<compile_context>
chip_gen: v6e
topology: v6e:2x2x1
jax: 0.10.0
libtpu: 0.0.40
codegen_flags: <defaults>
</compile_context>

<pallas_src>
import functools

import jax
import jax.numpy as jnp
from jax.experimental import pallas as pl
from jax.experimental.pallas import tpu as pltpu

KH = 5  # all four convs are 5x5, stride 1


# ----------------------------------------------------------------------------
# Pallas kernels
# ----------------------------------------------------------------------------

def _enc_conv_kernel(x_ref, w1_ref, b1_ref, w2_ref, b2_ref, feat_ref,
                     xcat1_ref, xcat2_ref, *, B, H):
    """Fused encConv1+ReLU+encConv2+ReLU.

    x_ref    : (B*H, W*Cin)  images stacked as 2-D slabs, channel minor (NHWC rows)
    w1_ref   : (KH*W*Cin,  Wo1*16) banded conv1 weight (bf16)
    w2_ref   : (KH*Wo1*16, Wo2*32) banded conv2 weight (bf16)
    feat_ref : (B, Ho2, Wo2*32)    per-image NHWC feature slabs (bf16)
    xcat*_ref: f32 VMEM staging buffers holding the kh-stacked matmul operand.

    Batch is folded into the matmul M dimension ("tall slab"); output rows whose
    window straddles two images are computed but never read back.
    """
    Ho1 = H - KH + 1
    Ho2 = Ho1 - KH + 1
    R1 = B * H - (KH - 1)
    R2 = R1 - (KH - 1)
    WC = x_ref.shape[1]
    W1C = w1_ref.shape[1]

    x = x_ref[...]
    for kh in range(KH):                       # static unroll: build (R1, KH*W*Cin)
        xcat1_ref[:, kh * WC:(kh + 1) * WC] = x[kh:kh + R1, :]
    y1 = jnp.dot(xcat1_ref[...].astype(jnp.bfloat16), w1_ref[...],
                 preferred_element_type=jnp.float32)
    y1 = jnp.maximum(y1 + b1_ref[...], 0.0)    # (R1, Wo1*16)

    for kh in range(KH):                       # build (R2, KH*Wo1*16)
        xcat2_ref[:, kh * W1C:(kh + 1) * W1C] = y1[kh:kh + R2, :]
    y2 = jnp.dot(xcat2_ref[...].astype(jnp.bfloat16), w2_ref[...],
                 preferred_element_type=jnp.float32)
    y2 = jnp.maximum(y2 + b2_ref[...], 0.0)    # (R2, Wo2*32)

    for b in range(B):                         # keep only valid (per-image) rows
        feat_ref[b] = y2[b * H:b * H + Ho2, :].astype(feat_ref.dtype)


def _fc_kernel(feat_ref, wenc_ref, benc_ref, eps_ref, wdec_ref, bdec_ref,
               mu_ref, logvar_ref, h_ref, *, Z):
    """Fused encFC1 + encFC2 + reparameterize + decFC1(+ReLU) in one kernel."""
    feat = feat_ref[...]                                         # bf16 (B, F)
    y = jnp.dot(feat, wenc_ref[...], preferred_element_type=jnp.float32)
    y = y + benc_ref[...]                                        # (B, 2Z) f32
    mu = y[:, :Z]
    logvar = y[:, Z:]
    # TODO(synk): torch.randn_like draws eps internally; eps is a deterministic input here.
    z = mu + jnp.exp(logvar * 0.5) * eps_ref[...]
    h = jnp.dot(z.astype(jnp.bfloat16), wdec_ref[...],
                preferred_element_type=jnp.float32)
    h = jnp.maximum(h + bdec_ref[...], 0.0)
    mu_ref[...] = mu
    logvar_ref[...] = logvar
    h_ref[...] = h.astype(h_ref.dtype)


def _dec_conv_kernel(h_ref, w1_ref, b1_ref, w2_ref, b2_ref, o_ref,
                     pad1_ref, xcat1_ref, pad2_ref, xcat2_ref, *, B, Hf, Wf):
    """Fused decConv1(+ReLU)+decConv2(+sigmoid).

    ConvTranspose2d (stride 1, pad 0) == zero-pad by KH-1 then VALID conv with the
    spatially flipped kernel.  Padding is done in zeroed VMEM scratch slabs.
    """
    P = KH - 1
    C1, C2 = 32, 16
    H1, W1 = Hf + P, Wf + P
    H2 = H1 + P                                 # == original image height H
    Hp1, Wp1 = Hf + 2 * P, Wf + 2 * P
    Hp2, Wp2 = H1 + 2 * P, W1 + 2 * P
    R1 = B * Hp1 - (KH - 1)
    R2 = B * Hp2 - (KH - 1)
    WpC1 = Wp1 * C1
    WpC2 = Wp2 * C2

    # zero-pad h (B, Hf, Wf*32) into per-image blocks of a tall zeroed slab
    pad1_ref[...] = jnp.zeros_like(pad1_ref)
    for b in range(B):
        pad1_ref[b * Hp1 + P:b * Hp1 + P + Hf, P * C1:(P + Wf) * C1] = (
            h_ref[b].astype(pad1_ref.dtype))
    slab1 = pad1_ref[...]
    for kh in range(KH):
        xcat1_ref[:, kh * WpC1:(kh + 1) * WpC1] = slab1[kh:kh + R1, :]
    y1 = jnp.dot(xcat1_ref[...].astype(jnp.bfloat16), w1_ref[...],
                 preferred_element_type=jnp.float32)
    y1 = jnp.maximum(y1 + b1_ref[...], 0.0)     # (R1, W1*16)

    pad2_ref[...] = jnp.zeros_like(pad2_ref)
    for b in range(B):
        pad2_ref[b * Hp2 + P:b * Hp2 + P + H1, P * C2:(P + W1) * C2] = (
            y1[b * Hp1:b * Hp1 + H1, :])
    slab2 = pad2_ref[...]
    for kh in range(KH):
        xcat2_ref[:, kh * WpC2:(kh + 1) * WpC2] = slab2[kh:kh + R2, :]
    y2 = jnp.dot(xcat2_ref[...].astype(jnp.bfloat16), w2_ref[...],
                 preferred_element_type=jnp.float32)
    y2 = jax.nn.sigmoid(y2 + b2_ref[...])       # (R2, W*Cout) f32

    for b in range(B):
        o_ref[b] = y2[b * Hp2:b * Hp2 + H2, :].astype(o_ref.dtype)


# ----------------------------------------------------------------------------
# One-time weight preparation (hoisted out of the forward pass)
# ----------------------------------------------------------------------------

def prepare_params(params, img_channels, H, W):
    """Banded conv weights (bf16), flipped transposed-conv kernels, and FC weights
    permuted so kernels consume NHWC-flat activations directly (no transposes)."""
    Hf, Wf = H - 2 * (KH - 1), W - 2 * (KH - 1)
    F = 32 * Hf * Wf
    Wo1 = W - KH + 1
    W1 = Wf + KH - 1

    def banded(w_hwio, w_in):
        # banded[(kh*W+w)*Cin+ci, wo*Cout+co] = w[kh, w-wo, ci, co] if 0<=w-wo<KW else 0
        KHh, KW, Cin, Cout = w_hwio.shape
        Wo = w_in - KW + 1
        qw = jnp.arange(w_in)[:, None]
        q = jnp.arange(Wo)[None, :]
        kw_idx = qw - q
        valid = (kw_idx >= 0) & (kw_idx < KW)
        kw_c = jnp.clip(kw_idx, 0, KW - 1)
        b = w_hwio[:, kw_c, :, :] * valid[None, :, :, None, None].astype(w_hwio.dtype)
        b = jnp.transpose(b, (0, 1, 3, 2, 4))            # (KH, W, Cin, Wo, Cout)
        return b.reshape(KHh * w_in * Cin, Wo * Cout)

    p = {}
    w1 = jnp.transpose(params["encConv1_w"], (2, 3, 1, 0))          # OIHW -> HWIO
    p["enc1_w"] = banded(w1, W).astype(jnp.bfloat16)
    p["enc1_b"] = jnp.tile(params["encConv1_b"], (Wo1,)).reshape(1, -1)
    w2 = jnp.transpose(params["encConv2_w"], (2, 3, 1, 0))
    p["enc2_w"] = banded(w2, Wo1).astype(jnp.bfloat16)
    p["enc2_b"] = jnp.tile(params["encConv2_b"], (Wf,)).reshape(1, -1)

    # permutation: NHWC-flat feature index -> PyTorch NCHW-flat index
    idx = jnp.arange(F)
    c = idx % 32
    w_ = (idx // 32) % Wf
    h_ = idx // (32 * Wf)
    perm = (c * Hf + h_) * Wf + w_
    wcat = jnp.concatenate([params["encFC1_w"].T, params["encFC2_w"].T], axis=1)
    p["fc_enc_w"] = wcat[perm, :].astype(jnp.bfloat16)               # (F, 2Z)
    p["fc_enc_b"] = jnp.concatenate(
        [params["encFC1_b"], params["encFC2_b"]]).reshape(1, -1)
    p["fc_dec_w"] = params["decFC1_w"].T[:, perm].astype(jnp.bfloat16)   # (Z, F)
    p["fc_dec_b"] = params["decFC1_b"][perm].reshape(1, -1)

    # ConvTranspose2d == full conv with spatially flipped kernel ((in,out,kh,kw)->HWIO)
    wt1 = jnp.transpose(params["decConv1_w"][:, :, ::-1, ::-1], (2, 3, 0, 1))
    p["dec1_w"] = banded(wt1, Wf + 2 * (KH - 1)).astype(jnp.bfloat16)
    p["dec1_b"] = jnp.tile(params["decConv1_b"], (W1,)).reshape(1, -1)
    wt2 = jnp.transpose(params["decConv2_w"][:, :, ::-1, ::-1], (2, 3, 0, 1))
    p["dec2_w"] = banded(wt2, W1 + 2 * (KH - 1)).astype(jnp.bfloat16)
    p["dec2_b"] = jnp.tile(params["decConv2_b"], (W,)).reshape(1, -1)
    return p


# ----------------------------------------------------------------------------
# VAE forward (3 pallas_calls)
# ----------------------------------------------------------------------------

def vae_forward(prepped, x_nchw, eps):
    B, C, H, W = x_nchw.shape
    P = KH - 1
    Hf, Wf = H - 2 * P, W - 2 * P
    Wo1 = W - P
    F = 32 * Hf * Wf
    Z = eps.shape[1]
    arb = pltpu.CompilerParams(dimension_semantics=("arbitrary",))

    # ---- fused encoder convs (batch folded into matmul M) ----
    x_slab = jnp.transpose(x_nchw, (0, 2, 3, 1)).reshape(B * H, W * C)
    R1 = B * H - P
    R2 = R1 - P
    feat = pl.pallas_call(
        functools.partial(_enc_conv_kernel, B=B, H=H),
        out_shape=jax.ShapeDtypeStruct((B, Hf, Wf * 32), jnp.bfloat16),
        grid=(1,),
        in_specs=[
            pl.BlockSpec((B * H, W * C), lambda i: (0, 0)),
            pl.BlockSpec(prepped["enc1_w"].shape, lambda i: (0, 0)),
            pl.BlockSpec(prepped["enc1_b"].shape, lambda i: (0, 0)),
            pl.BlockSpec(prepped["enc2_w"].shape, lambda i: (0, 0)),
            pl.BlockSpec(prepped["enc2_b"].shape, lambda i: (0, 0)),
        ],
        out_specs=pl.BlockSpec((B, Hf, Wf * 32), lambda i: (0, 0, 0)),
        scratch_shapes=[
            pltpu.VMEM((R1, KH * W * C), jnp.float32),
            pltpu.VMEM((R2, KH * Wo1 * 16), jnp.float32),
        ],
        compiler_params=arb,
    )(x_slab, prepped["enc1_w"], prepped["enc1_b"],
      prepped["enc2_w"], prepped["enc2_b"]).reshape(B, F)

    # ---- fused encFC1/encFC2 + reparameterize + decFC1 ----
    mu, logvar, h = pl.pallas_call(
        functools.partial(_fc_kernel, Z=Z),
        out_shape=(jax.ShapeDtypeStruct((B, Z), jnp.float32),
                   jax.ShapeDtypeStruct((B, Z), jnp.float32),
                   jax.ShapeDtypeStruct((B, F), jnp.bfloat16)),
        grid=(1,),
        in_specs=[
            pl.BlockSpec((B, F), lambda i: (0, 0)),
            pl.BlockSpec((F, 2 * Z), lambda i: (0, 0)),
            pl.BlockSpec((1, 2 * Z), lambda i: (0, 0)),
            pl.BlockSpec((B, Z), lambda i: (0, 0)),
            pl.BlockSpec((Z, F), lambda i: (0, 0)),
            pl.BlockSpec((1, F), lambda i: (0, 0)),
        ],
        out_specs=(pl.BlockSpec((B, Z), lambda i: (0, 0)),
                   pl.BlockSpec((B, Z), lambda i: (0, 0)),
                   pl.BlockSpec((B, F), lambda i: (0, 0))),
        compiler_params=arb,
    )(feat, prepped["fc_enc_w"], prepped["fc_enc_b"], eps,
      prepped["fc_dec_w"], prepped["fc_dec_b"])

    # ---- fused decoder transposed convs (in-kernel zero padding) ----
    h3 = h.reshape(B, Hf, Wf * 32)
    H1, W1 = Hf + P, Wf + P
    Hp1, Wp1 = Hf + 2 * P, Wf + 2 * P
    Hp2, Wp2 = H1 + 2 * P, W1 + 2 * P
    Rd1 = B * Hp1 - P
    Rd2 = B * Hp2 - P
    out3 = pl.pallas_call(
        functools.partial(_dec_conv_kernel, B=B, Hf=Hf, Wf=Wf),
        out_shape=jax.ShapeDtypeStruct((B, H, W * C), jnp.float32),
        grid=(1,),
        in_specs=[
            pl.BlockSpec((B, Hf, Wf * 32), lambda i: (0, 0, 0)),
            pl.BlockSpec(prepped["dec1_w"].shape, lambda i: (0, 0)),
            pl.BlockSpec(prepped["dec1_b"].shape, lambda i: (0, 0)),
            pl.BlockSpec(prepped["dec2_w"].shape, lambda i: (0, 0)),
            pl.BlockSpec(prepped["dec2_b"].shape, lambda i: (0, 0)),
        ],
        out_specs=pl.BlockSpec((B, H, W * C), lambda i: (0, 0, 0)),
        scratch_shapes=[
            pltpu.VMEM((B * Hp1, Wp1 * 32), jnp.float32),
            pltpu.VMEM((Rd1, KH * Wp1 * 32), jnp.float32),
            pltpu.VMEM((B * Hp2, Wp2 * 16), jnp.float32),
            pltpu.VMEM((Rd2, KH * Wp2 * 16), jnp.float32),
        ],
        compiler_params=arb,
    )(h3, prepped["dec1_w"], prepped["dec1_b"],
      prepped["dec2_w"], prepped["dec2_b"])
    out = jnp.transpose(out3.reshape(B, H, W, C), (0, 3, 1, 2))      # back to NCHW
    return out, mu, logvar


# ----------------------------------------------------------------------------
# Parameters (deterministic synthetic init, PyTorch shapes) + pure-JAX reference
# ----------------------------------------------------------------------------

def init_params(key, img_channels, H, W, z_dim):
    feature_dim = 32 * (H - 8) * (W - 8)
    ks = jax.random.split(key, 14)

    def nrm(k, shape, scale):
        return (scale * jax.random.normal(k, shape)).astype(jnp.float32)

    params = {
        "encConv1_w": nrm(ks[0], (16, img_channels, 5, 5), 0.05),   # Conv2d OIHW
        "encConv1_b": nrm(ks[1], (16,), 0.05),
        "encConv2_w": nrm(ks[2], (32, 16, 5, 5), 0.05),
        "encConv2_b": nrm(ks[3], (32,), 0.05),
        "encFC1_w": nrm(ks[4], (z_dim, feature_dim), 0.02),          # Linear (out, in)
        "encFC1_b": nrm(ks[5], (z_dim,), 0.02),
        "encFC2_w": nrm(ks[6], (z_dim, feature_dim), 0.02),
        "encFC2_b": nrm(ks[7], (z_dim,), 0.02),
        "decFC1_w": nrm(ks[8], (feature_dim, z_dim), 0.02),
        "decFC1_b": nrm(ks[9], (feature_dim,), 0.02),
        "decConv1_w": nrm(ks[10], (32, 16, 5, 5), 0.05),             # ConvTranspose2d (in,out,kh,kw)
        "decConv1_b": nrm(ks[11], (16,), 0.05),
        "decConv2_w": nrm(ks[12], (16, img_channels, 5, 5), 0.05),
        "decConv2_b": nrm(ks[13], (img_channels,), 0.05),
    }
    return params, feature_dim


def ref_forward(params, x, eps):
    def conv(x, w, b):
        y = jax.lax.conv_general_dilated(
            x, w, (1, 1), "VALID", dimension_numbers=("NCHW", "OIHW", "NCHW"))
        return y + b[None, :, None, None]

    def conv_t(x, w, b):
        wflip = jnp.transpose(w[:, :, ::-1, ::-1], (1, 0, 2, 3))
        xp = jnp.pad(x, ((0, 0), (0, 0), (4, 4), (4, 4)))
        y = jax.lax.conv_general_dilated(
            xp, wflip, (1, 1), "VALID", dimension_numbers=("NCHW", "OIHW", "NCHW"))
        return y + b[None, :, None, None]

    B, C, H, W = x.shape
    h = jax.nn.relu(conv(x, params["encConv1_w"], params["encConv1_b"]))
    h = jax.nn.relu(conv(h, params["encConv2_w"], params["encConv2_b"]))
    feat = h.reshape(B, -1)
    mu = feat @ params["encFC1_w"].T + params["encFC1_b"]
    logvar = feat @ params["encFC2_w"].T + params["encFC2_b"]
    z = mu + jnp.exp(logvar / 2) * eps
    d = jax.nn.relu(z @ params["decFC1_w"].T + params["decFC1_b"])
    d = d.reshape(B, 32, H - 8, W - 8)
    d = jax.nn.relu(conv_t(d, params["decConv1_w"], params["decConv1_b"]))
    out = jax.nn.sigmoid(conv_t(d, params["decConv2_w"], params["decConv2_b"]))
    return out, mu, logvar


if __name__ == "__main__":
    key = jax.random.PRNGKey(0)
    k_params, k_x, k_eps = jax.random.split(key, 3)

    B, C, H, W = 2, 3, 16, 16          # small shapes; featureDim = 32*8*8 = 2048
    z_dim = 128

    params, feature_dim = init_params(k_params, C, H, W, z_dim)
    prepped = prepare_params(params, C, H, W)   # one-time weight prep, hoisted
    x = jax.random.normal(k_x, (B, C, H, W), dtype=jnp.float32)
    eps = jax.random.normal(k_eps, (B, z_dim), dtype=jnp.float32)

    out, mu, logvar = jax.jit(vae_forward)(prepped, x, eps)
    jax.block_until_ready((out, mu, logvar))

    assert out.shape == (B, C, H, W)
    assert mu.shape == (B, z_dim) and logvar.shape == (B, z_dim)

    r_out, r_mu, r_logvar = jax.jit(ref_forward)(params, x, eps)
    # bf16 MXU operands (f32 accumulation) => compare against the f32 reference
    # with a correspondingly looser tolerance.
    assert jnp.allclose(out, r_out, atol=2e-2, rtol=2e-2)
    assert jnp.allclose(mu, r_mu, atol=2e-2, rtol=2e-2)
    assert jnp.allclose(logvar, r_logvar, atol=2e-2, rtol=2e-2)

    print("KERNEL_OK")
</pallas_src>

<mosaic_0001>
module attributes {stable_mosaic.version = 11 : i64} {
  func.func @_fc_kernel(%arg0: i32, %arg1: memref<2x2048xbf16, #tpu.memory_space<vmem>>, %arg2: memref<2048x256xbf16, #tpu.memory_space<vmem>>, %arg3: memref<1x256xf32, #tpu.memory_space<vmem>>, %arg4: memref<2x128xf32, #tpu.memory_space<vmem>>, %arg5: memref<128x2048xbf16, #tpu.memory_space<vmem>>, %arg6: memref<1x2048xf32, #tpu.memory_space<vmem>>, %arg7: memref<2x128xf32, #tpu.memory_space<vmem>>, %arg8: memref<2x128xf32, #tpu.memory_space<vmem>>, %arg9: memref<2x2048xbf16, #tpu.memory_space<vmem>>) attributes {dimension_semantics = [#tpu.dimension_semantics<arbitrary>], iteration_bounds = array<i64: 1>, scalar_prefetch = 0 : i64, scratch_operands = 0 : i64, tpu.core_type = #tpu.core_type<tc>, window_params = [{pipeline_mode = #tpu.pipeline_mode<synchronous>, transform_indices = @transform_0, window_bounds = array<i64: 2, 2048>}, {pipeline_mode = #tpu.pipeline_mode<synchronous>, transform_indices = @transform_1, window_bounds = array<i64: 2048, 256>}, {pipeline_mode = #tpu.pipeline_mode<synchronous>, transform_indices = @transform_2, window_bounds = array<i64: 1, 256>}, {pipeline_mode = #tpu.pipeline_mode<synchronous>, transform_indices = @transform_3, window_bounds = array<i64: 2, 128>}, {pipeline_mode = #tpu.pipeline_mode<synchronous>, transform_indices = @transform_4, window_bounds = array<i64: 128, 2048>}, {pipeline_mode = #tpu.pipeline_mode<synchronous>, transform_indices = @transform_5, window_bounds = array<i64: 1, 2048>}, {pipeline_mode = #tpu.pipeline_mode<synchronous>, transform_indices = @transform_6, window_bounds = array<i64: 2, 128>}, {pipeline_mode = #tpu.pipeline_mode<synchronous>, transform_indices = @transform_7, window_bounds = array<i64: 2, 128>}, {pipeline_mode = #tpu.pipeline_mode<synchronous>, transform_indices = @transform_8, window_bounds = array<i64: 2, 2048>}]} {
    %c0 = arith.constant 0 : index
    %c0_0 = arith.constant 0 : index
    %0 = vector.load %arg1[%c0, %c0_0] : memref<2x2048xbf16, #tpu.memory_space<vmem>>, vector<2x2048xbf16>
    %c0_1 = arith.constant 0 : index
    %c0_2 = arith.constant 0 : index
    %1 = vector.load %arg2[%c0_1, %c0_2] : memref<2048x256xbf16, #tpu.memory_space<vmem>>, vector<2048x256xbf16>
    %cst = arith.constant dense<0.000000e+00> : vector<2x256xf32>
    %2 = tpu.matmul %0, %1, %cst {dimension_numbers = #tpu.dot_dimension_numbers<[1], [0], [0], [1], [0, 0, 1, 1], [], []>} : vector<2x2048xbf16>, vector<2048x256xbf16>, vector<2x256xf32> -> vector<2x256xf32>
    %c0_3 = arith.constant 0 : index
    %c0_4 = arith.constant 0 : index
    %3 = vector.load %arg3[%c0_3, %c0_4] : memref<1x256xf32, #tpu.memory_space<vmem>>, vector<1x256xf32>
    %4 = vector.broadcast %3 : vector<1x256xf32> to vector<2x256xf32>
    %5 = arith.addf %2, %4 : vector<2x256xf32>
    %6 = vector.extract_strided_slice %5 {offsets = [0, 0], sizes = [2, 128], strides = [1, 1]} : vector<2x256xf32> to vector<2x128xf32>
    %7 = vector.extract_strided_slice %5 {offsets = [0, 128], sizes = [2, 128], strides = [1, 1]} : vector<2x256xf32> to vector<2x128xf32>
    %cst_5 = arith.constant 5.000000e-01 : f32
    %8 = vector.broadcast %cst_5 : f32 to vector<2x128xf32>
    %9 = arith.mulf %7, %8 : vector<2x128xf32>
    %10 = math.exp %9 : vector<2x128xf32>
    %c0_6 = arith.constant 0 : index
    %c0_7 = arith.constant 0 : index
    %11 = vector.load %arg4[%c0_6, %c0_7] : memref<2x128xf32, #tpu.memory_space<vmem>>, vector<2x128xf32>
    %12 = arith.mulf %10, %11 : vector<2x128xf32>
    %13 = arith.addf %6, %12 : vector<2x128xf32>
    %14 = arith.truncf %13 : vector<2x128xf32> to vector<2x128xbf16>
    %c0_8 = arith.constant 0 : index
    %c0_9 = arith.constant 0 : index
    %15 = vector.load %arg5[%c0_8, %c0_9] : memref<128x2048xbf16, #tpu.memory_space<vmem>>, vector<128x2048xbf16>
    %cst_10 = arith.constant dense<0.000000e+00> : vector<2x2048xf32>
    %16 = tpu.matmul %14, %15, %cst_10 {dimension_numbers = #tpu.dot_dimension_numbers<[1], [0], [0], [1], [0, 0, 1, 1], [], []>} : vector<2x128xbf16>, vector<128x2048xbf16>, vector<2x2048xf32> -> vector<2x2048xf32>
    %c0_11 = arith.constant 0 : index
    %c0_12 = arith.constant 0 : index
    %17 = vector.load %arg6[%c0_11, %c0_12] : memref<1x2048xf32, #tpu.memory_space<vmem>>, vector<1x2048xf32>
    %18 = vector.broadcast %17 : vector<1x2048xf32> to vector<2x2048xf32>
    %19 = arith.addf %16, %18 : vector<2x2048xf32>
    %cst_13 = arith.constant 0.000000e+00 : f32
    %20 = vector.broadcast %cst_13 : f32 to vector<2x2048xf32>
    %21 = arith.maximumf %19, %20 : vector<2x2048xf32>
    %c0_14 = arith.constant 0 : index
    %c0_15 = arith.constant 0 : index
    %22 = vector.load %arg7[%c0_14, %c0_15] : memref<2x128xf32, #tpu.memory_space<vmem>>, vector<2x128xf32>
    tpu.vector_store %arg7[%c0_14, %c0_15], %6 {strides = array<i32>} : memref<2x128xf32, #tpu.memory_space<vmem>>, vector<2x128xf32>,
    %c0_16 = arith.constant 0 : index
    %c0_17 = arith.constant 0 : index
    %23 = vector.load %arg8[%c0_16, %c0_17] : memref<2x128xf32, #tpu.memory_space<vmem>>, vector<2x128xf32>
    tpu.vector_store %arg8[%c0_16, %c0_17], %7 {strides = array<i32>} : memref<2x128xf32, #tpu.memory_space<vmem>>, vector<2x128xf32>,
    %24 = arith.truncf %21 : vector<2x2048xf32> to vector<2x2048xbf16>
    %c0_18 = arith.constant 0 : index
    %c0_19 = arith.constant 0 : index
    %25 = vector.load %arg9[%c0_18, %c0_19] : memref<2x2048xbf16, #tpu.memory_space<vmem>>, vector<2x2048xbf16>
    tpu.vector_store %arg9[%c0_18, %c0_19], %24 {strides = array<i32>} : memref<2x2048xbf16, #tpu.memory_space<vmem>>, vector<2x2048xbf16>,
    return
  }
  func.func @transform_0(%arg0: i32) -> (i32, i32) {
    %c0_i32 = arith.constant 0 : i32
    %c0_i32_0 = arith.constant 0 : i32
    %c0_i32_1 = arith.constant 0 : i32
    return %c0_i32, %c0_i32_0 : i32, i32
  }
  func.func @transform_1(%arg0: i32) -> (i32, i32) {
    %c0_i32 = arith.constant 0 : i32
    %c0_i32_0 = arith.constant 0 : i32
    %c0_i32_1 = arith.constant 0 : i32
    return %c0_i32, %c0_i32_0 : i32, i32
  }
  func.func @transform_2(%arg0: i32) -> (i32, i32) {
    %c0_i32 = arith.constant 0 : i32
    %c0_i32_0 = arith.constant 0 : i32
    %c0_i32_1 = arith.constant 0 : i32
    return %c0_i32, %c0_i32_0 : i32, i32
  }
  func.func @transform_3(%arg0: i32) -> (i32, i32) {
    %c0_i32 = arith.constant 0 : i32
    %c0_i32_0 = arith.constant 0 : i32
    %c0_i32_1 = arith.constant 0 : i32
    return %c0_i32, %c0_i32_0 : i32, i32
  }
  func.func @transform_4(%arg0: i32) -> (i32, i32) {
    %c0_i32 = arith.constant 0 : i32
    %c0_i32_0 = arith.constant 0 : i32
    %c0_i32_1 = arith.constant 0 : i32
    return %c0_i32, %c0_i32_0 : i32, i32
  }
  func.func @transform_5(%arg0: i32) -> (i32, i32) {
    %c0_i32 = arith.constant 0 : i32
    %c0_i32_0 = arith.constant 0 : i32
    %c0_i32_1 = arith.constant 0 : i32
    return %c0_i32, %c0_i32_0 : i32, i32
  }
  func.func @transform_6(%arg0: i32) -> (i32, i32) {
    %c0_i32 = arith.constant 0 : i32
    %c0_i32_0 = arith.constant 0 : i32
    %c0_i32_1 = arith.constant 0 : i32
    return %c0_i32, %c0_i32_0 : i32, i32
  }
  func.func @transform_7(%arg0: i32) -> (i32, i32) {
    %c0_i32 = arith.constant 0 : i32
    %c0_i32_0 = arith.constant 0 : i32
    %c0_i32_1 = arith.constant 0 : i32
    return %c0_i32, %c0_i32_0 : i32, i32
  }
  func.func @transform_8(%arg0: i32) -> (i32, i32) {
    %c0_i32 = arith.constant 0 : i32
    %c0_i32_0 = arith.constant 0 : i32
    %c0_i32_1 = arith.constant 0 : i32
    return %c0_i32, %c0_i32_0 : i32, i32
  }
}

module attributes {stable_mosaic.version = 11 : i64} {
  func.func @_enc_conv_kernel(%arg0: i32, %arg1: memref<32x48xf32, #tpu.memory_space<vmem>>, %arg2: memref<240x192xbf16, #tpu.memory_space<vmem>>, %arg3: memref<1x192xf32, #tpu.memory_space<vmem>>, %arg4: memref<960x256xbf16, #tpu.memory_space<vmem>>, %arg5: memref<1x256xf32, #tpu.memory_space<vmem>>, %arg6: memref<2x8x256xbf16, #tpu.memory_space<vmem>>, %arg7: memref<28x240xf32, #tpu.memory_space<vmem>>, %arg8: memref<24x960xf32, #tpu.memory_space<vmem>>) attributes {dimension_semantics = [#tpu.dimension_semantics<arbitrary>], iteration_bounds = array<i64: 1>, scalar_prefetch = 0 : i64, scratch_operands = 2 : i64, tpu.core_type = #tpu.core_type<tc>, window_params = [{pipeline_mode = #tpu.pipeline_mode<synchronous>, transform_indices = @transform_0, window_bounds = array<i64: 32, 48>}, {pipeline_mode = #tpu.pipeline_mode<synchronous>, transform_indices = @transform_1, window_bounds = array<i64: 240, 192>}, {pipeline_mode = #tpu.pipeline_mode<synchronous>, transform_indices = @transform_2, window_bounds = array<i64: 1, 192>}, {pipeline_mode = #tpu.pipeline_mode<synchronous>, transform_indices = @transform_3, window_bounds = array<i64: 960, 256>}, {pipeline_mode = #tpu.pipeline_mode<synchronous>, transform_indices = @transform_4, window_bounds = array<i64: 1, 256>}, {pipeline_mode = #tpu.pipeline_mode<synchronous>, transform_indices = @transform_5, window_bounds = array<i64: 2, 8, 256>}]} {
    %c0 = arith.constant 0 : index
    %c0_0 = arith.constant 0 : index
    %0 = vector.load %arg1[%c0, %c0_0] : memref<32x48xf32, #tpu.memory_space<vmem>>, vector<32x48xf32>
    %1 = vector.extract_strided_slice %0 {offsets = [0, 0], sizes = [28, 48], strides = [1, 1]} : vector<32x48xf32> to vector<28x48xf32>
    %c0_1 = arith.constant 0 : index
    %c0_2 = arith.constant 0 : index
    %2 = vector.load %arg7[%c0_1, %c0_2] : memref<28x240xf32, #tpu.memory_space<vmem>>, vector<28x48xf32>
    tpu.vector_store %arg7[%c0_1, %c0_2], %1 {strides = array<i32>} : memref<28x240xf32, #tpu.memory_space<vmem>>, vector<28x48xf32>,
    %3 = vector.extract_strided_slice %0 {offsets = [1, 0], sizes = [28, 48], strides = [1, 1]} : vector<32x48xf32> to vector<28x48xf32>
    %c0_3 = arith.constant 0 : index
    %c48 = arith.constant 48 : index
    %4 = vector.load %arg7[%c0_3, %c48] : memref<28x240xf32, #tpu.memory_space<vmem>>, vector<28x48xf32>
    tpu.vector_store %arg7[%c0_3, %c48], %3 {strides = array<i32>} : memref<28x240xf32, #tpu.memory_space<vmem>>, vector<28x48xf32>,
    %5 = vector.extract_strided_slice %0 {offsets = [2, 0], sizes = [28, 48], strides = [1, 1]} : vector<32x48xf32> to vector<28x48xf32>
    %c0_4 = arith.constant 0 : index
    %c96 = arith.constant 96 : index
    %6 = vector.load %arg7[%c0_4, %c96] : memref<28x240xf32, #tpu.memory_space<vmem>>, vector<28x48xf32>
    tpu.vector_store %arg7[%c0_4, %c96], %5 {strides = array<i32>} : memref<28x240xf32, #tpu.memory_space<vmem>>, vector<28x48xf32>,
    %7 = vector.extract_strided_slice %0 {offsets = [3, 0], sizes = [28, 48], strides = [1, 1]} : vector<32x48xf32> to vector<28x48xf32>
    %c0_5 = arith.constant 0 : index
    %c144 = arith.constant 144 : index
    %8 = vector.load %arg7[%c0_5, %c144] : memref<28x240xf32, #tpu.memory_space<vmem>>, vector<28x48xf32>
    tpu.vector_store %arg7[%c0_5, %c144], %7 {strides = array<i32>} : memref<28x240xf32, #tpu.memory_space<vmem>>, vector<28x48xf32>,
    %9 = vector.extract_strided_slice %0 {offsets = [4, 0], sizes = [28, 48], strides = [1, 1]} : vector<32x48xf32> to vector<28x48xf32>
    %c0_6 = arith.constant 0 : index
    %c192 = arith.constant 192 : index
    %10 = vector.load %arg7[%c0_6, %c192] : memref<28x240xf32, #tpu.memory_space<vmem>>, vector<28x48xf32>
    tpu.vector_store %arg7[%c0_6, %c192], %9 {strides = array<i32>} : memref<28x240xf32, #tpu.memory_space<vmem>>, vector<28x48xf32>,
    %c0_7 = arith.constant 0 : index
    %c0_8 = arith.constant 0 : index
    %11 = vector.load %arg7[%c0_7, %c0_8] : memref<28x240xf32, #tpu.memory_space<vmem>>, vector<28x240xf32>
    %12 = arith.truncf %11 : vector<28x240xf32> to vector<28x240xbf16>
    %c0_9 = arith.constant 0 : index
    %c0_10 = arith.constant 0 : index
    %13 = vector.load %arg2[%c0_9, %c0_10] : memref<240x192xbf16, #tpu.memory_space<vmem>>, vector<240x192xbf16>
    %cst = arith.constant dense<0.000000e+00> : vector<28x192xf32>
    %14 = tpu.matmul %12, %13, %cst {dimension_numbers = #tpu.dot_dimension_numbers<[1], [0], [0], [1], [0, 0, 1, 1], [], []>} : vector<28x240xbf16>, vector<240x192xbf16>, vector<28x192xf32> -> vector<28x192xf32>
    %c0_11 = arith.constant 0 : index
    %c0_12 = arith.constant 0 : index
    %15 = vector.load %arg3[%c0_11, %c0_12] : memref<1x192xf32, #tpu.memory_space<vmem>>, vector<1x192xf32>
    %16 = vector.broadcast %15 : vector<1x192xf32> to vector<28x192xf32>
    %17 = arith.addf %14, %16 : vector<28x192xf32>
    %cst_13 = arith.constant 0.000000e+00 : f32
    %18 = vector.broadcast %cst_13 : f32 to vector<28x192xf32>
    %19 = arith.maximumf %17, %18 : vector<28x192xf32>
    %20 = vector.extract_strided_slice %19 {offsets = [0, 0], sizes = [24, 192], strides = [1, 1]} : vector<28x192xf32> to vector<24x192xf32>
    %c0_14 = arith.constant 0 : index
    %c0_15 = arith.constant 0 : index
    %21 = vector.load %arg8[%c0_14, %c0_15] : memref<24x960xf32, #tpu.memory_space<vmem>>, vector<24x192xf32>
    tpu.vector_store %arg8[%c0_14, %c0_15], %20 {strides = array<i32>} : memref<24x960xf32, #tpu.memory_space<vmem>>, vector<24x192xf32>,
    %22 = vector.extract_strided_slice %19 {offsets = [1, 0], sizes = [24, 192], strides = [1, 1]} : vector<28x192xf32> to vector<24x192xf32>
    %c0_16 = arith.constant 0 : index
    %c192_17 = arith.constant 192 : index
    %23 = vector.load %arg8[%c0_16, %c192_17] : memref<24x960xf32, #tpu.memory_space<vmem>>, vector<24x192xf32>
    tpu.vector_store %arg8[%c0_16, %c192_17], %22 {strides = array<i32>} : memref<24x960xf32, #tpu.memory_space<vmem>>, vector<24x192xf32>,
    %24 = vector.extract_strided_slice %19 {offsets = [2, 0], sizes = [24, 192], strides = [1, 1]} : vector<28x192xf32> to vector<24x192xf32>
    %c0_18 = arith.constant 0 : index
    %c384 = arith.constant 384 : index
    %25 = vector.load %arg8[%c0_18, %c384] : memref<24x960xf32, #tpu.memory_space<vmem>>, vector<24x192xf32>
    tpu.vector_store %arg8[%c0_18, %c384], %24 {strides = array<i32>} : memref<24x960xf32, #tpu.memory_space<vmem>>, vector<24x192xf32>,
    %26 = vector.extract_strided_slice %19 {offsets = [3, 0], sizes = [24, 192], strides = [1, 1]} : vector<28x192xf32> to vector<24x192xf32>
    %c0_19 = arith.constant 0 : index
    %c576 = arith.constant 576 : index
    %27 = vector.load %arg8[%c0_19, %c576] : memref<24x960xf32, #tpu.memory_space<vmem>>, vector<24x192xf32>
    tpu.vector_store %arg8[%c0_19, %c576], %26 {strides = array<i32>} : memref<24x960xf32, #tpu.memory_space<vmem>>, vector<24x192xf32>,
    %28 = vector.extract_strided_slice %19 {offsets = [4, 0], sizes = [24, 192], strides = [1, 1]} : vector<28x192xf32> to vector<24x192xf32>
    %c0_20 = arith.constant 0 : index
    %c768 = arith.constant 768 : index
    %29 = vector.load %arg8[%c0_20, %c768] : memref<24x960xf32, #tpu.memory_space<vmem>>, vector<24x192xf32>
    tpu.vector_store %arg8[%c0_20, %c768], %28 {strides = array<i32>} : memref<24x960xf32, #tpu.memory_space<vmem>>, vector<24x192xf32>,
    %c0_21 = arith.constant 0 : index
    %c0_22 = arith.constant 0 : index
    %30 = vector.load %arg8[%c0_21, %c0_22] : memref<24x960xf32, #tpu.memory_space<vmem>>, vector<24x960xf32>
    %31 = arith.truncf %30 : vector<24x960xf32> to vector<24x960xbf16>
    %c0_23 = arith.constant 0 : index
    %c0_24 = arith.constant 0 : index
    %32 = vector.load %arg4[%c0_23, %c0_24] : memref<960x256xbf16, #tpu.memory_space<vmem>>, vector<960x256xbf16>
    %cst_25 = arith.constant dense<0.000000e+00> : vector<24x256xf32>
    %33 = tpu.matmul %31, %32, %cst_25 {dimension_numbers = #tpu.dot_dimension_numbers<[1], [0], [0], [1], [0, 0, 1, 1], [], []>} : vector<24x960xbf16>, vector<960x256xbf16>, vector<24x256xf32> -> vector<24x256xf32>
    %c0_26 = arith.constant 0 : index
    %c0_27 = arith.constant 0 : index
    %34 = vector.load %arg5[%c0_26, %c0_27] : memref<1x256xf32, #tpu.memory_space<vmem>>, vector<1x256xf32>
    %35 = vector.broadcast %34 : vector<1x256xf32> to vector<24x256xf32>
    %36 = arith.addf %33, %35 : vector<24x256xf32>
    %cst_28 = arith.constant 0.000000e+00 : f32
    %37 = vector.broadcast %cst_28 : f32 to vector<24x256xf32>
    %38 = arith.maximumf %36, %37 : vector<24x256xf32>
    %39 = vector.extract_strided_slice %38 {offsets = [0, 0], sizes = [8, 256], strides = [1, 1]} : vector<24x256xf32> to vector<8x256xf32>
    %40 = arith.truncf %39 : vector<8x256xf32> to vector<8x256xbf16>
    %c0_29 = arith.constant 0 : index
    %c0_30 = arith.constant 0 : index
    %c0_31 = arith.constant 0 : index
    %41 = vector.load %arg6[%c0_29, %c0_30, %c0_31] : memref<2x8x256xbf16, #tpu.memory_space<vmem>>, vector<1x8x256xbf16>
    %42 = vector.shape_cast %41 : vector<1x8x256xbf16> to vector<8x256xbf16>
    %43 = vector.shape_cast %40 : vector<8x256xbf16> to vector<1x8x256xbf16>
    tpu.vector_store %arg6[%c0_29, %c0_30, %c0_31], %43 {strides = array<i32>} : memref<2x8x256xbf16, #tpu.memory_space<vmem>>, vector<1x8x256xbf16>,
    %44 = vector.extract_strided_slice %38 {offsets = [16, 0], sizes = [8, 256], strides = [1, 1]} : vector<24x256xf32> to vector<8x256xf32>
    %45 = arith.truncf %44 : vector<8x256xf32> to vector<8x256xbf16>
    %c1 = arith.constant 1 : index
    %c0_32 = arith.constant 0 : index
    %c0_33 = arith.constant 0 : index
    %46 = vector.load %arg6[%c1, %c0_32, %c0_33] : memref<2x8x256xbf16, #tpu.memory_space<vmem>>, vector<1x8x256xbf16>
    %47 = vector.shape_cast %46 : vector<1x8x256xbf16> to vector<8x256xbf16>
    %48 = vector.shape_cast %45 : vector<8x256xbf16> to vector<1x8x256xbf16>
    tpu.vector_store %arg6[%c1, %c0_32, %c0_33], %48 {strides = array<i32>} : memref<2x8x256xbf16, #tpu.memory_space<vmem>>, vector<1x8x256xbf16>,
    return
  }
  func.func @transform_0(%arg0: i32) -> (i32, i32) {
    %c0_i32 = arith.constant 0 : i32
    %c0_i32_0 = arith.constant 0 : i32
    %c0_i32_1 = arith.constant 0 : i32
    return %c0_i32, %c0_i32_0 : i32, i32
  }
  func.func @transform_1(%arg0: i32) -> (i32, i32) {
    %c0_i32 = arith.constant 0 : i32
    %c0_i32_0 = arith.constant 0 : i32
    %c0_i32_1 = arith.constant 0 : i32
    return %c0_i32, %c0_i32_0 : i32, i32
  }
  func.func @transform_2(%arg0: i32) -> (i32, i32) {
    %c0_i32 = arith.constant 0 : i32
    %c0_i32_0 = arith.constant 0 : i32
    %c0_i32_1 = arith.constant 0 : i32
    return %c0_i32, %c0_i32_0 : i32, i32
  }
  func.func @transform_3(%arg0: i32) -> (i32, i32) {
    %c0_i32 = arith.constant 0 : i32
    %c0_i32_0 = arith.constant 0 : i32
    %c0_i32_1 = arith.constant 0 : i32
    return %c0_i32, %c0_i32_0 : i32, i32
  }
  func.func @transform_4(%arg0: i32) -> (i32, i32) {
    %c0_i32 = arith.constant 0 : i32
    %c0_i32_0 = arith.constant 0 : i32
    %c0_i32_1 = arith.constant 0 : i32
    return %c0_i32, %c0_i32_0 : i32, i32
  }
  func.func @transform_5(%arg0: i32) -> (i32, i32, i32) {
    %c0_i32 = arith.constant 0 : i32
    %c0_i32_0 = arith.constant 0 : i32
    %c0_i32_1 = arith.constant 0 : i32
    %c0_i32_2 = arith.constant 0 : i32
    return %c0_i32, %c0_i32_0, %c0_i32_1 : i32, i32, i32
  }
}

module attributes {stable_mosaic.version = 11 : i64} {
  func.func @_dec_conv_kernel(%arg0: i32, %arg1: memref<2x8x256xbf16, #tpu.memory_space<vmem>>, %arg2: memref<2560x192xbf16, #tpu.memory_space<vmem>>, %arg3: memref<1x192xf32, #tpu.memory_space<vmem>>, %arg4: memref<1600x48xbf16, #tpu.memory_space<vmem>>, %arg5: memref<1x48xf32, #tpu.memory_space<vmem>>, %arg6: memref<2x16x48xf32, #tpu.memory_space<vmem>>, %arg7: memref<32x512xf32, #tpu.memory_space<vmem>>, %arg8: memref<28x2560xf32, #tpu.memory_space<vmem>>, %arg9: memref<40x320xf32, #tpu.memory_space<vmem>>, %arg10: memref<36x1600xf32, #tpu.memory_space<vmem>>) attributes {dimension_semantics = [#tpu.dimension_semantics<arbitrary>], iteration_bounds = array<i64: 1>, scalar_prefetch = 0 : i64, scratch_operands = 4 : i64, tpu.core_type = #tpu.core_type<tc>, window_params = [{pipeline_mode = #tpu.pipeline_mode<synchronous>, transform_indices = @transform_0, window_bounds = array<i64: 2, 8, 256>}, {pipeline_mode = #tpu.pipeline_mode<synchronous>, transform_indices = @transform_1, window_bounds = array<i64: 2560, 192>}, {pipeline_mode = #tpu.pipeline_mode<synchronous>, transform_indices = @transform_2, window_bounds = array<i64: 1, 192>}, {pipeline_mode = #tpu.pipeline_mode<synchronous>, transform_indices = @transform_3, window_bounds = array<i64: 1600, 48>}, {pipeline_mode = #tpu.pipeline_mode<synchronous>, transform_indices = @transform_4, window_bounds = array<i64: 1, 48>}, {pipeline_mode = #tpu.pipeline_mode<synchronous>, transform_indices = @transform_5, window_bounds = array<i64: 2, 16, 48>}]} {
    %cst = arith.constant 0.000000e+00 : f32
    %0 = vector.broadcast %cst : f32 to vector<32x512xf32>
    %c0 = arith.constant 0 : index
    %c0_0 = arith.constant 0 : index
    %1 = vector.load %arg7[%c0, %c0_0] : memref<32x512xf32, #tpu.memory_space<vmem>>, vector<32x512xf32>
    tpu.vector_store %arg7[%c0, %c0_0], %0 {strides = array<i32>} : memref<32x512xf32, #tpu.memory_space<vmem>>, vector<32x512xf32>,
    %c0_1 = arith.constant 0 : index
    %c0_2 = arith.constant 0 : index
    %c0_3 = arith.constant 0 : index
    %2 = vector.load %arg1[%c0_1, %c0_2, %c0_3] : memref<2x8x256xbf16, #tpu.memory_space<vmem>>, vector<1x8x256xbf16>
    %3 = vector.shape_cast %2 : vector<1x8x256xbf16> to vector<8x256xbf16>
    %4 = arith.extf %3 : vector<8x256xbf16> to vector<8x256xf32>
    %c4 = arith.constant 4 : index
    %c128 = arith.constant 128 : index
    %5 = vector.load %arg7[%c4, %c128] : memref<32x512xf32, #tpu.memory_space<vmem>>, vector<8x256xf32>
    tpu.vector_store %arg7[%c4, %c128], %4 {strides = array<i32>} : memref<32x512xf32, #tpu.memory_space<vmem>>, vector<8x256xf32>,
    %c1 = arith.constant 1 : index
    %c0_4 = arith.constant 0 : index
    %c0_5 = arith.constant 0 : index
    %6 = vector.load %arg1[%c1, %c0_4, %c0_5] : memref<2x8x256xbf16, #tpu.memory_space<vmem>>, vector<1x8x256xbf16>
    %7 = vector.shape_cast %6 : vector<1x8x256xbf16> to vector<8x256xbf16>
    %8 = arith.extf %7 : vector<8x256xbf16> to vector<8x256xf32>
    %c20 = arith.constant 20 : index
    %c128_6 = arith.constant 128 : index
    %9 = vector.load %arg7[%c20, %c128_6] : memref<32x512xf32, #tpu.memory_space<vmem>>, vector<8x256xf32>
    tpu.vector_store %arg7[%c20, %c128_6], %8 {strides = array<i32>} : memref<32x512xf32, #tpu.memory_space<vmem>>, vector<8x256xf32>,
    %c0_7 = arith.constant 0 : index
    %c0_8 = arith.constant 0 : index
    %10 = vector.load %arg7[%c0_7, %c0_8] : memref<32x512xf32, #tpu.memory_space<vmem>>, vector<32x512xf32>
    %11 = vector.extract_strided_slice %10 {offsets = [0, 0], sizes = [28, 512], strides = [1, 1]} : vector<32x512xf32> to vector<28x512xf32>
    %c0_9 = arith.constant 0 : index
    %c0_10 = arith.constant 0 : index
    %12 = vector.load %arg8[%c0_9, %c0_10] : memref<28x2560xf32, #tpu.memory_space<vmem>>, vector<28x512xf32>
    tpu.vector_store %arg8[%c0_9, %c0_10], %11 {strides = array<i32>} : memref<28x2560xf32, #tpu.memory_space<vmem>>, vector<28x512xf32>,
    %13 = vector.extract_strided_slice %10 {offsets = [1, 0], sizes = [28, 512], strides = [1, 1]} : vector<32x512xf32> to vector<28x512xf32>
    %c0_11 = arith.constant 0 : index
    %c512 = arith.constant 512 : index
    %14 = vector.load %arg8[%c0_11, %c512] : memref<28x2560xf32, #tpu.memory_space<vmem>>, vector<28x512xf32>
    tpu.vector_store %arg8[%c0_11, %c512], %13 {strides = array<i32>} : memref<28x2560xf32, #tpu.memory_space<vmem>>, vector<28x512xf32>,
    %15 = vector.extract_strided_slice %10 {offsets = [2, 0], sizes = [28, 512], strides = [1, 1]} : vector<32x512xf32> to vector<28x512xf32>
    %c0_12 = arith.constant 0 : index
    %c1024 = arith.constant 1024 : index
    %16 = vector.load %arg8[%c0_12, %c1024] : memref<28x2560xf32, #tpu.memory_space<vmem>>, vector<28x512xf32>
    tpu.vector_store %arg8[%c0_12, %c1024], %15 {strides = array<i32>} : memref<28x2560xf32, #tpu.memory_space<vmem>>, vector<28x512xf32>,
    %17 = vector.extract_strided_slice %10 {offsets = [3, 0], sizes = [28, 512], strides = [1, 1]} : vector<32x512xf32> to vector<28x512xf32>
    %c0_13 = arith.constant 0 : index
    %c1536 = arith.constant 1536 : index
    %18 = vector.load %arg8[%c0_13, %c1536] : memref<28x2560xf32, #tpu.memory_space<vmem>>, vector<28x512xf32>
    tpu.vector_store %arg8[%c0_13, %c1536], %17 {strides = array<i32>} : memref<28x2560xf32, #tpu.memory_space<vmem>>, vector<28x512xf32>,
    %19 = vector.extract_strided_slice %10 {offsets = [4, 0], sizes = [28, 512], strides = [1, 1]} : vector<32x512xf32> to vector<28x512xf32>
    %c0_14 = arith.constant 0 : index
    %c2048 = arith.constant 2048 : index
    %20 = vector.load %arg8[%c0_14, %c2048] : memref<28x2560xf32, #tpu.memory_space<vmem>>, vector<28x512xf32>
    tpu.vector_store %arg8[%c0_14, %c2048], %19 {strides = array<i32>} : memref<28x2560xf32, #tpu.memory_space<vmem>>, vector<28x512xf32>,
    %c0_15 = arith.constant 0 : index
    %c0_16 = arith.constant 0 : index
    %21 = vector.load %arg8[%c0_15, %c0_16] : memref<28x2560xf32, #tpu.memory_space<vmem>>, vector<28x2560xf32>
    %22 = arith.truncf %21 : vector<28x2560xf32> to vector<28x2560xbf16>
    %c0_17 = arith.constant 0 : index
    %c0_18 = arith.constant 0 : index
    %23 = vector.load %arg2[%c0_17, %c0_18] : memref<2560x192xbf16, #tpu.memory_space<vmem>>, vector<2560x192xbf16>
    %cst_19 = arith.constant dense<0.000000e+00> : vector<28x192xf32>
    %24 = tpu.matmul %22, %23, %cst_19 {dimension_numbers = #tpu.dot_dimension_numbers<[1], [0], [0], [1], [0, 0, 1, 1], [], []>} : vector<28x2560xbf16>, vector<2560x192xbf16>, vector<28x192xf32> -> vector<28x192xf32>
    %c0_20 = arith.constant 0 : index
    %c0_21 = arith.constant 0 : index
    %25 = vector.load %arg3[%c0_20, %c0_21] : memref<1x192xf32, #tpu.memory_space<vmem>>, vector<1x192xf32>
    %26 = vector.broadcast %25 : vector<1x192xf32> to vector<28x192xf32>
    %27 = arith.addf %24, %26 : vector<28x192xf32>
    %cst_22 = arith.constant 0.000000e+00 : f32
    %28 = vector.broadcast %cst_22 : f32 to vector<28x192xf32>
    %29 = arith.maximumf %27, %28 : vector<28x192xf32>
    %cst_23 = arith.constant 0.000000e+00 : f32
    %30 = vector.broadcast %cst_23 : f32 to vector<40x320xf32>
    %c0_24 = arith.constant 0 : index
    %c0_25 = arith.constant 0 : index
    %31 = vector.load %arg9[%c0_24, %c0_25] : memref<40x320xf32, #tpu.memory_space<vmem>>, vector<40x320xf32>
    tpu.vector_store %arg9[%c0_24, %c0_25], %30 {strides = array<i32>} : memref<40x320xf32, #tpu.memory_space<vmem>>, vector<40x320xf32>,
    %32 = vector.extract_strided_slice %29 {offsets = [0, 0], sizes = [12, 192], strides = [1, 1]} : vector<28x192xf32> to vector<12x192xf32>
    %c4_26 = arith.constant 4 : index
    %c64 = arith.constant 64 : index
    %33 = vector.load %arg9[%c4_26, %c64] : memref<40x320xf32, #tpu.memory_space<vmem>>, vector<12x192xf32>
    tpu.vector_store %arg9[%c4_26, %c64], %32 {strides = array<i32>} : memref<40x320xf32, #tpu.memory_space<vmem>>, vector<12x192xf32>,
    %34 = vector.extract_strided_slice %29 {offsets = [16, 0], sizes = [12, 192], strides = [1, 1]} : vector<28x192xf32> to vector<12x192xf32>
    %c24 = arith.constant 24 : index
    %c64_27 = arith.constant 64 : index
    %35 = vector.load %arg9[%c24, %c64_27] : memref<40x320xf32, #tpu.memory_space<vmem>>, vector<12x192xf32>
    tpu.vector_store %arg9[%c24, %c64_27], %34 {strides = array<i32>} : memref<40x320xf32, #tpu.memory_space<vmem>>, vector<12x192xf32>,
    %c0_28 = arith.constant 0 : index
    %c0_29 = arith.constant 0 : index
    %36 = vector.load %arg9[%c0_28, %c0_29] : memref<40x320xf32, #tpu.memory_space<vmem>>, vector<40x320xf32>
    %37 = vector.extract_strided_slice %36 {offsets = [0, 0], sizes = [36, 320], strides = [1, 1]} : vector<40x320xf32> to vector<36x320xf32>
    %c0_30 = arith.constant 0 : index
    %c0_31 = arith.constant 0 : index
    %38 = vector.load %arg10[%c0_30, %c0_31] : memref<36x1600xf32, #tpu.memory_space<vmem>>, vector<36x320xf32>
    tpu.vector_store %arg10[%c0_30, %c0_31], %37 {strides = array<i32>} : memref<36x1600xf32, #tpu.memory_space<vmem>>, vector<36x320xf32>,
    %39 = vector.extract_strided_slice %36 {offsets = [1, 0], sizes = [36, 320], strides = [1, 1]} : vector<40x320xf32> to vector<36x320xf32>
    %c0_32 = arith.constant 0 : index
    %c320 = arith.constant 320 : index
    %40 = vector.load %arg10[%c0_32, %c320] : memref<36x1600xf32, #tpu.memory_space<vmem>>, vector<36x320xf32>
    tpu.vector_store %arg10[%c0_32, %c320], %39 {strides = array<i32>} : memref<36x1600xf32, #tpu.memory_space<vmem>>, vector<36x320xf32>,
    %41 = vector.extract_strided_slice %36 {offsets = [2, 0], sizes = [36, 320], strides = [1, 1]} : vector<40x320xf32> to vector<36x320xf32>
    %c0_33 = arith.constant 0 : index
    %c640 = arith.constant 640 : index
    %42 = vector.load %arg10[%c0_33, %c640] : memref<36x1600xf32, #tpu.memory_space<vmem>>, vector<36x320xf32>
    tpu.vector_store %arg10[%c0_33, %c640], %41 {strides = array<i32>} : memref<36x1600xf32, #tpu.memory_space<vmem>>, vector<36x320xf32>,
    %43 = vector.extract_strided_slice %36 {offsets = [3, 0], sizes = [36, 320], strides = [1, 1]} : vector<40x320xf32> to vector<36x320xf32>
    %c0_34 = arith.constant 0 : index
    %c960 = arith.constant 960 : index
    %44 = vector.load %arg10[%c0_34, %c960] : memref<36x1600xf32, #tpu.memory_space<vmem>>, vector<36x320xf32>
    tpu.vector_store %arg10[%c0_34, %c960], %43 {strides = array<i32>} : memref<36x1600xf32, #tpu.memory_space<vmem>>, vector<36x320xf32>,
    %45 = vector.extract_strided_slice %36 {offsets = [4, 0], sizes = [36, 320], strides = [1, 1]} : vector<40x320xf32> to vector<36x320xf32>
    %c0_35 = arith.constant 0 : index
    %c1280 = arith.constant 1280 : index
    %46 = vector.load %arg10[%c0_35, %c1280] : memref<36x1600xf32, #tpu.memory_space<vmem>>, vector<36x320xf32>
    tpu.vector_store %arg10[%c0_35, %c1280], %45 {strides = array<i32>} : memref<36x1600xf32, #tpu.memory_space<vmem>>, vector<36x320xf32>,
    %c0_36 = arith.constant 0 : index
    %c0_37 = arith.constant 0 : index
    %47 = vector.load %arg10[%c0_36, %c0_37] : memref<36x1600xf32, #tpu.memory_space<vmem>>, vector<36x1600xf32>
    %48 = arith.truncf %47 : vector<36x1600xf32> to vector<36x1600xbf16>
    %c0_38 = arith.constant 0 : index
    %c0_39 = arith.constant 0 : index
    %49 = vector.load %arg4[%c0_38, %c0_39] : memref<1600x48xbf16, #tpu.memory_space<vmem>>, vector<1600x48xbf16>
    %cst_40 = arith.constant dense<0.000000e+00> : vector<36x48xf32>
    %50 = tpu.matmul %48, %49, %cst_40 {dimension_numbers = #tpu.dot_dimension_numbers<[1], [0], [0], [1], [0, 0, 1, 1], [], []>} : vector<36x1600xbf16>, vector<1600x48xbf16>, vector<36x48xf32> -> vector<36x48xf32>
    %c0_41 = arith.constant 0 : index
    %c0_42 = arith.constant 0 : index
    %51 = vector.load %arg5[%c0_41, %c0_42] : memref<1x48xf32, #tpu.memory_space<vmem>>, vector<1x48xf32>
    %52 = vector.broadcast %51 : vector<1x48xf32> to vector<36x48xf32>
    %53 = arith.addf %50, %52 : vector<36x48xf32>
    %54 = arith.negf %53 : vector<36x48xf32>
    %55 = math.exp %54 : vector<36x48xf32>
    %cst_43 = arith.constant 1.000000e+00 : f32
    %56 = vector.broadcast %cst_43 : f32 to vector<36x48xf32>
    %57 = arith.addf %56, %55 : vector<36x48xf32>
    %58 = arith.divf %56, %57 : vector<36x48xf32>
    %59 = vector.extract_strided_slice %58 {offsets = [0, 0], sizes = [16, 48], strides = [1, 1]} : vector<36x48xf32> to vector<16x48xf32>
    %c0_44 = arith.constant 0 : index
    %c0_45 = arith.constant 0 : index
    %c0_46 = arith.constant 0 : index
    %60 = vector.load %arg6[%c0_44, %c0_45, %c0_46] : memref<2x16x48xf32, #tpu.memory_space<vmem>>, vector<1x16x48xf32>
    %61 = vector.shape_cast %60 : vector<1x16x48xf32> to vector<16x48xf32>
    %62 = vector.shape_cast %59 : vector<16x48xf32> to vector<1x16x48xf32>
    tpu.vector_store %arg6[%c0_44, %c0_45, %c0_46], %62 {strides = array<i32>} : memref<2x16x48xf32, #tpu.memory_space<vmem>>, vector<1x16x48xf32>,
    %63 = vector.extract_strided_slice %58 {offsets = [20, 0], sizes = [16, 48], strides = [1, 1]} : vector<36x48xf32> to vector<16x48xf32>
    %c1_47 = arith.constant 1 : index
    %c0_48 = arith.constant 0 : index
    %c0_49 = arith.constant 0 : index
    %64 = vector.load %arg6[%c1_47, %c0_48, %c0_49] : memref<2x16x48xf32, #tpu.memory_space<vmem>>, vector<1x16x48xf32>
    %65 = vector.shape_cast %64 : vector<1x16x48xf32> to vector<16x48xf32>
    %66 = vector.shape_cast %63 : vector<16x48xf32> to vector<1x16x48xf32>
    tpu.vector_store %arg6[%c1_47, %c0_48, %c0_49], %66 {strides = array<i32>} : memref<2x16x48xf32, #tpu.memory_space<vmem>>, vector<1x16x48xf32>,
    return
  }
  func.func @transform_0(%arg0: i32) -> (i32, i32, i32) {
    %c0_i32 = arith.constant 0 : i32
    %c0_i32_0 = arith.constant 0 : i32
    %c0_i32_1 = arith.constant 0 : i32
    %c0_i32_2 = arith.constant 0 : i32
    return %c0_i32, %c0_i32_0, %c0_i32_1 : i32, i32, i32
  }
  func.func @transform_1(%arg0: i32) -> (i32, i32) {
    %c0_i32 = arith.constant 0 : i32
    %c0_i32_0 = arith.constant 0 : i32
    %c0_i32_1 = arith.constant 0 : i32
    return %c0_i32, %c0_i32_0 : i32, i32
  }
  func.func @transform_2(%arg0: i32) -> (i32, i32) {
    %c0_i32 = arith.constant 0 : i32
    %c0_i32_0 = arith.constant 0 : i32
    %c0_i32_1 = arith.constant 0 : i32
    return %c0_i32, %c0_i32_0 : i32, i32
  }
  func.func @transform_3(%arg0: i32) -> (i32, i32) {
    %c0_i32 = arith.constant 0 : i32
    %c0_i32_0 = arith.constant 0 : i32
    %c0_i32_1 = arith.constant 0 : i32
    return %c0_i32, %c0_i32_0 : i32, i32
  }
  func.func @transform_4(%arg0: i32) -> (i32, i32) {
    %c0_i32 = arith.constant 0 : i32
    %c0_i32_0 = arith.constant 0 : i32
    %c0_i32_1 = arith.constant 0 : i32
    return %c0_i32, %c0_i32_0 : i32, i32
  }
  func.func @transform_5(%arg0: i32) -> (i32, i32, i32) {
    %c0_i32 = arith.constant 0 : i32
    %c0_i32_0 = arith.constant 0 : i32
    %c0_i32_1 = arith.constant 0 : i32
    %c0_i32_2 = arith.constant 0 : i32
    return %c0_i32, %c0_i32_0, %c0_i32_1 : i32, i32, i32
  }
}

</mosaic_0001>

<bundles_post_ra>
// kernel: vae_forward.3
= control target key start
LH: loop header
LB: loop body
LE: loop exit
PB: predicated region body
PF: predicated region fallthrough
CT: control target
= control target key end

     0   :  { %10 = vsyncpa [#allocation5], 0  ;;  %s2547_s0 = inlined_call_operand.vmem [shape: f32[32,48], index: 0, kind: input, shape index: {}]   ;;  %s2548_s1 = inlined_call_operand.vmem [shape: bf16[240,192], index: 1, kind: input, shape index: {}]   ;;  %s2549_s2 = inlined_call_operand.hbm [shape: f32[1,192], index: 2, kind: input, shape index: {}]   ;;  %s2550_s3 = inlined_call_operand.hbm [shape: bf16[960,256], index: 3, kind: input, shape index: {}]   ;;  %s2551_s4 = inlined_call_operand.hbm [shape: f32[1,256], index: 4, kind: input, shape index: {}]   ;;  %s2552_s5 = inlined_call_operand.vmem [shape: bf16[2,8,256], index: 5, kind: output, shape index: {}]  }
   0x1   :  { %11 = vsyncpa [#allocation7], 0  ;;  %s2082_s18 = smov [#allocation6]  }
   0x2   :  { %s31_s19 = sshll.u32 %s2082_s18, 4  ;;  %s32_s19 = int_to_ptr.vmem [resolvable:$true] %s31_s19 }
   0x3   :  { %s2026_s20 = scalar_lea.vmem %s32_s19, 15360  ;;  %p2031_p1 = scmp.lt.s32.totalorder %s32_s19, %s32_s19 }
   0x4   :  { %p2027_p0 = scmp.ne.s32.totalorder %s32_s19, %s2026_s20  ;;  %p2032_p2 = scmp.lt.s32.totalorder %s2026_s20, %s2026_s20 }
   0x6   :  { %p2033_p3 = por %p2032_p2, %p2031_p1 }
   0x8   :  { %p2034_p4 = pnand %p2033_p3, %p2027_p0 }
   0xa   :  { %2037 = shalt.err (!%p2034_p4)
}
   0xb   :  { %s2083_s21 = smov 128   ;;  %s2084_s22 = smov 8  }
   0xc   :  { %37 = dma.hbm_to_vmem [thread:$0]  %s2550_s3, 15360, %s32_s19, [#allocation7], %s2083_s21, %s2083_s21, %s2084_s22  }
   0xd   :  { %s2085_s25 = smov [#allocation4]   ;;  %s2086_s27 = smov [#allocation8]  }
   0xe   :  { %s22_s26 = sshll.u32 %s2085_s25, 4  ;;  %s44_s28 = sshll.u32 %s2086_s27, 4  ;;  %s23_s26 = int_to_ptr.vmem [resolvable:$true] %s22_s26  ;;  %s45_s28 = int_to_ptr.vmem [resolvable:$true] %s44_s28 }
   0xf   :  { %s2046_s29 = scalar_lea.vmem %s23_s26, 32  ;;  %p2051_p6 = scmp.lt.s32.totalorder %s23_s26, %s23_s26 }
  0x10   :  { %p2047_p5 = scmp.ne.s32.totalorder %s23_s26, %s2046_s29  ;;  %p2052_p7 = scmp.lt.s32.totalorder %s2046_s29, %s2046_s29 }
  0x12   :  { %p2053_p8 = por %p2052_p7, %p2051_p6 }
  0x14   :  { %p2054_p9 = pnand %p2053_p8, %p2047_p5 }
  0x16   :  { %2057 = shalt.err (!%p2054_p9)
}
  0x17   :  { %25 = dma.hbm_to_vmem [thread:$0]  %s2549_s2, 32, %s23_s26, [#allocation5]  }
  0x18   :  { %s2066_s7 = scalar_lea.vmem %s45_s28, 32  ;;  %p2071_p11 = scmp.lt.s32.totalorder %s45_s28, %s45_s28 }
  0x19   :  { %p2067_p10 = scmp.ne.s32.totalorder %s45_s28, %s2066_s7  ;;  %p2072_p12 = scmp.lt.s32.totalorder %s2066_s7, %s2066_s7 }
  0x1b   :  { %p2073_p13 = por %p2072_p12, %p2071_p11 }
  0x1d   :  { %p2074_p0 = pnand %p2073_p13, %p2067_p10 }
  0x1f   :  { %2077 = shalt.err (!%p2074_p0)
}
  0x20   :  { %47 = dma.hbm_to_vmem [thread:$0]  %s2551_s4, 32, %s45_s28, [#allocation7]  }
  0x21   :  { %2078 = dma.done.wait [#allocation5], 32  }
  0x22   :  { %2079 = vsyncadd [#allocation5], 4294967264 }
  0x23   :  { %2080 = dma.done.wait [#allocation7], 15392  }
  0x24   :  { %2081 = vsyncadd [#allocation7], 4294951904  ;;  %vm62_vm0 = vcmask 392192   ;;  %v58_v0 = vld [vmem:[%s2547_s0] sm:$0xff]  ;;  %v59_v1 = vld [vmem:[%s2547_s0 + $0x8] sm:$0xff]  ;;  %vm130_vm1 = vcmask 1044480  }
  0x25   :  { %vm98_vm2 = vcmask 1045504   ;;  %v2139_v2 = vld [vmem:[%s2547_s0 + $0x10] sm:$0xff]  ;;  %v131_v3 = vrot.slane %v58_v0, 3  ;;  %v132_v4 = vrot.slane %v59_v1, 3  ;;  %v99_v5 = vrot.slane %v58_v0, 2  ;;  %64 = vst.msk [vmem:[#allocation2 + $0x10] sm:$0xff] %vm62_vm0, %v59_v1 }
  0x26   :  { %v100_v6 = vrot.slane %v59_v1, 2  ;;  %63 = vst.msk [vmem:[#allocation2] sm:$0xff] %vm62_vm0, %v58_v0  ;;  %65 = vst.msk [vmem:[#allocation2 + $0x20] sm:$0xff] %vm62_vm0, %v2139_v2  ;;  %v134_v7 = vrot.slane %v2139_v2, 3  ;;  %v102_v8 = vrot.slane %v2139_v2, 2  ;;  %s2087_s17 = smov 16  }
  0x27   :  { %v133_v9 = vsel %vm130_vm1, %v131_v3, %v132_v4  ;;  %v1799_v11 = vld [vmem:[%s2548_s1 + $0x74] ss:$8 sps:$4 sm:$0xff]   ;;  %v1801_v12 = vld [vmem:[%s2548_s1 + $0x70] ss:$8 sps:$4 sm:$0xff]   ;;  %s2088_s18 = smov 96   ;;  %v74_v13 = vrot.slane %v59_v1, 1 }
  0x28   :  { %v101_v10 = vsel %vm98_vm2, %v99_v5, %v100_v6  ;;  %138 = vrot.lane.b32.xlu1 %v133_v9, %s2087_s17  ;;  %v1802_v14 = vld [vmem:[%s2548_s1 + $0x64] ss:$8 sps:$4 sm:$0xff]   ;;  %v135_v15 = vsel %vm130_vm1, %v132_v4, %v134_v7  ;;  %v103_v16 = vsel %vm98_vm2, %v100_v6, %v102_v8  ;;  %v76_v17 = vrot.slane %v2139_v2, 1  ;;  %393 = vmatprep.subr.bf16.mxu0 %v1799_v11  ;;  %v1804_v19 = vld [vmem:[%s2548_s1 + $0x60] ss:$8 sps:$4 sm:$0xff]   ;;  %v61_v26 = vld [vmem:[%s2547_s0 + $0x18] sm:$0xff] }
  0x29   :  { %106 = vrot.lane.b32.xlu0 %v101_v10, %s2088_s18  ;;  %v73_v18 = vrot.slane %v58_v0, 1  ;;  %vm72_vm3 = vcmask 1046528   ;;  %394 = vmatpush1.bf16.msra.mxu0 %v1801_v12  ;;  %v1805_v20 = vld [vmem:[%s2548_s1 + $0x54] ss:$8 sps:$4 sm:$0xff]   ;;  %v158_v21 = vrot.slane %v59_v1, 4  ;;  %v160_v24 = vrot.slane %v2139_v2, 4 }
  0x2a   :  { %395 = vmatprep.subr.bf16.mxu0 %v1802_v14  ;;  %v77_v22 = vsel %vm72_vm3, %v74_v13, %v76_v17  ;;  %v157_v25 = vrot.slane %v58_v0, 4  ;;  %vm156_vm4 = vcmask 1043456   ;;  %v1807_v27 = vld [vmem:[%s2548_s1 + $0x50] ss:$8 sps:$4 sm:$0xff]   ;;  %v1808_v28 = vld [vmem:[%s2548_s1 + $0x44] ss:$8 sps:$4 sm:$0xff]  }
  0x2b   :  { %v75_v23 = vsel %vm72_vm3, %v73_v18, %v74_v13  ;;  %s2089_s6 = smov 48   ;;  %v161_v29 = vsel %vm156_vm4, %v158_v21, %v160_v24  ;;  %v104_v31 = vrot.slane %v61_v26, 2  ;;  %vm66_vm5 = vcmask 388096   ;;  %v1810_v32 = vld [vmem:[%s2548_s1 + $0x40] ss:$8 sps:$4 sm:$0xff]   ;;  %s2090_s9 = smov 64  }
  0x2c   :  { %140 = vrot.lane.b32.xlu1 %v135_v15, %s2087_s17  ;;  %v159_v30 = vsel %vm156_vm4, %v157_v25, %v158_v21  ;;  %67 = vst.msk [vmem:[#allocation2 + $0x30] sm:$0xf] %vm66_vm5, %v61_v26  ;;  %v1811_v33 = vld [vmem:[%s2548_s1 + $0x34] ss:$8 sps:$4 sm:$0xff]   ;;  %v136_v35 = vrot.slane %v61_v26, 3  ;;  %v78_v39 = vrot.slane %v61_v26, 1 }
  0x2d   :  { %108 = vrot.lane.b32.xlu0 %v103_v16, %s2088_s18  ;;  %396 = vmatpush1.bf16.msra.mxu0 %v1804_v19  ;;  %v105_v34 = vsel %vm98_vm2, %v102_v8, %v104_v31  ;;  %v1813_v36 = vld [vmem:[%s2548_s1 + $0x30] ss:$8 sps:$4 sm:$0xff]   ;;  %v1814_v37 = vld [vmem:[%s2548_s1 + $0x24] ss:$8 sps:$4 sm:$0xff]   ;;  %v1816_v40 = vld [vmem:[%s2548_s1 + $0x20] ss:$8 sps:$4 sm:$0xff]  }
  0x2e   :  { %397 = vmatprep.subr.bf16.mxu0 %v1805_v20  ;;  %v137_v38 = vsel %vm130_vm1, %v134_v7, %v136_v35  ;;  %v1817_v41 = vld [vmem:[%s2548_s1 + $0x14] ss:$8 sps:$4 sm:$0xff]   ;;  %v1819_v42 = vld [vmem:[%s2548_s1 + $0x10] ss:$8 sps:$4 sm:$0xff]   ;;  %v79_v43 = vsel %vm72_vm3, %v76_v17, %v78_v39  ;;  %v162_v44 = vrot.slane %v61_v26, 4  ;;  %v218_v53 = vld [vmem:[%s2548_s1 + $0xc0] sm:$0xff] }
  0x2f   :  { %v1820_v45 = vld [vmem:[%s2548_s1 + $0x4] ss:$8 sps:$4 sm:$0xff]   ;;  %v1822_v46 = vld [vmem:[%s2548_s1] ss:$8 sps:$4 sm:$0xff]   ;;  %v220_v50 = vld [vmem:[%s2548_s1 + $0xd0] sm:$0xff]  ;;  %vm120_vm6 = vcmask 130048  }
  0x30   :  { %82 = vrot.lane.b32.xlu1 %v77_v22, %s2089_s6  ;;  %v163_v47 = vsel %vm156_vm4, %v160_v24, %v162_v44  ;;  %v1823_v48 = vld [vmem:[%s2548_s1 + $0xe4] ss:$8 sps:$4 sm:$0xff]   ;;  %v1825_v49 = vld [vmem:[%s2548_s1 + $0xe0] ss:$8 sps:$4 sm:$0xff]   ;;  %v221_v51 = vld [vmem:[%s2548_s1 + $0xd8] sm:$0xff]  ;;  %vm150_vm7 = vcmask 523392  }
  0x31   :  { %80 = vrot.lane.b32.xlu0 %v75_v23, %s2089_s6  ;;  %398 = vmatpush1.bf16.msra.mxu0 %v1807_v27  ;;  %v1826_v52 = vld [vmem:[%s2548_s1 + $0xd4] ss:$8 sps:$4 sm:$0xff]   ;;  %v219_v54 = vld [vmem:[%s2548_s1 + $0xc8] sm:$0xff]  ;;  %v1633_v56 = vcombine.low %v220_v50, %v221_v51  ;;  %v214_v61 = vld [vmem:[%s2548_s1 + $0xa0] sm:$0xff]  ;;  %vm92_vm8 = vcmask 785792   ;;  %vm118_vm9 = vcmask 1048320  }
  0x32   :  { %399 = vmatprep.subr.bf16.mxu0 %v1808_v28  ;;  %v1828_v55 = vld [vmem:[%s2548_s1 + $0xc4] ss:$8 sps:$4 sm:$0xff]   ;;  %v216_v57 = vld [vmem:[%s2548_s1 + $0xb0] sm:$0xff]  ;;  %v217_v58 = vld [vmem:[%s2548_s1 + $0xb8] sm:$0xff]  ;;  %v1631_v60 = vcombine.low %v218_v53, %v219_v54  ;;  %vm176_vm10 = vcmask 916992   ;;  %vm128_vm11 = vcmask 125952  }
  0x33   :  { %v1830_v59 = vld [vmem:[%s2548_s1 + $0xb4] ss:$8 sps:$4 sm:$0xff]   ;;  %v215_v62 = vld [vmem:[%s2548_s1 + $0xa8] sm:$0xff]  ;;  %v1629_v0 = vcombine.low %v216_v57, %v217_v58  ;;  %v210_v5 = vld [vmem:[%s2548_s1 + $0x80] sm:$0xff]  ;;  %vm154_vm12 = vcmask 519296   ;;  %vm386_vm13 = vcmask 916480  }
  0x34   :  { %166 = vrot.lane.b32.xlu1 %v161_v29, %s2090_s9  ;;  %v1832_v63 = vld [vmem:[%s2548_s1 + $0xa4] ss:$8 sps:$4 sm:$0xff]   ;;  %v212_v1 = vld [vmem:[%s2548_s1 + $0x90] sm:$0xff]  ;;  %v213_v2 = vld [vmem:[%s2548_s1 + $0x98] sm:$0xff]  ;;  %v1627_v4 = vcombine.low %v214_v61, %v215_v62  ;;  %vm96_vm14 = vcmask 781696   ;;  %vm126_vm15 = vcmask 1044224  }
  0x35   :  { %164 = vrot.lane.b32.xlu0 %v159_v30, %s2090_s9  ;;  %400 = vmatpush1.bf16.msra.mxu0 %v1810_v32  ;;  %v1834_v3 = vld [vmem:[%s2548_s1 + $0x94] ss:$8 sps:$4 sm:$0xff]   ;;  %v211_v6 = vld [vmem:[%s2548_s1 + $0x88] sm:$0xff]  ;;  %v1625_v8 = vcombine.low %v212_v1, %v213_v2  ;;  %vm180_vm0 = vcmask 912896   ;;  %vm455_vm5 = vcmask 523264  }
  0x36   :  { %401 = vmatprep.subr.bf16.mxu0 %v1811_v33  ;;  %v1836_v7 = vld [vmem:[%s2548_s1 + $0x84] ss:$8 sps:$4 sm:$0xff]   ;;  %v1623_v9 = vcombine.low %v210_v5, %v211_v6  ;;  %v1861_v50 = vld [vmem:[#allocation6 + $0x150] ss:$8 sps:$4 sm:$0xff]   ;;  %v1853_v53 = vld [vmem:[#allocation6 + $0x34] ss:$8 sps:$4 sm:$0xff]  }
  0x37   :  { %v1869_v51 = vld [vmem:[#allocation6 + $0x144] ss:$8 sps:$4 sm:$0xff]   ;;  %v1867_v54 = vld [vmem:[#allocation6 + $0x140] ss:$8 sps:$4 sm:$0xff]   ;;  %v1873_v58 = vld [vmem:[#allocation6 + $0x130] ss:$8 sps:$4 sm:$0xff]  }
  0x38   :  { %112 = vrot.lane.b32.xlu1 %v104_v31, %s2088_s18  ;;  %v1859_v57 = vld [vmem:[#allocation6 + $0x24] ss:$8 sps:$4 sm:$0xff]   ;;  %v1865_v61 = vld [vmem:[#allocation6 + $0x14] ss:$8 sps:$4 sm:$0xff]   ;;  %v1879_v62 = vld [vmem:[#allocation6 + $0x120] ss:$8 sps:$4 sm:$0xff]  }
  0x39   :  { %110 = vrot.lane.b32.xlu0 %v105_v34, %s2088_s18  ;;  %402 = vmatpush1.bf16.msra.mxu0 %v1813_v36  ;;  %v1871_v1 = vld [vmem:[#allocation6 + $0x4] ss:$8 sps:$4 sm:$0xff]   ;;  %v1885_v2 = vld [vmem:[#allocation6 + $0x110] ss:$8 sps:$4 sm:$0xff]   ;;  %v1877_v5 = vld [vmem:[#allocation6 + $0xf4] ss:$8 sps:$4 sm:$0xff]  }
  0x3a   :  { %403 = vmatprep.subr.bf16.mxu0 %v1814_v37  ;;  %v1891_v6 = vld [vmem:[#allocation6 + $0x100] ss:$8 sps:$4 sm:$0xff]  }
  0x3c   :  { %144 = vrot.lane.b32.xlu1 %v136_v35, %s2087_s17 }
  0x3d   :  { %142 = vrot.lane.b32.xlu0 %v137_v38, %s2087_s17  ;;  %404 = vmatpush1.bf16.msra.mxu0 %v1816_v40  ;;  %v1838_v38 = vld [vmem:[#allocation6 + $0x74] ss:$8 sps:$4 sm:$0xff]   ;;  %v1841_v40 = vld [vmem:[#allocation6 + $0x64] ss:$8 sps:$4 sm:$0xff]  }
  0x3e   :  { %405 = vmatprep.subr.bf16.mxu0 %v1817_v41  ;;  %1382 = vmatprep.subr.bf16.mxu1 %v1838_v38  ;;  %v1849_v41 = vld [vmem:[#allocation6 + $0x170] ss:$8 sps:$4 sm:$0xff]   ;;  %v1917_v38 = vld [vmem:[#allocation6 + $0x1c4] ss:$8 sps:$4 sm:$0xff]  }
  0x40   :  { %86 = vrot.lane.b32.xlu1 %v78_v39, %s2089_s6  ;;  %v1840_v39 = vld [vmem:[#allocation6 + $0x70] ss:$8 sps:$4 sm:$0xff]  }
  0x41   :  { %84 = vrot.lane.b32.xlu0 %v79_v43, %s2089_s6  ;;  %406 = vmatpush1.bf16.msra.mxu0 %v1819_v42  ;;  %v1851_v42 = vld [vmem:[#allocation6 + $0x174] ss:$8 sps:$4 sm:$0xff]   ;;  %v1843_v43 = vld [vmem:[#allocation6 + $0x60] ss:$8 sps:$4 sm:$0xff]  }
  0x42   :  { %407 = vmatprep.subr.bf16.mxu0 %v1820_v45  ;;  %1383 = vmatpush1.bf16.msra.mxu1 %v1840_v39  ;;  %v1857_v45 = vld [vmem:[#allocation6 + $0x164] ss:$8 sps:$4 sm:$0xff]  }
  0x43   :  { %1384 = vmatprep.subr.bf16.mxu1 %v1841_v40  ;;  %v1915_v40 = vld [vmem:[#allocation6 + $0x1c0] ss:$8 sps:$4 sm:$0xff]  }
  0x44   :  { %170 = vrot.lane.b32.xlu1 %v162_v44, %s2090_s9  ;;  %v1844_v44 = vld [vmem:[#allocation6 + $0x54] ss:$8 sps:$4 sm:$0xff]  }
  0x45   :  { %168 = vrot.lane.b32.xlu0 %v163_v47, %s2090_s9  ;;  %408 = vmatpush1.bf16.msra.mxu0 %v1822_v46  ;;  %v1855_v46 = vld [vmem:[#allocation6 + $0x160] ss:$8 sps:$4 sm:$0xff]   ;;  %v1863_v47 = vld [vmem:[#allocation6 + $0x154] ss:$8 sps:$4 sm:$0xff]  }
  0x46   :  { %411 = vmatprep.subr.bf16.mxu0 %v1823_v48  ;;  %1385 = vmatpush1.bf16.msra.mxu1 %v1843_v43  ;;  %v1846_v48 = vld [vmem:[#allocation6 + $0x50] ss:$8 sps:$4 sm:$0xff]   ;;  %v1912_v43 = vld [vmem:[#allocation6 + $0xa0] ss:$8 sps:$4 sm:$0xff]  }
  0x47   :  { %1386 = vmatprep.subr.bf16.mxu1 %v1844_v44 }
  0x49   :  { %412 = vmatpush2.bf16.msra.mxu0 %v1825_v49  ;;  %v1847_v49 = vld [vmem:[#allocation6 + $0x44] ss:$8 sps:$4 sm:$0xff]  }
  0x4a   :  { %413 = vmatprep.subr.bf16.mxu0 %v1826_v52  ;;  %1387 = vmatpush1.bf16.msra.mxu1 %v1846_v48  ;;  %v1852_v52 = vld [vmem:[#allocation6 + $0x40] ss:$8 sps:$4 sm:$0xff]  }
  0x4b   :  { %1388 = vmatprep.subr.bf16.mxu1 %v1847_v49 }
  0x4d   :  { %414 = vmatpush2.bf16.msra.mxu0 %v1633_v56  ;;  %v1858_v56 = vld [vmem:[#allocation6 + $0x30] ss:$8 sps:$4 sm:$0xff]  }
  0x4e   :  { %415 = vmatprep.subr.bf16.mxu0 %v1828_v55  ;;  %v1875_v55 = vld [vmem:[#allocation6 + $0x134] ss:$8 sps:$4 sm:$0xff]   ;;  %1389 = vmatpush1.bf16.msra.mxu1 %v1852_v52 }
  0x4f   :  { %1390 = vmatprep.subr.bf16.mxu1 %v1853_v53 }
  0x51   :  { %416 = vmatpush2.bf16.msra.mxu0 %v1631_v60  ;;  %v1864_v60 = vld [vmem:[#allocation6 + $0x20] ss:$8 sps:$4 sm:$0xff]  }
  0x52   :  { %417 = vmatprep.subr.bf16.mxu0 %v1830_v59  ;;  %v1881_v59 = vld [vmem:[#allocation6 + $0x124] ss:$8 sps:$4 sm:$0xff]   ;;  %1391 = vmatpush1.bf16.msra.mxu1 %v1858_v56 }
  0x53   :  { %1392 = vmatprep.subr.bf16.mxu1 %v1859_v57 }
  0x55   :  { %418 = vmatpush2.bf16.msra.mxu0 %v1629_v0  ;;  %v1870_v0 = vld [vmem:[#allocation6 + $0x10] ss:$8 sps:$4 sm:$0xff]  }
  0x56   :  { %419 = vmatprep.subr.bf16.mxu0 %v1832_v63  ;;  %v1887_v63 = vld [vmem:[#allocation6 + $0x114] ss:$8 sps:$4 sm:$0xff]   ;;  %1393 = vmatpush1.bf16.msra.mxu1 %v1864_v60 }
  0x57   :  { %1394 = vmatprep.subr.bf16.mxu1 %v1865_v61 }
  0x59   :  { %420 = vmatpush2.bf16.msra.mxu0 %v1627_v4  ;;  %v1876_v4 = vld [vmem:[#allocation6] ss:$8 sps:$4 sm:$0xff]  }
  0x5a   :  { %421 = vmatprep.subr.bf16.mxu0 %v1834_v3  ;;  %v1893_v3 = vld [vmem:[#allocation6 + $0x104] ss:$8 sps:$4 sm:$0xff]   ;;  %1395 = vmatpush1.bf16.msra.mxu1 %v1870_v0 }
  0x5b   :  { %1396 = vmatprep.subr.bf16.mxu1 %v1871_v1 }
  0x5d   :  { %422 = vmatpush2.bf16.msra.mxu0 %v1625_v8  ;;  %v1883_v8 = vld [vmem:[#allocation6 + $0xe4] ss:$8 sps:$4 sm:$0xff]  }
  0x5e   :  { %423 = vmatprep.subr.bf16.mxu0 %v1836_v7  ;;  %1397 = vmatpush1.bf16.msra.mxu1 %v1876_v4  ;;  %v1882_v7 = vld [vmem:[#allocation6 + $0xf0] ss:$8 sps:$4 sm:$0xff]   ;;  %v1925_v4 = vld [vmem:[#allocation6 + $0x1a0] ss:$8 sps:$4 sm:$0xff]  }
  0x5f   :  { %1398 = vmatprep.subr.bf16.mxu1 %v1877_v5 }
  0x61   :  { %424 = vmatpush2.bf16.msra.mxu0 %v1623_v9  ;;  %v1888_v9 = vld [vmem:[#allocation6 + $0xe0] ss:$8 sps:$4 sm:$0xff]  }
  0x62   :  { %1431 = vmatprep.subr.bf16.mxu0 %v1851_v42  ;;  %1399 = vmatpush2.bf16.msra.mxu1 %v1882_v7 }
  0x63   :  { %1400 = vmatprep.subr.bf16.mxu1 %v1883_v8  ;;  %v1919_v8 = vld [vmem:[#allocation6 + $0x84] ss:$8 sps:$4 sm:$0xff]  }
  0x66   :  { %1401 = vmatpush2.bf16.msra.mxu1 %v1888_v9  ;;  %v1924_v9 = vld [vmem:[#allocation6 + $0x80] ss:$8 sps:$4 sm:$0xff]  }
  0x9a   :  { %v139_v10 = vpop.permute.xlu1 %138 }
  0x9b   :  { %v107_v11 = vpop.permute.xlu0 %106 }
  0x9c   :  { %121 = vst.msk [vmem:[#allocation2 + $0x8] sm:$0xff] %vm120_vm6, %v107_v11 }
  0x9d   :  { %151 = vst.msk [vmem:[#allocation2 + $0x8] sm:$0xff] %vm150_vm7, %v139_v10  ;;  %v1889_v10 = vld [vmem:[#allocation6 + $0xd4] ss:$8 sps:$4 sm:$0xff]  }
  0x9e   :  { %v141_v12 = vpop.permute.xlu1 %140  ;;  %1402 = vmatprep.subr.bf16.mxu1 %v1889_v10  ;;  %v1933_v10 = vld [vmem:[#allocation6 + $0x194] ss:$8 sps:$4 sm:$0xff]  }
  0x9f   :  { %v109_v13 = vpop.permute.xlu0 %108 }
  0xa0   :  { %123 = vst.msk [vmem:[#allocation2 + $0x18] sm:$0xff] %vm120_vm6, %v109_v13 }
  0xa1   :  { %152 = vst.msk [vmem:[#allocation2 + $0x18] sm:$0xff] %vm150_vm7, %v141_v12  ;;  %v226_v12 = vlaneseq }
  0xa2   :  { %v83_v14 = vpop.permute.xlu1 %82 }
  0xa3   :  { %v81_v15 = vpop.permute.xlu0 %80  ;;  %94 = vst.msk [vmem:[#allocation2 + $0x10] sm:$0xff] %vm92_vm8, %v83_v14 }
  0xa4   :  { %93 = vst.msk [vmem:[#allocation2] sm:$0xff] %vm92_vm8, %v81_v15  ;;  %v1899_v15 = vld [vmem:[#allocation6 + $0x1f4] ss:$8 sps:$4 sm:$0xff]  }
  0xa5   :  { %122 = vst.msk [vmem:[#allocation2 + $0x10] sm:$0xff] %vm118_vm9, %v109_v13  ;;  %119 = vst.msk [vmem:[#allocation2] sm:$0xff] %vm118_vm9, %v107_v11  ;;  %v1894_v11 = vld [vmem:[#allocation6 + $0xd0] ss:$8 sps:$4 sm:$0xff]   ;;  %v2302_v13 = vshrl.u32 %v226_v12, 7 }
  0xa6   :  { %v167_v16 = vpop.permute.xlu1 %166  ;;  %1403 = vmatpush2.bf16.msra.mxu1 %v1894_v11  ;;  %v1931_v12 = vld [vmem:[#allocation6 + $0x190] ss:$8 sps:$4 sm:$0xff]  }
  0xa7   :  { %v165_v17 = vpop.permute.xlu0 %164  ;;  %178 = vst.msk [vmem:[#allocation2 + $0x18] sm:$0xff] %vm176_vm10, %v167_v16  ;;  %v228_v14 = vsub.s32 0, %v2302_v13  ;;  %v224_v16 = vld [vmem:[#allocation4] sm:$0x3] }
  0xa8   :  { %177 = vst.msk [vmem:[#allocation2 + $0x8] sm:$0xff] %vm176_vm10, %v165_v17  ;;  %v1897_v17 = vld [vmem:[#allocation6 + $0x1f0] ss:$8 sps:$4 sm:$0xff]  }
  0xaa   :  { %v113_v18 = vpop.permute.xlu1 %112 }
  0xab   :  { %v111_v19 = vpop.permute.xlu0 %110  ;;  %129 = vst.msk [vmem:[#allocation2 + $0x38] sm:$0xf] %vm128_vm11, %v113_v18 }
  0xac   :  { %125 = vst.msk [vmem:[#allocation2 + $0x28] sm:$0xff] %vm120_vm6, %v111_v19  ;;  %v182_v20 = vld [vmem:[#allocation2] sm:$0xff]  ;;  %v184_v21 = vld [vmem:[#allocation2 + $0x10] sm:$0xff] }
  0xad   :  { %v190_v27 = vpack.c.bf16 %v184_v21, %v182_v20  ;;  %v1905_v20 = vld [vmem:[#allocation6 + $0x1e4] ss:$8 sps:$4 sm:$0xff]   ;;  %v1903_v21 = vld [vmem:[#allocation6 + $0x1e0] ss:$8 sps:$4 sm:$0xff]  }
  0xae   :  { %v145_v22 = vpop.permute.xlu1 %144  ;;  %v185_v25 = vld [vmem:[#allocation2 + $0x18] sm:$0xff] }
  0xaf   :  { %v143_v23 = vpop.permute.xlu0 %142  ;;  %v183_v24 = vld [vmem:[#allocation2 + $0x8] sm:$0xff]  ;;  %155 = vst.msk [vmem:[#allocation2 + $0x38] sm:$0xf] %vm154_vm12, %v145_v22 }
  0xb0   :  { %153 = vst.msk [vmem:[#allocation2 + $0x28] sm:$0xff] %vm150_vm7, %v143_v23  ;;  %v191_v26 = vpack.c.bf16 %v185_v25, %v183_v24  ;;  %v1895_v24 = vld [vmem:[#allocation6 + $0xc4] ss:$8 sps:$4 sm:$0xff]   ;;  %v1900_v25 = vld [vmem:[#allocation6 + $0xc0] ss:$8 sps:$4 sm:$0xff]  }
  0xb1   :  { %1404 = vmatprep.subr.bf16.mxu1 %v1895_v24 }
  0xb2   :  { %1637 = vmatprep.mubr.msk.bf16.mxu0 %vm386_vm13, %v191_v26  ;;  %v87_v28 = vpop.permute.xlu1 %86  ;;  %1405 = vmatpush2.bf16.msra.mxu1 %v1900_v25  ;;  %v1930_v25 = vld [vmem:[#allocation6 + $0x274] ss:$8 sps:$4 sm:$0xff]  }
  0xb3   :  { %v85_v29 = vpop.permute.xlu0 %84  ;;  %426 = vmatmul.mubr.bf16.vlgmr.msra.gmra.mxu0 %v190_v27  ;;  %97 = vst.msk [vmem:[#allocation2 + $0x30] sm:$0xf] %vm96_vm14, %v87_v28  ;;  %v1911_v27 = vld [vmem:[#allocation6 + $0x1d4] ss:$8 sps:$4 sm:$0xff]  }
  0xb4   :  { %95 = vst.msk [vmem:[#allocation2 + $0x20] sm:$0xff] %vm92_vm8, %v85_v29  ;;  %1432 = vmatpush1.bf16.msra.mxu0 %v1849_v41  ;;  %v1909_v29 = vld [vmem:[#allocation6 + $0x1d0] ss:$8 sps:$4 sm:$0xff]  }
  0xb5   :  { %127 = vst.msk [vmem:[#allocation2 + $0x30] sm:$0xf] %vm126_vm15, %v113_v18  ;;  %1433 = vmatprep.subr.bf16.mxu0 %v1857_v45  ;;  %v232_v18 = vsub.s32 1, %v2302_v13 }
  0xb6   :  { %124 = vst.msk [vmem:[#allocation2 + $0x20] sm:$0xff] %vm118_vm9, %v111_v19  ;;  %v171_v30 = vpop.permute.xlu1 %170  ;;  %v2308_v19 = vrot.slane %v224_v16, %v228_v14 }
  0xb7   :  { %v169_v31 = vpop.permute.xlu0 %168  ;;  %181 = vst.msk [vmem:[#allocation2 + $0x38] sm:$0xf] %vm180_vm0, %v171_v30  ;;  %v2312_v22 = vrot.slane %v224_v16, %v232_v18 }
  0xb8   :  { %179 = vst.msk [vmem:[#allocation2 + $0x28] sm:$0xff] %vm176_vm10, %v169_v31  ;;  %1434 = vmatpush1.bf16.msra.mxu0 %v1855_v46 }
  0xb9   :  { %1435 = vmatprep.subr.bf16.mxu0 %v1863_v47 }
  0xbc   :  { %v188_v33 = vld [vmem:[#allocation2 + $0x30] sm:$0xf]  ;;  %1436 = vmatpush1.bf16.msra.mxu0 %v1861_v50  ;;  %v1923_v50 = vld [vmem:[#allocation6 + $0x1b4] ss:$8 sps:$4 sm:$0xff]  }
  0xbd   :  { %v186_v32 = vld [vmem:[#allocation2 + $0x20] sm:$0xff]  ;;  %1437 = vmatprep.subr.bf16.mxu0 %v1869_v51 }
  0xbe   :  { %v189_v35 = vld [vmem:[#allocation2 + $0x38] sm:$0xf]  ;;  %v192_v37 = vpack.c.bf16 %v188_v33, %v186_v32 }
  0xbf   :  { %v187_v34 = vld [vmem:[#allocation2 + $0x28] sm:$0xff]  ;;  %v1901_v32 = vld [vmem:[#allocation6 + $0xb4] ss:$8 sps:$4 sm:$0xff]   ;;  %v1906_v33 = vld [vmem:[#allocation6 + $0xb0] ss:$8 sps:$4 sm:$0xff]  }
  0xc0   :  { %v193_v36 = vpack.c.bf16 %v189_v35, %v187_v34  ;;  %1438 = vmatpush1.bf16.msra.mxu0 %v1867_v54  ;;  %v1907_v35 = vld [vmem:[#allocation6 + $0xa4] ss:$8 sps:$4 sm:$0xff]   ;;  %1406 = vmatprep.subr.bf16.mxu1 %v1901_v32  ;;  %v1921_v54 = vld [vmem:[#allocation6 + $0x1b0] ss:$8 sps:$4 sm:$0xff]  }
  0xc1   :  { %1439 = vmatprep.subr.bf16.mxu0 %v1875_v55  ;;  %1407 = vmatpush2.bf16.msra.mxu1 %v1906_v33 }
  0xc2   :  { %1638 = vmatprep.mubr.msk.bf16.mxu0 %vm386_vm13, %v193_v36  ;;  %1408 = vmatprep.subr.bf16.mxu1 %v1907_v35 }
  0xc3   :  { %436 = vmatmul.mubr.bf16.gmra.mxu0 %v192_v37 }
  0xc4   :  { %1440 = vmatpush1.bf16.msra.mxu0 %v1873_v58 }
  0xc5   :  { %1441 = vmatprep.subr.bf16.mxu0 %v1881_v59  ;;  %1409 = vmatpush2.bf16.msra.mxu1 %v1912_v43  ;;  %v2389_v43 = vld [vmem:[#allocation6 + $0x374] ss:$8 sps:$4 sm:$0xff]  }
  0xc8   :  { %1442 = vmatpush1.bf16.msra.mxu0 %v1879_v62  ;;  %v1913_v62 = vld [vmem:[#allocation6 + $0x94] ss:$8 sps:$4 sm:$0xff]  }
  0xc9   :  { %1443 = vmatprep.subr.bf16.mxu0 %v1887_v63  ;;  %v1918_v63 = vld [vmem:[#allocation6 + $0x90] ss:$8 sps:$4 sm:$0xff]   ;;  %1410 = vmatprep.subr.bf16.mxu1 %v1913_v62 }
  0xca   :  { %1411 = vmatpush2.bf16.msra.mxu1 %v1918_v63 }
  0xcb   :  { %1412 = vmatprep.subr.bf16.mxu1 %v1919_v8 }
  0xcc   :  { %1444 = vmatpush1.bf16.msra.mxu0 %v1885_v2  ;;  %v1927_v2 = vld [vmem:[#allocation6 + $0x1a4] ss:$8 sps:$4 sm:$0xff]  }
  0xcd   :  { %1445 = vmatprep.subr.bf16.mxu0 %v1893_v3 }
  0xce   :  { %1413 = vmatpush2.bf16.msra.mxu1 %v1924_v9 }
  0xcf   :  { %1480 = vmatprep.subr.bf16.mxu1 %v1930_v25 }
  0xd0   :  { %1446 = vmatpush1.bf16.msra.mxu0 %v1891_v6 }
  0xd1   :  { %1447 = vmatprep.subr.bf16.mxu0 %v1899_v15 }
  0xd4   :  { %1448 = vmatpush2.bf16.msra.mxu0 %v1897_v17 }
  0xd5   :  { %1449 = vmatprep.subr.bf16.mxu0 %v1905_v20 }
  0xd8   :  { %1450 = vmatpush2.bf16.msra.mxu0 %v1903_v21 }
  0xd9   :  { %1451 = vmatprep.subr.bf16.mxu0 %v1911_v27 }
  0xdc   :  { %1452 = vmatpush2.bf16.msra.mxu0 %v1909_v29  ;;  %v1937_v29 = vld [vmem:[#allocation6 + $0x180] ss:$8 sps:$4 sm:$0xff]  }
  0xdd   :  { %1453 = vmatprep.subr.bf16.mxu0 %v1917_v38 }
  0xe0   :  { %1454 = vmatpush2.bf16.msra.mxu0 %v1915_v40 }
  0xe1   :  { %1455 = vmatprep.subr.bf16.mxu0 %v1923_v50 }
  0xe4   :  { %1456 = vmatpush2.bf16.msra.mxu0 %v1921_v54 }
  0xe5   :  { %1457 = vmatprep.subr.bf16.mxu0 %v1927_v2 }
  0xe8   :  { %1458 = vmatpush2.bf16.msra.mxu0 %v1925_v4 }
  0xe9   :  { %1459 = vmatprep.subr.bf16.mxu0 %v1933_v10 }
  0xec   :  { %1460 = vmatpush2.bf16.msra.mxu0 %v1931_v12 }
 0x173   :  { %v427_v23 = vpop.f32.mrf.mxu0 }
 0x174   :  { %v428_v26 = vadd.f32 %v427_v23, %v2308_v19 }
 0x175   :  { %v429_v28 = vpop.f32.mrf.mxu0 }
 0x176   :  { %v2315_v30 = vmax.f32 %v428_v26, 0.0  ;;  %v430_v31 = vadd.f32 %v429_v28, %v2312_v22 }
 0x177   :  { %v431_v34 = vpop.f32.mrf.mxu0 }
 0x178   :  { %v2318_v36 = vmax.f32 %v430_v31, 0.0  ;;  %v432_v37 = vadd.f32 %v431_v34, %v2308_v19  ;;  %v511_v44 = vrot.slane %v2315_v30, 2  ;;  %v578_v45 = vrot.slane %v2315_v30, 4 }
 0x179   :  { %v433_v39 = vpop.f32.mrf.mxu0  ;;  %v469_v53 = vrot.slane %v2315_v30, 1  ;;  %v537_v40 = vrot.slane %v2315_v30, 3 }
 0x17a   :  { %v2321_v41 = vmax.f32 %v432_v37, 0.0  ;;  %v434_v42 = vadd.f32 %v433_v39, %v2312_v22  ;;  %456 = vst.msk [vmem:[#allocation3 + $0x8] sm:$0xff] %vm455_vm5, %v2318_v36  ;;  %v514_v51 = vrot.slane %v2318_v36, 2  ;;  %v581_v52 = vrot.slane %v2318_v36, 4 }
 0x17b   :  { %v540_v3 = vrot.slane %v2318_v36, 3 }
 0x17c   :  { %v512_v46 = vrot.slane %v2321_v41, 2  ;;  %v579_v47 = vrot.slane %v2321_v41, 4  ;;  %v2330_v48 = vmax.f32 %v434_v42, 0.0  ;;  %v470_v49 = vrot.slane %v2321_v41, 1 }
 0x17d   :  { %v628_v55 = vpack.c.bf16 %v2321_v41, %v2315_v30  ;;  %v538_v28 = vrot.slane %v2321_v41, 3  ;;  %v1940_v41 = vld [vmem:[#allocation6 + $0x250] ss:$8 sps:$4 sm:$0xff]  }
 0x17e   :  { %v2339_v56 = vsel %vm98_vm2, %v511_v44, %v512_v46  ;;  %v580_v57 = vsel %vm156_vm4, %v578_v45, %v579_v47  ;;  %v515_v58 = vrot.slane %v2330_v48, 2  ;;  %v582_v59 = vrot.slane %v2330_v48, 4  ;;  %458 = vst.msk [vmem:[#allocation3 + $0x48] sm:$0xff] %vm455_vm5, %v2330_v48 }
 0x17f   :  { %598 = vst [vmem:[#allocation3 + $0x30] sm:$0xff] %v580_v57  ;;  %v471_v60 = vsel %vm72_vm3, %v469_v53, %v470_v49  ;;  %v541_v61 = vrot.slane %v2330_v48, 3  ;;  %v473_v62 = vrot.slane %v2330_v48, 1 }
 0x180   :  { %v583_v0 = vsel %vm156_vm4, %v581_v52, %v582_v59  ;;  %483 = vrot.lane.b32.xlu0 %v471_v60, %s2090_s9  ;;  %v516_v1 = vsel %vm98_vm2, %v514_v51, %v515_v58 }
 0x181   :  { %599 = vst.msk [vmem:[#allocation3 + $0x38] sm:$0xff] %vm455_vm5, %v583_v0  ;;  %532 = vst.msk [vmem:[#allocation3 + $0x20] sm:$0xff] %vm455_vm5, %v516_v1  ;;  %v542_v6 = vsel %vm130_vm1, %v540_v3, %v541_v61  ;;  %v472_v1 = vrot.slane %v2318_v36, 1 }
 0x183   :  { %v437_v5 = vpop.f32.mrf.mxu0  ;;  %v474_v2 = vsel %vm72_vm3, %v472_v1, %v473_v62  ;;  %v1963_v1 = vld [vmem:[#allocation6 + $0x214] ss:$8 sps:$4 sm:$0xff]  }
 0x184   :  { %v438_v7 = vadd.f32 %v437_v5, %v2308_v19  ;;  %553 = vrot.lane.b32.xlu0 %v542_v6, %s2090_s9 }
 0x185   :  { %v439_v11 = vpop.f32.mrf.mxu0 }
 0x186   :  { %v2363_v15 = vmax.f32 %v438_v7, 0.0  ;;  %v440_v16 = vadd.f32 %v439_v11, %v2312_v22 }
 0x187   :  { %v441_v17 = vpop.f32.mrf.mxu0 }
 0x188   :  { %v517_v20 = vrot.slane %v2363_v15, 2  ;;  %v584_v21 = vrot.slane %v2363_v15, 4  ;;  %v2368_v23 = vmax.f32 %v440_v16, 0.0  ;;  %v442_v24 = vadd.f32 %v441_v17, %v2308_v19  ;;  %v1939_v19 = vld [vmem:[#allocation6 + $0x184] ss:$8 sps:$4 sm:$0xff]  }
 0x189   :  { %v443_v26 = vpop.f32.mrf.mxu0  ;;  %v475_v27 = vrot.slane %v2363_v15, 1  ;;  %1461 = vmatprep.subr.bf16.mxu0 %v1939_v19 }
 0x18a   :  { %v518_v31 = vsel %vm98_vm2, %v512_v46, %v517_v20  ;;  %v2375_v32 = vsel %vm156_vm4, %v579_v47, %v584_v21  ;;  %v519_v33 = vrot.slane %v2368_v23, 2  ;;  %v586_v34 = vrot.slane %v2368_v23, 4  ;;  %460 = vst.msk [vmem:[#allocation3 + $0x88] sm:$0xff] %vm455_vm5, %v2368_v23  ;;  %1462 = vmatpush2.bf16.msra.mxu0 %v1937_v29 }
 0x18b   :  { %v452_v35 = vmax.f32 %v442_v24, 0.0  ;;  %v444_v37 = vadd.f32 %v443_v26, %v2312_v22  ;;  %v476_v38 = vsel %vm72_vm3, %v470_v49, %v475_v27  ;;  %v631_v42 = vpack.c.bf16 %v518_v31, %v2339_v56  ;;  %1529 = vmatprep.subr.bf16.mxu0 %v2389_v43  ;;  %v1928_v24 = vld [vmem:[#allocation6 + $0x270] ss:$8 sps:$4 sm:$0xff]   ;;  %v1936_v26 = vld [vmem:[#allocation6 + $0x264] ss:$8 sps:$4 sm:$0xff]  }
 0x18c   :  { %v587_v39 = vsel %vm156_vm4, %v582_v59, %v586_v34  ;;  %487 = vrot.lane.b32.xlu1 %v476_v38, %s2090_s9  ;;  %v539_v47 = vsel %vm130_vm1, %v537_v40, %v538_v28  ;;  %v543_v49 = vrot.slane %v2363_v15, 3  ;;  %v520_v50 = vsel %vm98_vm2, %v515_v58, %v519_v33 }
 0x18d   :  { %601 = vst.msk [vmem:[#allocation3 + $0x78] sm:$0xff] %vm455_vm5, %v587_v39  ;;  %v521_v44 = vrot.slane %v452_v35, 2  ;;  %v588_v45 = vrot.slane %v452_v35, 4  ;;  %v453_v22 = vmax.f32 %v444_v37, 0.0  ;;  %v479_v46 = vrot.slane %v452_v35, 1  ;;  %1463 = vmatprep.mubr.bf16.mxu0 %v631_v42  ;;  %534 = vst.msk [vmem:[#allocation3 + $0x60] sm:$0xff] %vm455_vm5, %v520_v50 }
 0x18e   :  { %v545_v57 = vrot.slane %v2368_v23, 3  ;;  %v544_v60 = vsel %vm130_vm1, %v538_v28, %v543_v49  ;;  %v477_v0 = vrot.slane %v2368_v23, 1  ;;  %v547_v3 = vrot.slane %v452_v35, 3  ;;  %v1942_v35 = vld [vmem:[#allocation6 + $0x254] ss:$8 sps:$4 sm:$0xff]  }
 0x18f   :  { %v2399_v51 = vsel %vm98_vm2, %v517_v20, %v521_v44  ;;  %v589_v52 = vsel %vm156_vm4, %v584_v21, %v588_v45  ;;  %v523_v53 = vrot.slane %v453_v22, 2  ;;  %v590_v54 = vrot.slane %v453_v22, 4  ;;  %v2442_v37 = vld [vmem:[#allocation6 + $0x370] ss:$8 sps:$4 sm:$0xff]   ;;  %v2444_v39 = vld [vmem:[#allocation6 + $0x364] ss:$8 sps:$4 sm:$0xff]  }
 0x190   :  { %602 = vst [vmem:[#allocation3 + $0xb0] sm:$0xff] %v589_v52  ;;  %551 = vrot.lane.b32.xlu1 %v539_v47, %s2090_s9  ;;  %v480_v56 = vsel %vm72_vm3, %v475_v27, %v479_v46  ;;  %v546_v63 = vsel %vm130_vm1, %v541_v61, %v545_v57  ;;  %v478_v4 = vsel %vm72_vm3, %v473_v62, %v477_v0  ;;  %v549_v5 = vrot.slane %v453_v22, 3  ;;  %v1945_v45 = vld [vmem:[#allocation6 + $0x244] ss:$8 sps:$4 sm:$0xff]   ;;  %v2458_v47 = vld [vmem:[#allocation6 + $0x354] ss:$8 sps:$4 sm:$0xff]  }
 0x191   :  { %v591_v58 = vsel %vm156_vm4, %v586_v34, %v590_v54  ;;  %491 = vrot.lane.b32.xlu0 %v480_v56, %s2090_s9  ;;  %v524_v59 = vsel %vm98_vm2, %v519_v33, %v523_v53  ;;  %v548_v48 = vsel %vm130_vm1, %v543_v49, %v547_v3  ;;  %v481_v6 = vrot.slane %v453_v22, 1  ;;  %v1934_v33 = vld [vmem:[#allocation6 + $0x260] ss:$8 sps:$4 sm:$0xff]   ;;  %v2462_v52 = vld [vmem:[#allocation6 + $0x350] ss:$8 sps:$4 sm:$0xff]  }
 0x192   :  { %603 = vst.msk [vmem:[#allocation3 + $0xb8] sm:$0xff] %vm455_vm5, %v591_v58  ;;  %536 = vst.msk [vmem:[#allocation3 + $0xa0] sm:$0xff] %vm455_vm5, %v524_v59  ;;  %v550_v61 = vsel %vm130_vm1, %v545_v57, %v549_v5  ;;  %vm504_vm2 = vcmask 1048064   ;;  %v636_v44 = vpack.c.bf16 %v2363_v15, %v2363_v15  ;;  %v2455_v22 = vld [vmem:[#allocation6 + $0x360] ss:$8 sps:$4 sm:$0xff]   ;;  %v611_v57 = vld [vmem:[#allocation3 + $0x38] sm:$0xff] }
 0x193   :  { %v482_v36 = vsel %vm72_vm3, %v477_v0, %v481_v6  ;;  %v1951_v15 = vld [vmem:[#allocation6 + $0x234] ss:$8 sps:$4 sm:$0xff]   ;;  %v2465_v56 = vld [vmem:[#allocation6 + $0x344] ss:$8 sps:$4 sm:$0xff]   ;;  %v1949_v58 = vld [vmem:[#allocation6 + $0x230] ss:$8 sps:$4 sm:$0xff]  }
 0x194   :  { %555 = vrot.lane.b32.xlu1 %v544_v60, %s2090_s9  ;;  %v619_v54 = vld [vmem:[#allocation3 + $0x78] sm:$0xff]  ;;  %v1957_v60 = vld [vmem:[#allocation6 + $0x224] ss:$8 sps:$4 sm:$0xff]   ;;  %v2468_v62 = vld [vmem:[#allocation6 + $0x340] ss:$8 sps:$4 sm:$0xff]  }
 0x195   :  { %557 = vrot.lane.b32.xlu0 %v546_v63, %s2090_s9  ;;  %v635_v59 = vpack.c.bf16 %v619_v54, %v611_v57  ;;  %v2472_v63 = vld [vmem:[#allocation6 + $0x334] ss:$8 sps:$4 sm:$0xff]   ;;  %v1955_v0 = vld [vmem:[#allocation6 + $0x220] ss:$8 sps:$4 sm:$0xff]   ;;  %v2478_v3 = vld [vmem:[#allocation6 + $0x324] ss:$8 sps:$4 sm:$0xff]  }
 0x196   :  { %v1969_v5 = vld [vmem:[#allocation6 + $0x204] ss:$8 sps:$4 sm:$0xff]   ;;  %v2484_v6 = vld [vmem:[#allocation6 + $0x314] ss:$8 sps:$4 sm:$0xff]   ;;  %v764_v54 = vld [vmem:[#allocation8] sm:$0x3] }
 0x198   :  { %485 = vrot.lane.b32.xlu1 %v474_v2, %s2090_s9  ;;  %v2475_v2 = vld [vmem:[#allocation6 + $0x330] ss:$8 sps:$4 sm:$0xff]  }
 0x199   :  { %489 = vrot.lane.b32.xlu0 %v478_v4, %s2090_s9  ;;  %v1961_v4 = vld [vmem:[#allocation6 + $0x210] ss:$8 sps:$4 sm:$0xff]  }
 0x19c   :  { %559 = vrot.lane.b32.xlu1 %v548_v48, %s2090_s9  ;;  %v2481_v48 = vld [vmem:[#allocation6 + $0x320] ss:$8 sps:$4 sm:$0xff]  }
 0x19d   :  { %561 = vrot.lane.b32.xlu0 %v550_v61, %s2090_s9  ;;  %v1967_v61 = vld [vmem:[#allocation6 + $0x200] ss:$8 sps:$4 sm:$0xff]  }
 0x1a0   :  { %493 = vrot.lane.b32.xlu1 %v482_v36, %s2090_s9  ;;  %v1975_v36 = vld [vmem:[#allocation6 + $0x2f4] ss:$8 sps:$4 sm:$0xff]  }
 0x1f2   :  { %v484_v7 = vpop.permute.xlu0 %483 }
 0x1f3   :  { %505 = vst.msk [vmem:[#allocation3 + $0x8] sm:$0xff] %vm504_vm2, %v484_v7 }
 0x1f6   :  { %v554_v9 = vpop.permute.xlu0 %553 }
 0x1fa   :  { %v605_v17 = vld [vmem:[#allocation3 + $0x8] sm:$0xff] }
 0x1fe   :  { %v488_v8 = vpop.permute.xlu1 %487 }
 0x1ff   :  { %507 = vst.msk [vmem:[#allocation3 + $0x48] sm:$0xff] %vm504_vm2, %v488_v8 }
 0x202   :  { %v552_v10 = vpop.permute.xlu1 %551 }
 0x203   :  { %v563_v11 = vsel %vm455_vm5, %v552_v10, %v554_v9  ;;  %572 = vst.msk [vmem:[#allocation3 + $0x20] sm:$0xff] %vm504_vm2, %v552_v10  ;;  %v492_v12 = vpop.permute.xlu0 %491  ;;  %v1973_v9 = vld [vmem:[#allocation6 + $0x2f0] ss:$8 sps:$4 sm:$0xff]   ;;  %v1981_v10 = vld [vmem:[#allocation6 + $0x2e4] ss:$8 sps:$4 sm:$0xff]  }
 0x204   :  { %509 = vst.msk [vmem:[#allocation3 + $0x88] sm:$0xff] %vm504_vm2, %v492_v12 }
 0x206   :  { %v556_v16 = vpop.permute.xlu1 %555  ;;  %v613_v20 = vld [vmem:[#allocation3 + $0x48] sm:$0xff] }
 0x207   :  { %574 = vst.msk [vmem:[#allocation3 + $0x60] sm:$0xff] %vm504_vm2, %v556_v16  ;;  %v558_v21 = vpop.permute.xlu0 %557  ;;  %v629_v23 = vpack.c.bf16 %v613_v20, %v605_v17  ;;  %v1987_v17 = vld [vmem:[#allocation6 + $0x2d4] ss:$8 sps:$4 sm:$0xff]   ;;  %v2499_v20 = vld [vmem:[#allocation6 + $0x3b0] ss:$8 sps:$4 sm:$0xff]  }
 0x208   :  { %v564_v25 = vsel %vm455_vm5, %v556_v16, %v558_v21  ;;  %v1979_v16 = vld [vmem:[#allocation6 + $0x2e0] ss:$8 sps:$4 sm:$0xff]   ;;  %v2502_v21 = vld [vmem:[#allocation6 + $0x3a4] ss:$8 sps:$4 sm:$0xff]  }
 0x209   :  { %1414 = vmatprep.mubr.bf16.mxu1 %v629_v23  ;;  %v633_v46 = vpack.c.bf16 %v564_v25, %v563_v11  ;;  %v2493_v11 = vld [vmem:[#allocation6 + $0x300] ss:$8 sps:$4 sm:$0xff]   ;;  %v1985_v23 = vld [vmem:[#allocation6 + $0x2d0] ss:$8 sps:$4 sm:$0xff]  }
 0x20a   :  { %v486_v27 = vpop.permute.xlu1 %485  ;;  %1415 = vmatmul.mubr.bf16.vlgmr.msra.gmra.mxu1 %v628_v55  ;;  %v639_v55 = vpack.c.bf16 %v2399_v51, %v2399_v51  ;;  %v1943_v51 = vld [vmem:[#allocation6 + $0x240] ss:$8 sps:$4 sm:$0xff]  }
 0x20b   :  { %v495_v28 = vsel %vm455_vm5, %v484_v7, %v486_v27  ;;  %v490_v29 = vpop.permute.xlu0 %489  ;;  %1481 = vmatpush1.bf16.msra.mxu1 %v1928_v24  ;;  %v621_v31 = vld [vmem:[#allocation3 + $0x88] sm:$0xff]  ;;  %v2487_v7 = vld [vmem:[#allocation6 + $0x310] ss:$8 sps:$4 sm:$0xff]  }
 0x20c   :  { %v496_v34 = vsel %vm455_vm5, %v488_v8, %v490_v29  ;;  %v637_v19 = vpack.c.bf16 %v621_v31, %v621_v31  ;;  %1482 = vmatprep.subr.bf16.mxu1 %v1936_v26  ;;  %v2490_v8 = vld [vmem:[#allocation6 + $0x304] ss:$8 sps:$4 sm:$0xff]   ;;  %v2505_v25 = vld [vmem:[#allocation6 + $0x3a0] ss:$8 sps:$4 sm:$0xff]   ;;  %v2508_v26 = vld [vmem:[#allocation6 + $0x394] ss:$8 sps:$4 sm:$0xff]  }
 0x20d   :  { %v630_v38 = vpack.c.bf16 %v496_v34, %v495_v28  ;;  %v1993_v24 = vld [vmem:[#allocation6 + $0x2c4] ss:$8 sps:$4 sm:$0xff]   ;;  %v1991_v27 = vld [vmem:[#allocation6 + $0x2c0] ss:$8 sps:$4 sm:$0xff]   ;;  %v1999_v28 = vld [vmem:[#allocation6 + $0x2b4] ss:$8 sps:$4 sm:$0xff]  }
 0x20e   :  { %1422 = vmatprep.mubr.bf16.mxu1 %v637_v19  ;;  %v560_v40 = vpop.permute.xlu1 %559  ;;  %v2006_v29 = vld [vmem:[#allocation6 + $0x390] ss:$8 sps:$4 sm:$0xff]   ;;  %v2014_v31 = vld [vmem:[#allocation6 + $0x384] ss:$8 sps:$4 sm:$0xff]   ;;  %v2012_v19 = vld [vmem:[#allocation6 + $0x380] ss:$8 sps:$4 sm:$0xff]  }
 0x20f   :  { %576 = vst.msk [vmem:[#allocation3 + $0xa0] sm:$0xff] %vm504_vm2, %v560_v40  ;;  %v562_v30 = vpop.permute.xlu0 %561  ;;  %1483 = vmatpush1.bf16.msra.mxu1 %v1934_v33  ;;  %1464 = vmatmul.mubr.bf16.vlgmr.msra.gmra.mxu0 %v630_v38  ;;  %v1997_v33 = vld [vmem:[#allocation6 + $0x2b0] ss:$8 sps:$4 sm:$0xff]   ;;  %v2005_v34 = vld [vmem:[#allocation6 + $0x2a4] ss:$8 sps:$4 sm:$0xff]  }
 0x210   :  { %v2450_v42 = vsel %vm455_vm5, %v560_v40, %v562_v30  ;;  %1484 = vmatprep.subr.bf16.mxu1 %v1942_v35  ;;  %1530 = vmatpush1.bf16.msra.mxu0 %v2442_v37  ;;  %v2003_v35 = vld [vmem:[#allocation6 + $0x2a0] ss:$8 sps:$4 sm:$0xff]   ;;  %v2011_v38 = vld [vmem:[#allocation6 + $0x294] ss:$8 sps:$4 sm:$0xff]  }
 0x211   :  { %1471 = vmatprep.mubr.bf16.mxu0 %v639_v55  ;;  %1531 = vmatprep.subr.bf16.mxu0 %v2444_v39  ;;  %v610_v40 = vld [vmem:[#allocation3 + $0x30] sm:$0xff] }
 0x212   :  { %v494_v49 = vpop.permute.xlu1 %493  ;;  %1423 = vmatmul.mubr.bf16.gmra.mxu1 %v636_v44  ;;  %v634_v30 = vpack.c.bf16 %v2375_v32, %v610_v40  ;;  %v2017_v55 = vld [vmem:[#allocation6 + $0x284] ss:$8 sps:$4 sm:$0xff]   ;;  %v2015_v44 = vld [vmem:[#allocation6 + $0x280] ss:$8 sps:$4 sm:$0xff]  }
 0x213   :  { %v497_v50 = vsel %vm455_vm5, %v492_v12, %v494_v49  ;;  %1485 = vmatpush1.bf16.msra.mxu1 %v1940_v41  ;;  %1512 = vmatprep.mubr.bf16.mxu1 %v633_v46  ;;  %v2496_v12 = vld [vmem:[#allocation6 + $0x3b4] ss:$8 sps:$4 sm:$0xff]   ;;  %v2009_v41 = vld [vmem:[#allocation6 + $0x290] ss:$8 sps:$4 sm:$0xff]  }
 0x214   :  { %1486 = vmatprep.subr.bf16.mxu1 %v1945_v45  ;;  %1532 = vmatpush1.bf16.msra.mxu0 %v2455_v22  ;;  %v638_v53 = vpack.c.bf16 %v497_v50, %v497_v50  ;;  %v616_v45 = vld [vmem:[#allocation3 + $0x60] sm:$0xff]  ;;  %v641_v50 = vpack.c.bf16 %v2450_v42, %v2450_v42 }
 0x215   :  { %1533 = vmatprep.subr.bf16.mxu0 %v2458_v47  ;;  %v608_v46 = vld [vmem:[#allocation3 + $0x20] sm:$0xff] }
 0x216   :  { %v632_v49 = vpack.c.bf16 %v616_v45, %v608_v46  ;;  %v624_v32 = vld [vmem:[#allocation3 + $0xa0] sm:$0xff] }
 0x217   :  { %1487 = vmatpush1.bf16.msra.mxu1 %v1943_v51  ;;  %1472 = vmatmul.mubr.bf16.gmra.mxu0 %v638_v53  ;;  %v627_v51 = vld [vmem:[#allocation3 + $0xb8] sm:$0xff] }
 0x218   :  { %1488 = vmatprep.subr.bf16.mxu1 %v1951_v15  ;;  %1534 = vmatpush1.bf16.msra.mxu0 %v2462_v52  ;;  %v640_v15 = vpack.c.bf16 %v624_v32, %v624_v32  ;;  %v643_v53 = vpack.c.bf16 %v627_v51, %v627_v51 }
 0x219   :  { %1759 = vmatprep.mubr.msk.bf16.mxu0 %vm455_vm5, %v635_v59  ;;  %1535 = vmatprep.subr.bf16.mxu0 %v2465_v56  ;;  %v769_v59 = vrot.slane %v764_v54, %v228_v14 }
 0x21b   :  { %1489 = vmatpush1.bf16.msra.mxu1 %v1949_v58 }
 0x21c   :  { %1490 = vmatprep.subr.bf16.mxu1 %v1957_v60  ;;  %1536 = vmatpush1.bf16.msra.mxu0 %v2468_v62 }
 0x21d   :  { %1537 = vmatprep.subr.bf16.mxu0 %v2472_v63 }
 0x21f   :  { %1491 = vmatpush1.bf16.msra.mxu1 %v1955_v0 }
 0x220   :  { %1492 = vmatprep.subr.bf16.mxu1 %v1963_v1  ;;  %1538 = vmatpush1.bf16.msra.mxu0 %v2475_v2 }
 0x221   :  { %1539 = vmatprep.subr.bf16.mxu0 %v2478_v3 }
 0x223   :  { %1493 = vmatpush1.bf16.msra.mxu1 %v1961_v4 }
 0x224   :  { %1494 = vmatprep.subr.bf16.mxu1 %v1969_v5  ;;  %1540 = vmatpush1.bf16.msra.mxu0 %v2481_v48 }
 0x225   :  { %1541 = vmatprep.subr.bf16.mxu0 %v2484_v6 }
 0x227   :  { %1495 = vmatpush1.bf16.msra.mxu1 %v1967_v61 }
 0x228   :  { %1496 = vmatprep.subr.bf16.mxu1 %v1975_v36  ;;  %1542 = vmatpush1.bf16.msra.mxu0 %v2487_v7 }
 0x229   :  { %1543 = vmatprep.subr.bf16.mxu0 %v2490_v8 }
 0x22b   :  { %1497 = vmatpush2.bf16.msra.mxu1 %v1973_v9 }
 0x22c   :  { %1498 = vmatprep.subr.bf16.mxu1 %v1981_v10  ;;  %1544 = vmatpush1.bf16.msra.mxu0 %v2493_v11 }
 0x22d   :  { %1553 = vmatprep.subr.bf16.mxu0 %v2496_v12 }
 0x22f   :  { %1499 = vmatpush2.bf16.msra.mxu1 %v1979_v16 }
 0x230   :  { %1500 = vmatprep.subr.bf16.mxu1 %v1987_v17  ;;  %1554 = vmatpush2.bf16.msra.mxu0 %v2499_v20 }
 0x231   :  { %1555 = vmatprep.subr.bf16.mxu0 %v2502_v21 }
 0x233   :  { %1501 = vmatpush2.bf16.msra.mxu1 %v1985_v23 }
 0x234   :  { %1502 = vmatprep.subr.bf16.mxu1 %v1993_v24  ;;  %1556 = vmatpush2.bf16.msra.mxu0 %v2505_v25 }
 0x235   :  { %1557 = vmatprep.subr.bf16.mxu0 %v2508_v26 }
 0x237   :  { %1503 = vmatpush2.bf16.msra.mxu1 %v1991_v27 }
 0x238   :  { %1504 = vmatprep.subr.bf16.mxu1 %v1999_v28  ;;  %1558 = vmatpush2.bf16.msra.mxu0 %v2006_v29 }
 0x239   :  { %1559 = vmatprep.subr.bf16.mxu0 %v2014_v31 }
 0x23b   :  { %1505 = vmatpush2.bf16.msra.mxu1 %v1997_v33 }
 0x23c   :  { %1506 = vmatprep.subr.bf16.mxu1 %v2005_v34  ;;  %1560 = vmatpush2.bf16.msra.mxu0 %v2012_v19 }
 0x23f   :  { %1507 = vmatpush2.bf16.msra.mxu1 %v2003_v35  ;;  %1562 = vmatmul.mubr.bf16.vlgmr.msra.gmra.mxu0 %v634_v30 }
 0x240   :  { %1508 = vmatprep.subr.bf16.mxu1 %v2011_v38 }
 0x243   :  { %1509 = vmatpush2.bf16.msra.mxu1 %v2009_v41 }
 0x244   :  { %1510 = vmatprep.subr.bf16.mxu1 %v2017_v55 }
 0x247   :  { %1511 = vmatpush2.bf16.msra.mxu1 %v2015_v44 }
 0x248   :  { %1766 = vmatprep.subr.bf16.mxu1 %v2389_v43  ;;  %v626_v43 = vld [vmem:[#allocation3 + $0xb0] sm:$0xff] }
 0x24a   :  { %1513 = vmatmul.mubr.bf16.vlgmr.msra.gmra.mxu1 %v632_v49 }
 0x24b   :  { %1520 = vmatprep.mubr.bf16.mxu1 %v641_v50  ;;  %1778 = vmatpush1.bf16.msra.mxu1 %v2442_v37  ;;  %v642_v37 = vpack.c.bf16 %v626_v43, %v626_v43 }
 0x24c   :  { %1767 = vmatprep.subr.bf16.mxu1 %v2444_v39 }
 0x24f   :  { %1779 = vmatpush1.bf16.msra.mxu1 %v2455_v22 }
 0x250   :  { %1768 = vmatprep.subr.bf16.mxu1 %v2458_v47 }
 0x252   :  { %1521 = vmatmul.mubr.bf16.gmra.mxu1 %v640_v15 }
 0x253   :  { %1780 = vmatpush1.bf16.msra.mxu1 %v2462_v52  ;;  %1760 = vmatprep.mubr.msk.bf16.mxu1 %vm455_vm5, %v643_v53 }
 0x254   :  { %1769 = vmatprep.subr.bf16.mxu1 %v2465_v56 }
 0x257   :  { %1781 = vmatpush1.bf16.msra.mxu1 %v2468_v62 }
 0x258   :  { %1770 = vmatprep.subr.bf16.mxu1 %v2472_v63  ;;  %v773_v63 = vrot.slane %v764_v54, %v232_v18 }
 0x25b   :  { %1782 = vmatpush1.bf16.msra.mxu1 %v2475_v2 }
 0x25c   :  { %1771 = vmatprep.subr.bf16.mxu1 %v2478_v3 }
 0x25f   :  { %1783 = vmatpush1.bf16.msra.mxu1 %v2481_v48 }
 0x260   :  { %1772 = vmatprep.subr.bf16.mxu1 %v2484_v6 }
 0x263   :  { %1784 = vmatpush1.bf16.msra.mxu1 %v2487_v7 }
 0x264   :  { %1773 = vmatprep.subr.bf16.mxu1 %v2490_v8 }
 0x267   :  { %1785 = vmatpush1.bf16.msra.mxu1 %v2493_v11 }
 0x268   :  { %1774 = vmatprep.subr.bf16.mxu1 %v2496_v12 }
 0x26b   :  { %1786 = vmatpush2.bf16.msra.mxu1 %v2499_v20 }
 0x26c   :  { %1775 = vmatprep.subr.bf16.mxu1 %v2502_v21 }
 0x26f   :  { %1787 = vmatpush2.bf16.msra.mxu1 %v2505_v25 }
 0x270   :  { %1776 = vmatprep.subr.bf16.mxu1 %v2508_v26 }
 0x273   :  { %1788 = vmatpush2.bf16.msra.mxu1 %v2006_v29 }
 0x274   :  { %1777 = vmatprep.subr.bf16.mxu1 %v2014_v31 }
 0x277   :  { %1789 = vmatpush2.bf16.msra.mxu1 %v2012_v19 }
 0x27a   :  { %1570 = vmatmul.mubr.bf16.vlgmr.msra.gmra.mxu1 %v642_v37 }
 0x2ca   :  { %v1416_v39 = vpop.f32.mrf.mxu1 }
 0x2cb   :  { %v1417_v14 = vadd.f32 %v1416_v39, %v769_v59 }
 0x2cc   :  { %v1418_v42 = vpop.f32.mrf.mxu1 }
 0x2cd   :  { %v1419_v11 = vadd.f32 %v1418_v42, %v773_v63 }
 0x2ce   :  { %v1420_v22 = vpop.f32.mrf.mxu1 }
 0x2cf   :  { %v1465_v47 = vpop.f32.mrf.mxu0 }
 0x2d0   :  { %v1421_v52 = vpop.f32.mrf.mxu1  ;;  %v1466_v12 = vadd.f32 %v1465_v47, %v1417_v14 }
 0x2d1   :  { %v1467_v56 = vpop.f32.mrf.mxu0 }
 0x2d2   :  { %v1424_v57 = vpop.f32.mrf.mxu1  ;;  %v1468_v13 = vadd.f32 %v1467_v56, %v1419_v11 }
 0x2d3   :  { %v1469_v58 = vpop.f32.mrf.mxu0  ;;  %v1425_v0 = vadd.f32 %v1424_v57, %v769_v59 }
 0x2d4   :  { %v1426_v60 = vpop.f32.mrf.mxu1 }
 0x2d5   :  { %v1470_v62 = vpop.f32.mrf.mxu0  ;;  %v1427_v3 = vadd.f32 %v1426_v60, %v773_v63 }
 0x2d6   :  { %v1428_v1 = vpop.f32.mrf.mxu1 }
 0x2d7   :  { %v1473_v2 = vpop.f32.mrf.mxu0 }
 0x2d8   :  { %v1429_v4 = vpop.f32.mrf.mxu1  ;;  %v1474_v5 = vadd.f32 %v1473_v2, %v1425_v0 }
 0x2d9   :  { %v1475_v48 = vpop.f32.mrf.mxu0 }
 0x2da   :  { %v1476_v6 = vadd.f32 %v1475_v48, %v1427_v3 }
 0x2db   :  { %v1477_v61 = vpop.f32.mrf.mxu0 }
 0x2dd   :  { %v1478_v36 = vpop.f32.mrf.mxu0 }
 0x2ff   :  { %v1563_v7 = vpop.f32.mrf.mxu0 }
 0x301   :  { %v1565_v8 = vpop.f32.mrf.mxu0 }
 0x303   :  { %v1567_v9 = vpop.f32.mrf.mxu0 }
 0x305   :  { %v1568_v10 = vpop.f32.mrf.mxu0 }
 0x30a   :  { %v1514_v16 = vpop.f32.mrf.mxu1 }
 0x30b   :  { %v1515_v18 = vadd.f32 %v1514_v16, %v1466_v12 }
 0x30c   :  { %v1516_v17 = vpop.f32.mrf.mxu1 }
 0x30d   :  { %v1564_v20 = vadd.f32 %v1563_v7, %v1515_v18  ;;  %v1517_v21 = vadd.f32 %v1516_v17, %v1468_v13 }
 0x30e   :  { %v1518_v23 = vpop.f32.mrf.mxu1 }
 0x30f   :  { %v1566_v24 = vadd.f32 %v1565_v8, %v1517_v21  ;;  %v1578_v26 = vmax.f32 %v1564_v20, 0.0 }
 0x310   :  { %v1519_v25 = vpop.f32.mrf.mxu1 }
 0x311   :  { %v1579_v27 = vmax.f32 %v1566_v24, 0.0 }
 0x312   :  { %v1522_v28 = vpop.f32.mrf.mxu1 }
 0x313   :  { %v1764_v29 = vpack.c.bf16 %v1579_v27, %v1578_v26  ;;  %v1523_v19 = vadd.f32 %v1522_v28, %v1474_v5 }
 0x314   :  { %v1524_v31 = vpop.f32.mrf.mxu1 }
 0x315   :  { %1590 = vst [vmem:[%s2552_s5] sm:$0xff] %v1764_v29  ;;  %v1525_v38 = vadd.f32 %v1524_v31, %v1476_v6 }
 0x316   :  { %v1526_v33 = vpop.f32.mrf.mxu1 }
 0x318   :  { %v1527_v34 = vpop.f32.mrf.mxu1 }
 0x33a   :  { %v1571_v35 = vpop.f32.mrf.mxu1 }
 0x33b   :  { %v1572_v40 = vadd.f32 %v1571_v35, %v1523_v19 }
 0x33c   :  { %v1573_v30 = vpop.f32.mrf.mxu1 }
 0x33d   :  { %v1574_v41 = vadd.f32 %v1573_v30, %v1525_v38  ;;  %v1580_v44 = vmax.f32 %v1572_v40, 0.0 }
 0x33e   :  { %v1575_v55 = vpop.f32.mrf.mxu1 }
 0x33f   :  { %v1581_v45 = vmax.f32 %v1574_v41, 0.0 }
 0x340   :  { %v1576_v46 = vpop.f32.mrf.mxu1 }
 0x341   :  { %v1765_v49 = vpack.c.bf16 %v1581_v45, %v1580_v44 }
 0x343   :  { %1763 = vst [vmem:[%s2552_s5 + $0x8] sm:$0xff] %v1765_v49 }
 0x344   :  { %1605 = vsyncpa [#allocation5], 1 }
 0x345   :  { %1606 = vsyncpa [#allocation7], 1 }

// kernel: vae_forward.4
= control target key start
LH: loop header
LB: loop body
LE: loop exit
PB: predicated region body
PF: predicated region fallthrough
CT: control target
= control target key end

     0   :  { %14 = vsyncpa [#allocation3], 0  ;;  %s5326_s0 = inlined_call_operand.vmem [shape: bf16[2,2048], index: 0, kind: input, shape index: {}]   ;;  %s5327_s1 = inlined_call_operand.vmem [shape: bf16[2048,256], index: 1, kind: input, shape index: {}]   ;;  %s5328_s2 = inlined_call_operand.hbm [shape: f32[1,256], index: 2, kind: input, shape index: {}]   ;;  %s5329_s3 = inlined_call_operand.hbm [shape: f32[2,128], index: 3, kind: input, shape index: {}]   ;;  %s5330_s4 = inlined_call_operand.hbm [shape: bf16[128,2048], index: 4, kind: input, shape index: {}]   ;;  %s5331_s5 = inlined_call_operand.hbm [shape: f32[1,2048], index: 5, kind: input, shape index: {}]   ;;  %s5332_s6 = inlined_call_operand.hbm [shape: f32[2,128], index: 6, kind: output, shape index: {0}]   ;;  %s5333_s7 = inlined_call_operand.hbm [shape: f32[2,128], index: 7, kind: output, shape index: {1}]   ;;  %s5334_s8 = inlined_call_operand.vmem [shape: bf16[2,2048], index: 8, kind: output, shape index: {2}]  }
   0x1   :  { %15 = vsyncpa [#allocation6], 0 }
   0x2   :  { %16 = vsyncpa [#allocation9], 0 }
   0x3   :  { %17 = vsyncpa [#allocation4], 0 }
   0x4   :  { %18 = vsyncpa [#allocation12], 0  ;;  %s4366_s27 = smov [#allocation5]   ;;  %s4367_s29 = smov [#allocation2]  }
   0x5   :  { %s39_s28 = sshll.u32 %s4366_s27, 4  ;;  %s29_s30 = sshll.u32 %s4367_s29, 4  ;;  %s40_s28 = int_to_ptr.vmem [resolvable:$true] %s39_s28  ;;  %s30_s30 = int_to_ptr.vmem [resolvable:$true] %s29_s30 }
   0x6   :  { %s4244_s9 = scalar_lea.vmem %s40_s28, 32  ;;  %p4249_p1 = scmp.lt.s32.totalorder %s40_s28, %s40_s28 }
   0x7   :  { %p4245_p0 = scmp.ne.s32.totalorder %s40_s28, %s4244_s9  ;;  %p4250_p2 = scmp.lt.s32.totalorder %s4244_s9, %s4244_s9 }
   0x9   :  { %p4251_p3 = por %p4250_p2, %p4249_p1 }
   0xb   :  { %p4252_p4 = pnand %p4251_p3, %p4245_p0 }
   0xd   :  { %4255 = shalt.err (!%p4252_p4)
}
   0xe   :  { %42 = dma.hbm_to_vmem [thread:$0]  %s5329_s3, 32, %s40_s28, [#allocation6]  }
   0xf   :  { %s4264_s12 = scalar_lea.vmem %s30_s30, 32  ;;  %p4269_p6 = scmp.lt.s32.totalorder %s30_s30, %s30_s30 }
  0x10   :  { %p4265_p5 = scmp.ne.s32.totalorder %s30_s30, %s4264_s12  ;;  %p4270_p7 = scmp.lt.s32.totalorder %s4264_s12, %s4264_s12 }
  0x12   :  { %p4271_p8 = por %p4270_p7, %p4269_p6 }
  0x14   :  { %p4272_p9 = pnand %p4271_p8, %p4265_p5 }
  0x16   :  { %4275 = shalt.err (!%p4272_p9)
}
  0x17   :  { %32 = dma.hbm_to_vmem [thread:$0]  %s5328_s2, 32, %s30_s30, [#allocation3]  }
  0x18   :  { %s4368_s15 = smov [#allocation7]  }
  0x19   :  { %s48_s16 = sshll.u32 %s4368_s15, 4  ;;  %s49_s16 = int_to_ptr.vmem [resolvable:$true] %s48_s16 }
  0x1a   :  { %s4284_s17 = scalar_lea.vmem %s49_s16, 16384  ;;  %p4289_p11 = scmp.lt.s32.totalorder %s49_s16, %s49_s16 }
  0x1b   :  { %p4285_p10 = scmp.ne.s32.totalorder %s49_s16, %s4284_s17  ;;  %p4290_p12 = scmp.lt.s32.totalorder %s4284_s17, %s4284_s17 }
  0x1d   :  { %p4291_p13 = por %p4290_p12, %p4289_p11 }
  0x1f   :  { %p4292_p0 = pnand %p4291_p13, %p4285_p10 }
  0x21   :  { %4295 = shalt.err (!%p4292_p0)
}
  0x22   :  { %s4369_s3 = smov 1024   ;;  %s4370_s18 = smov 64  }
  0x23   :  { %54 = dma.hbm_to_vmem [thread:$0]  %s5330_s4, 16384, %s49_s16, [#allocation6], %s4369_s3, %s4369_s3, %s4370_s18  }
  0x24   :  { %s4371_s21 = smov [#allocation8]  }
  0x25   :  { %s61_s22 = sshll.u32 %s4371_s21, 4  ;;  %s62_s22 = int_to_ptr.vmem [resolvable:$true] %s61_s22 }
  0x26   :  { %s4304_s2 = scalar_lea.vmem %s62_s22, 256  ;;  %p4309_p2 = scmp.lt.s32.totalorder %s62_s22, %s62_s22 }
  0x27   :  { %p4305_p1 = scmp.ne.s32.totalorder %s62_s22, %s4304_s2  ;;  %p4310_p3 = scmp.lt.s32.totalorder %s4304_s2, %s4304_s2 }
  0x29   :  { %p4311_p4 = por %p4310_p3, %p4309_p2 }
  0x2b   :  { %p4312_p5 = pnand %p4311_p4, %p4305_p1 }
  0x2d   :  { %4315 = shalt.err (!%p4312_p5)
}
  0x2e   :  { %64 = dma.hbm_to_vmem [thread:$0]  %s5331_s5, 256, %s62_s22, [#allocation9]  }
  0x2f   :  { %4356 = dma.done.wait [#allocation3], 32  }
  0x30   :  { %4357 = vsyncadd [#allocation3], 4294967264 }
  0x31   :  { %4358 = dma.done.wait [#allocation6], 16416  }
  0x32   :  { %4359 = vsyncadd [#allocation6], 4294950880 }
  0x33   :  { %4360 = dma.done.wait [#allocation9], 256  }
  0x34   :  { %4361 = vsyncadd [#allocation9], 4294967040  ;;  %v3848_v0 = vld [vmem:[%s5327_s1 + $0x74] ss:$8 sps:$4 sm:$0xff]   ;;  %v3852_v2 = vld [vmem:[%s5327_s1 + $0x70] ss:$8 sps:$4 sm:$0xff]   ;;  %v338_v36 = vlaneseq }
  0x35   :  { %v3850_v1 = vld [vmem:[%s5327_s1 + $0x174] ss:$8 sps:$4 sm:$0xff]   ;;  %1744 = vmatprep.subr.bf16.mxu0 %v3848_v0  ;;  %v3853_v3 = vld [vmem:[%s5327_s1 + $0x170] ss:$8 sps:$4 sm:$0xff]   ;;  %v3854_v4 = vld [vmem:[%s5327_s1 + $0x64] ss:$8 sps:$4 sm:$0xff]  }
  0x36   :  { %1785 = vmatprep.subr.bf16.mxu1 %v3850_v1  ;;  %1745 = vmatpush1.bf16.msra.mxu0 %v3852_v2  ;;  %v3856_v5 = vld [vmem:[%s5327_s1 + $0x164] ss:$8 sps:$4 sm:$0xff]   ;;  %v3858_v6 = vld [vmem:[%s5327_s1 + $0x60] ss:$8 sps:$4 sm:$0xff]   ;;  %v3860_v8 = vld [vmem:[%s5327_s1 + $0x54] ss:$8 sps:$4 sm:$0xff]  }
  0x37   :  { %1786 = vmatpush1.bf16.msra.mxu1 %v3853_v3  ;;  %1746 = vmatprep.subr.bf16.mxu0 %v3854_v4  ;;  %v3859_v7 = vld [vmem:[%s5327_s1 + $0x160] ss:$8 sps:$4 sm:$0xff]   ;;  %v3862_v9 = vld [vmem:[%s5327_s1 + $0x154] ss:$8 sps:$4 sm:$0xff]   ;;  %v3864_v10 = vld [vmem:[%s5327_s1 + $0x50] ss:$8 sps:$4 sm:$0xff]  }
  0x38   :  { %1787 = vmatprep.subr.bf16.mxu1 %v3856_v5  ;;  %v3865_v11 = vld [vmem:[%s5327_s1 + $0x150] ss:$8 sps:$4 sm:$0xff]   ;;  %v3866_v12 = vld [vmem:[%s5327_s1 + $0x44] ss:$8 sps:$4 sm:$0xff]   ;;  %v3870_v14 = vld [vmem:[%s5327_s1 + $0x40] ss:$8 sps:$4 sm:$0xff]  }
  0x39   :  { %v3868_v13 = vld [vmem:[%s5327_s1 + $0x144] ss:$8 sps:$4 sm:$0xff]   ;;  %v3871_v15 = vld [vmem:[%s5327_s1 + $0x140] ss:$8 sps:$4 sm:$0xff]   ;;  %v3872_v16 = vld [vmem:[%s5327_s1 + $0x34] ss:$8 sps:$4 sm:$0xff]  }
  0x3a   :  { %1747 = vmatpush1.bf16.msra.mxu0 %v3858_v6  ;;  %v3874_v17 = vld [vmem:[%s5327_s1 + $0x134] ss:$8 sps:$4 sm:$0xff]   ;;  %v3876_v18 = vld [vmem:[%s5327_s1 + $0x30] ss:$8 sps:$4 sm:$0xff]   ;;  %v3878_v20 = vld [vmem:[%s5327_s1 + $0x24] ss:$8 sps:$4 sm:$0xff]  }
  0x3b   :  { %1788 = vmatpush1.bf16.msra.mxu1 %v3859_v7  ;;  %1748 = vmatprep.subr.bf16.mxu0 %v3860_v8  ;;  %v3877_v19 = vld [vmem:[%s5327_s1 + $0x130] ss:$8 sps:$4 sm:$0xff]   ;;  %v3880_v21 = vld [vmem:[%s5327_s1 + $0x124] ss:$8 sps:$4 sm:$0xff]   ;;  %v3882_v22 = vld [vmem:[%s5327_s1 + $0x20] ss:$8 sps:$4 sm:$0xff]  }
  0x3c   :  { %1789 = vmatprep.subr.bf16.mxu1 %v3862_v9  ;;  %v3883_v23 = vld [vmem:[%s5327_s1 + $0x120] ss:$8 sps:$4 sm:$0xff]   ;;  %v3884_v24 = vld [vmem:[%s5327_s1 + $0x14] ss:$8 sps:$4 sm:$0xff]   ;;  %v3888_v26 = vld [vmem:[%s5327_s1 + $0x10] ss:$8 sps:$4 sm:$0xff]  }
  0x3d   :  { %v3886_v25 = vld [vmem:[%s5327_s1 + $0x114] ss:$8 sps:$4 sm:$0xff]   ;;  %v3889_v27 = vld [vmem:[%s5327_s1 + $0x110] ss:$8 sps:$4 sm:$0xff]   ;;  %v3890_v28 = vld [vmem:[%s5327_s1 + $0x4] ss:$8 sps:$4 sm:$0xff]  }
  0x3e   :  { %1749 = vmatpush1.bf16.msra.mxu0 %v3864_v10  ;;  %v3892_v29 = vld [vmem:[%s5327_s1 + $0x104] ss:$8 sps:$4 sm:$0xff]   ;;  %v3894_v30 = vld [vmem:[%s5327_s1] ss:$8 sps:$4 sm:$0xff]   ;;  %v3896_v32 = vld [vmem:[%s5327_s1 + $0xf4] ss:$8 sps:$4 sm:$0xff]  }
  0x3f   :  { %1790 = vmatpush1.bf16.msra.mxu1 %v3865_v11  ;;  %1750 = vmatprep.subr.bf16.mxu0 %v3866_v12  ;;  %v3895_v31 = vld [vmem:[%s5327_s1 + $0x100] ss:$8 sps:$4 sm:$0xff]   ;;  %v3898_v33 = vld [vmem:[%s5327_s1 + $0x1f4] ss:$8 sps:$4 sm:$0xff]   ;;  %v3900_v34 = vld [vmem:[%s5327_s1 + $0xf0] ss:$8 sps:$4 sm:$0xff]  }
  0x40   :  { %1791 = vmatprep.subr.bf16.mxu1 %v3868_v13  ;;  %v3901_v35 = vld [vmem:[%s5327_s1 + $0x1f0] ss:$8 sps:$4 sm:$0xff]   ;;  %v4372_v37 = vmov 1966171168   ;;  %v3902_v39 = vld [vmem:[%s5327_s1 + $0xe4] ss:$8 sps:$4 sm:$0xff]  }
  0x41   :  { %v352_v38 = vunpack.c.l.s4 %v4372_v37  ;;  %v3904_v40 = vld [vmem:[%s5327_s1 + $0x1e4] ss:$8 sps:$4 sm:$0xff]   ;;  %v3906_v41 = vld [vmem:[%s5327_s1 + $0xe0] ss:$8 sps:$4 sm:$0xff]   ;;  %v4550_v42 = vshrl.u32 %v338_v36, 7  ;;  %s4375_s14 = smov [#allocation11]  }
  0x42   :  { %1751 = vmatpush1.bf16.msra.mxu0 %v3870_v14  ;;  %v3907_v44 = vld [vmem:[%s5327_s1 + $0x1e0] ss:$8 sps:$4 sm:$0xff]   ;;  %v3908_v45 = vld [vmem:[%s5327_s1 + $0xd4] ss:$8 sps:$4 sm:$0xff]   ;;  %v3912_v47 = vld [vmem:[%s5327_s1 + $0xd0] ss:$8 sps:$4 sm:$0xff]  }
  0x43   :  { %1792 = vmatpush1.bf16.msra.mxu1 %v3871_v15  ;;  %1752 = vmatprep.subr.bf16.mxu0 %v3872_v16  ;;  %v353_v43 = vunpack.c.0.s8 %v352_v38  ;;  %v3910_v46 = vld [vmem:[%s5327_s1 + $0x1d4] ss:$8 sps:$4 sm:$0xff]   ;;  %v3913_v48 = vld [vmem:[%s5327_s1 + $0x1d0] ss:$8 sps:$4 sm:$0xff]   ;;  %v3914_v50 = vld [vmem:[%s5327_s1 + $0xc4] ss:$8 sps:$4 sm:$0xff]  }
  0x44   :  { %1793 = vmatprep.subr.bf16.mxu1 %v3874_v17  ;;  %v3916_v51 = vld [vmem:[%s5327_s1 + $0x1c4] ss:$8 sps:$4 sm:$0xff]   ;;  %v3918_v53 = vld [vmem:[%s5327_s1 + $0xc0] ss:$8 sps:$4 sm:$0xff]   ;;  %v3920_v56 = vld [vmem:[%s5327_s1 + $0xb4] ss:$8 sps:$4 sm:$0xff]  }
  0x45   :  { %v4568_v49 = vsub.s32 %v353_v43, %v4550_v42  ;;  %v78_v52 = vld [vmem:[%s5326_s0] sm:$0xff]  ;;  %v3922_v57 = vld [vmem:[%s5327_s1 + $0x1b4] ss:$8 sps:$4 sm:$0xff]   ;;  %v3924_v59 = vld [vmem:[%s5327_s1 + $0xb0] ss:$8 sps:$4 sm:$0xff]   ;;  %s3427_s15 = sshll.u32 %s4375_s14, 4  ;;  %s3428_s15 = int_to_ptr.vmem [resolvable:$true] %s3427_s15 }
  0x46   :  { %1753 = vmatpush1.bf16.msra.mxu0 %v3876_v18  ;;  %v3919_v55 = vld [vmem:[%s5327_s1 + $0x1c0] ss:$8 sps:$4 sm:$0xff]   ;;  %v3925_v61 = vld [vmem:[%s5327_s1 + $0x1b0] ss:$8 sps:$4 sm:$0xff]   ;;  %v3926_v62 = vld [vmem:[%s5327_s1 + $0xa4] ss:$8 sps:$4 sm:$0xff]   ;;  %v350_v1 = vcombine.high %v78_v52, %v78_v52 }
  0x47   :  { %1794 = vmatpush1.bf16.msra.mxu1 %v3877_v19  ;;  %1754 = vmatprep.subr.bf16.mxu0 %v3878_v20  ;;  %v357_v54 = vrot.slane %v78_v52, %v4568_v49  ;;  %v3928_v63 = vld [vmem:[%s5327_s1 + $0x1a4] ss:$8 sps:$4 sm:$0xff]   ;;  %v3930_v2 = vld [vmem:[%s5327_s1 + $0xa0] ss:$8 sps:$4 sm:$0xff]   ;;  %v3932_v4 = vld [vmem:[%s5327_s1 + $0x94] ss:$8 sps:$4 sm:$0xff]  }
  0x48   :  { %1795 = vmatprep.subr.bf16.mxu1 %v3880_v21  ;;  %v3931_v3 = vld [vmem:[%s5327_s1 + $0x1a0] ss:$8 sps:$4 sm:$0xff]   ;;  %v3934_v5 = vld [vmem:[%s5327_s1 + $0x194] ss:$8 sps:$4 sm:$0xff]   ;;  %v4618_v6 = vrot.slane %v350_v1, %v4568_v49  ;;  %v3936_v7 = vld [vmem:[%s5327_s1 + $0x90] ss:$8 sps:$4 sm:$0xff]  }
  0x49   :  { %v365_v58 = vcombine.high %v357_v54, %v357_v54  ;;  %v3937_v8 = vld [vmem:[%s5327_s1 + $0x190] ss:$8 sps:$4 sm:$0xff]   ;;  %v3938_v9 = vld [vmem:[%s5327_s1 + $0x84] ss:$8 sps:$4 sm:$0xff]   ;;  %v3942_v12 = vld [vmem:[%s5327_s1 + $0x80] ss:$8 sps:$4 sm:$0xff]   ;;  %v373_v13 = vrot.slane %v357_v54, %v4568_v49 }
  0x4a   :  { %1755 = vmatpush1.bf16.msra.mxu0 %v3882_v22  ;;  %v3940_v10 = vld [vmem:[%s5327_s1 + $0x184] ss:$8 sps:$4 sm:$0xff]   ;;  %v366_v11 = vcombine.high %v4618_v6, %v4618_v6  ;;  %v3943_v14 = vld [vmem:[%s5327_s1 + $0x180] ss:$8 sps:$4 sm:$0xff]   ;;  %v3947_v15 = vld [vmem:[%s5327_s1 + $0x274] ss:$8 sps:$4 sm:$0xff]  }
  0x4b   :  { %1796 = vmatpush1.bf16.msra.mxu1 %v3883_v23  ;;  %1756 = vmatprep.subr.bf16.mxu0 %v3884_v24  ;;  %v387_v60 = vrot.slane %v365_v58, %v4568_v49  ;;  %v3950_v16 = vld [vmem:[%s5327_s1 + $0x374] ss:$8 sps:$4 sm:$0xff]   ;;  %v395_v18 = vcombine.high %v373_v13, %v373_v13  ;;  %v3945_v19 = vld [vmem:[%s5327_s1 + $0x270] ss:$8 sps:$4 sm:$0xff]   ;;  %v3953_v21 = vld [vmem:[%s5327_s1 + $0x264] ss:$8 sps:$4 sm:$0xff]  }
  0x4c   :  { %1797 = vmatprep.subr.bf16.mxu1 %v3886_v25  ;;  %v394_v17 = vrot.slane %v366_v11, %v4568_v49  ;;  %v3948_v20 = vld [vmem:[%s5327_s1 + $0x370] ss:$8 sps:$4 sm:$0xff]   ;;  %v3956_v22 = vld [vmem:[%s5327_s1 + $0x364] ss:$8 sps:$4 sm:$0xff]   ;;  %v3951_v24 = vld [vmem:[%s5327_s1 + $0x260] ss:$8 sps:$4 sm:$0xff]  }
  0x4d   :  { %v397_v0 = vcombine.high %v387_v60, %v387_v60  ;;  %1776 = vmatprep.mubr.bf16.mxu0 %v387_v60  ;;  %v3954_v25 = vld [vmem:[%s5327_s1 + $0x360] ss:$8 sps:$4 sm:$0xff]   ;;  %v3969_v36 = vld [vmem:[%s5327_s1 + $0x230] ss:$8 sps:$4 sm:$0xff]   ;;  %v3977_v38 = vld [vmem:[%s5327_s1 + $0x224] ss:$8 sps:$4 sm:$0xff]  }
  0x4e   :  { %1757 = vmatpush1.bf16.msra.mxu0 %v3888_v26  ;;  %v398_v23 = vcombine.high %v394_v17, %v394_v17  ;;  %v3959_v26 = vld [vmem:[%s5327_s1 + $0x254] ss:$8 sps:$4 sm:$0xff]   ;;  %v3972_v37 = vld [vmem:[%s5327_s1 + $0x330] ss:$8 sps:$4 sm:$0xff]   ;;  %v3999_v58 = vld [vmem:[%s5327_s1 + $0x2e0] ss:$8 sps:$4 sm:$0xff]  }
  0x4f   :  { %1798 = vmatpush1.bf16.msra.mxu1 %v3889_v27  ;;  %1758 = vmatprep.subr.bf16.mxu0 %v3890_v28  ;;  %v3962_v27 = vld [vmem:[%s5327_s1 + $0x354] ss:$8 sps:$4 sm:$0xff]   ;;  %v3957_v28 = vld [vmem:[%s5327_s1 + $0x250] ss:$8 sps:$4 sm:$0xff]   ;;  %v4016_v1 = vld [vmem:[%s5327_s1 + $0x3c4] ss:$8 sps:$4 sm:$0xff]  }
  0x50   :  { %1799 = vmatprep.subr.bf16.mxu1 %v3892_v29  ;;  %1817 = vmatprep.mubr.bf16.mxu1 %v397_v0  ;;  %v3960_v29 = vld [vmem:[%s5327_s1 + $0x350] ss:$8 sps:$4 sm:$0xff]   ;;  %v3983_v43 = vld [vmem:[%s5327_s1 + $0x214] ss:$8 sps:$4 sm:$0xff]   ;;  %v4013_v0 = vld [vmem:[%s5327_s1 + $0x2c4] ss:$8 sps:$4 sm:$0xff]  }
  0x51   :  { %v3995_v52 = vld [vmem:[%s5327_s1 + $0x2f4] ss:$8 sps:$4 sm:$0xff]   ;;  %v3993_v54 = vld [vmem:[%s5327_s1 + $0x2f0] ss:$8 sps:$4 sm:$0xff]   ;;  %v4023_v11 = vld [vmem:[%s5327_s1 + $0x2a0] ss:$8 sps:$4 sm:$0xff]  }
  0x52   :  { %1759 = vmatpush1.bf16.msra.mxu0 %v3894_v30  ;;  %v3965_v30 = vld [vmem:[%s5327_s1 + $0x244] ss:$8 sps:$4 sm:$0xff]   ;;  %v4007_v60 = vld [vmem:[%s5327_s1 + $0x2d4] ss:$8 sps:$4 sm:$0xff]  }
  0x53   :  { %1800 = vmatpush1.bf16.msra.mxu1 %v3895_v31  ;;  %1760 = vmatprep.subr.bf16.mxu0 %v3896_v32  ;;  %v3968_v31 = vld [vmem:[%s5327_s1 + $0x344] ss:$8 sps:$4 sm:$0xff]   ;;  %v3963_v32 = vld [vmem:[%s5327_s1 + $0x240] ss:$8 sps:$4 sm:$0xff]  }
  0x54   :  { %1801 = vmatprep.subr.bf16.mxu1 %v3898_v33  ;;  %v3966_v33 = vld [vmem:[%s5327_s1 + $0x340] ss:$8 sps:$4 sm:$0xff]  }
  0x56   :  { %1761 = vmatpush2.bf16.msra.mxu0 %v3900_v34  ;;  %v3971_v34 = vld [vmem:[%s5327_s1 + $0x234] ss:$8 sps:$4 sm:$0xff]  }
  0x57   :  { %1802 = vmatpush2.bf16.msra.mxu1 %v3901_v35  ;;  %1762 = vmatprep.subr.bf16.mxu0 %v3902_v39  ;;  %v3974_v35 = vld [vmem:[%s5327_s1 + $0x334] ss:$8 sps:$4 sm:$0xff]   ;;  %v3980_v39 = vld [vmem:[%s5327_s1 + $0x324] ss:$8 sps:$4 sm:$0xff]  }
  0x58   :  { %1803 = vmatprep.subr.bf16.mxu1 %v3904_v40  ;;  %v3975_v40 = vld [vmem:[%s5327_s1 + $0x220] ss:$8 sps:$4 sm:$0xff]  }
  0x5a   :  { %1763 = vmatpush2.bf16.msra.mxu0 %v3906_v41  ;;  %v3978_v41 = vld [vmem:[%s5327_s1 + $0x320] ss:$8 sps:$4 sm:$0xff]  }
  0x5b   :  { %1804 = vmatpush2.bf16.msra.mxu1 %v3907_v44  ;;  %1764 = vmatprep.subr.bf16.mxu0 %v3908_v45  ;;  %v3986_v44 = vld [vmem:[%s5327_s1 + $0x314] ss:$8 sps:$4 sm:$0xff]   ;;  %v3981_v45 = vld [vmem:[%s5327_s1 + $0x210] ss:$8 sps:$4 sm:$0xff]  }
  0x5c   :  { %1805 = vmatprep.subr.bf16.mxu1 %v3910_v46  ;;  %v3984_v46 = vld [vmem:[%s5327_s1 + $0x310] ss:$8 sps:$4 sm:$0xff]  }
  0x5e   :  { %1765 = vmatpush2.bf16.msra.mxu0 %v3912_v47  ;;  %v3989_v47 = vld [vmem:[%s5327_s1 + $0x204] ss:$8 sps:$4 sm:$0xff]  }
  0x5f   :  { %1806 = vmatpush2.bf16.msra.mxu1 %v3913_v48  ;;  %1766 = vmatprep.subr.bf16.mxu0 %v3914_v50  ;;  %v3992_v48 = vld [vmem:[%s5327_s1 + $0x304] ss:$8 sps:$4 sm:$0xff]   ;;  %v3987_v50 = vld [vmem:[%s5327_s1 + $0x200] ss:$8 sps:$4 sm:$0xff]  }
  0x60   :  { %1807 = vmatprep.subr.bf16.mxu1 %v3916_v51  ;;  %v3990_v51 = vld [vmem:[%s5327_s1 + $0x300] ss:$8 sps:$4 sm:$0xff]  }
  0x62   :  { %1767 = vmatpush2.bf16.msra.mxu0 %v3918_v53  ;;  %v3998_v53 = vld [vmem:[%s5327_s1 + $0x3f4] ss:$8 sps:$4 sm:$0xff]  }
  0x63   :  { %1808 = vmatpush2.bf16.msra.mxu1 %v3919_v55  ;;  %1768 = vmatprep.subr.bf16.mxu0 %v3920_v56  ;;  %v3996_v55 = vld [vmem:[%s5327_s1 + $0x3f0] ss:$8 sps:$4 sm:$0xff]   ;;  %v4001_v56 = vld [vmem:[%s5327_s1 + $0x2e4] ss:$8 sps:$4 sm:$0xff]  }
  0x64   :  { %1809 = vmatprep.subr.bf16.mxu1 %v3922_v57  ;;  %v4004_v57 = vld [vmem:[%s5327_s1 + $0x3e4] ss:$8 sps:$4 sm:$0xff]  }
  0x66   :  { %1769 = vmatpush2.bf16.msra.mxu0 %v3924_v59  ;;  %v4002_v59 = vld [vmem:[%s5327_s1 + $0x3e0] ss:$8 sps:$4 sm:$0xff]  }
  0x67   :  { %1810 = vmatpush2.bf16.msra.mxu1 %v3925_v61  ;;  %1770 = vmatprep.subr.bf16.mxu0 %v3926_v62  ;;  %v4010_v61 = vld [vmem:[%s5327_s1 + $0x3d4] ss:$8 sps:$4 sm:$0xff]   ;;  %v4005_v62 = vld [vmem:[%s5327_s1 + $0x2d0] ss:$8 sps:$4 sm:$0xff]  }
  0x68   :  { %1811 = vmatprep.subr.bf16.mxu1 %v3928_v63  ;;  %v4008_v63 = vld [vmem:[%s5327_s1 + $0x3d0] ss:$8 sps:$4 sm:$0xff]  }
  0x6a   :  { %1771 = vmatpush2.bf16.msra.mxu0 %v3930_v2  ;;  %v4011_v2 = vld [vmem:[%s5327_s1 + $0x2c0] ss:$8 sps:$4 sm:$0xff]  }
  0x6b   :  { %1812 = vmatpush2.bf16.msra.mxu1 %v3931_v3  ;;  %1772 = vmatprep.subr.bf16.mxu0 %v3932_v4  ;;  %v4014_v3 = vld [vmem:[%s5327_s1 + $0x3c0] ss:$8 sps:$4 sm:$0xff]   ;;  %v4019_v4 = vld [vmem:[%s5327_s1 + $0x2b4] ss:$8 sps:$4 sm:$0xff]  }
  0x6c   :  { %1813 = vmatprep.subr.bf16.mxu1 %v3934_v5  ;;  %v4022_v5 = vld [vmem:[%s5327_s1 + $0x3b4] ss:$8 sps:$4 sm:$0xff]  }
  0x6e   :  { %1773 = vmatpush2.bf16.msra.mxu0 %v3936_v7  ;;  %v4017_v7 = vld [vmem:[%s5327_s1 + $0x2b0] ss:$8 sps:$4 sm:$0xff]  }
  0x6f   :  { %1814 = vmatpush2.bf16.msra.mxu1 %v3937_v8  ;;  %1774 = vmatprep.subr.bf16.mxu0 %v3938_v9  ;;  %v4020_v8 = vld [vmem:[%s5327_s1 + $0x3b0] ss:$8 sps:$4 sm:$0xff]   ;;  %v4025_v9 = vld [vmem:[%s5327_s1 + $0x2a4] ss:$8 sps:$4 sm:$0xff]  }
  0x70   :  { %1815 = vmatprep.subr.bf16.mxu1 %v3940_v10  ;;  %v4028_v10 = vld [vmem:[%s5327_s1 + $0x3a4] ss:$8 sps:$4 sm:$0xff]  }
  0x72   :  { %1775 = vmatpush2.bf16.msra.mxu0 %v3942_v12  ;;  %v4026_v12 = vld [vmem:[%s5327_s1 + $0x3a0] ss:$8 sps:$4 sm:$0xff]  }
  0x73   :  { %1816 = vmatpush2.bf16.msra.mxu1 %v3943_v14  ;;  %1826 = vmatprep.subr.bf16.mxu0 %v3947_v15  ;;  %v4034_v14 = vld [vmem:[%s5327_s1 + $0x394] ss:$8 sps:$4 sm:$0xff]   ;;  %v4029_v15 = vld [vmem:[%s5327_s1 + $0x290] ss:$8 sps:$4 sm:$0xff]  }
  0x74   :  { %1867 = vmatprep.subr.bf16.mxu1 %v3950_v16  ;;  %v4032_v16 = vld [vmem:[%s5327_s1 + $0x390] ss:$8 sps:$4 sm:$0xff]  }
  0x75   :  { %1777 = vmatmul.mubr.bf16.vlgmr.msra.gmra.mxu0 %v373_v13  ;;  %v4031_v13 = vld [vmem:[%s5327_s1 + $0x294] ss:$8 sps:$4 sm:$0xff]  }
  0x76   :  { %1818 = vmatmul.mubr.bf16.vlgmr.msra.gmra.mxu1 %v395_v18  ;;  %1827 = vmatpush1.bf16.msra.mxu0 %v3945_v19  ;;  %v4040_v18 = vld [vmem:[%s5327_s1 + $0x384] ss:$8 sps:$4 sm:$0xff]   ;;  %v4035_v19 = vld [vmem:[%s5327_s1 + $0x280] ss:$8 sps:$4 sm:$0xff]  }
  0x77   :  { %1868 = vmatpush1.bf16.msra.mxu1 %v3948_v20  ;;  %1828 = vmatprep.subr.bf16.mxu0 %v3953_v21  ;;  %v380_v20 = vrot.slane %v4618_v6, %v4568_v49  ;;  %v4038_v21 = vld [vmem:[%s5327_s1 + $0x380] ss:$8 sps:$4 sm:$0xff]   ;;  %v4041_v6 = vld [vmem:[%s5327_s1 + $0x470] ss:$8 sps:$4 sm:$0xff]  }
  0x78   :  { %1869 = vmatprep.subr.bf16.mxu1 %v3956_v22  ;;  %1858 = vmatprep.mubr.bf16.mxu0 %v394_v17  ;;  %v4037_v17 = vld [vmem:[%s5327_s1 + $0x284] ss:$8 sps:$4 sm:$0xff]   ;;  %v4043_v22 = vld [vmem:[%s5327_s1 + $0x474] ss:$8 sps:$4 sm:$0xff]  }
  0x79   :  { %1899 = vmatprep.mubr.bf16.mxu1 %v398_v23  ;;  %v4046_v23 = vld [vmem:[%s5327_s1 + $0x574] ss:$8 sps:$4 sm:$0xff]  }
  0x7a   :  { %1829 = vmatpush1.bf16.msra.mxu0 %v3951_v24  ;;  %v396_v24 = vcombine.high %v380_v20, %v380_v20 }
  0x7b   :  { %1870 = vmatpush1.bf16.msra.mxu1 %v3954_v25  ;;  %1830 = vmatprep.subr.bf16.mxu0 %v3959_v26  ;;  %v4044_v25 = vld [vmem:[%s5327_s1 + $0x570] ss:$8 sps:$4 sm:$0xff]   ;;  %v4851_v26 = vld [vmem:[%s5326_s0 + $0x8] sm:$0xff] }
  0x7c   :  { %1871 = vmatprep.subr.bf16.mxu1 %v3962_v27  ;;  %v4049_v27 = vld [vmem:[%s5327_s1 + $0x464] ss:$8 sps:$4 sm:$0xff]  }
  0x7e   :  { %1831 = vmatpush1.bf16.msra.mxu0 %v3957_v28  ;;  %v4052_v28 = vld [vmem:[%s5327_s1 + $0x564] ss:$8 sps:$4 sm:$0xff]  }
  0x7f   :  { %1872 = vmatpush1.bf16.msra.mxu1 %v3960_v29  ;;  %1832 = vmatprep.subr.bf16.mxu0 %v3965_v30  ;;  %v4861_v29 = vrot.slane %v4851_v26, %v4568_v49 }
  0x80   :  { %1873 = vmatprep.subr.bf16.mxu1 %v3968_v31  ;;  %v4047_v31 = vld [vmem:[%s5327_s1 + $0x460] ss:$8 sps:$4 sm:$0xff]  }
  0x81   :  { %v414_v30 = vcombine.high %v4861_v29, %v4861_v29 }
  0x82   :  { %1833 = vmatpush1.bf16.msra.mxu0 %v3963_v32  ;;  %v4050_v32 = vld [vmem:[%s5327_s1 + $0x560] ss:$8 sps:$4 sm:$0xff]  }
  0x83   :  { %1874 = vmatpush1.bf16.msra.mxu1 %v3966_v33  ;;  %1834 = vmatprep.subr.bf16.mxu0 %v3971_v34  ;;  %v4055_v33 = vld [vmem:[%s5327_s1 + $0x454] ss:$8 sps:$4 sm:$0xff]  }
  0x84   :  { %1875 = vmatprep.subr.bf16.mxu1 %v3974_v35  ;;  %v4058_v34 = vld [vmem:[%s5327_s1 + $0x554] ss:$8 sps:$4 sm:$0xff]   ;;  %v436_v35 = vrot.slane %v414_v30, %v4568_v49 }
  0x86   :  { %1835 = vmatpush1.bf16.msra.mxu0 %v3969_v36  ;;  %v446_v36 = vcombine.high %v436_v35, %v436_v35 }
  0x87   :  { %1876 = vmatpush1.bf16.msra.mxu1 %v3972_v37  ;;  %1836 = vmatprep.subr.bf16.mxu0 %v3977_v38  ;;  %v4053_v37 = vld [vmem:[%s5327_s1 + $0x450] ss:$8 sps:$4 sm:$0xff]  }
  0x88   :  { %1877 = vmatprep.subr.bf16.mxu1 %v3980_v39  ;;  %v4056_v38 = vld [vmem:[%s5327_s1 + $0x550] ss:$8 sps:$4 sm:$0xff]   ;;  %v4061_v39 = vld [vmem:[%s5327_s1 + $0x444] ss:$8 sps:$4 sm:$0xff]  }
  0x8a   :  { %1837 = vmatpush1.bf16.msra.mxu0 %v3975_v40  ;;  %v4064_v40 = vld [vmem:[%s5327_s1 + $0x544] ss:$8 sps:$4 sm:$0xff]  }
  0x8b   :  { %1878 = vmatpush1.bf16.msra.mxu1 %v3978_v41  ;;  %1838 = vmatprep.subr.bf16.mxu0 %v3983_v43  ;;  %v4059_v41 = vld [vmem:[%s5327_s1 + $0x440] ss:$8 sps:$4 sm:$0xff]  }
  0x8c   :  { %1879 = vmatprep.subr.bf16.mxu1 %v3986_v44  ;;  %v4062_v43 = vld [vmem:[%s5327_s1 + $0x540] ss:$8 sps:$4 sm:$0xff]   ;;  %v4067_v44 = vld [vmem:[%s5327_s1 + $0x434] ss:$8 sps:$4 sm:$0xff]  }
  0x8e   :  { %1839 = vmatpush1.bf16.msra.mxu0 %v3981_v45  ;;  %v4070_v45 = vld [vmem:[%s5327_s1 + $0x534] ss:$8 sps:$4 sm:$0xff]  }
  0x8f   :  { %1880 = vmatpush1.bf16.msra.mxu1 %v3984_v46  ;;  %1840 = vmatprep.subr.bf16.mxu0 %v3989_v47  ;;  %v4065_v46 = vld [vmem:[%s5327_s1 + $0x430] ss:$8 sps:$4 sm:$0xff]  }
  0x90   :  { %1881 = vmatprep.subr.bf16.mxu1 %v3992_v48  ;;  %v4068_v47 = vld [vmem:[%s5327_s1 + $0x530] ss:$8 sps:$4 sm:$0xff]   ;;  %v4073_v48 = vld [vmem:[%s5327_s1 + $0x424] ss:$8 sps:$4 sm:$0xff]  }
  0x92   :  { %1841 = vmatpush1.bf16.msra.mxu0 %v3987_v50  ;;  %v4076_v50 = vld [vmem:[%s5327_s1 + $0x524] ss:$8 sps:$4 sm:$0xff]  }
  0x93   :  { %1882 = vmatpush1.bf16.msra.mxu1 %v3990_v51  ;;  %1842 = vmatprep.subr.bf16.mxu0 %v3995_v52  ;;  %v4071_v51 = vld [vmem:[%s5327_s1 + $0x420] ss:$8 sps:$4 sm:$0xff]  }
  0x94   :  { %1883 = vmatprep.subr.bf16.mxu1 %v3998_v53  ;;  %v4074_v52 = vld [vmem:[%s5327_s1 + $0x520] ss:$8 sps:$4 sm:$0xff]   ;;  %v4079_v53 = vld [vmem:[%s5327_s1 + $0x414] ss:$8 sps:$4 sm:$0xff]  }
  0x96   :  { %1843 = vmatpush2.bf16.msra.mxu0 %v3993_v54  ;;  %v4082_v54 = vld [vmem:[%s5327_s1 + $0x514] ss:$8 sps:$4 sm:$0xff]  }
  0x97   :  { %1884 = vmatpush2.bf16.msra.mxu1 %v3996_v55  ;;  %1844 = vmatprep.subr.bf16.mxu0 %v4001_v56  ;;  %v4077_v55 = vld [vmem:[%s5327_s1 + $0x410] ss:$8 sps:$4 sm:$0xff]  }
  0x98   :  { %1885 = vmatprep.subr.bf16.mxu1 %v4004_v57  ;;  %v4080_v56 = vld [vmem:[%s5327_s1 + $0x510] ss:$8 sps:$4 sm:$0xff]   ;;  %v4085_v57 = vld [vmem:[%s5327_s1 + $0x404] ss:$8 sps:$4 sm:$0xff]  }
  0x9a   :  { %1845 = vmatpush2.bf16.msra.mxu0 %v3999_v58  ;;  %v4088_v58 = vld [vmem:[%s5327_s1 + $0x504] ss:$8 sps:$4 sm:$0xff]  }
  0x9b   :  { %1886 = vmatpush2.bf16.msra.mxu1 %v4002_v59  ;;  %1846 = vmatprep.subr.bf16.mxu0 %v4007_v60  ;;  %v4083_v59 = vld [vmem:[%s5327_s1 + $0x400] ss:$8 sps:$4 sm:$0xff]  }
  0x9c   :  { %1887 = vmatprep.subr.bf16.mxu1 %v4010_v61  ;;  %v4086_v60 = vld [vmem:[%s5327_s1 + $0x500] ss:$8 sps:$4 sm:$0xff]   ;;  %v4091_v61 = vld [vmem:[%s5327_s1 + $0x4f4] ss:$8 sps:$4 sm:$0xff]  }
  0x9e   :  { %1847 = vmatpush2.bf16.msra.mxu0 %v4005_v62  ;;  %v4094_v62 = vld [vmem:[%s5327_s1 + $0x5f4] ss:$8 sps:$4 sm:$0xff]  }
  0x9f   :  { %1888 = vmatpush2.bf16.msra.mxu1 %v4008_v63  ;;  %1848 = vmatprep.subr.bf16.mxu0 %v4013_v0  ;;  %v4089_v63 = vld [vmem:[%s5327_s1 + $0x4f0] ss:$8 sps:$4 sm:$0xff]  }
  0xa0   :  { %1889 = vmatprep.subr.bf16.mxu1 %v4016_v1  ;;  %v4092_v0 = vld [vmem:[%s5327_s1 + $0x5f0] ss:$8 sps:$4 sm:$0xff]   ;;  %v4097_v1 = vld [vmem:[%s5327_s1 + $0x4e4] ss:$8 sps:$4 sm:$0xff]  }
  0xa2   :  { %1849 = vmatpush2.bf16.msra.mxu0 %v4011_v2  ;;  %v4100_v2 = vld [vmem:[%s5327_s1 + $0x5e4] ss:$8 sps:$4 sm:$0xff]  }
  0xa3   :  { %1890 = vmatpush2.bf16.msra.mxu1 %v4014_v3  ;;  %1850 = vmatprep.subr.bf16.mxu0 %v4019_v4  ;;  %v4095_v3 = vld [vmem:[%s5327_s1 + $0x4e0] ss:$8 sps:$4 sm:$0xff]  }
  0xa4   :  { %1891 = vmatprep.subr.bf16.mxu1 %v4022_v5  ;;  %v4098_v4 = vld [vmem:[%s5327_s1 + $0x5e0] ss:$8 sps:$4 sm:$0xff]   ;;  %v4103_v5 = vld [vmem:[%s5327_s1 + $0x4d4] ss:$8 sps:$4 sm:$0xff]  }
  0xa6   :  { %1851 = vmatpush2.bf16.msra.mxu0 %v4017_v7  ;;  %v4106_v7 = vld [vmem:[%s5327_s1 + $0x5d4] ss:$8 sps:$4 sm:$0xff]  }
  0xa7   :  { %1892 = vmatpush2.bf16.msra.mxu1 %v4020_v8  ;;  %1852 = vmatprep.subr.bf16.mxu0 %v4025_v9  ;;  %v4101_v8 = vld [vmem:[%s5327_s1 + $0x4d0] ss:$8 sps:$4 sm:$0xff]  }
  0xa8   :  { %1893 = vmatprep.subr.bf16.mxu1 %v4028_v10  ;;  %v4104_v9 = vld [vmem:[%s5327_s1 + $0x5d0] ss:$8 sps:$4 sm:$0xff]   ;;  %v4109_v10 = vld [vmem:[%s5327_s1 + $0x4c4] ss:$8 sps:$4 sm:$0xff]  }
  0xaa   :  { %1853 = vmatpush2.bf16.msra.mxu0 %v4023_v11  ;;  %v4112_v11 = vld [vmem:[%s5327_s1 + $0x5c4] ss:$8 sps:$4 sm:$0xff]  }
  0xab   :  { %1894 = vmatpush2.bf16.msra.mxu1 %v4026_v12  ;;  %1854 = vmatprep.subr.bf16.mxu0 %v4031_v13  ;;  %v4107_v12 = vld [vmem:[%s5327_s1 + $0x4c0] ss:$8 sps:$4 sm:$0xff]  }
  0xac   :  { %1895 = vmatprep.subr.bf16.mxu1 %v4034_v14  ;;  %v4110_v13 = vld [vmem:[%s5327_s1 + $0x5c0] ss:$8 sps:$4 sm:$0xff]   ;;  %v4115_v14 = vld [vmem:[%s5327_s1 + $0x4b4] ss:$8 sps:$4 sm:$0xff]  }
  0xae   :  { %1855 = vmatpush2.bf16.msra.mxu0 %v4029_v15  ;;  %v4118_v15 = vld [vmem:[%s5327_s1 + $0x5b4] ss:$8 sps:$4 sm:$0xff]  }
  0xaf   :  { %1896 = vmatpush2.bf16.msra.mxu1 %v4032_v16  ;;  %1856 = vmatprep.subr.bf16.mxu0 %v4037_v17  ;;  %v4113_v16 = vld [vmem:[%s5327_s1 + $0x4b0] ss:$8 sps:$4 sm:$0xff]  }
  0xb0   :  { %1897 = vmatprep.subr.bf16.mxu1 %v4040_v18  ;;  %v4116_v17 = vld [vmem:[%s5327_s1 + $0x5b0] ss:$8 sps:$4 sm:$0xff]   ;;  %v4121_v18 = vld [vmem:[%s5327_s1 + $0x4a4] ss:$8 sps:$4 sm:$0xff]  }
  0xb2   :  { %1857 = vmatpush2.bf16.msra.mxu0 %v4035_v19  ;;  %v4124_v19 = vld [vmem:[%s5327_s1 + $0x5a4] ss:$8 sps:$4 sm:$0xff]  }
  0xb3   :  { %1898 = vmatpush2.bf16.msra.mxu1 %v4038_v21  ;;  %1908 = vmatprep.subr.bf16.mxu0 %v4043_v22  ;;  %v4119_v21 = vld [vmem:[%s5327_s1 + $0x4a0] ss:$8 sps:$4 sm:$0xff]  }
  0xb4   :  { %1949 = vmatprep.subr.bf16.mxu1 %v4046_v23  ;;  %v4122_v22 = vld [vmem:[%s5327_s1 + $0x5a0] ss:$8 sps:$4 sm:$0xff]   ;;  %v4127_v23 = vld [vmem:[%s5327_s1 + $0x494] ss:$8 sps:$4 sm:$0xff]  }
  0xb5   :  { %1859 = vmatmul.mubr.bf16.vlgmr.msra.gmra.mxu0 %v380_v20  ;;  %v399_v20 = vcombine.high %v4851_v26, %v4851_v26  ;;  %v4128_v26 = vld [vmem:[%s5327_s1 + $0x590] ss:$8 sps:$4 sm:$0xff]  }
  0xb6   :  { %1900 = vmatmul.mubr.bf16.vlgmr.msra.gmra.mxu1 %v396_v24  ;;  %1909 = vmatpush1.bf16.msra.mxu0 %v4041_v6  ;;  %v4130_v24 = vld [vmem:[%s5327_s1 + $0x594] ss:$8 sps:$4 sm:$0xff]  }
  0xb7   :  { %1950 = vmatpush1.bf16.msra.mxu1 %v4044_v25  ;;  %1910 = vmatprep.subr.bf16.mxu0 %v4049_v27  ;;  %v5025_v6 = vrot.slane %v399_v20, %v4568_v49  ;;  %v4125_v25 = vld [vmem:[%s5327_s1 + $0x490] ss:$8 sps:$4 sm:$0xff]   ;;  %v4133_v27 = vld [vmem:[%s5327_s1 + $0x484] ss:$8 sps:$4 sm:$0xff]  }
  0xb8   :  { %1951 = vmatprep.subr.bf16.mxu1 %v4052_v28  ;;  %1940 = vmatprep.mubr.bf16.mxu0 %v436_v35  ;;  %v4136_v28 = vld [vmem:[%s5327_s1 + $0x584] ss:$8 sps:$4 sm:$0xff]  }
  0xb9   :  { %1981 = vmatprep.mubr.bf16.mxu1 %v446_v36  ;;  %v415_v30 = vcombine.high %v5025_v6, %v5025_v6  ;;  %v4208_v20 = vld [vmem:[%s5327_s1 + $0x7c4] ss:$8 sps:$4 sm:$0xff]  }
  0xba   :  { %1911 = vmatpush1.bf16.msra.mxu0 %v4047_v31  ;;  %v422_v31 = vrot.slane %v4861_v29, %v4568_v49  ;;  %v4142_v29 = vld [vmem:[%s5327_s1 + $0x774] ss:$8 sps:$4 sm:$0xff]  }
  0xbb   :  { %1952 = vmatpush1.bf16.msra.mxu1 %v4050_v32  ;;  %1912 = vmatprep.subr.bf16.mxu0 %v4055_v33  ;;  %v4131_v32 = vld [vmem:[%s5327_s1 + $0x480] ss:$8 sps:$4 sm:$0xff]   ;;  %v443_v35 = vrot.slane %v415_v30, %v4568_v49 }
  0xbc   :  { %1953 = vmatprep.subr.bf16.mxu1 %v4058_v34  ;;  %v4134_v33 = vld [vmem:[%s5327_s1 + $0x580] ss:$8 sps:$4 sm:$0xff]   ;;  %v4139_v34 = vld [vmem:[%s5327_s1 + $0x674] ss:$8 sps:$4 sm:$0xff]   ;;  %v444_v36 = vcombine.high %v422_v31, %v422_v31 }
  0xbd   :  { %v4215_v30 = vld [vmem:[%s5327_s1 + $0x6a0] ss:$8 sps:$4 sm:$0xff]  }
  0xbe   :  { %1913 = vmatpush1.bf16.msra.mxu0 %v4053_v37  ;;  %v4137_v37 = vld [vmem:[%s5327_s1 + $0x670] ss:$8 sps:$4 sm:$0xff]  }
  0xbf   :  { %1954 = vmatpush1.bf16.msra.mxu1 %v4056_v38  ;;  %1914 = vmatprep.subr.bf16.mxu0 %v4061_v39  ;;  %v4140_v38 = vld [vmem:[%s5327_s1 + $0x770] ss:$8 sps:$4 sm:$0xff]   ;;  %v4145_v39 = vld [vmem:[%s5327_s1 + $0x664] ss:$8 sps:$4 sm:$0xff]  }
  0xc0   :  { %1955 = vmatprep.subr.bf16.mxu1 %v4064_v40  ;;  %v4148_v40 = vld [vmem:[%s5327_s1 + $0x764] ss:$8 sps:$4 sm:$0xff]  }
  0xc2   :  { %1915 = vmatpush1.bf16.msra.mxu0 %v4059_v41  ;;  %v447_v41 = vcombine.high %v443_v35, %v443_v35 }
  0xc3   :  { %1956 = vmatpush1.bf16.msra.mxu1 %v4062_v43  ;;  %1916 = vmatprep.subr.bf16.mxu0 %v4067_v44  ;;  %v4143_v43 = vld [vmem:[%s5327_s1 + $0x660] ss:$8 sps:$4 sm:$0xff]  }
  0xc4   :  { %1957 = vmatprep.subr.bf16.mxu1 %v4070_v45  ;;  %v4146_v44 = vld [vmem:[%s5327_s1 + $0x760] ss:$8 sps:$4 sm:$0xff]   ;;  %v4151_v45 = vld [vmem:[%s5327_s1 + $0x654] ss:$8 sps:$4 sm:$0xff]  }
  0xc6   :  { %1917 = vmatpush1.bf16.msra.mxu0 %v4065_v46  ;;  %v4154_v46 = vld [vmem:[%s5327_s1 + $0x754] ss:$8 sps:$4 sm:$0xff]  }
  0xc7   :  { %1958 = vmatpush1.bf16.msra.mxu1 %v4068_v47  ;;  %1918 = vmatprep.subr.bf16.mxu0 %v4073_v48  ;;  %v4149_v47 = vld [vmem:[%s5327_s1 + $0x650] ss:$8 sps:$4 sm:$0xff]  }
  0xc8   :  { %1959 = vmatprep.subr.bf16.mxu1 %v4076_v50  ;;  %v4152_v48 = vld [vmem:[%s5327_s1 + $0x750] ss:$8 sps:$4 sm:$0xff]   ;;  %v4157_v50 = vld [vmem:[%s5327_s1 + $0x644] ss:$8 sps:$4 sm:$0xff]  }
  0xca   :  { %1919 = vmatpush1.bf16.msra.mxu0 %v4071_v51  ;;  %v4160_v51 = vld [vmem:[%s5327_s1 + $0x744] ss:$8 sps:$4 sm:$0xff]  }
  0xcb   :  { %1960 = vmatpush1.bf16.msra.mxu1 %v4074_v52  ;;  %1920 = vmatprep.subr.bf16.mxu0 %v4079_v53  ;;  %v4155_v52 = vld [vmem:[%s5327_s1 + $0x640] ss:$8 sps:$4 sm:$0xff]  }
  0xcc   :  { %1961 = vmatprep.subr.bf16.mxu1 %v4082_v54  ;;  %v4158_v53 = vld [vmem:[%s5327_s1 + $0x740] ss:$8 sps:$4 sm:$0xff]   ;;  %v4163_v54 = vld [vmem:[%s5327_s1 + $0x634] ss:$8 sps:$4 sm:$0xff]  }
  0xce   :  { %1921 = vmatpush1.bf16.msra.mxu0 %v4077_v55  ;;  %v4166_v55 = vld [vmem:[%s5327_s1 + $0x734] ss:$8 sps:$4 sm:$0xff]  }
  0xcf   :  { %1962 = vmatpush1.bf16.msra.mxu1 %v4080_v56  ;;  %1922 = vmatprep.subr.bf16.mxu0 %v4085_v57  ;;  %v4161_v56 = vld [vmem:[%s5327_s1 + $0x630] ss:$8 sps:$4 sm:$0xff]  }
  0xd0   :  { %1963 = vmatprep.subr.bf16.mxu1 %v4088_v58  ;;  %v4164_v57 = vld [vmem:[%s5327_s1 + $0x730] ss:$8 sps:$4 sm:$0xff]   ;;  %v4169_v58 = vld [vmem:[%s5327_s1 + $0x624] ss:$8 sps:$4 sm:$0xff]  }
  0xd2   :  { %1923 = vmatpush1.bf16.msra.mxu0 %v4083_v59  ;;  %v4172_v59 = vld [vmem:[%s5327_s1 + $0x724] ss:$8 sps:$4 sm:$0xff]  }
  0xd3   :  { %1964 = vmatpush1.bf16.msra.mxu1 %v4086_v60  ;;  %1924 = vmatprep.subr.bf16.mxu0 %v4091_v61  ;;  %v4167_v60 = vld [vmem:[%s5327_s1 + $0x620] ss:$8 sps:$4 sm:$0xff]  }
  0xd4   :  { %1965 = vmatprep.subr.bf16.mxu1 %v4094_v62  ;;  %v4170_v61 = vld [vmem:[%s5327_s1 + $0x720] ss:$8 sps:$4 sm:$0xff]   ;;  %v4175_v62 = vld [vmem:[%s5327_s1 + $0x614] ss:$8 sps:$4 sm:$0xff]  }
  0xd6   :  { %1925 = vmatpush2.bf16.msra.mxu0 %v4089_v63  ;;  %v4178_v63 = vld [vmem:[%s5327_s1 + $0x714] ss:$8 sps:$4 sm:$0xff]  }
  0xd7   :  { %1966 = vmatpush2.bf16.msra.mxu1 %v4092_v0  ;;  %1926 = vmatprep.subr.bf16.mxu0 %v4097_v1  ;;  %v4173_v0 = vld [vmem:[%s5327_s1 + $0x610] ss:$8 sps:$4 sm:$0xff]  }
  0xd8   :  { %1967 = vmatprep.subr.bf16.mxu1 %v4100_v2  ;;  %v4176_v1 = vld [vmem:[%s5327_s1 + $0x710] ss:$8 sps:$4 sm:$0xff]   ;;  %v4181_v2 = vld [vmem:[%s5327_s1 + $0x604] ss:$8 sps:$4 sm:$0xff]  }
  0xda   :  { %1927 = vmatpush2.bf16.msra.mxu0 %v4095_v3  ;;  %v4184_v3 = vld [vmem:[%s5327_s1 + $0x704] ss:$8 sps:$4 sm:$0xff]  }
  0xdb   :  { %1968 = vmatpush2.bf16.msra.mxu1 %v4098_v4  ;;  %1928 = vmatprep.subr.bf16.mxu0 %v4103_v5  ;;  %v4179_v4 = vld [vmem:[%s5327_s1 + $0x600] ss:$8 sps:$4 sm:$0xff]  }
  0xdc   :  { %1969 = vmatprep.subr.bf16.mxu1 %v4106_v7  ;;  %v4182_v5 = vld [vmem:[%s5327_s1 + $0x700] ss:$8 sps:$4 sm:$0xff]   ;;  %v4187_v7 = vld [vmem:[%s5327_s1 + $0x6f4] ss:$8 sps:$4 sm:$0xff]  }
  0xde   :  { %1929 = vmatpush2.bf16.msra.mxu0 %v4101_v8  ;;  %v4190_v8 = vld [vmem:[%s5327_s1 + $0x7f4] ss:$8 sps:$4 sm:$0xff]  }
  0xdf   :  { %1970 = vmatpush2.bf16.msra.mxu1 %v4104_v9  ;;  %1930 = vmatprep.subr.bf16.mxu0 %v4109_v10  ;;  %v4185_v9 = vld [vmem:[%s5327_s1 + $0x6f0] ss:$8 sps:$4 sm:$0xff]  }
  0xe0   :  { %1971 = vmatprep.subr.bf16.mxu1 %v4112_v11  ;;  %v4188_v10 = vld [vmem:[%s5327_s1 + $0x7f0] ss:$8 sps:$4 sm:$0xff]   ;;  %v4193_v11 = vld [vmem:[%s5327_s1 + $0x6e4] ss:$8 sps:$4 sm:$0xff]  }
  0xe2   :  { %1931 = vmatpush2.bf16.msra.mxu0 %v4107_v12  ;;  %v4196_v12 = vld [vmem:[%s5327_s1 + $0x7e4] ss:$8 sps:$4 sm:$0xff]  }
  0xe3   :  { %1972 = vmatpush2.bf16.msra.mxu1 %v4110_v13  ;;  %1932 = vmatprep.subr.bf16.mxu0 %v4115_v14  ;;  %v4191_v13 = vld [vmem:[%s5327_s1 + $0x6e0] ss:$8 sps:$4 sm:$0xff]  }
  0xe4   :  { %1973 = vmatprep.subr.bf16.mxu1 %v4118_v15  ;;  %v4194_v14 = vld [vmem:[%s5327_s1 + $0x7e0] ss:$8 sps:$4 sm:$0xff]   ;;  %v4199_v15 = vld [vmem:[%s5327_s1 + $0x6d4] ss:$8 sps:$4 sm:$0xff]  }
  0xe6   :  { %1933 = vmatpush2.bf16.msra.mxu0 %v4113_v16  ;;  %v4202_v16 = vld [vmem:[%s5327_s1 + $0x7d4] ss:$8 sps:$4 sm:$0xff]  }
  0xe7   :  { %1974 = vmatpush2.bf16.msra.mxu1 %v4116_v17  ;;  %1934 = vmatprep.subr.bf16.mxu0 %v4121_v18  ;;  %v4197_v17 = vld [vmem:[%s5327_s1 + $0x6d0] ss:$8 sps:$4 sm:$0xff]  }
  0xe8   :  { %1975 = vmatprep.subr.bf16.mxu1 %v4124_v19  ;;  %v4200_v18 = vld [vmem:[%s5327_s1 + $0x7d0] ss:$8 sps:$4 sm:$0xff]   ;;  %v4205_v19 = vld [vmem:[%s5327_s1 + $0x6c4] ss:$8 sps:$4 sm:$0xff]  }
  0xea   :  { %1935 = vmatpush2.bf16.msra.mxu0 %v4119_v21  ;;  %v4203_v21 = vld [vmem:[%s5327_s1 + $0x6c0] ss:$8 sps:$4 sm:$0xff]  }
  0xeb   :  { %1976 = vmatpush2.bf16.msra.mxu1 %v4122_v22  ;;  %1936 = vmatprep.subr.bf16.mxu0 %v4127_v23  ;;  %v4206_v22 = vld [vmem:[%s5327_s1 + $0x7c0] ss:$8 sps:$4 sm:$0xff]   ;;  %v4211_v23 = vld [vmem:[%s5327_s1 + $0x6b4] ss:$8 sps:$4 sm:$0xff]  }
  0xec   :  { %1977 = vmatprep.subr.bf16.mxu1 %v4130_v24  ;;  %v4214_v24 = vld [vmem:[%s5327_s1 + $0x7b4] ss:$8 sps:$4 sm:$0xff]  }
  0xee   :  { %1937 = vmatpush2.bf16.msra.mxu0 %v4125_v25  ;;  %v4209_v25 = vld [vmem:[%s5327_s1 + $0x6b0] ss:$8 sps:$4 sm:$0xff]  }
  0xef   :  { %1978 = vmatpush2.bf16.msra.mxu1 %v4128_v26  ;;  %1938 = vmatprep.subr.bf16.mxu0 %v4133_v27  ;;  %v4212_v26 = vld [vmem:[%s5327_s1 + $0x7b0] ss:$8 sps:$4 sm:$0xff]   ;;  %v4217_v27 = vld [vmem:[%s5327_s1 + $0x6a4] ss:$8 sps:$4 sm:$0xff]  }
  0xf0   :  { %1979 = vmatprep.subr.bf16.mxu1 %v4136_v28  ;;  %v4220_v28 = vld [vmem:[%s5327_s1 + $0x7a4] ss:$8 sps:$4 sm:$0xff]  }
  0xf2   :  { %1939 = vmatpush2.bf16.msra.mxu0 %v4131_v32  ;;  %v4223_v32 = vld [vmem:[%s5327_s1 + $0x694] ss:$8 sps:$4 sm:$0xff]  }
  0xf3   :  { %1980 = vmatpush2.bf16.msra.mxu1 %v4134_v33  ;;  %1990 = vmatprep.subr.bf16.mxu0 %v4139_v34  ;;  %v4226_v33 = vld [vmem:[%s5327_s1 + $0x794] ss:$8 sps:$4 sm:$0xff]   ;;  %v4221_v34 = vld [vmem:[%s5327_s1 + $0x690] ss:$8 sps:$4 sm:$0xff]  }
  0xf4   :  { %2031 = vmatprep.subr.bf16.mxu1 %v4142_v29  ;;  %v4224_v29 = vld [vmem:[%s5327_s1 + $0x790] ss:$8 sps:$4 sm:$0xff]  }
  0xf5   :  { %1941 = vmatmul.mubr.bf16.vlgmr.msra.gmra.mxu0 %v422_v31  ;;  %v4218_v31 = vld [vmem:[%s5327_s1 + $0x7a0] ss:$8 sps:$4 sm:$0xff]  }
  0xf6   :  { %1982 = vmatmul.mubr.bf16.vlgmr.msra.gmra.mxu1 %v444_v36  ;;  %1991 = vmatpush1.bf16.msra.mxu0 %v4137_v37  ;;  %v4232_v36 = vld [vmem:[%s5327_s1 + $0x784] ss:$8 sps:$4 sm:$0xff]   ;;  %v429_v37 = vrot.slane %v5025_v6, %v4568_v49 }
  0xf7   :  { %2032 = vmatpush1.bf16.msra.mxu1 %v4140_v38  ;;  %1992 = vmatprep.subr.bf16.mxu0 %v4145_v39  ;;  %v4227_v38 = vld [vmem:[%s5327_s1 + $0x680] ss:$8 sps:$4 sm:$0xff]  }
  0xf8   :  { %2033 = vmatprep.subr.bf16.mxu1 %v4148_v40  ;;  %2022 = vmatprep.mubr.bf16.mxu0 %v443_v35  ;;  %v4229_v35 = vld [vmem:[%s5327_s1 + $0x684] ss:$8 sps:$4 sm:$0xff]   ;;  %v4230_v39 = vld [vmem:[%s5327_s1 + $0x780] ss:$8 sps:$4 sm:$0xff]   ;;  %v5245_v40 = vsub.s32 0, %v4550_v42  ;;  %v445_v6 = vcombine.high %v429_v37, %v429_v37  ;;  %s4374_s1 = smov [#allocation10]  }
  0xf9   :  { %2063 = vmatprep.mubr.bf16.mxu1 %v447_v41  ;;  %v336_v41 = vld [vmem:[#allocation2] sm:$0x3]  ;;  %s3417_s13 = sshll.u32 %s4374_s1, 4  ;;  %s3418_s13 = int_to_ptr.vmem [resolvable:$true] %s3417_s13 }
  0xfa   :  { %1993 = vmatpush1.bf16.msra.mxu0 %v4143_v43  ;;  %v5248_v43 = vsub.s32 1, %v4550_v42  ;;  %s4316_s16 = scalar_lea.vmem %s3418_s13, 32  ;;  %p4321_p7 = scmp.lt.s32.totalorder %s3418_s13, %s3418_s13 }
  0xfb   :  { %2034 = vmatpush1.bf16.msra.mxu1 %v4146_v44  ;;  %1994 = vmatprep.subr.bf16.mxu0 %v4151_v45  ;;  %v341_v44 = vrot.slane %v336_v41, %v5245_v40  ;;  %p4317_p6 = scmp.ne.s32.totalorder %s3418_s13, %s4316_s16  ;;  %p4322_p8 = scmp.lt.s32.totalorder %s4316_s16, %s4316_s16 }
  0xfc   :  { %2035 = vmatprep.subr.bf16.mxu1 %v4154_v46  ;;  %v345_v45 = vrot.slane %v336_v41, %v5248_v43  ;;  %v2127_v41 = vld [vmem:[#allocation7 + $0x180] sm:$0xff] }
  0xfd   :  { %p4323_p9 = por %p4322_p8, %p4321_p7 }
  0xfe   :  { %1995 = vmatpush1.bf16.msra.mxu0 %v4149_v47 }
  0xff   :  { %2036 = vmatpush1.bf16.msra.mxu1 %v4152_v48  ;;  %1996 = vmatprep.subr.bf16.mxu0 %v4157_v50  ;;  %p4324_p10 = pnand %p4323_p9, %p4317_p6 }
 0x100   :  { %2037 = vmatprep.subr.bf16.mxu1 %v4160_v51 }
 0x102   :  { %1997 = vmatpush1.bf16.msra.mxu0 %v4155_v52 }
 0x103   :  { %2038 = vmatpush1.bf16.msra.mxu1 %v4158_v53  ;;  %1998 = vmatprep.subr.bf16.mxu0 %v4163_v54 }
 0x104   :  { %2039 = vmatprep.subr.bf16.mxu1 %v4166_v55 }
 0x106   :  { %1999 = vmatpush1.bf16.msra.mxu0 %v4161_v56 }
 0x107   :  { %2040 = vmatpush1.bf16.msra.mxu1 %v4164_v57  ;;  %2000 = vmatprep.subr.bf16.mxu0 %v4169_v58 }
 0x108   :  { %2041 = vmatprep.subr.bf16.mxu1 %v4172_v59  ;;  %v2191_v59 = vld [vmem:[#allocation7 + $0x380] sm:$0xff] }
 0x10a   :  { %2001 = vmatpush1.bf16.msra.mxu0 %v4167_v60  ;;  %v2199_v60 = vld [vmem:[#allocation7 + $0x3c0] sm:$0xff] }
 0x10b   :  { %2042 = vmatpush1.bf16.msra.mxu1 %v4170_v61  ;;  %2002 = vmatprep.subr.bf16.mxu0 %v4175_v62  ;;  %v2192_v61 = vld [vmem:[#allocation7 + $0x388] sm:$0xff]  ;;  %v3814_v62 = vcombine.low %v2191_v59, %v2199_v60 }
 0x10c   :  { %2043 = vmatprep.subr.bf16.mxu1 %v4178_v63  ;;  %v3815_v63 = vcombine.high %v2191_v59, %v2199_v60  ;;  %v2095_v59 = vld [vmem:[#allocation7 + $0x80] sm:$0xff] }
 0x10d   :  { %v2103_v60 = vld [vmem:[#allocation7 + $0xc0] sm:$0xff] }
 0x10e   :  { %2003 = vmatpush1.bf16.msra.mxu0 %v4173_v0  ;;  %v2200_v0 = vld [vmem:[#allocation7 + $0x3c8] sm:$0xff] }
 0x10f   :  { %2044 = vmatpush1.bf16.msra.mxu1 %v4176_v1  ;;  %2004 = vmatprep.subr.bf16.mxu0 %v4181_v2  ;;  %v3816_v1 = vcombine.low %v2192_v61, %v2200_v0  ;;  %v3817_v2 = vcombine.high %v2192_v61, %v2200_v0  ;;  %v2096_v61 = vld [vmem:[#allocation7 + $0x88] sm:$0xff]  ;;  %v3718_v0 = vcombine.low %v2095_v59, %v2103_v60 }
 0x110   :  { %2045 = vmatprep.subr.bf16.mxu1 %v4184_v3  ;;  %v2175_v3 = vld [vmem:[#allocation7 + $0x300] sm:$0xff] }
 0x112   :  { %2005 = vmatpush1.bf16.msra.mxu0 %v4179_v4  ;;  %v2183_v4 = vld [vmem:[#allocation7 + $0x340] sm:$0xff] }
 0x113   :  { %2046 = vmatpush1.bf16.msra.mxu1 %v4182_v5  ;;  %2006 = vmatprep.subr.bf16.mxu0 %v4187_v7  ;;  %v2176_v5 = vld [vmem:[#allocation7 + $0x308] sm:$0xff] }
 0x114   :  { %2047 = vmatprep.subr.bf16.mxu1 %v4190_v8 }
 0x116   :  { %2007 = vmatpush2.bf16.msra.mxu0 %v4185_v9  ;;  %v3799_v9 = vcombine.high %v2175_v3, %v2183_v4 }
 0x117   :  { %2048 = vmatpush2.bf16.msra.mxu1 %v4188_v10  ;;  %2008 = vmatprep.subr.bf16.mxu0 %v4193_v11  ;;  %v2184_v10 = vld [vmem:[#allocation7 + $0x348] sm:$0xff] }
 0x118   :  { %2049 = vmatprep.subr.bf16.mxu1 %v4196_v12  ;;  %v3798_v12 = vcombine.low %v2175_v3, %v2183_v4  ;;  %v2079_v3 = vld [vmem:[#allocation7] sm:$0xff] }
 0x119   :  { %v2087_v4 = vld [vmem:[#allocation7 + $0x40] sm:$0xff] }
 0x11a   :  { %2009 = vmatpush2.bf16.msra.mxu0 %v4191_v13  ;;  %v3800_v13 = vcombine.low %v2176_v5, %v2184_v10 }
 0x11b   :  { %2050 = vmatpush2.bf16.msra.mxu1 %v4194_v14  ;;  %2010 = vmatprep.subr.bf16.mxu0 %v4199_v15  ;;  %v3801_v14 = vcombine.high %v2176_v5, %v2184_v10  ;;  %v2080_v5 = vld [vmem:[#allocation7 + $0x8] sm:$0xff] }
 0x11c   :  { %2051 = vmatprep.subr.bf16.mxu1 %v4202_v16 }
 0x11e   :  { %2011 = vmatpush2.bf16.msra.mxu0 %v4197_v17 }
 0x11f   :  { %2052 = vmatpush2.bf16.msra.mxu1 %v4200_v18  ;;  %2012 = vmatprep.subr.bf16.mxu0 %v4205_v19  ;;  %v2159_v19 = vld [vmem:[#allocation7 + $0x280] sm:$0xff] }
 0x120   :  { %2053 = vmatprep.subr.bf16.mxu1 %v4208_v20  ;;  %v2167_v20 = vld [vmem:[#allocation7 + $0x2c0] sm:$0xff] }
 0x122   :  { %2013 = vmatpush2.bf16.msra.mxu0 %v4203_v21  ;;  %v2160_v21 = vld [vmem:[#allocation7 + $0x288] sm:$0xff] }
 0x123   :  { %2054 = vmatpush2.bf16.msra.mxu1 %v4206_v22  ;;  %2014 = vmatprep.subr.bf16.mxu0 %v4211_v23 }
 0x124   :  { %2055 = vmatprep.subr.bf16.mxu1 %v4214_v24  ;;  %v3783_v24 = vcombine.high %v2159_v19, %v2167_v20 }
 0x126   :  { %2015 = vmatpush2.bf16.msra.mxu0 %v4209_v25  ;;  %v2168_v25 = vld [vmem:[#allocation7 + $0x2c8] sm:$0xff] }
 0x127   :  { %2056 = vmatpush2.bf16.msra.mxu1 %v4212_v26  ;;  %2016 = vmatprep.subr.bf16.mxu0 %v4217_v27  ;;  %v3782_v27 = vcombine.low %v2159_v19, %v2167_v20 }
 0x128   :  { %2057 = vmatprep.subr.bf16.mxu1 %v4220_v28  ;;  %v3784_v28 = vcombine.low %v2160_v21, %v2168_v25 }
 0x12a   :  { %2017 = vmatpush2.bf16.msra.mxu0 %v4215_v30  ;;  %v3785_v30 = vcombine.high %v2160_v21, %v2168_v25  ;;  %v4373_v21 = vmov 0  }
 0x12b   :  { %2058 = vmatpush2.bf16.msra.mxu1 %v4218_v31  ;;  %2018 = vmatprep.subr.bf16.mxu0 %v4223_v32 }
 0x12c   :  { %2059 = vmatprep.subr.bf16.mxu1 %v4226_v33  ;;  %v2143_v33 = vld [vmem:[#allocation7 + $0x200] sm:$0xff] }
 0x12e   :  { %2019 = vmatpush2.bf16.msra.mxu0 %v4221_v34  ;;  %v2151_v34 = vld [vmem:[#allocation7 + $0x240] sm:$0xff] }
 0x12f   :  { %2060 = vmatpush2.bf16.msra.mxu1 %v4224_v29  ;;  %2020 = vmatprep.subr.bf16.mxu0 %v4229_v35  ;;  %v2144_v29 = vld [vmem:[#allocation7 + $0x208] sm:$0xff]  ;;  %v3767_v35 = vcombine.high %v2143_v33, %v2151_v34 }
 0x130   :  { %2061 = vmatprep.subr.bf16.mxu1 %v4232_v36  ;;  %v2152_v36 = vld [vmem:[#allocation7 + $0x248] sm:$0xff] }
 0x132   :  { %2021 = vmatpush2.bf16.msra.mxu0 %v4227_v38  ;;  %v3768_v38 = vcombine.low %v2144_v29, %v2152_v36 }
 0x133   :  { %2062 = vmatpush2.bf16.msra.mxu1 %v4230_v39  ;;  %2931 = vmatprep.subr.bf16.mxu0 %v3815_v63  ;;  %v3769_v39 = vcombine.high %v2144_v29, %v2152_v36  ;;  %v2104_v63 = vld [vmem:[#allocation7 + $0xc8] sm:$0xff] }
 0x134   :  { %2972 = vmatprep.subr.bf16.mxu1 %v3817_v2  ;;  %v3721_v2 = vcombine.high %v2096_v61, %v2104_v63 }
 0x135   :  { %v1778_v46 = vpop.f32.mrf.mxu0  ;;  %2023 = vmatmul.mubr.bf16.vlgmr.msra.gmra.mxu0 %v429_v37  ;;  %v3766_v37 = vcombine.low %v2143_v33, %v2151_v34 }
 0x136   :  { %v1819_v47 = vpop.f32.mrf.mxu1  ;;  %2064 = vmatmul.mubr.bf16.vlgmr.msra.gmra.mxu1 %v445_v6  ;;  %v1779_v48 = vadd.f32 %v1778_v46, %v341_v44  ;;  %2932 = vmatpush1.bf16.msra.mxu0 %v3814_v62  ;;  %v2135_v6 = vld [vmem:[#allocation7 + $0x1c0] sm:$0xff]  ;;  %v2136_v46 = vld [vmem:[#allocation7 + $0x1c8] sm:$0xff]  ;;  %v3719_v62 = vcombine.high %v2095_v59, %v2103_v60 }
 0x137   :  { %v1780_v50 = vpop.f32.mrf.mxu0  ;;  %2973 = vmatpush1.bf16.msra.mxu1 %v3816_v1  ;;  %2933 = vmatprep.subr.bf16.mxu0 %v3799_v9  ;;  %v3751_v44 = vcombine.high %v2127_v41, %v2135_v6  ;;  %v3720_v1 = vcombine.low %v2096_v61, %v2104_v63  ;;  %v3702_v9 = vcombine.low %v2079_v3, %v2087_v4  ;;  %v2161_v61 = vld [vmem:[#allocation7 + $0x290] sm:$0xff]  ;;  %v2162_v63 = vld [vmem:[#allocation7 + $0x298] sm:$0xff] }
 0x138   :  { %v1821_v51 = vpop.f32.mrf.mxu1  ;;  %v1820_v52 = vadd.f32 %v1819_v47, %v1779_v48  ;;  %v1781_v53 = vadd.f32 %v1780_v50, %v345_v45  ;;  %2974 = vmatprep.subr.bf16.mxu1 %v3801_v14  ;;  %v2128_v45 = vld [vmem:[#allocation7 + $0x188] sm:$0xff]  ;;  %v3750_v47 = vcombine.low %v2127_v41, %v2135_v6  ;;  %v2194_v14 = vld [vmem:[#allocation7 + $0x398] sm:$0xff]  ;;  %2963 = vmatprep.mubr.bf16.mxu0 %v4373_v21 }
 0x139   :  { %v1782_v54 = vpop.f32.mrf.mxu0  ;;  %v3752_v48 = vcombine.low %v2128_v45, %v2136_v46  ;;  %v3753_v50 = vcombine.high %v2128_v45, %v2136_v46  ;;  %3004 = vmatprep.mubr.bf16.mxu1 %v4373_v21 }
 0x13a   :  { %v1823_v55 = vpop.f32.mrf.mxu1  ;;  %v1822_v56 = vadd.f32 %v1821_v51, %v1781_v53  ;;  %2934 = vmatpush1.bf16.msra.mxu0 %v3798_v12  ;;  %v2111_v51 = vld [vmem:[#allocation7 + $0x100] sm:$0xff]  ;;  %v2112_v53 = vld [vmem:[#allocation7 + $0x108] sm:$0xff]  ;;  %v2193_v12 = vld [vmem:[#allocation7 + $0x390] sm:$0xff] }
 0x13b   :  { %v1783_v57 = vpop.f32.mrf.mxu0  ;;  %2975 = vmatpush1.bf16.msra.mxu1 %v3800_v13  ;;  %2935 = vmatprep.subr.bf16.mxu0 %v3783_v24  ;;  %v2120_v55 = vld [vmem:[#allocation7 + $0x148] sm:$0xff]  ;;  %v2201_v13 = vld [vmem:[#allocation7 + $0x3d0] sm:$0xff] }
 0x13c   :  { %v1824_v58 = vpop.f32.mrf.mxu1  ;;  %2976 = vmatprep.subr.bf16.mxu1 %v3785_v30  ;;  %v3736_v57 = vcombine.low %v2112_v53, %v2120_v55 }
 0x13d   :  { %v3737_v58 = vcombine.high %v2112_v53, %v2120_v55  ;;  %v2177_v53 = vld [vmem:[#allocation7 + $0x310] sm:$0xff]  ;;  %v2178_v55 = vld [vmem:[#allocation7 + $0x318] sm:$0xff] }
 0x13e   :  { %2936 = vmatpush1.bf16.msra.mxu0 %v3782_v27 }
 0x13f   :  { %2977 = vmatpush1.bf16.msra.mxu1 %v3784_v28  ;;  %2937 = vmatprep.subr.bf16.mxu0 %v3767_v35 }
 0x140   :  { %2978 = vmatprep.subr.bf16.mxu1 %v3769_v39 }
 0x142   :  { %2938 = vmatpush1.bf16.msra.mxu0 %v3766_v37 }
 0x143   :  { %2979 = vmatpush1.bf16.msra.mxu1 %v3768_v38  ;;  %2939 = vmatprep.subr.bf16.mxu0 %v3751_v44 }
 0x144   :  { %2980 = vmatprep.subr.bf16.mxu1 %v3753_v50 }
 0x146   :  { %2940 = vmatpush1.bf16.msra.mxu0 %v3750_v47 }
 0x147   :  { %2981 = vmatpush1.bf16.msra.mxu1 %v3752_v48 }
 0x148   :  { %2982 = vmatprep.subr.bf16.mxu1 %v3737_v58 }
 0x14b   :  { %2983 = vmatpush1.bf16.msra.mxu1 %v3736_v57 }
 0x14c   :  { %2984 = vmatprep.subr.bf16.mxu1 %v3721_v2 }
 0x14f   :  { %2985 = vmatpush1.bf16.msra.mxu1 %v3720_v1 }
 0x175   :  { %v1860_v7 = vpop.f32.mrf.mxu0 }
 0x176   :  { %v1901_v8 = vpop.f32.mrf.mxu1  ;;  %v1861_v11 = vadd.f32 %v1860_v7, %v1820_v52  ;;  %v2119_v52 = vld [vmem:[#allocation7 + $0x140] sm:$0xff]  ;;  %v3703_v7 = vcombine.high %v2079_v3, %v2087_v4 }
 0x177   :  { %v1862_v15 = vpop.f32.mrf.mxu0  ;;  %v3735_v54 = vcombine.high %v2111_v51, %v2119_v52 }
 0x178   :  { %v1903_v16 = vpop.f32.mrf.mxu1  ;;  %v5252_v17 = vadd.f32 %v1901_v8, %v1861_v11  ;;  %v1863_v18 = vadd.f32 %v1862_v15, %v1822_v56  ;;  %v3734_v56 = vcombine.low %v2111_v51, %v2119_v52  ;;  %v2088_v8 = vld [vmem:[#allocation7 + $0x48] sm:$0xff]  ;;  %v3819_v15 = vcombine.high %v2193_v12, %v2201_v13 }
 0x179   :  { %v1864_v22 = vpop.f32.mrf.mxu0  ;;  %2941 = vmatprep.subr.bf16.mxu0 %v3735_v54  ;;  %v3704_v10 = vcombine.low %v2080_v5, %v2088_v8  ;;  %v3705_v11 = vcombine.high %v2080_v5, %v2088_v8  ;;  %v2185_v54 = vld [vmem:[#allocation7 + $0x350] sm:$0xff]  ;;  %v2146_v8 = vld [vmem:[#allocation7 + $0x218] sm:$0xff] }
 0x17a   :  { %v1905_v23 = vpop.f32.mrf.mxu1  ;;  %v5254_v26 = vadd.f32 %v1903_v16, %v1863_v18  ;;  %2942 = vmatpush1.bf16.msra.mxu0 %v3734_v56  ;;  %v2202_v16 = vld [vmem:[#allocation7 + $0x3d8] sm:$0xff]  ;;  %v3818_v18 = vcombine.low %v2193_v12, %v2201_v13  ;;  %v3803_v59 = vcombine.high %v2177_v53, %v2185_v54  ;;  %v3802_v1 = vcombine.low %v2177_v53, %v2185_v54  ;;  %v2145_v5 = vld [vmem:[#allocation7 + $0x210] sm:$0xff]  ;;  %v2204_v53 = vld [vmem:[#allocation7 + $0x3e8] sm:$0xff] }
 0x17b   :  { %v1865_v31 = vpop.f32.mrf.mxu0  ;;  %2943 = vmatprep.subr.bf16.mxu0 %v3719_v62  ;;  %2986 = vmatprep.subr.bf16.mxu1 %v3705_v11  ;;  %v3820_v19 = vcombine.low %v2194_v14, %v2202_v16  ;;  %v3821_v20 = vcombine.high %v2194_v14, %v2202_v16  ;;  %v2186_v56 = vld [vmem:[#allocation7 + $0x358] sm:$0xff]  ;;  %v2169_v62 = vld [vmem:[#allocation7 + $0x2d0] sm:$0xff] }
 0x17c   :  { %v1906_v32 = vpop.f32.mrf.mxu1  ;;  %2987 = vmatpush1.bf16.msra.mxu1 %v3704_v10  ;;  %v3805_v60 = vcombine.high %v2178_v55, %v2186_v56  ;;  %v3804_v2 = vcombine.low %v2178_v55, %v2186_v56  ;;  %v3787_v3 = vcombine.high %v2161_v61, %v2169_v62  ;;  %v3786_v10 = vcombine.low %v2161_v61, %v2169_v62  ;;  %v2129_v14 = vld [vmem:[#allocation7 + $0x190] sm:$0xff]  ;;  %v2130_v16 = vld [vmem:[#allocation7 + $0x198] sm:$0xff]  ;;  %v2180_v61 = vld [vmem:[#allocation7 + $0x328] sm:$0xff] }
 0x17d   :  { %3054 = vmatprep.subr.bf16.mxu1 %v3821_v20  ;;  %v2188_v62 = vld [vmem:[#allocation7 + $0x368] sm:$0xff] }
 0x17e   :  { %2944 = vmatpush1.bf16.msra.mxu0 %v3718_v0  ;;  %v2170_v0 = vld [vmem:[#allocation7 + $0x2d8] sm:$0xff] }
 0x17f   :  { %2945 = vmatprep.subr.bf16.mxu0 %v3703_v7  ;;  %v3789_v4 = vcombine.high %v2162_v63, %v2170_v0  ;;  %v2153_v7 = vld [vmem:[#allocation7 + $0x250] sm:$0xff]  ;;  %v3788_v11 = vcombine.low %v2162_v63, %v2170_v0 }
 0x180   :  { %v3771_v12 = vcombine.high %v2145_v5, %v2153_v7 }
 0x182   :  { %2946 = vmatpush1.bf16.msra.mxu0 %v3702_v9  ;;  %v2154_v9 = vld [vmem:[#allocation7 + $0x258] sm:$0xff] }
 0x183   :  { %3013 = vmatprep.subr.bf16.mxu0 %v3819_v15  ;;  %v3773_v13 = vcombine.high %v2146_v8, %v2154_v9  ;;  %v2137_v15 = vld [vmem:[#allocation7 + $0x1d0] sm:$0xff]  ;;  %v3772_v20 = vcombine.low %v2146_v8, %v2154_v9  ;;  %v3808_v9 = vcombine.low %v2180_v61, %v2188_v62 }
 0x1b5   :  { %v1942_v22 = vpop.f32.mrf.mxu0 }
 0x1b6   :  { %v1983_v23 = vpop.f32.mrf.mxu1  ;;  %v1943_v32 = vadd.f32 %v1942_v22, %v5252_v17  ;;  %v3755_v22 = vcombine.high %v2129_v14, %v2137_v15 }
 0x1b7   :  { %v1944_v24 = vpop.f32.mrf.mxu0 }
 0x1b8   :  { %v1985_v25 = vpop.f32.mrf.mxu1  ;;  %v1945_v33 = vadd.f32 %v1944_v24, %v5254_v26  ;;  %v1984_v34 = vadd.f32 %v1983_v23, %v1943_v32  ;;  %v2075_v26 = vld [vmem:[#allocation5] sm:$0x3]  ;;  %v2113_v24 = vld [vmem:[#allocation7 + $0x110] sm:$0xff] }
 0x1b9   :  { %v1946_v27 = vpop.f32.mrf.mxu0 }
 0x1ba   :  { %v1987_v28 = vpop.f32.mrf.mxu1  ;;  %v1986_v36 = vadd.f32 %v1985_v25, %v1945_v33  ;;  %v2121_v25 = vld [vmem:[#allocation7 + $0x150] sm:$0xff]  ;;  %v2114_v27 = vld [vmem:[#allocation7 + $0x118] sm:$0xff] }
 0x1bb   :  { %v1947_v30 = vpop.f32.mrf.mxu0  ;;  %v2122_v28 = vld [vmem:[#allocation7 + $0x158] sm:$0xff]  ;;  %v3739_v32 = vcombine.high %v2113_v24, %v2121_v25 }
 0x1bc   :  { %v1988_v31 = vpop.f32.mrf.mxu1  ;;  %v3754_v30 = vcombine.low %v2129_v14, %v2137_v15  ;;  %v3741_v33 = vcombine.high %v2114_v27, %v2122_v28  ;;  %v2148_v14 = vld [vmem:[#allocation7 + $0x228] sm:$0xff] }
 0x1bd   :  { %v2156_v15 = vld [vmem:[#allocation7 + $0x268] sm:$0xff] }
 0x1f5   :  { %v2024_v29 = vpop.f32.mrf.mxu0 }
 0x1f6   :  { %v2065_v35 = vpop.f32.mrf.mxu1  ;;  %v2025_v37 = vadd.f32 %v2024_v29, %v1984_v34  ;;  %v2097_v34 = vld [vmem:[#allocation7 + $0x90] sm:$0xff] }
 0x1f7   :  { %v2026_v38 = vpop.f32.mrf.mxu0  ;;  %v2105_v29 = vld [vmem:[#allocation7 + $0xd0] sm:$0xff] }
 0x1f8   :  { %v2067_v39 = vpop.f32.mrf.mxu1  ;;  %v2066_v41 = vadd.f32 %v2065_v35, %v2025_v37  ;;  %v2027_v6 = vadd.f32 %v2026_v38, %v1986_v36  ;;  %v2098_v35 = vld [vmem:[#allocation7 + $0x98] sm:$0xff]  ;;  %v3738_v37 = vcombine.low %v2113_v24, %v2121_v25  ;;  %v3740_v38 = vcombine.low %v2114_v27, %v2122_v28  ;;  %v2132_v24 = vld [vmem:[#allocation7 + $0x1a8] sm:$0xff] }
 0x1f9   :  { %v2028_v44 = vpop.f32.mrf.mxu0  ;;  %v2106_v36 = vld [vmem:[#allocation7 + $0xd8] sm:$0xff]  ;;  %v2140_v25 = vld [vmem:[#allocation7 + $0x1e8] sm:$0xff]  ;;  %v3776_v28 = vcombine.low %v2148_v14, %v2156_v15 }
 0x1fa   :  { %v2069_v45 = vpop.f32.mrf.mxu1  ;;  %3275 = vst [vmem:[#allocation10] sm:$0x3] %v2066_v41  ;;  %v2068_v46 = vadd.f32 %v2067_v39, %v2027_v6  ;;  %v3723_v39 = vcombine.high %v2097_v34, %v2105_v29  ;;  %v2081_v6 = vld [vmem:[#allocation7 + $0x10] sm:$0xff] }
 0x1fb   :  { %v2029_v47 = vpop.f32.mrf.mxu0  ;;  %v2089_v44 = vld [vmem:[#allocation7 + $0x50] sm:$0xff]  ;;  %v2082_v45 = vld [vmem:[#allocation7 + $0x18] sm:$0xff] }
 0x1fc   :  { %v2070_v48 = vpop.f32.mrf.mxu1  ;;  %v2072_v50 = vmul.f32 0.5, %v2068_v46  ;;  %3276 = vst [vmem:[#allocation11] sm:$0x3] %v2068_v46  ;;  %v2090_v46 = vld [vmem:[#allocation7 + $0x58] sm:$0xff]  ;;  %v3722_v47 = vcombine.low %v2097_v34, %v2105_v29  ;;  %v3706_v54 = vcombine.low %v2081_v6, %v2089_v44  ;;  %v2116_v34 = vld [vmem:[#allocation7 + $0x128] sm:$0xff] }
 0x1fd   :  { %v3724_v48 = vcombine.low %v2098_v35, %v2106_v36  ;;  %v3708_v55 = vcombine.low %v2082_v45, %v2090_v46  ;;  %v2124_v29 = vld [vmem:[#allocation7 + $0x168] sm:$0xff] }
 0x1fe   :  { %v2073_v17 = vmul.f32 1.442695, %v2072_v50  ;;  %v3707_v50 = vcombine.high %v2081_v6, %v2089_v44  ;;  %v2100_v6 = vld [vmem:[#allocation7 + $0xa8] sm:$0xff] }
 0x1ff   :  { %v2108_v44 = vld [vmem:[#allocation7 + $0xe8] sm:$0xff] }
 0x200   :  { %4234 = vpow2.f32 %v2073_v17  ;;  %v3709_v17 = vcombine.high %v2082_v45, %v2090_v46  ;;  %v3744_v46 = vcombine.low %v2116_v34, %v2124_v29 }
 0x20d   :  { %v4235_v51 = vpop.eup %4234 }
 0x20e   :  { %v2076_v52 = vmul.f32 %v4235_v51, %v2075_v26  ;;  %v2195_v26 = vld [vmem:[#allocation7 + $0x3a0] sm:$0xff] }
 0x20f   :  { %v2203_v51 = vld [vmem:[#allocation7 + $0x3e0] sm:$0xff] }
 0x210   :  { %v2077_v57 = vadd.f32 %v2076_v52, %v2066_v41  ;;  %v3725_v41 = vcombine.high %v2098_v35, %v2106_v36  ;;  %v2196_v52 = vld [vmem:[#allocation7 + $0x3a8] sm:$0xff]  ;;  %v3823_v56 = vcombine.high %v2195_v26, %v2203_v51  ;;  %v3822_v63 = vcombine.low %v2195_v26, %v2203_v51 }
 0x211   :  { %v3824_v0 = vcombine.low %v2196_v52, %v2204_v53  ;;  %v3760_v36 = vcombine.low %v2132_v24, %v2140_v25  ;;  %v2084_v26 = vld [vmem:[#allocation7 + $0x28] sm:$0xff] }
 0x212   :  { %v5260_v58 = vpack.c.bf16 %v2077_v57, %v2077_v57  ;;  %v3825_v57 = vcombine.high %v2196_v52, %v2204_v53  ;;  %v2092_v51 = vld [vmem:[#allocation7 + $0x68] sm:$0xff]  ;;  %v3728_v53 = vcombine.low %v2100_v6, %v2108_v44 }
 0x214   :  { %2964 = vmatmul.mubr.bf16.vlgmr.msra.gmra.mxu0 %v5260_v58  ;;  %3005 = vmatmul.mubr.bf16.vlgmr.msra.gmra.mxu1 %v5260_v58 }
 0x215   :  { %3014 = vmatpush1.bf16.msra.mxu0 %v3818_v18  ;;  %3055 = vmatpush1.bf16.msra.mxu1 %v3820_v19  ;;  %v2138_v18 = vld [vmem:[#allocation7 + $0x1d8] sm:$0xff]  ;;  %v3770_v19 = vcombine.low %v2145_v5, %v2153_v7  ;;  %v2164_v5 = vld [vmem:[#allocation7 + $0x2a8] sm:$0xff] }
 0x216   :  { %3015 = vmatprep.subr.bf16.mxu0 %v3803_v59  ;;  %3056 = vmatprep.subr.bf16.mxu1 %v3805_v60  ;;  %v3757_v23 = vcombine.high %v2130_v16, %v2138_v18  ;;  %v3756_v31 = vcombine.low %v2130_v16, %v2138_v18  ;;  %v2179_v59 = vld [vmem:[#allocation7 + $0x320] sm:$0xff]  ;;  %v2172_v7 = vld [vmem:[#allocation7 + $0x2e8] sm:$0xff] }
 0x217   :  { %3045 = vmatprep.mubr.bf16.mxu0 %v4373_v21  ;;  %3086 = vmatprep.mubr.bf16.mxu1 %v4373_v21  ;;  %v2187_v60 = vld [vmem:[#allocation7 + $0x360] sm:$0xff]  ;;  %v3792_v18 = vcombine.low %v2164_v5, %v2172_v7 }
 0x218   :  { %v3806_v8 = vcombine.low %v2179_v59, %v2187_v60 }
 0x219   :  { %3016 = vmatpush1.bf16.msra.mxu0 %v3802_v1  ;;  %3057 = vmatpush1.bf16.msra.mxu1 %v3804_v2  ;;  %v3807_v1 = vcombine.high %v2179_v59, %v2187_v60  ;;  %v3809_v2 = vcombine.high %v2180_v61, %v2188_v62  ;;  %v2198_v59 = vld [vmem:[#allocation7 + $0x3b8] sm:$0xff]  ;;  %v3712_v62 = vcombine.low %v2084_v26, %v2092_v51 }
 0x21a   :  { %3017 = vmatprep.subr.bf16.mxu0 %v3787_v3  ;;  %3058 = vmatprep.subr.bf16.mxu1 %v3789_v4  ;;  %v2163_v3 = vld [vmem:[#allocation7 + $0x2a0] sm:$0xff]  ;;  %v2206_v60 = vld [vmem:[#allocation7 + $0x3f8] sm:$0xff] }
 0x21b   :  { %v2171_v4 = vld [vmem:[#allocation7 + $0x2e0] sm:$0xff] }
 0x21c   :  { %v3790_v16 = vcombine.low %v2163_v3, %v2171_v4 }
 0x21d   :  { %3018 = vmatpush1.bf16.msra.mxu0 %v3786_v10  ;;  %3059 = vmatpush1.bf16.msra.mxu1 %v3788_v11  ;;  %v3791_v10 = vcombine.high %v2163_v3, %v2171_v4  ;;  %v3793_v11 = vcombine.high %v2164_v5, %v2172_v7  ;;  %v2182_v3 = vld [vmem:[#allocation7 + $0x338] sm:$0xff]  ;;  %v3828_v7 = vcombine.low %v2198_v59, %v2206_v60 }
 0x21e   :  { %3019 = vmatprep.subr.bf16.mxu0 %v3771_v12  ;;  %3060 = vmatprep.subr.bf16.mxu1 %v3773_v13  ;;  %v2147_v12 = vld [vmem:[#allocation7 + $0x220] sm:$0xff]  ;;  %v2190_v4 = vld [vmem:[#allocation7 + $0x378] sm:$0xff] }
 0x21f   :  { %v2155_v13 = vld [vmem:[#allocation7 + $0x260] sm:$0xff] }
 0x220   :  { %v3774_v27 = vcombine.low %v2147_v12, %v2155_v13 }
 0x221   :  { %3020 = vmatpush1.bf16.msra.mxu0 %v3770_v19  ;;  %3061 = vmatpush1.bf16.msra.mxu1 %v3772_v20  ;;  %v3775_v19 = vcombine.high %v2147_v12, %v2155_v13  ;;  %v3777_v20 = vcombine.high %v2148_v14, %v2156_v15  ;;  %v2166_v12 = vld [vmem:[#allocation7 + $0x2b8] sm:$0xff]  ;;  %v3812_v15 = vcombine.low %v2182_v3, %v2190_v4 }
 0x222   :  { %3021 = vmatprep.subr.bf16.mxu0 %v3755_v22  ;;  %3062 = vmatprep.subr.bf16.mxu1 %v3757_v23  ;;  %v2131_v22 = vld [vmem:[#allocation7 + $0x1a0] sm:$0xff]  ;;  %v2174_v13 = vld [vmem:[#allocation7 + $0x2f8] sm:$0xff] }
 0x223   :  { %v2139_v23 = vld [vmem:[#allocation7 + $0x1e0] sm:$0xff] }
 0x224   :  { %v3758_v35 = vcombine.low %v2131_v22, %v2139_v23 }
 0x225   :  { %3022 = vmatpush1.bf16.msra.mxu0 %v3754_v30  ;;  %3063 = vmatpush1.bf16.msra.mxu1 %v3756_v31  ;;  %v3759_v30 = vcombine.high %v2131_v22, %v2139_v23  ;;  %v3761_v31 = vcombine.high %v2132_v24, %v2140_v25  ;;  %v2150_v22 = vld [vmem:[#allocation7 + $0x238] sm:$0xff]  ;;  %v3796_v25 = vcombine.low %v2166_v12, %v2174_v13 }
 0x226   :  { %3023 = vmatprep.subr.bf16.mxu0 %v3739_v32  ;;  %3064 = vmatprep.subr.bf16.mxu1 %v3741_v33  ;;  %v2115_v32 = vld [vmem:[#allocation7 + $0x120] sm:$0xff]  ;;  %v2158_v23 = vld [vmem:[#allocation7 + $0x278] sm:$0xff] }
 0x227   :  { %v2123_v33 = vld [vmem:[#allocation7 + $0x160] sm:$0xff] }
 0x228   :  { %v3742_v45 = vcombine.low %v2115_v32, %v2123_v33 }
 0x229   :  { %3024 = vmatpush1.bf16.msra.mxu0 %v3738_v37  ;;  %3065 = vmatpush1.bf16.msra.mxu1 %v3740_v38  ;;  %v3743_v37 = vcombine.high %v2115_v32, %v2123_v33  ;;  %v3745_v38 = vcombine.high %v2116_v34, %v2124_v29  ;;  %v2134_v32 = vld [vmem:[#allocation7 + $0x1b8] sm:$0xff]  ;;  %v3780_v29 = vcombine.low %v2150_v22, %v2158_v23 }
 0x22a   :  { %3025 = vmatprep.subr.bf16.mxu0 %v3723_v39  ;;  %3066 = vmatprep.subr.bf16.mxu1 %v3725_v41  ;;  %v2099_v39 = vld [vmem:[#allocation7 + $0xa0] sm:$0xff]  ;;  %v2142_v33 = vld [vmem:[#allocation7 + $0x1f8] sm:$0xff] }
 0x22b   :  { %v2107_v41 = vld [vmem:[#allocation7 + $0xe0] sm:$0xff] }
 0x22c   :  { %v3726_v52 = vcombine.low %v2099_v39, %v2107_v41 }
 0x22d   :  { %3026 = vmatpush1.bf16.msra.mxu0 %v3722_v47  ;;  %3067 = vmatpush1.bf16.msra.mxu1 %v3724_v48  ;;  %v3727_v47 = vcombine.high %v2099_v39, %v2107_v41  ;;  %v3729_v48 = vcombine.high %v2100_v6, %v2108_v44  ;;  %v2126_v39 = vld [vmem:[#allocation7 + $0x178] sm:$0xff]  ;;  %v3764_v6 = vcombine.low %v2134_v32, %v2142_v33 }
 0x22e   :  { %3027 = vmatprep.subr.bf16.mxu0 %v3707_v50  ;;  %3068 = vmatprep.subr.bf16.mxu1 %v3709_v17  ;;  %v2083_v50 = vld [vmem:[#allocation7 + $0x20] sm:$0xff] }
 0x22f   :  { %v2091_v17 = vld [vmem:[#allocation7 + $0x60] sm:$0xff] }
 0x230   :  { %v3710_v61 = vcombine.low %v2083_v50, %v2091_v17 }
 0x231   :  { %3028 = vmatpush1.bf16.msra.mxu0 %v3706_v54  ;;  %3069 = vmatpush1.bf16.msra.mxu1 %v3708_v55  ;;  %v3711_v54 = vcombine.high %v2083_v50, %v2091_v17  ;;  %v3713_v55 = vcombine.high %v2084_v26, %v2092_v51  ;;  %v2110_v50 = vld [vmem:[#allocation7 + $0xf8] sm:$0xff] }
 0x232   :  { %3095 = vmatprep.subr.bf16.mxu0 %v3823_v56  ;;  %3136 = vmatprep.subr.bf16.mxu1 %v3825_v57  ;;  %v2197_v56 = vld [vmem:[#allocation7 + $0x3b0] sm:$0xff] }
 0x233   :  { %v2205_v57 = vld [vmem:[#allocation7 + $0x3f0] sm:$0xff] }
 0x234   :  { %3046 = vmatmul.mubr.bf16.vlgmr.msra.gmra.mxu0 %v5260_v58  ;;  %3087 = vmatmul.mubr.bf16.vlgmr.msra.gmra.mxu1 %v5260_v58  ;;  %v3826_v5 = vcombine.low %v2197_v56, %v2205_v57 }
 0x235   :  { %3096 = vmatpush1.bf16.msra.mxu0 %v3822_v63  ;;  %3137 = vmatpush1.bf16.msra.mxu1 %v3824_v0  ;;  %v3827_v63 = vcombine.high %v2197_v56, %v2205_v57  ;;  %v3829_v0 = vcombine.high %v2198_v59, %v2206_v60  ;;  %v2094_v56 = vld [vmem:[#allocation7 + $0x78] sm:$0xff] }
 0x236   :  { %3097 = vmatprep.subr.bf16.mxu0 %v3807_v1  ;;  %3138 = vmatprep.subr.bf16.mxu1 %v3809_v2  ;;  %v2181_v1 = vld [vmem:[#allocation7 + $0x330] sm:$0xff] }
 0x237   :  { %3127 = vmatprep.mubr.bf16.mxu0 %v4373_v21  ;;  %3168 = vmatprep.mubr.bf16.mxu1 %v4373_v21  ;;  %v2189_v2 = vld [vmem:[#allocation7 + $0x370] sm:$0xff] }
 0x238   :  { %v3810_v14 = vcombine.low %v2181_v1, %v2189_v2 }
 0x239   :  { %3098 = vmatpush1.bf16.msra.mxu0 %v3806_v8  ;;  %3139 = vmatpush1.bf16.msra.mxu1 %v3808_v9  ;;  %v3811_v8 = vcombine.high %v2181_v1, %v2189_v2  ;;  %v3813_v9 = vcombine.high %v2182_v3, %v2190_v4 }
 0x23a   :  { %3099 = vmatprep.subr.bf16.mxu0 %v3791_v10  ;;  %3140 = vmatprep.subr.bf16.mxu1 %v3793_v11  ;;  %v2165_v10 = vld [vmem:[#allocation7 + $0x2b0] sm:$0xff] }
 0x23b   :  { %v2173_v11 = vld [vmem:[#allocation7 + $0x2f0] sm:$0xff] }
 0x23c   :  { %v3794_v24 = vcombine.low %v2165_v10, %v2173_v11 }
 0x23d   :  { %3100 = vmatpush1.bf16.msra.mxu0 %v3790_v16  ;;  %3141 = vmatpush1.bf16.msra.mxu1 %v3792_v18  ;;  %v3795_v16 = vcombine.high %v2165_v10, %v2173_v11  ;;  %v3797_v18 = vcombine.high %v2166_v12, %v2174_v13 }
 0x23e   :  { %3101 = vmatprep.subr.bf16.mxu0 %v3775_v19  ;;  %3142 = vmatprep.subr.bf16.mxu1 %v3777_v20  ;;  %v2149_v19 = vld [vmem:[#allocation7 + $0x230] sm:$0xff] }
 0x23f   :  { %v2157_v20 = vld [vmem:[#allocation7 + $0x270] sm:$0xff] }
 0x240   :  { %v3778_v34 = vcombine.low %v2149_v19, %v2157_v20 }
 0x241   :  { %3102 = vmatpush1.bf16.msra.mxu0 %v3774_v27  ;;  %3143 = vmatpush1.bf16.msra.mxu1 %v3776_v28  ;;  %v3779_v27 = vcombine.high %v2149_v19, %v2157_v20  ;;  %v3781_v28 = vcombine.high %v2150_v22, %v2158_v23 }
 0x242   :  { %3103 = vmatprep.subr.bf16.mxu0 %v3759_v30  ;;  %3144 = vmatprep.subr.bf16.mxu1 %v3761_v31  ;;  %v2133_v30 = vld [vmem:[#allocation7 + $0x1b0] sm:$0xff] }
 0x243   :  { %v2141_v31 = vld [vmem:[#allocation7 + $0x1f0] sm:$0xff] }
 0x244   :  { %v3762_v41 = vcombine.low %v2133_v30, %v2141_v31 }
 0x245   :  { %3104 = vmatpush1.bf16.msra.mxu0 %v3758_v35  ;;  %3145 = vmatpush1.bf16.msra.mxu1 %v3760_v36  ;;  %v3763_v35 = vcombine.high %v2133_v30, %v2141_v31  ;;  %v2117_v36 = vld [vmem:[#allocation7 + $0x130] sm:$0xff] }
 0x246   :  { %3105 = vmatprep.subr.bf16.mxu0 %v3743_v37  ;;  %3146 = vmatprep.subr.bf16.mxu1 %v3745_v38  ;;  %v2125_v37 = vld [vmem:[#allocation7 + $0x170] sm:$0xff]  ;;  %v2118_v38 = vld [vmem:[#allocation7 + $0x138] sm:$0xff] }
 0x247   :  { %v3747_v44 = vcombine.high %v2117_v36, %v2125_v37  ;;  %v3746_v17 = vcombine.low %v2117_v36, %v2125_v37  ;;  %v3748_v26 = vcombine.low %v2118_v38, %v2126_v39 }
 0x249   :  { %3106 = vmatpush1.bf16.msra.mxu0 %v3742_v45  ;;  %3147 = vmatpush1.bf16.msra.mxu1 %v3744_v46  ;;  %v3749_v45 = vcombine.high %v2118_v38, %v2126_v39  ;;  %v2101_v46 = vld [vmem:[#allocation7 + $0xb0] sm:$0xff] }
 0x24a   :  { %3107 = vmatprep.subr.bf16.mxu0 %v3727_v47  ;;  %3148 = vmatprep.subr.bf16.mxu1 %v3729_v48  ;;  %v2109_v47 = vld [vmem:[#allocation7 + $0xf0] sm:$0xff]  ;;  %v2102_v48 = vld [vmem:[#allocation7 + $0xb8] sm:$0xff] }
 0x24b   :  { %v3731_v51 = vcombine.high %v2101_v46, %v2109_v47  ;;  %v3730_v57 = vcombine.low %v2101_v46, %v2109_v47  ;;  %v3732_v59 = vcombine.low %v2102_v48, %v2110_v50 }
 0x24d   :  { %3108 = vmatpush1.bf16.msra.mxu0 %v3726_v52  ;;  %3149 = vmatpush1.bf16.msra.mxu1 %v3728_v53  ;;  %v3733_v52 = vcombine.high %v2102_v48, %v2110_v50  ;;  %v2085_v53 = vld [vmem:[#allocation7 + $0x30] sm:$0xff] }
 0x24e   :  { %3109 = vmatprep.subr.bf16.mxu0 %v3711_v54  ;;  %3150 = vmatprep.subr.bf16.mxu1 %v3713_v55  ;;  %v2093_v54 = vld [vmem:[#allocation7 + $0x70] sm:$0xff]  ;;  %v2086_v55 = vld [vmem:[#allocation7 + $0x38] sm:$0xff] }
 0x24f   :  { %v3715_v60 = vcombine.high %v2085_v53, %v2093_v54 }
 0x251   :  { %3110 = vmatpush1.bf16.msra.mxu0 %v3710_v61  ;;  %3151 = vmatpush1.bf16.msra.mxu1 %v3712_v62  ;;  %v3717_v61 = vcombine.high %v2086_v55, %v2094_v56  ;;  %v3714_v62 = vcombine.low %v2085_v53, %v2093_v54 }
 0x252   :  { %3177 = vmatprep.subr.bf16.mxu0 %v3827_v63  ;;  %3218 = vmatprep.subr.bf16.mxu1 %v3829_v0  ;;  %v3716_v63 = vcombine.low %v2086_v55, %v2094_v56 }
 0x254   :  { %3128 = vmatmul.mubr.bf16.vlgmr.msra.gmra.mxu0 %v5260_v58  ;;  %3169 = vmatmul.mubr.bf16.vlgmr.msra.gmra.mxu1 %v5260_v58 }
 0x255   :  { %3178 = vmatpush1.bf16.msra.mxu0 %v3826_v5  ;;  %3219 = vmatpush1.bf16.msra.mxu1 %v3828_v7 }
 0x256   :  { %3179 = vmatprep.subr.bf16.mxu0 %v3811_v8  ;;  %3220 = vmatprep.subr.bf16.mxu1 %v3813_v9 }
 0x257   :  { %3209 = vmatprep.mubr.bf16.mxu0 %v4373_v21  ;;  %3250 = vmatprep.mubr.bf16.mxu1 %v4373_v21  ;;  %v3765_v21 = vcombine.high %v2134_v32, %v2142_v33 }
 0x259   :  { %3180 = vmatpush1.bf16.msra.mxu0 %v3810_v14  ;;  %3221 = vmatpush1.bf16.msra.mxu1 %v3812_v15 }
 0x25a   :  { %3181 = vmatprep.subr.bf16.mxu0 %v3795_v16  ;;  %3222 = vmatprep.subr.bf16.mxu1 %v3797_v18 }
 0x25d   :  { %3182 = vmatpush1.bf16.msra.mxu0 %v3794_v24  ;;  %3223 = vmatpush1.bf16.msra.mxu1 %v3796_v25 }
 0x25e   :  { %3183 = vmatprep.subr.bf16.mxu0 %v3779_v27  ;;  %3224 = vmatprep.subr.bf16.mxu1 %v3781_v28 }
 0x261   :  { %3184 = vmatpush1.bf16.msra.mxu0 %v3778_v34  ;;  %3225 = vmatpush1.bf16.msra.mxu1 %v3780_v29 }
 0x262   :  { %3185 = vmatprep.subr.bf16.mxu0 %v3763_v35  ;;  %3226 = vmatprep.subr.bf16.mxu1 %v3765_v21 }
 0x265   :  { %3186 = vmatpush1.bf16.msra.mxu0 %v3762_v41  ;;  %3227 = vmatpush1.bf16.msra.mxu1 %v3764_v6 }
 0x266   :  { %3187 = vmatprep.subr.bf16.mxu0 %v3747_v44  ;;  %3228 = vmatprep.subr.bf16.mxu1 %v3749_v45 }
 0x269   :  { %3188 = vmatpush1.bf16.msra.mxu0 %v3746_v17  ;;  %3229 = vmatpush1.bf16.msra.mxu1 %v3748_v26 }
 0x26a   :  { %3189 = vmatprep.subr.bf16.mxu0 %v3731_v51  ;;  %3230 = vmatprep.subr.bf16.mxu1 %v3733_v52 }
 0x26d   :  { %3190 = vmatpush1.bf16.msra.mxu0 %v3730_v57  ;;  %3231 = vmatpush1.bf16.msra.mxu1 %v3732_v59 }
 0x26e   :  { %3191 = vmatprep.subr.bf16.mxu0 %v3715_v60  ;;  %3232 = vmatprep.subr.bf16.mxu1 %v3717_v61 }
 0x271   :  { %3192 = vmatpush1.bf16.msra.mxu0 %v3714_v62  ;;  %3233 = vmatpush1.bf16.msra.mxu1 %v3716_v63 }
 0x274   :  { %3210 = vmatmul.mubr.bf16.vlgmr.msra.gmra.mxu0 %v5260_v58  ;;  %3251 = vmatmul.mubr.bf16.vlgmr.msra.gmra.mxu1 %v5260_v58 }
 0x275   :  { %4327 = shalt.err (!%p4324_p10)
}
 0x276   :  { %3420 = dma.vmem_to_hbm [thread:$0]  %s3418_s13, 32, %s5332_s6, [#allocation4]  }
 0x277   :  { %s4336_s18 = scalar_lea.vmem %s3428_s15, 32  ;;  %p4341_p12 = scmp.lt.s32.totalorder %s3428_s15, %s3428_s15 }
 0x278   :  { %p4337_p11 = scmp.ne.s32.totalorder %s3428_s15, %s4336_s18  ;;  %p4342_p13 = scmp.lt.s32.totalorder %s4336_s18, %s4336_s18 }
 0x27a   :  { %p4343_p0 = por %p4342_p13, %p4341_p12 }
 0x27c   :  { %p4344_p1 = pnand %p4343_p0, %p4337_p11 }
 0x27e   :  { %4347 = shalt.err (!%p4344_p1)
}
 0x27f   :  { %3430 = dma.vmem_to_hbm [thread:$0]  %s3428_s15, 32, %s5333_s7, [#allocation12]   ;;  %v2225_v8 = vsub.s32 3, %v4550_v42  ;;  %v2221_v9 = vsub.s32 2, %v4550_v42  ;;  %v2207_v10 = vld [vmem:[#allocation8] sm:$0xff]  ;;  %v2229_v18 = vsub.s32 4, %v4550_v42 }
 0x280   :  { %v2218_v11 = vrot.slane %v2207_v10, %v5248_v43  ;;  %v2214_v13 = vrot.slane %v2207_v10, %v5245_v40  ;;  %v2237_v19 = vsub.s32 6, %v4550_v42  ;;  %v2233_v23 = vsub.s32 5, %v4550_v42 }
 0x281   :  { %v2226_v12 = vrot.slane %v2207_v10, %v2225_v8  ;;  %v2222_v14 = vrot.slane %v2207_v10, %v2221_v9  ;;  %v2241_v24 = vsub.s32 7, %v4550_v42  ;;  %v2230_v28 = vrot.slane %v2207_v10, %v2229_v18 }
 0x282   :  { %v2238_v30 = vrot.slane %v2207_v10, %v2237_v19  ;;  %v2234_v33 = vrot.slane %v2207_v10, %v2233_v23 }
 0x283   :  { %v2242_v34 = vrot.slane %v2207_v10, %v2241_v24 }
 0x2d4   :  { %v2965_v58 = vpop.f32.mrf.mxu0  ;;  %v3006_v0 = vpop.f32.mrf.mxu1 }
 0x2d5   :  { %v2966_v20 = vadd.f32 %v2965_v58, %v2214_v13  ;;  %v3007_v22 = vadd.f32 %v3006_v0, %v2222_v14  ;;  %v2208_v58 = vld [vmem:[#allocation8 + $0x8] sm:$0xff] }
 0x2d6   :  { %v2967_v1 = vpop.f32.mrf.mxu0  ;;  %v3008_v2 = vpop.f32.mrf.mxu1  ;;  %v2254_v0 = vrot.slane %v2208_v58, %v2221_v9 }
 0x2d7   :  { %v2968_v15 = vadd.f32 %v2967_v1, %v2218_v11  ;;  %v3009_v16 = vadd.f32 %v3008_v2, %v2226_v12  ;;  %v3259_v31 = vmax.f32 %v2966_v20, 0.0  ;;  %v3261_v32 = vmax.f32 %v3007_v22, 0.0 }
 0x2d8   :  { %v2969_v3 = vpop.f32.mrf.mxu0  ;;  %v3010_v4 = vpop.f32.mrf.mxu1  ;;  %v2258_v1 = vrot.slane %v2208_v58, %v2225_v8  ;;  %v2250_v22 = vrot.slane %v2208_v58, %v5248_v43 }
 0x2d9   :  { %v3260_v25 = vmax.f32 %v2968_v15, 0.0  ;;  %v3262_v27 = vmax.f32 %v3009_v16, 0.0 }
 0x2da   :  { %v2970_v5 = vpop.f32.mrf.mxu0  ;;  %v3011_v7 = vpop.f32.mrf.mxu1 }
 0x2db   :  { %v3830_v29 = vpack.c.bf16 %v3260_v25, %v3259_v31  ;;  %v3831_v35 = vpack.c.bf16 %v3262_v27, %v3261_v32  ;;  %v2246_v25 = vrot.slane %v2208_v58, %v5245_v40  ;;  %v2266_v32 = vrot.slane %v2208_v58, %v2233_v23 }
 0x2dd   :  { %v3319_v45 = vrot.slane %v3830_v29, %v4568_v49  ;;  %v3326_v46 = vrot.slane %v3831_v35, %v4568_v49 }
 0x2df   :  { %v3341_v56 = vcombine.low %v3319_v45, %v3326_v46 }
 0x2e1   :  { %v3349_v61 = vrot.slane %v3341_v56, %v4568_v49 }
 0x2f4   :  { %v3047_v21 = vpop.f32.mrf.mxu0  ;;  %v3088_v36 = vpop.f32.mrf.mxu1 }
 0x2f5   :  { %v3048_v37 = vadd.f32 %v3047_v21, %v2230_v28  ;;  %v3089_v38 = vadd.f32 %v3088_v36, %v2238_v30  ;;  %v2262_v28 = vrot.slane %v2208_v58, %v2229_v18  ;;  %v2270_v30 = vrot.slane %v2208_v58, %v2237_v19 }
 0x2f6   :  { %v3049_v39 = vpop.f32.mrf.mxu0  ;;  %v3090_v41 = vpop.f32.mrf.mxu1 }
 0x2f7   :  { %v3050_v6 = vadd.f32 %v3049_v39, %v2234_v33  ;;  %v3091_v44 = vadd.f32 %v3090_v41, %v2242_v34  ;;  %v3263_v50 = vmax.f32 %v3048_v37, 0.0  ;;  %v3265_v17 = vmax.f32 %v3089_v38, 0.0 }
 0x2f8   :  { %v3051_v47 = vpop.f32.mrf.mxu0  ;;  %v3092_v48 = vpop.f32.mrf.mxu1  ;;  %v2274_v33 = vrot.slane %v2208_v58, %v2241_v24 }
 0x2f9   :  { %v3264_v26 = vmax.f32 %v3050_v6, 0.0  ;;  %v3266_v51 = vmax.f32 %v3091_v44, 0.0 }
 0x2fa   :  { %v3052_v52 = vpop.f32.mrf.mxu0  ;;  %v3093_v53 = vpop.f32.mrf.mxu1 }
 0x2fb   :  { %v3832_v54 = vpack.c.bf16 %v3264_v26, %v3263_v50  ;;  %v3833_v55 = vpack.c.bf16 %v3266_v51, %v3265_v17 }
 0x2fd   :  { %v3333_v57 = vrot.slane %v3832_v54, %v4568_v49  ;;  %v3340_v59 = vrot.slane %v3833_v55, %v4568_v49 }
 0x2ff   :  { %v3342_v60 = vcombine.low %v3333_v57, %v3340_v59 }
 0x301   :  { %v3356_v62 = vrot.slane %v3342_v60, %v4568_v49 }
 0x303   :  { %v3357_v63 = vcombine.low %v3349_v61, %v3356_v62 }
 0x305   :  { %3409 = vst [vmem:[%s5334_s8] sm:$0xff] %v3357_v63 }
 0x314   :  { %v3129_v2 = vpop.f32.mrf.mxu0  ;;  %v3170_v3 = vpop.f32.mrf.mxu1 }
 0x315   :  { %v3171_v4 = vadd.f32 %v3170_v3, %v2254_v0  ;;  %v3130_v9 = vadd.f32 %v3129_v2, %v2246_v25 }
 0x316   :  { %v3131_v5 = vpop.f32.mrf.mxu0  ;;  %v3172_v7 = vpop.f32.mrf.mxu1 }
 0x317   :  { %v3173_v10 = vadd.f32 %v3172_v7, %v2258_v1  ;;  %v3269_v13 = vmax.f32 %v3171_v4, 0.0  ;;  %v3132_v27 = vadd.f32 %v3131_v5, %v2250_v22  ;;  %v3267_v31 = vmax.f32 %v3130_v9, 0.0 }
 0x318   :  { %v3133_v11 = vpop.f32.mrf.mxu0  ;;  %v3174_v12 = vpop.f32.mrf.mxu1 }
 0x319   :  { %v3270_v14 = vmax.f32 %v3173_v10, 0.0  ;;  %v3268_v8 = vmax.f32 %v3132_v27, 0.0 }
 0x31a   :  { %v3134_v15 = vpop.f32.mrf.mxu0  ;;  %v3175_v16 = vpop.f32.mrf.mxu1 }
 0x31b   :  { %v3835_v20 = vpack.c.bf16 %v3270_v14, %v3269_v13  ;;  %v3834_v34 = vpack.c.bf16 %v3268_v8, %v3267_v31 }
 0x31d   :  { %v3368_v18 = vrot.slane %v3834_v34, %v4568_v49  ;;  %v3375_v19 = vrot.slane %v3835_v20, %v4568_v49 }
 0x31f   :  { %v3390_v48 = vcombine.low %v3368_v18, %v3375_v19 }
 0x321   :  { %v3398_v51 = vrot.slane %v3390_v48, %v4568_v49 }
 0x334   :  { %v3211_v43 = vpop.f32.mrf.mxu0  ;;  %v3252_v29 = vpop.f32.mrf.mxu1 }
 0x335   :  { %v3212_v40 = vadd.f32 %v3211_v43, %v2262_v28  ;;  %v3253_v35 = vadd.f32 %v3252_v29, %v2270_v30 }
 0x336   :  { %v3213_v21 = vpop.f32.mrf.mxu0  ;;  %v3254_v36 = vpop.f32.mrf.mxu1 }
 0x337   :  { %v3214_v37 = vadd.f32 %v3213_v21, %v2266_v32  ;;  %v3255_v38 = vadd.f32 %v3254_v36, %v2274_v33  ;;  %v3271_v6 = vmax.f32 %v3212_v40, 0.0  ;;  %v3273_v23 = vmax.f32 %v3253_v35, 0.0 }
 0x338   :  { %v3215_v39 = vpop.f32.mrf.mxu0  ;;  %v3256_v41 = vpop.f32.mrf.mxu1 }
 0x339   :  { %v3272_v44 = vmax.f32 %v3214_v37, 0.0  ;;  %v3274_v42 = vmax.f32 %v3255_v38, 0.0 }
 0x33a   :  { %v3216_v24 = vpop.f32.mrf.mxu0  ;;  %v3257_v45 = vpop.f32.mrf.mxu1 }
 0x33b   :  { %v3836_v46 = vpack.c.bf16 %v3272_v44, %v3271_v6  ;;  %v3837_v47 = vpack.c.bf16 %v3274_v42, %v3273_v23 }
 0x33d   :  { %v3382_v50 = vrot.slane %v3836_v46, %v4568_v49  ;;  %v3389_v17 = vrot.slane %v3837_v47, %v4568_v49 }
 0x33f   :  { %v3391_v26 = vcombine.low %v3382_v50, %v3389_v17 }
 0x341   :  { %v3405_v52 = vrot.slane %v3391_v26, %v4568_v49 }
 0x343   :  { %v3406_v53 = vcombine.low %v3398_v51, %v3405_v52 }
 0x345   :  { %3410 = vst [vmem:[%s5334_s8 + $0x8] sm:$0xff] %v3406_v53 }
 0x346   :  { %4362 = dma.done.wait [#allocation4], 32  }
 0x347   :  { %4363 = vsyncadd [#allocation4], 4294967264 }
 0x348   :  { %4364 = dma.done.wait [#allocation12], 32  }
 0x349   :  { %4365 = vsyncadd [#allocation12], 4294967264 }
 0x34a   :  { %3441 = vsyncpa [#allocation3], 1 }
 0x34b   :  { %3442 = vsyncpa [#allocation6], 1 }
 0x34c   :  { %3443 = vsyncpa [#allocation9], 1 }
 0x34d   :  { %3444 = vsyncpa [#allocation4], 1 }
 0x34e   :  { %3445 = vsyncpa [#allocation12], 1 }

// kernel: vae_forward.5
= control target key start
LH: loop header
LB: loop body
LE: loop exit
PB: predicated region body
PF: predicated region fallthrough
CT: control target
= control target key end

     0   :  { %vm112_vm0 = vcmask 1046528   ;;  %v6010_v1 = vmov 0.0   ;;  %v6011_v6 = vmov 0.0|0.0   ;;  %vm173_vm1 = vcmask 1045504   ;;  %s6012_s19 = smov 64   ;;  %s8170_s1 = inlined_call_operand.vmem [shape: bf16[2560,192], index: 1, kind: input, shape index: {}]   ;;  %s8171_s0 = inlined_call_operand.vmem [shape: bf16[2,8,256], index: 0, kind: input, shape index: {}]   ;;  %s8172_s3 = inlined_call_operand.vmem [shape: bf16[1600,48], index: 3, kind: input, shape index: {}]   ;;  %s8173_s2 = inlined_call_operand.vmem [shape: f32[1,192], index: 2, kind: input, shape index: {}]   ;;  %s8174_s4 = inlined_call_operand.vmem [shape: f32[1,48], index: 4, kind: input, shape index: {}]   ;;  %s8175_s5 = inlined_call_operand.vmem [shape: f32[2,16,48], index: 5, kind: output, shape index: {}]  }
   0x1   :  { %v5399_v0 = vld [vmem:[%s8170_s1 + $0x74] ss:$8 sps:$4 sm:$0xff]   ;;  %22 = vst [vmem:[#allocation2] sm:$0xff] %v6010_v1  ;;  %26 = vst [vmem:[#allocation2 + $0x68] sm:$0xff] %v6010_v1  ;;  %v6063_v2 = vrot.slane %v6010_v1, 1  ;;  %2493 = vmatprep.mubr.bf16.mxu1 %v6011_v6  ;;  %v37_v50 = vld [vmem:[%s8171_s0] sm:$0xff] }
   0x2   :  { %21 = vst [vmem:[#allocation2 + $0x30] sm:$0xff] %v6010_v1  ;;  %23 = vst [vmem:[#allocation2 + $0x58] sm:$0xff] %v6010_v1  ;;  %v5401_v3 = vld [vmem:[%s8170_s1 + $0x174] ss:$8 sps:$4 sm:$0xff]   ;;  %2408 = vmatprep.subr.bf16.mxu0 %v5399_v0  ;;  %v5403_v4 = vld [vmem:[%s8170_s1 + $0x70] ss:$8 sps:$4 sm:$0xff]   ;;  %v38_v51 = vunpack.c.l.bf16 %v37_v50  ;;  %v39_v52 = vunpack.c.h.bf16 %v37_v50 }
   0x3   :  { %27 = vst [vmem:[#allocation2 + $0x8] sm:$0xff] %v6010_v1  ;;  %30 = vst [vmem:[#allocation2 + $0x20] sm:$0xff] %v6010_v1  ;;  %v5404_v5 = vld [vmem:[%s8170_s1 + $0x170] ss:$8 sps:$4 sm:$0xff]   ;;  %2461 = vmatprep.subr.bf16.mxu1 %v5401_v3  ;;  %v5405_v7 = vld [vmem:[%s8170_s1 + $0x64] ss:$8 sps:$4 sm:$0xff]   ;;  %2409 = vmatpush1.bf16.msra.mxu0 %v5403_v4 }
   0x4   :  { %31 = vst [vmem:[#allocation2 + $0x10] sm:$0xff] %v6010_v1  ;;  %34 = vst [vmem:[#allocation2 + $0x70] sm:$0xff] %v6010_v1  ;;  %2462 = vmatpush1.bf16.msra.mxu1 %v5404_v5  ;;  %v5407_v8 = vld [vmem:[%s8170_s1 + $0x164] ss:$8 sps:$4 sm:$0xff]   ;;  %v5409_v9 = vld [vmem:[%s8170_s1 + $0x60] ss:$8 sps:$4 sm:$0xff]   ;;  %2410 = vmatprep.subr.bf16.mxu0 %v5405_v7 }
   0x5   :  { %35 = vst [vmem:[#allocation2 + $0x78] sm:$0xff] %v6010_v1  ;;  %2946 = vst [vmem:[#allocation4] sm:$0xff] %v6010_v1  ;;  %v5410_v10 = vld [vmem:[%s8170_s1 + $0x160] ss:$8 sps:$4 sm:$0xff]   ;;  %2463 = vmatprep.subr.bf16.mxu1 %v5407_v8  ;;  %v5411_v11 = vld [vmem:[%s8170_s1 + $0x54] ss:$8 sps:$4 sm:$0xff]  }
   0x6   :  { %2947 = vst [vmem:[#allocation4 + $0x8] sm:$0xff] %v6010_v1  ;;  %2950 = vst [vmem:[#allocation4 + $0x18] sm:$0xff] %v6010_v1  ;;  %v5413_v12 = vld [vmem:[%s8170_s1 + $0x154] ss:$8 sps:$4 sm:$0xff]   ;;  %v5415_v13 = vld [vmem:[%s8170_s1 + $0x50] ss:$8 sps:$4 sm:$0xff]  }
   0x7   :  { %2956 = vst [vmem:[#allocation4 + $0x48] sm:$0xff] %v6010_v1  ;;  %2959 = vst [vmem:[#allocation4 + $0x60] sm:$0xff] %v6010_v1  ;;  %v5416_v14 = vld [vmem:[%s8170_s1 + $0x150] ss:$8 sps:$4 sm:$0xff]   ;;  %2411 = vmatpush1.bf16.msra.mxu0 %v5409_v9  ;;  %v5417_v15 = vld [vmem:[%s8170_s1 + $0x44] ss:$8 sps:$4 sm:$0xff]  }
   0x8   :  { %2960 = vst [vmem:[#allocation4 + $0x68] sm:$0xff] %v6010_v1  ;;  %92 = vst [vmem:[#allocation3 + $0x198] sm:$0xf] %v6010_v1  ;;  %2464 = vmatpush1.bf16.msra.mxu1 %v5410_v10  ;;  %2412 = vmatprep.subr.bf16.mxu0 %v5411_v11  ;;  %v5419_v16 = vld [vmem:[%s8170_s1 + $0x144] ss:$8 sps:$4 sm:$0xff]   ;;  %v42_v59 = vrot.slane %v38_v51, 4 }
   0x9   :  { %95 = vst [vmem:[#allocation3 + $0x240] sm:$0xf] %v6010_v1  ;;  %169 = vst [vmem:[#allocation3 + $0x258] sm:$0xf] %v6063_v2  ;;  %2465 = vmatprep.subr.bf16.mxu1 %v5413_v12  ;;  %v5421_v17 = vld [vmem:[%s8170_s1 + $0x40] ss:$8 sps:$4 sm:$0xff]  }
   0xa   :  { %172 = vst [vmem:[#allocation3 + $0xc8] sm:$0xf] %v6063_v2  ;;  %160 = vst [vmem:[#allocation3 + $0x130] sm:$0xff] %v6063_v2  ;;  %v5422_v18 = vld [vmem:[%s8170_s1 + $0x140] ss:$8 sps:$4 sm:$0xff]   ;;  %v43_v60 = vrot.slane %v39_v52, 4 }
   0xb   :  { %2413 = vmatpush1.bf16.msra.mxu0 %v5415_v13  ;;  %v5423_v19 = vld [vmem:[%s8170_s1 + $0x34] ss:$8 sps:$4 sm:$0xff]   ;;  %v5427_v21 = vld [vmem:[%s8170_s1 + $0x30] ss:$8 sps:$4 sm:$0xff]   ;;  %v5429_v23 = vld [vmem:[%s8170_s1 + $0x24] ss:$8 sps:$4 sm:$0xff]  }
   0xc   :  { %2466 = vmatpush1.bf16.msra.mxu1 %v5416_v14  ;;  %2414 = vmatprep.subr.bf16.mxu0 %v5417_v15  ;;  %v5425_v20 = vld [vmem:[%s8170_s1 + $0x134] ss:$8 sps:$4 sm:$0xff]   ;;  %v5428_v22 = vld [vmem:[%s8170_s1 + $0x130] ss:$8 sps:$4 sm:$0xff]   ;;  %v5431_v24 = vld [vmem:[%s8170_s1 + $0x124] ss:$8 sps:$4 sm:$0xff]  }
   0xd   :  { %2467 = vmatprep.subr.bf16.mxu1 %v5419_v16  ;;  %v5433_v25 = vld [vmem:[%s8170_s1 + $0x20] ss:$8 sps:$4 sm:$0xff]   ;;  %v5435_v27 = vld [vmem:[%s8170_s1 + $0x14] ss:$8 sps:$4 sm:$0xff]   ;;  %v5439_v29 = vld [vmem:[%s8170_s1 + $0x10] ss:$8 sps:$4 sm:$0xff]  }
   0xe   :  { %v5434_v26 = vld [vmem:[%s8170_s1 + $0x120] ss:$8 sps:$4 sm:$0xff]   ;;  %v5437_v28 = vld [vmem:[%s8170_s1 + $0x114] ss:$8 sps:$4 sm:$0xff]   ;;  %v5440_v30 = vld [vmem:[%s8170_s1 + $0x110] ss:$8 sps:$4 sm:$0xff]  }
   0xf   :  { %2415 = vmatpush1.bf16.msra.mxu0 %v5421_v17  ;;  %v5441_v31 = vld [vmem:[%s8170_s1 + $0x4] ss:$8 sps:$4 sm:$0xff]   ;;  %v5445_v33 = vld [vmem:[%s8170_s1] ss:$8 sps:$4 sm:$0xff]   ;;  %v5447_v35 = vld [vmem:[%s8170_s1 + $0xf4] ss:$8 sps:$4 sm:$0xff]  }
  0x10   :  { %2468 = vmatpush1.bf16.msra.mxu1 %v5422_v18  ;;  %2416 = vmatprep.subr.bf16.mxu0 %v5423_v19  ;;  %v5443_v32 = vld [vmem:[%s8170_s1 + $0x104] ss:$8 sps:$4 sm:$0xff]   ;;  %v5446_v34 = vld [vmem:[%s8170_s1 + $0x100] ss:$8 sps:$4 sm:$0xff]   ;;  %v5449_v36 = vld [vmem:[%s8170_s1 + $0x1f4] ss:$8 sps:$4 sm:$0xff]  }
  0x11   :  { %2469 = vmatprep.subr.bf16.mxu1 %v5425_v20  ;;  %v5451_v37 = vld [vmem:[%s8170_s1 + $0xf0] ss:$8 sps:$4 sm:$0xff]   ;;  %v5453_v39 = vld [vmem:[%s8170_s1 + $0xe4] ss:$8 sps:$4 sm:$0xff]   ;;  %v5457_v41 = vld [vmem:[%s8170_s1 + $0xe0] ss:$8 sps:$4 sm:$0xff]  }
  0x12   :  { %v5452_v38 = vld [vmem:[%s8170_s1 + $0x1f0] ss:$8 sps:$4 sm:$0xff]   ;;  %v5455_v40 = vld [vmem:[%s8170_s1 + $0x1e4] ss:$8 sps:$4 sm:$0xff]   ;;  %v5458_v42 = vld [vmem:[%s8170_s1 + $0x1e0] ss:$8 sps:$4 sm:$0xff]  }
  0x13   :  { %2417 = vmatpush1.bf16.msra.mxu0 %v5427_v21  ;;  %v5459_v43 = vld [vmem:[%s8170_s1 + $0xd4] ss:$8 sps:$4 sm:$0xff]   ;;  %v5463_v45 = vld [vmem:[%s8170_s1 + $0xd0] ss:$8 sps:$4 sm:$0xff]   ;;  %v5465_v47 = vld [vmem:[%s8170_s1 + $0xc4] ss:$8 sps:$4 sm:$0xff]  }
  0x14   :  { %2470 = vmatpush1.bf16.msra.mxu1 %v5428_v22  ;;  %2418 = vmatprep.subr.bf16.mxu0 %v5429_v23  ;;  %v5461_v44 = vld [vmem:[%s8170_s1 + $0x1d4] ss:$8 sps:$4 sm:$0xff]   ;;  %v5464_v46 = vld [vmem:[%s8170_s1 + $0x1d0] ss:$8 sps:$4 sm:$0xff]   ;;  %v5467_v48 = vld [vmem:[%s8170_s1 + $0x1c4] ss:$8 sps:$4 sm:$0xff]  }
  0x15   :  { %2471 = vmatprep.subr.bf16.mxu1 %v5431_v24  ;;  %v5469_v49 = vld [vmem:[%s8170_s1 + $0xc0] ss:$8 sps:$4 sm:$0xff]   ;;  %v5471_v55 = vld [vmem:[%s8170_s1 + $0xb4] ss:$8 sps:$4 sm:$0xff]   ;;  %46 = vst [vmem:[#allocation2 + $0x68] ss:$-100 sps:$4 sm:$0xff] %v42_v59  }
  0x16   :  { %v4724_v53 = vld [vmem:[%s8171_s0 + $0x8] sm:$0xff]  ;;  %v5473_v58 = vld [vmem:[%s8170_s1 + $0x1b4] ss:$8 sps:$4 sm:$0xff]   ;;  %47 = vst [vmem:[#allocation2 + $0x8] ss:$84 sps:$4 sm:$0xff] %v43_v60   ;;  %vm234_vm2 = vcmask 1044480  }
  0x17   :  { %2419 = vmatpush1.bf16.msra.mxu0 %v5433_v25  ;;  %v5470_v54 = vld [vmem:[%s8170_s1 + $0x1c0] ss:$8 sps:$4 sm:$0xff]   ;;  %v52_v56 = vunpack.c.l.bf16 %v4724_v53  ;;  %v53_v57 = vunpack.c.h.bf16 %v4724_v53  ;;  %v5475_v63 = vld [vmem:[%s8170_s1 + $0xb0] ss:$8 sps:$4 sm:$0xff]   ;;  %v5477_v3 = vld [vmem:[%s8170_s1 + $0xa4] ss:$8 sps:$4 sm:$0xff]  }
  0x18   :  { %2472 = vmatpush1.bf16.msra.mxu1 %v5434_v26  ;;  %2420 = vmatprep.subr.bf16.mxu0 %v5435_v27  ;;  %v5476_v0 = vld [vmem:[%s8170_s1 + $0x1b0] ss:$8 sps:$4 sm:$0xff]   ;;  %v5479_v4 = vld [vmem:[%s8170_s1 + $0x1a4] ss:$8 sps:$4 sm:$0xff]   ;;  %v5481_v5 = vld [vmem:[%s8170_s1 + $0xa0] ss:$8 sps:$4 sm:$0xff]  }
  0x19   :  { %2473 = vmatprep.subr.bf16.mxu1 %v5437_v28  ;;  %v56_v61 = vrot.slane %v52_v56, 4  ;;  %v57_v62 = vrot.slane %v53_v57, 4  ;;  %v5482_v7 = vld [vmem:[%s8170_s1 + $0x1a0] ss:$8 sps:$4 sm:$0xff]   ;;  %v5483_v8 = vld [vmem:[%s8170_s1 + $0x94] ss:$8 sps:$4 sm:$0xff]  }
  0x1a   :  { %v5485_v9 = vld [vmem:[%s8170_s1 + $0x194] ss:$8 sps:$4 sm:$0xff]   ;;  %v5487_v10 = vld [vmem:[%s8170_s1 + $0x90] ss:$8 sps:$4 sm:$0xff]   ;;  %v5489_v18 = vld [vmem:[%s8170_s1 + $0x84] ss:$8 sps:$4 sm:$0xff]  }
  0x1b   :  { %2421 = vmatpush1.bf16.msra.mxu0 %v5439_v29  ;;  %60 = vst [vmem:[#allocation2 + $0x70] ss:$-76 sps:$4 sm:$0xff] %v56_v61   ;;  %61 = vst [vmem:[#allocation2 + $0x78] ss:$-100 sps:$4 sm:$0xff] %v57_v62   ;;  %v5488_v17 = vld [vmem:[%s8170_s1 + $0x190] ss:$8 sps:$4 sm:$0xff]  }
  0x1c   :  { %2474 = vmatpush1.bf16.msra.mxu1 %v5440_v30  ;;  %2422 = vmatprep.subr.bf16.mxu0 %v5441_v31  ;;  %v6251_v11 = vld [vmem:[#allocation2] sm:$0xff]  ;;  %v6253_v12 = vld [vmem:[#allocation2 + $0x68] sm:$0xff]  ;;  %v6290_v26 = vrot.slane %v6010_v1, 2  ;;  %v5497_v29 = vld [vmem:[%s8170_s1 + $0x274] ss:$8 sps:$4 sm:$0xff]   ;;  %vm295_vm3 = vcmask 1043456  }
  0x1d   :  { %2475 = vmatprep.subr.bf16.mxu1 %v5443_v32  ;;  %v6255_v13 = vld [vmem:[#allocation2 + $0x58] sm:$0xff]  ;;  %81 = vst [vmem:[#allocation3 + $0x1c8] sm:$0xff] %v6251_v11  ;;  %85 = vst [vmem:[#allocation3 + $0x1d8] sm:$0xff] %v6253_v12  ;;  %v437_v14 = vpack.c.bf16 %v6253_v12, %v6251_v11  ;;  %v6261_v15 = vld [vmem:[#allocation2 + $0x8] sm:$0xff]  ;;  %v116_v21 = vrot.slane %v6251_v11, 1  ;;  %v117_v22 = vrot.slane %v6253_v12, 1 }
  0x1e   :  { %82 = vst [vmem:[#allocation3 + $0x50] sm:$0xff] %v6255_v13  ;;  %v119_v16 = vrot.slane %v6255_v13, 1  ;;  %86 = vst [vmem:[#allocation3 + $0x250] sm:$0xff] %v6261_v15  ;;  %v120_v19 = vrot.slane %v6261_v15, 1  ;;  %v5491_v20 = vld [vmem:[%s8170_s1 + $0x184] ss:$8 sps:$4 sm:$0xff]  }
  0x1f   :  { %2423 = vmatpush1.bf16.msra.mxu0 %v5445_v33  ;;  %2440 = vmatprep.mubr.bf16.mxu0 %v437_v14  ;;  %v5493_v24 = vld [vmem:[%s8170_s1 + $0x80] ss:$8 sps:$4 sm:$0xff]   ;;  %v180_v27 = vrot.slane %v6255_v13, 2  ;;  %v181_v28 = vrot.slane %v6261_v15, 2  ;;  %v6300_v30 = vsel %vm112_vm0, %v116_v21, %v117_v22  ;;  %v5500_v31 = vld [vmem:[%s8170_s1 + $0x374] ss:$8 sps:$4 sm:$0xff]  }
  0x20   :  { %2476 = vmatpush1.bf16.msra.mxu1 %v5446_v34  ;;  %2424 = vmatprep.subr.bf16.mxu0 %v5447_v35  ;;  %v6281_v23 = vsel %vm112_vm0, %v119_v16, %v120_v19  ;;  %v5494_v25 = vld [vmem:[%s8170_s1 + $0x180] ss:$8 sps:$4 sm:$0xff]   ;;  %v177_v32 = vrot.slane %v6251_v11, 2  ;;  %v178_v33 = vrot.slane %v6253_v12, 2  ;;  %v438_v34 = vpack.c.bf16 %v6261_v15, %v6255_v13  ;;  %v5495_v35 = vld [vmem:[%s8170_s1 + $0x270] ss:$8 sps:$4 sm:$0xff]  }
  0x21   :  { %2477 = vmatprep.subr.bf16.mxu1 %v5449_v36  ;;  %v5498_v36 = vld [vmem:[%s8170_s1 + $0x370] ss:$8 sps:$4 sm:$0xff]   ;;  %218 = vst [vmem:[#allocation3 + $0x1e0] sm:$0xff] %v6290_v26  ;;  %230 = vst [vmem:[#allocation3 + $0xb8] sm:$0xf] %v6290_v26  ;;  %vm2948_vm4 = vcmask 523264  }
  0x22   :  { %233 = vst [vmem:[#allocation3 + $0x238] sm:$0xf] %v6290_v26  ;;  %221 = vst [vmem:[#allocation3 + $0x118] sm:$0xff] %v6290_v26  ;;  %v5516_v50 = vld [vmem:[%s8170_s1 + $0x340] ss:$8 sps:$4 sm:$0xff]   ;;  %vm2986_vm5 = vcmask 1048068  }
  0x23   :  { %2425 = vmatpush2.bf16.msra.mxu0 %v5451_v37  ;;  %v6318_v37 = vsel %vm173_vm1, %v177_v32, %v178_v33  ;;  %v5521_v51 = vld [vmem:[%s8170_s1 + $0x234] ss:$8 sps:$4 sm:$0xff]   ;;  %v5519_v53 = vld [vmem:[%s8170_s1 + $0x230] ss:$8 sps:$4 sm:$0xff]   ;;  %v5530_v56 = vld [vmem:[%s8170_s1 + $0x324] ss:$8 sps:$4 sm:$0xff]  }
  0x24   :  { %2478 = vmatpush2.bf16.msra.mxu1 %v5452_v38  ;;  %2426 = vmatprep.subr.bf16.mxu0 %v5453_v39  ;;  %v5503_v38 = vld [vmem:[%s8170_s1 + $0x264] ss:$8 sps:$4 sm:$0xff]   ;;  %v6326_v39 = vsel %vm173_vm1, %v180_v27, %v181_v28  ;;  %v5524_v52 = vld [vmem:[%s8170_s1 + $0x334] ss:$8 sps:$4 sm:$0xff]   ;;  %v419_v59 = vld [vmem:[#allocation3 + $0x240] sm:$0xf] }
  0x25   :  { %2479 = vmatprep.subr.bf16.mxu1 %v5455_v40  ;;  %v5506_v40 = vld [vmem:[%s8170_s1 + $0x364] ss:$8 sps:$4 sm:$0xff]   ;;  %v5525_v62 = vld [vmem:[%s8170_s1 + $0x220] ss:$8 sps:$4 sm:$0xff]   ;;  %v5536_v16 = vld [vmem:[%s8170_s1 + $0x314] ss:$8 sps:$4 sm:$0xff]  }
  0x26   :  { %v6387_v57 = vld [vmem:[#allocation2 + $0x20] sm:$0xff]  ;;  %vm2989_vm6 = vcmask 1048064   ;;  %vm3012_vm7 = vcmask 1043968   ;;  %vm3044_vm8 = vcmask 519168   ;;  %vm6013_vm9 = vmmov 0  }
  0x27   :  { %2427 = vmatpush2.bf16.msra.mxu0 %v5457_v41  ;;  %v5501_v41 = vld [vmem:[%s8170_s1 + $0x260] ss:$8 sps:$4 sm:$0xff]   ;;  %v127_v60 = vrot.slane %v6387_v57, 1  ;;  %v5539_v32 = vld [vmem:[%s8170_s1 + $0x204] ss:$8 sps:$4 sm:$0xff]   ;;  %vm4711_vm10 = vcmask 392192  }
  0x28   :  { %2480 = vmatpush2.bf16.msra.mxu1 %v5458_v42  ;;  %2428 = vmatprep.subr.bf16.mxu0 %v5459_v43  ;;  %v5504_v42 = vld [vmem:[%s8170_s1 + $0x360] ss:$8 sps:$4 sm:$0xff]   ;;  %v5509_v43 = vld [vmem:[%s8170_s1 + $0x254] ss:$8 sps:$4 sm:$0xff]   ;;  %vm4715_vm11 = vcmask 392196   ;;  %vm4718_vm12 = vcmask 388096  }
  0x29   :  { %2481 = vmatprep.subr.bf16.mxu1 %v5461_v44  ;;  %v5507_v44 = vld [vmem:[%s8170_s1 + $0x250] ss:$8 sps:$4 sm:$0xff]  }
  0x2b   :  { %2429 = vmatpush2.bf16.msra.mxu0 %v5463_v45  ;;  %v5510_v45 = vld [vmem:[%s8170_s1 + $0x350] ss:$8 sps:$4 sm:$0xff]  }
  0x2c   :  { %2482 = vmatpush2.bf16.msra.mxu1 %v5464_v46  ;;  %2430 = vmatprep.subr.bf16.mxu0 %v5465_v47  ;;  %v5515_v46 = vld [vmem:[%s8170_s1 + $0x244] ss:$8 sps:$4 sm:$0xff]   ;;  %v195_v47 = vsel %vm173_vm1, %v6290_v26, %v6290_v26 }
  0x2d   :  { %2483 = vmatprep.subr.bf16.mxu1 %v5467_v48  ;;  %v5518_v48 = vld [vmem:[%s8170_s1 + $0x344] ss:$8 sps:$4 sm:$0xff]   ;;  %226 = vst [vmem:[#allocation3 + $0xb0] sm:$0xff] %v195_v47 }
  0x2e   :  { %v5551_v47 = vld [vmem:[%s8170_s1 + $0x2e4] ss:$8 sps:$4 sm:$0xff]  }
  0x2f   :  { %2431 = vmatpush2.bf16.msra.mxu0 %v5469_v49  ;;  %v5513_v49 = vld [vmem:[%s8170_s1 + $0x240] ss:$8 sps:$4 sm:$0xff]  }
  0x30   :  { %2484 = vmatpush2.bf16.msra.mxu1 %v5470_v54  ;;  %2432 = vmatprep.subr.bf16.mxu0 %v5471_v55  ;;  %v5522_v54 = vld [vmem:[%s8170_s1 + $0x330] ss:$8 sps:$4 sm:$0xff]   ;;  %v5527_v55 = vld [vmem:[%s8170_s1 + $0x224] ss:$8 sps:$4 sm:$0xff]  }
  0x31   :  { %2485 = vmatprep.subr.bf16.mxu1 %v5473_v58  ;;  %v6389_v58 = vld [vmem:[#allocation2 + $0x70] sm:$0xff] }
  0x32   :  { %93 = vst [vmem:[#allocation3 + $0x1a8] sm:$0xf] %v6389_v58  ;;  %v135_v61 = vrot.slane %v6389_v58, 1 }
  0x33   :  { %2433 = vmatpush2.bf16.msra.mxu0 %v5475_v63  ;;  %v459_v63 = vpack.c.bf16 %v419_v59, %v6010_v1  ;;  %v5564_v59 = vld [vmem:[%s8170_s1 + $0x3c0] ss:$8 sps:$4 sm:$0xff]  }
  0x34   :  { %2486 = vmatpush2.bf16.msra.mxu1 %v5476_v0  ;;  %2434 = vmatprep.subr.bf16.mxu0 %v5477_v3  ;;  %v188_v0 = vrot.slane %v6387_v57, 2  ;;  %v5528_v3 = vld [vmem:[%s8170_s1 + $0x320] ss:$8 sps:$4 sm:$0xff]   ;;  %170 = vst [vmem:[#allocation3 + $0x230] sm:$0xf] %v135_v61 }
  0x35   :  { %2487 = vmatprep.subr.bf16.mxu1 %v5479_v4  ;;  %v5533_v4 = vld [vmem:[%s8170_s1 + $0x214] ss:$8 sps:$4 sm:$0xff]  }
  0x36   :  { %v6419_v14 = vsel %vm173_vm1, %v178_v33, %v188_v0 }
  0x37   :  { %2435 = vmatpush2.bf16.msra.mxu0 %v5481_v5  ;;  %v128_v5 = vsel %vm112_vm0, %v117_v22, %v127_v60 }
  0x38   :  { %2488 = vmatpush2.bf16.msra.mxu1 %v5482_v7  ;;  %2436 = vmatprep.subr.bf16.mxu0 %v5483_v8  ;;  %v6409_v7 = vsel %vm112_vm0, %v127_v60, %v135_v61  ;;  %v196_v8 = vrot.slane %v6389_v58, 2  ;;  %v5569_v60 = vld [vmem:[%s8170_s1 + $0x2b4] ss:$8 sps:$4 sm:$0xff]  }
  0x39   :  { %2489 = vmatprep.subr.bf16.mxu1 %v5485_v9  ;;  %v6412_v9 = vld [vmem:[#allocation2 + $0x10] sm:$0xff]  ;;  %v417_v33 = vld [vmem:[#allocation3 + $0x1a8] sm:$0xf] }
  0x3a   :  { %231 = vst [vmem:[#allocation3 + $0x60] sm:$0xf] %v196_v8  ;;  %v6432_v22 = vsel %vm173_vm1, %v188_v0, %v196_v8  ;;  %v5572_v61 = vld [vmem:[%s8170_s1 + $0x3b4] ss:$8 sps:$4 sm:$0xff]   ;;  %v5575_v0 = vld [vmem:[%s8170_s1 + $0x2a4] ss:$8 sps:$4 sm:$0xff]  }
  0x3b   :  { %2437 = vmatpush2.bf16.msra.mxu0 %v5487_v10  ;;  %v6414_v10 = vld [vmem:[#allocation2 + $0x78] sm:$0xff] }
  0x3c   :  { %2490 = vmatpush2.bf16.msra.mxu1 %v5488_v17  ;;  %2438 = vmatprep.subr.bf16.mxu0 %v5489_v18  ;;  %94 = vst [vmem:[#allocation3 + $0x80] sm:$0xf] %v6414_v10  ;;  %v129_v17 = vrot.slane %v6412_v9, 1  ;;  %v190_v18 = vrot.slane %v6412_v9, 2  ;;  %v137_v21 = vrot.slane %v6414_v10, 1 }
  0x3d   :  { %2491 = vmatprep.subr.bf16.mxu1 %v5491_v20  ;;  %v5531_v20 = vld [vmem:[%s8170_s1 + $0x210] ss:$8 sps:$4 sm:$0xff]   ;;  %v5581_v8 = vld [vmem:[%s8170_s1 + $0x294] ss:$8 sps:$4 sm:$0xff]  }
  0x3e   :  { %v6440_v27 = vsel %vm112_vm0, %v120_v19, %v129_v17  ;;  %171 = vst [vmem:[#allocation3 + $0x128] sm:$0xf] %v137_v21 }
  0x3f   :  { %2439 = vmatpush2.bf16.msra.mxu0 %v5493_v24  ;;  %v5534_v24 = vld [vmem:[%s8170_s1 + $0x310] ss:$8 sps:$4 sm:$0xff]  }
  0x40   :  { %2492 = vmatpush2.bf16.msra.mxu1 %v5494_v25  ;;  %2514 = vmatprep.subr.bf16.mxu0 %v5497_v29  ;;  %v416_v25 = vld [vmem:[#allocation3 + $0x198] sm:$0xf]  ;;  %v6445_v29 = vsel %vm173_vm1, %v181_v28, %v190_v18  ;;  %v5542_v28 = vld [vmem:[%s8170_s1 + $0x304] ss:$8 sps:$4 sm:$0xff]  }
  0x41   :  { %2567 = vmatprep.subr.bf16.mxu1 %v5500_v31  ;;  %v198_v31 = vrot.slane %v6414_v10, 2  ;;  %v446_v19 = vpack.c.bf16 %v6445_v29, %v6326_v39  ;;  %v5704_v39 = vld [vmem:[%s8170_s1 + $0x754] ss:$8 sps:$4 sm:$0xff]  }
  0x42   :  { %2441 = vmatmul.mubr.bf16.vlgmr.msra.gmra.mxu0 %v6011_v6  ;;  %v5512_v6 = vld [vmem:[%s8170_s1 + $0x354] ss:$8 sps:$4 sm:$0xff]  }
  0x43   :  { %2494 = vmatmul.mubr.bf16.vlgmr.msra.gmra.mxu1 %v438_v34  ;;  %2515 = vmatpush1.bf16.msra.mxu0 %v5495_v35  ;;  %v6452_v34 = vsel %vm112_vm0, %v129_v17, %v137_v21  ;;  %v457_v35 = vpack.c.bf16 %v417_v33, %v6387_v57  ;;  %232 = vst [vmem:[#allocation3 + $0x148] sm:$0xf] %v198_v31  ;;  %v5579_v17 = vld [vmem:[%s8170_s1 + $0x290] ss:$8 sps:$4 sm:$0xff]   ;;  %v5590_v21 = vld [vmem:[%s8170_s1 + $0x384] ss:$8 sps:$4 sm:$0xff]  }
  0x44   :  { %2568 = vmatpush1.bf16.msra.mxu1 %v5498_v36  ;;  %2516 = vmatprep.subr.bf16.mxu0 %v5503_v38  ;;  %v6461_v36 = vsel %vm173_vm1, %v190_v18, %v198_v31  ;;  %v456_v38 = vpack.c.bf16 %v416_v25, %v6010_v1  ;;  %v5545_v1 = vld [vmem:[%s8170_s1 + $0x2f4] ss:$8 sps:$4 sm:$0xff]   ;;  %v5582_v18 = vld [vmem:[%s8170_s1 + $0x390] ss:$8 sps:$4 sm:$0xff]   ;;  %v241_v31 = vrot.slane %v6255_v13, 3  ;;  %v242_v33 = vrot.slane %v6261_v15, 3 }
  0x45   :  { %2569 = vmatprep.subr.bf16.mxu1 %v5506_v40  ;;  %2503 = vmatprep.mubr.bf16.mxu1 %v459_v63  ;;  %v5537_v40 = vld [vmem:[%s8170_s1 + $0x200] ss:$8 sps:$4 sm:$0xff]   ;;  %v5570_v63 = vld [vmem:[%s8170_s1 + $0x3b0] ss:$8 sps:$4 sm:$0xff]   ;;  %v5593_v13 = vld [vmem:[%s8170_s1 + $0x474] ss:$8 sps:$4 sm:$0xff]  }
  0x46   :  { %2450 = vmatprep.mubr.bf16.mxu0 %v457_v35  ;;  %v5588_v35 = vld [vmem:[%s8170_s1 + $0x380] ss:$8 sps:$4 sm:$0xff]   ;;  %v238_v15 = vrot.slane %v6251_v11, 3  ;;  %v5594_v11 = vld [vmem:[%s8170_s1 + $0x570] ss:$8 sps:$4 sm:$0xff]  }
  0x47   :  { %2517 = vmatpush1.bf16.msra.mxu0 %v5501_v41  ;;  %v5540_v41 = vld [vmem:[%s8170_s1 + $0x300] ss:$8 sps:$4 sm:$0xff]   ;;  %v6007_v29 = vld [vmem:[#allocation3 + $0xb0] sm:$0xff] }
  0x48   :  { %2570 = vmatpush1.bf16.msra.mxu1 %v5504_v42  ;;  %2518 = vmatprep.subr.bf16.mxu0 %v5509_v43  ;;  %v441_v42 = vpack.c.bf16 %v128_v5, %v6300_v30  ;;  %v418_v43 = vld [vmem:[#allocation3 + $0x80] sm:$0xf]  ;;  %v5543_v30 = vld [vmem:[%s8170_s1 + $0x2f0] ss:$8 sps:$4 sm:$0xff]  }
  0x49   :  { %2571 = vmatprep.subr.bf16.mxu1 %v5512_v6  ;;  %v5548_v6 = vld [vmem:[%s8170_s1 + $0x3f4] ss:$8 sps:$4 sm:$0xff]   ;;  %v5576_v5 = vld [vmem:[%s8170_s1 + $0x3a0] ss:$8 sps:$4 sm:$0xff]  }
  0x4a   :  { %2451 = vmatmul.mubr.bf16.gmra.mxu0 %v456_v38  ;;  %v5596_v38 = vld [vmem:[%s8170_s1 + $0x574] ss:$8 sps:$4 sm:$0xff]  }
  0x4b   :  { %2519 = vmatpush1.bf16.msra.mxu0 %v5507_v44  ;;  %v458_v44 = vpack.c.bf16 %v418_v43, %v6412_v9  ;;  %2546 = vmatprep.mubr.bf16.mxu0 %v441_v42  ;;  %v442_v42 = vpack.c.bf16 %v6440_v27, %v6281_v23  ;;  %v423_v43 = vld [vmem:[#allocation3 + $0xc8] sm:$0xf]  ;;  %v5599_v23 = vld [vmem:[%s8170_s1 + $0x464] ss:$8 sps:$4 sm:$0xff]  }
  0x4c   :  { %2572 = vmatpush1.bf16.msra.mxu1 %v5510_v45  ;;  %2520 = vmatprep.subr.bf16.mxu0 %v5515_v46  ;;  %v6480_v45 = vpack.c.bf16 %v6063_v2, %v6063_v2  ;;  %v5546_v46 = vld [vmem:[%s8170_s1 + $0x3f0] ss:$8 sps:$4 sm:$0xff]   ;;  %v5554_v2 = vld [vmem:[%s8170_s1 + $0x3e4] ss:$8 sps:$4 sm:$0xff]  }
  0x4d   :  { %2573 = vmatprep.subr.bf16.mxu1 %v5518_v48  ;;  %2504 = vmatmul.mubr.bf16.gmra.mxu1 %v458_v44  ;;  %v5549_v48 = vld [vmem:[%s8170_s1 + $0x2e0] ss:$8 sps:$4 sm:$0xff]   ;;  %v6599_v44 = vsel %vm234_vm2, %v241_v31, %v242_v33 }
  0x4e   :  { %2599 = vmatprep.mubr.bf16.mxu1 %v6480_v45  ;;  %v5621_v31 = vld [vmem:[%s8170_s1 + $0x420] ss:$8 sps:$4 sm:$0xff]  }
  0x4f   :  { %2521 = vmatpush1.bf16.msra.mxu0 %v5513_v49  ;;  %v5552_v49 = vld [vmem:[%s8170_s1 + $0x3e0] ss:$8 sps:$4 sm:$0xff]  }
  0x50   :  { %2574 = vmatpush1.bf16.msra.mxu1 %v5516_v50  ;;  %2522 = vmatprep.subr.bf16.mxu0 %v5521_v51  ;;  %v5557_v50 = vld [vmem:[%s8170_s1 + $0x2d4] ss:$8 sps:$4 sm:$0xff]  }
  0x51   :  { %2575 = vmatprep.subr.bf16.mxu1 %v5524_v52  ;;  %v5560_v51 = vld [vmem:[%s8170_s1 + $0x3d4] ss:$8 sps:$4 sm:$0xff]   ;;  %v5555_v52 = vld [vmem:[%s8170_s1 + $0x2d0] ss:$8 sps:$4 sm:$0xff]  }
  0x53   :  { %2523 = vmatpush1.bf16.msra.mxu0 %v5519_v53  ;;  %v5558_v53 = vld [vmem:[%s8170_s1 + $0x3d0] ss:$8 sps:$4 sm:$0xff]  }
  0x54   :  { %2576 = vmatpush1.bf16.msra.mxu1 %v5522_v54  ;;  %2524 = vmatprep.subr.bf16.mxu0 %v5527_v55  ;;  %v5563_v54 = vld [vmem:[%s8170_s1 + $0x2c4] ss:$8 sps:$4 sm:$0xff]  }
  0x55   :  { %2577 = vmatprep.subr.bf16.mxu1 %v5530_v56  ;;  %v5566_v55 = vld [vmem:[%s8170_s1 + $0x3c4] ss:$8 sps:$4 sm:$0xff]   ;;  %v5561_v56 = vld [vmem:[%s8170_s1 + $0x2c0] ss:$8 sps:$4 sm:$0xff]  }
  0x57   :  { %2525 = vmatpush1.bf16.msra.mxu0 %v5525_v62  ;;  %v5567_v62 = vld [vmem:[%s8170_s1 + $0x2b0] ss:$8 sps:$4 sm:$0xff]  }
  0x58   :  { %2578 = vmatpush1.bf16.msra.mxu1 %v5528_v3  ;;  %2526 = vmatprep.subr.bf16.mxu0 %v5533_v4  ;;  %v5578_v3 = vld [vmem:[%s8170_s1 + $0x3a4] ss:$8 sps:$4 sm:$0xff]   ;;  %v5573_v4 = vld [vmem:[%s8170_s1 + $0x2a0] ss:$8 sps:$4 sm:$0xff]  }
  0x59   :  { %2579 = vmatprep.subr.bf16.mxu1 %v5536_v16  ;;  %v5584_v16 = vld [vmem:[%s8170_s1 + $0x394] ss:$8 sps:$4 sm:$0xff]  }
  0x5b   :  { %2527 = vmatpush1.bf16.msra.mxu0 %v5531_v20  ;;  %v5587_v20 = vld [vmem:[%s8170_s1 + $0x284] ss:$8 sps:$4 sm:$0xff]  }
  0x5c   :  { %2580 = vmatpush1.bf16.msra.mxu1 %v5534_v24  ;;  %2528 = vmatprep.subr.bf16.mxu0 %v5539_v32  ;;  %v6567_v24 = vld [vmem:[#allocation2 + $0x30] sm:$0xff]  ;;  %v5585_v32 = vld [vmem:[%s8170_s1 + $0x280] ss:$8 sps:$4 sm:$0xff]  }
  0x5d   :  { %2581 = vmatprep.subr.bf16.mxu1 %v5542_v28  ;;  %v6570_v25 = vrot.slane %v6567_v24, 3  ;;  %v251_v28 = vrot.slane %v6412_v9, 3 }
  0x5f   :  { %2529 = vmatpush1.bf16.msra.mxu0 %v5537_v40  ;;  %v5591_v40 = vld [vmem:[%s8170_s1 + $0x470] ss:$8 sps:$4 sm:$0xff]   ;;  %291 = vst [vmem:[#allocation3 + $0x158] sm:$0xf] %v6570_v25  ;;  %294 = vst [vmem:[#allocation3 + $0x200] sm:$0xf] %v6570_v25 }
  0x60   :  { %2582 = vmatpush1.bf16.msra.mxu1 %v5540_v41  ;;  %2530 = vmatprep.subr.bf16.mxu0 %v5545_v1  ;;  %v421_v41 = vld [vmem:[#allocation3 + $0x230] sm:$0xf]  ;;  %v239_v1 = vrot.slane %v6253_v12, 3  ;;  %v5602_v12 = vld [vmem:[%s8170_s1 + $0x564] ss:$8 sps:$4 sm:$0xff]  }
  0x61   :  { %2583 = vmatprep.subr.bf16.mxu1 %v5548_v6  ;;  %v249_v6 = vrot.slane %v6387_v57, 3  ;;  %v461_v27 = vpack.c.bf16 %v421_v41, %v6409_v7  ;;  %v5636_v41 = vld [vmem:[%s8170_s1 + $0x500] ss:$8 sps:$4 sm:$0xff]  }
  0x63   :  { %2531 = vmatpush2.bf16.msra.mxu0 %v5543_v30  ;;  %v6609_v30 = vsel %vm234_vm2, %v238_v15, %v239_v1  ;;  %v5638_v15 = vld [vmem:[%s8170_s1 + $0x504] ss:$8 sps:$4 sm:$0xff]  }
  0x64   :  { %2584 = vmatpush2.bf16.msra.mxu1 %v5546_v46  ;;  %2532 = vmatprep.subr.bf16.mxu0 %v5551_v47  ;;  %v6612_v46 = vsel %vm234_vm2, %v239_v1, %v249_v6  ;;  %v257_v47 = vrot.slane %v6389_v58, 3  ;;  %v5639_v1 = vld [vmem:[%s8170_s1 + $0x4f0] ss:$8 sps:$4 sm:$0xff]  }
  0x65   :  { %2585 = vmatprep.subr.bf16.mxu1 %v5554_v2  ;;  %v5597_v2 = vld [vmem:[%s8170_s1 + $0x460] ss:$8 sps:$4 sm:$0xff]   ;;  %v449_v7 = vpack.c.bf16 %v6612_v46, %v6609_v30  ;;  %v5722_v30 = vld [vmem:[%s8170_s1 + $0x724] ss:$8 sps:$4 sm:$0xff]  }
  0x66   :  { %292 = vst [vmem:[#allocation3 + $0x188] sm:$0xf] %v257_v47  ;;  %v5717_v46 = vld [vmem:[%s8170_s1 + $0x620] ss:$8 sps:$4 sm:$0xff]  }
  0x67   :  { %2533 = vmatpush2.bf16.msra.mxu0 %v5549_v48  ;;  %v5600_v48 = vld [vmem:[%s8170_s1 + $0x560] ss:$8 sps:$4 sm:$0xff]  }
  0x68   :  { %2586 = vmatpush2.bf16.msra.mxu1 %v5552_v49  ;;  %2534 = vmatprep.subr.bf16.mxu0 %v5557_v50  ;;  %v6000_v49 = vld [vmem:[#allocation3 + $0x130] sm:$0xff] }
  0x69   :  { %2587 = vmatprep.subr.bf16.mxu1 %v5560_v51  ;;  %v463_v50 = vpack.c.bf16 %v423_v43, %v6000_v49  ;;  %v6626_v51 = vsel %vm234_vm2, %v242_v33, %v251_v28  ;;  %v5629_v33 = vld [vmem:[%s8170_s1 + $0x414] ss:$8 sps:$4 sm:$0xff]  }
  0x6a   :  { %v5644_v43 = vld [vmem:[%s8170_s1 + $0x5f4] ss:$8 sps:$4 sm:$0xff]  }
  0x6b   :  { %2535 = vmatpush2.bf16.msra.mxu0 %v5555_v52  ;;  %v420_v52 = vld [vmem:[#allocation3 + $0x258] sm:$0xf] }
  0x6c   :  { %2588 = vmatpush2.bf16.msra.mxu1 %v5558_v53  ;;  %2536 = vmatprep.subr.bf16.mxu0 %v5563_v54  ;;  %v450_v53 = vpack.c.bf16 %v6626_v51, %v6599_v44  ;;  %v259_v54 = vrot.slane %v6414_v10, 3  ;;  %v5800_v44 = vld [vmem:[%s8170_s1 + $0x954] ss:$8 sps:$4 sm:$0xff]  }
  0x6d   :  { %2589 = vmatprep.subr.bf16.mxu1 %v5566_v55  ;;  %v422_v55 = vld [vmem:[#allocation3 + $0x128] sm:$0xf] }
  0x6e   :  { %293 = vst [vmem:[#allocation3 + $0x268] sm:$0xf] %v259_v54 }
  0x6f   :  { %2537 = vmatpush2.bf16.msra.mxu0 %v5561_v56  ;;  %v5605_v56 = vld [vmem:[%s8170_s1 + $0x454] ss:$8 sps:$4 sm:$0xff]  }
  0x70   :  { %2590 = vmatpush2.bf16.msra.mxu1 %v5564_v59  ;;  %2538 = vmatprep.subr.bf16.mxu0 %v5569_v60  ;;  %v460_v59 = vpack.c.bf16 %v420_v52, %v6000_v49  ;;  %v5603_v60 = vld [vmem:[%s8170_s1 + $0x450] ss:$8 sps:$4 sm:$0xff]   ;;  %v5662_v52 = vld [vmem:[%s8170_s1 + $0x5c4] ss:$8 sps:$4 sm:$0xff]  }
  0x71   :  { %2591 = vmatprep.subr.bf16.mxu1 %v5572_v61  ;;  %v462_v61 = vpack.c.bf16 %v422_v55, %v6452_v34  ;;  %v5611_v34 = vld [vmem:[%s8170_s1 + $0x444] ss:$8 sps:$4 sm:$0xff]   ;;  %v5654_v49 = vld [vmem:[%s8170_s1 + $0x5d0] ss:$8 sps:$4 sm:$0xff]   ;;  %v5660_v55 = vld [vmem:[%s8170_s1 + $0x5c0] ss:$8 sps:$4 sm:$0xff]  }
  0x73   :  { %2539 = vmatpush2.bf16.msra.mxu0 %v5567_v62  ;;  %v6645_v62 = vsel %vm234_vm2, %v249_v6, %v257_v47  ;;  %v5642_v6 = vld [vmem:[%s8170_s1 + $0x5f0] ss:$8 sps:$4 sm:$0xff]   ;;  %v5653_v47 = vld [vmem:[%s8170_s1 + $0x4d4] ss:$8 sps:$4 sm:$0xff]  }
  0x74   :  { %2592 = vmatpush2.bf16.msra.mxu1 %v5570_v63  ;;  %2540 = vmatprep.subr.bf16.mxu0 %v5575_v0  ;;  %v5606_v63 = vld [vmem:[%s8170_s1 + $0x550] ss:$8 sps:$4 sm:$0xff]   ;;  %v6653_v0 = vsel %vm234_vm2, %v6570_v25, %v6570_v25 }
  0x75   :  { %2593 = vmatprep.subr.bf16.mxu1 %v5578_v3  ;;  %v5614_v3 = vld [vmem:[%s8170_s1 + $0x544] ss:$8 sps:$4 sm:$0xff]  }
  0x77   :  { %2541 = vmatpush2.bf16.msra.mxu0 %v5573_v4  ;;  %v445_v4 = vpack.c.bf16 %v6419_v14, %v6318_v37  ;;  %v5612_v37 = vld [vmem:[%s8170_s1 + $0x540] ss:$8 sps:$4 sm:$0xff]   ;;  %v5620_v14 = vld [vmem:[%s8170_s1 + $0x534] ss:$8 sps:$4 sm:$0xff]  }
  0x78   :  { %2594 = vmatpush2.bf16.msra.mxu1 %v5576_v5  ;;  %2542 = vmatprep.subr.bf16.mxu0 %v5581_v8  ;;  %v447_v5 = vpack.c.bf16 %v6290_v26, %v6290_v26  ;;  %v6668_v8 = vsel %vm234_vm2, %v251_v28, %v259_v54  ;;  %v5617_v26 = vld [vmem:[%s8170_s1 + $0x434] ss:$8 sps:$4 sm:$0xff]   ;;  %v5657_v54 = vld [vmem:[%s8170_s1 + $0x4c0] ss:$8 sps:$4 sm:$0xff]  }
  0x79   :  { %2595 = vmatprep.subr.bf16.mxu1 %v5584_v16  ;;  %v5609_v16 = vld [vmem:[%s8170_s1 + $0x440] ss:$8 sps:$4 sm:$0xff]   ;;  %v5632_v28 = vld [vmem:[%s8170_s1 + $0x514] ss:$8 sps:$4 sm:$0xff]  }
  0x7b   :  { %2543 = vmatpush2.bf16.msra.mxu0 %v5579_v17  ;;  %v5615_v17 = vld [vmem:[%s8170_s1 + $0x430] ss:$8 sps:$4 sm:$0xff]  }
  0x7c   :  { %2596 = vmatpush2.bf16.msra.mxu1 %v5582_v18  ;;  %2544 = vmatprep.subr.bf16.mxu0 %v5587_v20  ;;  %v5618_v18 = vld [vmem:[%s8170_s1 + $0x530] ss:$8 sps:$4 sm:$0xff]   ;;  %v5623_v20 = vld [vmem:[%s8170_s1 + $0x424] ss:$8 sps:$4 sm:$0xff]  }
  0x7d   :  { %2597 = vmatprep.subr.bf16.mxu1 %v5590_v21  ;;  %v5626_v21 = vld [vmem:[%s8170_s1 + $0x524] ss:$8 sps:$4 sm:$0xff]  }
  0x7f   :  { %2545 = vmatpush2.bf16.msra.mxu0 %v5585_v32  ;;  %v5624_v32 = vld [vmem:[%s8170_s1 + $0x520] ss:$8 sps:$4 sm:$0xff]  }
  0x80   :  { %2598 = vmatpush2.bf16.msra.mxu1 %v5588_v35  ;;  %2620 = vmatprep.subr.bf16.mxu0 %v5593_v13  ;;  %v5627_v35 = vld [vmem:[%s8170_s1 + $0x410] ss:$8 sps:$4 sm:$0xff]  }
  0x81   :  { %2673 = vmatprep.subr.bf16.mxu1 %v5596_v38  ;;  %v5630_v13 = vld [vmem:[%s8170_s1 + $0x510] ss:$8 sps:$4 sm:$0xff]   ;;  %v5635_v38 = vld [vmem:[%s8170_s1 + $0x404] ss:$8 sps:$4 sm:$0xff]  }
  0x82   :  { %2547 = vmatmul.mubr.bf16.vlgmr.msra.gmra.mxu0 %v6480_v45  ;;  %v5608_v45 = vld [vmem:[%s8170_s1 + $0x554] ss:$8 sps:$4 sm:$0xff]  }
  0x83   :  { %2600 = vmatmul.mubr.bf16.vlgmr.msra.gmra.mxu1 %v442_v42  ;;  %2621 = vmatpush1.bf16.msra.mxu0 %v5591_v40  ;;  %v5633_v40 = vld [vmem:[%s8170_s1 + $0x400] ss:$8 sps:$4 sm:$0xff]   ;;  %v5641_v42 = vld [vmem:[%s8170_s1 + $0x4f4] ss:$8 sps:$4 sm:$0xff]  }
  0x84   :  { %2674 = vmatpush1.bf16.msra.mxu1 %v5594_v11  ;;  %2622 = vmatprep.subr.bf16.mxu0 %v5599_v23  ;;  %v5647_v11 = vld [vmem:[%s8170_s1 + $0x4e4] ss:$8 sps:$4 sm:$0xff]  }
  0x85   :  { %2675 = vmatprep.subr.bf16.mxu1 %v5602_v12  ;;  %2556 = vmatprep.mubr.bf16.mxu0 %v461_v27  ;;  %v5650_v23 = vld [vmem:[%s8170_s1 + $0x5e4] ss:$8 sps:$4 sm:$0xff]   ;;  %v5645_v12 = vld [vmem:[%s8170_s1 + $0x4e0] ss:$8 sps:$4 sm:$0xff]  }
  0x86   :  { %2609 = vmatprep.mubr.bf16.mxu1 %v463_v50  ;;  %v5648_v27 = vld [vmem:[%s8170_s1 + $0x5e0] ss:$8 sps:$4 sm:$0xff]   ;;  %v5659_v50 = vld [vmem:[%s8170_s1 + $0x4c4] ss:$8 sps:$4 sm:$0xff]  }
  0x87   :  { %2623 = vmatpush1.bf16.msra.mxu0 %v5597_v2  ;;  %v5656_v2 = vld [vmem:[%s8170_s1 + $0x5d4] ss:$8 sps:$4 sm:$0xff]  }
  0x88   :  { %2676 = vmatpush1.bf16.msra.mxu1 %v5600_v48  ;;  %2624 = vmatprep.subr.bf16.mxu0 %v5605_v56  ;;  %v5651_v48 = vld [vmem:[%s8170_s1 + $0x4d0] ss:$8 sps:$4 sm:$0xff]   ;;  %v5665_v56 = vld [vmem:[%s8170_s1 + $0x4b4] ss:$8 sps:$4 sm:$0xff]  }
  0x89   :  { %2677 = vmatprep.subr.bf16.mxu1 %v5608_v45  ;;  %v5668_v45 = vld [vmem:[%s8170_s1 + $0x5b4] ss:$8 sps:$4 sm:$0xff]  }
  0x8a   :  { %2557 = vmatmul.mubr.bf16.gmra.mxu0 %v460_v59  ;;  %v5663_v59 = vld [vmem:[%s8170_s1 + $0x4b0] ss:$8 sps:$4 sm:$0xff]  }
  0x8b   :  { %2610 = vmatmul.mubr.bf16.gmra.mxu1 %v462_v61  ;;  %2625 = vmatpush1.bf16.msra.mxu0 %v5603_v60  ;;  %v5666_v60 = vld [vmem:[%s8170_s1 + $0x5b0] ss:$8 sps:$4 sm:$0xff]   ;;  %v5671_v61 = vld [vmem:[%s8170_s1 + $0x4a4] ss:$8 sps:$4 sm:$0xff]  }
  0x8c   :  { %2678 = vmatpush1.bf16.msra.mxu1 %v5606_v63  ;;  %2626 = vmatprep.subr.bf16.mxu0 %v5611_v34  ;;  %v5674_v63 = vld [vmem:[%s8170_s1 + $0x5a4] ss:$8 sps:$4 sm:$0xff]   ;;  %v5669_v34 = vld [vmem:[%s8170_s1 + $0x4a0] ss:$8 sps:$4 sm:$0xff]  }
  0x8d   :  { %2679 = vmatprep.subr.bf16.mxu1 %v5614_v3  ;;  %2652 = vmatprep.mubr.bf16.mxu0 %v445_v4  ;;  %v5672_v3 = vld [vmem:[%s8170_s1 + $0x5a0] ss:$8 sps:$4 sm:$0xff]   ;;  %v5677_v4 = vld [vmem:[%s8170_s1 + $0x494] ss:$8 sps:$4 sm:$0xff]  }
  0x8e   :  { %2705 = vmatprep.mubr.bf16.mxu1 %v447_v5  ;;  %v5680_v5 = vld [vmem:[%s8170_s1 + $0x594] ss:$8 sps:$4 sm:$0xff]  }
  0x8f   :  { %2627 = vmatpush1.bf16.msra.mxu0 %v5609_v16  ;;  %v5675_v16 = vld [vmem:[%s8170_s1 + $0x490] ss:$8 sps:$4 sm:$0xff]  }
  0x90   :  { %2680 = vmatpush1.bf16.msra.mxu1 %v5612_v37  ;;  %2628 = vmatprep.subr.bf16.mxu0 %v5617_v26  ;;  %v5678_v37 = vld [vmem:[%s8170_s1 + $0x590] ss:$8 sps:$4 sm:$0xff]   ;;  %v5683_v26 = vld [vmem:[%s8170_s1 + $0x484] ss:$8 sps:$4 sm:$0xff]  }
  0x91   :  { %2681 = vmatprep.subr.bf16.mxu1 %v5620_v14  ;;  %v5686_v14 = vld [vmem:[%s8170_s1 + $0x584] ss:$8 sps:$4 sm:$0xff]  }
  0x93   :  { %2629 = vmatpush1.bf16.msra.mxu0 %v5615_v17  ;;  %v6815_v17 = vrot.slane %v6567_v24, 4  ;;  %v5689_v24 = vld [vmem:[%s8170_s1 + $0x674] ss:$8 sps:$4 sm:$0xff]  }
  0x94   :  { %2682 = vmatpush1.bf16.msra.mxu1 %v5618_v18  ;;  %2630 = vmatprep.subr.bf16.mxu0 %v5623_v20  ;;  %v6001_v18 = vld [vmem:[#allocation3 + $0x50] sm:$0xff] }
  0x95   :  { %2683 = vmatprep.subr.bf16.mxu1 %v5626_v21  ;;  %8178 = vst [vmem:[#allocation6_spill] sm:$0xff] %v6815_v17  ;;  %v302_v20 = vrot.slane %v6001_v18, 4  ;;  %v6002_v21 = vld [vmem:[#allocation3 + $0x250] sm:$0xff]  ;;  %352 = vst [vmem:[#allocation3 + $0x208] sm:$0xf] %v6815_v17 }
  0x96   :  { %355 = vst [vmem:[#allocation3 + $0xe8] sm:$0xf] %v6815_v17  ;;  %v5716_v18 = vld [vmem:[%s8170_s1 + $0x734] ss:$8 sps:$4 sm:$0xff]  }
  0x97   :  { %2631 = vmatpush1.bf16.msra.mxu0 %v5621_v31  ;;  %v303_v31 = vrot.slane %v6002_v21, 4  ;;  %v5714_v21 = vld [vmem:[%s8170_s1 + $0x730] ss:$8 sps:$4 sm:$0xff]  }
  0x98   :  { %2684 = vmatpush1.bf16.msra.mxu1 %v5624_v32  ;;  %2632 = vmatprep.subr.bf16.mxu0 %v5629_v33  ;;  %v312_v32 = vrot.slane %v6412_v9, 4  ;;  %v5681_v33 = vld [vmem:[%s8170_s1 + $0x480] ss:$8 sps:$4 sm:$0xff]   ;;  %v5713_v9 = vld [vmem:[%s8170_s1 + $0x634] ss:$8 sps:$4 sm:$0xff]  }
  0x99   :  { %2685 = vmatprep.subr.bf16.mxu1 %v5632_v28  ;;  %v5684_v28 = vld [vmem:[%s8170_s1 + $0x580] ss:$8 sps:$4 sm:$0xff]  }
  0x9b   :  { %2633 = vmatpush1.bf16.msra.mxu0 %v5627_v35  ;;  %v5692_v35 = vld [vmem:[%s8170_s1 + $0x774] ss:$8 sps:$4 sm:$0xff]  }
  0x9c   :  { %2686 = vmatpush1.bf16.msra.mxu1 %v5630_v13  ;;  %2634 = vmatprep.subr.bf16.mxu0 %v5635_v38  ;;  %v6003_v13 = vld [vmem:[#allocation3 + $0x1c8] sm:$0xff] }
  0x9d   :  { %2687 = vmatprep.subr.bf16.mxu1 %v5638_v15  ;;  %v299_v38 = vrot.slane %v6003_v13, 4  ;;  %v425_v15 = vld [vmem:[#allocation3 + $0x60] sm:$0xf]  ;;  %v5734_v13 = vld [vmem:[%s8170_s1 + $0x704] ss:$8 sps:$4 sm:$0xff]  }
  0x9f   :  { %2635 = vmatpush1.bf16.msra.mxu0 %v5633_v40  ;;  %v6004_v40 = vld [vmem:[#allocation3 + $0x1d8] sm:$0xff] }
  0xa0   :  { %2688 = vmatpush1.bf16.msra.mxu1 %v5636_v41  ;;  %2636 = vmatprep.subr.bf16.mxu0 %v5641_v42  ;;  %v300_v41 = vrot.slane %v6004_v40, 4  ;;  %v6005_v42 = vld [vmem:[#allocation3 + $0x1e0] sm:$0xff]  ;;  %v5737_v40 = vld [vmem:[%s8170_s1 + $0x6f4] ss:$8 sps:$4 sm:$0xff]  }
  0xa1   :  { %2689 = vmatprep.subr.bf16.mxu1 %v5644_v43  ;;  %v444_v43 = vpack.c.bf16 %v6005_v42, %v6005_v42  ;;  %v5735_v42 = vld [vmem:[%s8170_s1 + $0x6f0] ss:$8 sps:$4 sm:$0xff]  }
  0xa3   :  { %2637 = vmatpush2.bf16.msra.mxu0 %v5639_v1  ;;  %v427_v1 = vld [vmem:[#allocation3 + $0x238] sm:$0xf] }
  0xa4   :  { %2690 = vmatpush2.bf16.msra.mxu1 %v5642_v6  ;;  %2638 = vmatprep.subr.bf16.mxu0 %v5647_v11  ;;  %v310_v6 = vrot.slane %v6387_v57, 4  ;;  %v5687_v11 = vld [vmem:[%s8170_s1 + $0x670] ss:$8 sps:$4 sm:$0xff]   ;;  %v5695_v57 = vld [vmem:[%s8170_s1 + $0x664] ss:$8 sps:$4 sm:$0xff]  }
  0xa5   :  { %2691 = vmatprep.subr.bf16.mxu1 %v5650_v23  ;;  %v5690_v23 = vld [vmem:[%s8170_s1 + $0x770] ss:$8 sps:$4 sm:$0xff]  }
  0xa7   :  { %2639 = vmatpush2.bf16.msra.mxu0 %v5645_v12  ;;  %v6838_v12 = vsel %vm295_vm3, %v299_v38, %v300_v41  ;;  %v5729_v38 = vld [vmem:[%s8170_s1 + $0x600] ss:$8 sps:$4 sm:$0xff]  }
  0xa8   :  { %2692 = vmatpush2.bf16.msra.mxu1 %v5648_v27  ;;  %2640 = vmatprep.subr.bf16.mxu0 %v5653_v47  ;;  %v6841_v27 = vsel %vm295_vm3, %v302_v20, %v303_v31  ;;  %v318_v47 = vrot.slane %v6389_v58, 4  ;;  %v5693_v58 = vld [vmem:[%s8170_s1 + $0x660] ss:$8 sps:$4 sm:$0xff]   ;;  %v5711_v20 = vld [vmem:[%s8170_s1 + $0x630] ss:$8 sps:$4 sm:$0xff]  }
  0xa9   :  { %2693 = vmatprep.subr.bf16.mxu1 %v5656_v2  ;;  %v5698_v2 = vld [vmem:[%s8170_s1 + $0x764] ss:$8 sps:$4 sm:$0xff]  }
  0xaa   :  { %353 = vst [vmem:[#allocation3 + $0x210] sm:$0xf] %v318_v47 }
  0xab   :  { %2641 = vmatpush2.bf16.msra.mxu0 %v5651_v48  ;;  %v6851_v48 = vsel %vm295_vm3, %v300_v41, %v310_v6  ;;  %v5740_v41 = vld [vmem:[%s8170_s1 + $0x7f4] ss:$8 sps:$4 sm:$0xff]  }
  0xac   :  { %2694 = vmatpush2.bf16.msra.mxu1 %v5654_v49  ;;  %2642 = vmatprep.subr.bf16.mxu0 %v5659_v50  ;;  %v320_v49 = vrot.slane %v6414_v10, 4  ;;  %v465_v50 = vpack.c.bf16 %v425_v15, %v6432_v22  ;;  %v5696_v10 = vld [vmem:[%s8170_s1 + $0x760] ss:$8 sps:$4 sm:$0xff]  }
  0xad   :  { %2695 = vmatprep.subr.bf16.mxu1 %v5662_v52  ;;  %v6006_v52 = vld [vmem:[#allocation3 + $0x118] sm:$0xff]  ;;  %v5732_v15 = vld [vmem:[%s8170_s1 + $0x700] ss:$8 sps:$4 sm:$0xff]  }
  0xae   :  { %354 = vst [vmem:[#allocation3 + $0x218] sm:$0xf] %v320_v49 }
  0xaf   :  { %2643 = vmatpush2.bf16.msra.mxu0 %v5657_v54  ;;  %v467_v54 = vpack.c.bf16 %v427_v1, %v6006_v52  ;;  %v5743_v1 = vld [vmem:[%s8170_s1 + $0x6e4] ss:$8 sps:$4 sm:$0xff]   ;;  %v5753_v52 = vld [vmem:[%s8170_s1 + $0x6c0] ss:$8 sps:$4 sm:$0xff]  }
  0xb0   :  { %2696 = vmatpush2.bf16.msra.mxu1 %v5660_v55  ;;  %2644 = vmatprep.subr.bf16.mxu0 %v5665_v56  ;;  %v453_v55 = vpack.c.bf16 %v6851_v48, %v6838_v12  ;;  %v6865_v56 = vsel %vm295_vm3, %v303_v31, %v312_v32  ;;  %v5719_v31 = vld [vmem:[%s8170_s1 + $0x624] ss:$8 sps:$4 sm:$0xff]   ;;  %v5813_v48 = vld [vmem:[%s8170_s1 + $0x820] ss:$8 sps:$4 sm:$0xff]  }
  0xb1   :  { %2697 = vmatprep.subr.bf16.mxu1 %v5668_v45  ;;  %v454_v22 = vpack.c.bf16 %v6865_v56, %v6841_v27  ;;  %v424_v45 = vld [vmem:[#allocation3 + $0xb8] sm:$0xf]  ;;  %v5818_v12 = vld [vmem:[%s8170_s1 + $0x924] ss:$8 sps:$4 sm:$0xff]  }
  0xb3   :  { %2645 = vmatpush2.bf16.msra.mxu0 %v5663_v59  ;;  %v426_v59 = vld [vmem:[#allocation3 + $0x148] sm:$0xf] }
  0xb4   :  { %2698 = vmatpush2.bf16.msra.mxu1 %v5666_v60  ;;  %2646 = vmatprep.subr.bf16.mxu0 %v5671_v61  ;;  %v5701_v60 = vld [vmem:[%s8170_s1 + $0x654] ss:$8 sps:$4 sm:$0xff]   ;;  %v466_v61 = vpack.c.bf16 %v426_v59, %v6461_v36  ;;  %v5707_v36 = vld [vmem:[%s8170_s1 + $0x644] ss:$8 sps:$4 sm:$0xff]   ;;  %v5759_v59 = vld [vmem:[%s8170_s1 + $0x6b0] ss:$8 sps:$4 sm:$0xff]  }
  0xb5   :  { %2699 = vmatprep.subr.bf16.mxu1 %v5674_v63  ;;  %v6883_v63 = vsel %vm295_vm3, %v310_v6, %v318_v47  ;;  %v5746_v6 = vld [vmem:[%s8170_s1 + $0x7e4] ss:$8 sps:$4 sm:$0xff]   ;;  %v5749_v47 = vld [vmem:[%s8170_s1 + $0x6d4] ss:$8 sps:$4 sm:$0xff]  }
  0xb7   :  { %2647 = vmatpush2.bf16.msra.mxu0 %v5669_v34  ;;  %v5699_v34 = vld [vmem:[%s8170_s1 + $0x650] ss:$8 sps:$4 sm:$0xff]  }
  0xb8   :  { %2700 = vmatpush2.bf16.msra.mxu1 %v5672_v3  ;;  %2648 = vmatprep.subr.bf16.mxu0 %v5677_v4  ;;  %v5702_v3 = vld [vmem:[%s8170_s1 + $0x750] ss:$8 sps:$4 sm:$0xff]   ;;  %v6894_v4 = vsel %vm295_vm3, %v6815_v17, %v6815_v17 }
  0xb9   :  { %2701 = vmatprep.subr.bf16.mxu1 %v5680_v5  ;;  %v5710_v5 = vld [vmem:[%s8170_s1 + $0x744] ss:$8 sps:$4 sm:$0xff]  }
  0xbb   :  { %2649 = vmatpush2.bf16.msra.mxu0 %v5675_v16  ;;  %v6904_v16 = vpack.c.bf16 %v6570_v25, %v6570_v25 }
  0xbc   :  { %2702 = vmatpush2.bf16.msra.mxu1 %v5678_v37  ;;  %2650 = vmatprep.subr.bf16.mxu0 %v5683_v26  ;;  %v6909_v37 = vsel %vm295_vm3, %v312_v32, %v320_v49  ;;  %v5705_v26 = vld [vmem:[%s8170_s1 + $0x640] ss:$8 sps:$4 sm:$0xff]   ;;  %v5725_v32 = vld [vmem:[%s8170_s1 + $0x614] ss:$8 sps:$4 sm:$0xff]   ;;  %v5750_v49 = vld [vmem:[%s8170_s1 + $0x7d0] ss:$8 sps:$4 sm:$0xff]  }
  0xbd   :  { %2703 = vmatprep.subr.bf16.mxu1 %v5686_v14  ;;  %v5708_v14 = vld [vmem:[%s8170_s1 + $0x740] ss:$8 sps:$4 sm:$0xff]  }
  0xbf   :  { %2651 = vmatpush2.bf16.msra.mxu0 %v5681_v33  ;;  %v5728_v33 = vld [vmem:[%s8170_s1 + $0x714] ss:$8 sps:$4 sm:$0xff]  }
  0xc0   :  { %2704 = vmatpush2.bf16.msra.mxu1 %v5684_v28  ;;  %2726 = vmatprep.subr.bf16.mxu0 %v5689_v24  ;;  %v5723_v28 = vld [vmem:[%s8170_s1 + $0x610] ss:$8 sps:$4 sm:$0xff]  }
  0xc1   :  { %2779 = vmatprep.subr.bf16.mxu1 %v5692_v35  ;;  %v5726_v24 = vld [vmem:[%s8170_s1 + $0x710] ss:$8 sps:$4 sm:$0xff]   ;;  %v5731_v35 = vld [vmem:[%s8170_s1 + $0x604] ss:$8 sps:$4 sm:$0xff]  }
  0xc2   :  { %2653 = vmatmul.mubr.bf16.vlgmr.msra.gmra.mxu0 %v444_v43  ;;  %v5738_v43 = vld [vmem:[%s8170_s1 + $0x7f0] ss:$8 sps:$4 sm:$0xff]  }
  0xc3   :  { %2706 = vmatmul.mubr.bf16.vlgmr.msra.gmra.mxu1 %v446_v19  ;;  %2727 = vmatpush1.bf16.msra.mxu0 %v5687_v11  ;;  %v464_v19 = vpack.c.bf16 %v424_v45, %v6007_v29  ;;  %v5741_v11 = vld [vmem:[%s8170_s1 + $0x6e0] ss:$8 sps:$4 sm:$0xff]   ;;  %v5764_v45 = vld [vmem:[%s8170_s1 + $0x7b4] ss:$8 sps:$4 sm:$0xff]   ;;  %v5770_v29 = vld [vmem:[%s8170_s1 + $0x7a4] ss:$8 sps:$4 sm:$0xff]  }
  0xc4   :  { %2780 = vmatpush1.bf16.msra.mxu1 %v5690_v23  ;;  %2728 = vmatprep.subr.bf16.mxu0 %v5695_v57  ;;  %v5744_v23 = vld [vmem:[%s8170_s1 + $0x7e0] ss:$8 sps:$4 sm:$0xff]   ;;  %v5752_v57 = vld [vmem:[%s8170_s1 + $0x7d4] ss:$8 sps:$4 sm:$0xff]  }
  0xc5   :  { %2781 = vmatprep.subr.bf16.mxu1 %v5698_v2  ;;  %2662 = vmatprep.mubr.bf16.mxu0 %v465_v50  ;;  %v5747_v2 = vld [vmem:[%s8170_s1 + $0x6d0] ss:$8 sps:$4 sm:$0xff]   ;;  %v5758_v50 = vld [vmem:[%s8170_s1 + $0x7c4] ss:$8 sps:$4 sm:$0xff]  }
  0xc6   :  { %2715 = vmatprep.mubr.bf16.mxu1 %v467_v54  ;;  %v5756_v54 = vld [vmem:[%s8170_s1 + $0x7c0] ss:$8 sps:$4 sm:$0xff]  }
  0xc7   :  { %2729 = vmatpush1.bf16.msra.mxu0 %v5693_v58  ;;  %v5755_v58 = vld [vmem:[%s8170_s1 + $0x6c4] ss:$8 sps:$4 sm:$0xff]  }
  0xc8   :  { %2782 = vmatpush1.bf16.msra.mxu1 %v5696_v10  ;;  %2730 = vmatprep.subr.bf16.mxu0 %v5701_v60  ;;  %v5761_v10 = vld [vmem:[%s8170_s1 + $0x6b4] ss:$8 sps:$4 sm:$0xff]   ;;  %v5762_v60 = vld [vmem:[%s8170_s1 + $0x7b0] ss:$8 sps:$4 sm:$0xff]  }
  0xc9   :  { %2783 = vmatprep.subr.bf16.mxu1 %v5704_v39  ;;  %v5767_v39 = vld [vmem:[%s8170_s1 + $0x6a4] ss:$8 sps:$4 sm:$0xff]  }
  0xca   :  { %2663 = vmatmul.mubr.bf16.gmra.mxu0 %v464_v19  ;;  %v5765_v19 = vld [vmem:[%s8170_s1 + $0x6a0] ss:$8 sps:$4 sm:$0xff]  }
  0xcb   :  { %2716 = vmatmul.mubr.bf16.gmra.mxu1 %v466_v61  ;;  %2731 = vmatpush1.bf16.msra.mxu0 %v5699_v34  ;;  %v5768_v61 = vld [vmem:[%s8170_s1 + $0x7a0] ss:$8 sps:$4 sm:$0xff]   ;;  %v5773_v34 = vld [vmem:[%s8170_s1 + $0x694] ss:$8 sps:$4 sm:$0xff]  }
  0xcc   :  { %2784 = vmatpush1.bf16.msra.mxu1 %v5702_v3  ;;  %2732 = vmatprep.subr.bf16.mxu0 %v5707_v36  ;;  %v5776_v3 = vld [vmem:[%s8170_s1 + $0x794] ss:$8 sps:$4 sm:$0xff]   ;;  %v5771_v36 = vld [vmem:[%s8170_s1 + $0x690] ss:$8 sps:$4 sm:$0xff]  }
  0xcd   :  { %2785 = vmatprep.subr.bf16.mxu1 %v5710_v5  ;;  %2758 = vmatprep.mubr.bf16.mxu0 %v449_v7  ;;  %v5720_v7 = vld [vmem:[%s8170_s1 + $0x720] ss:$8 sps:$4 sm:$0xff]   ;;  %v5774_v5 = vld [vmem:[%s8170_s1 + $0x790] ss:$8 sps:$4 sm:$0xff]  }
  0xce   :  { %2811 = vmatprep.mubr.bf16.mxu1 %v6904_v16 }
  0xcf   :  { %2733 = vmatpush1.bf16.msra.mxu0 %v5705_v26  ;;  %v5779_v26 = vld [vmem:[%s8170_s1 + $0x684] ss:$8 sps:$4 sm:$0xff]  }
  0xd0   :  { %2786 = vmatpush1.bf16.msra.mxu1 %v5708_v14  ;;  %2734 = vmatprep.subr.bf16.mxu0 %v5713_v9  ;;  %v5782_v14 = vld [vmem:[%s8170_s1 + $0x784] ss:$8 sps:$4 sm:$0xff]   ;;  %v5777_v9 = vld [vmem:[%s8170_s1 + $0x680] ss:$8 sps:$4 sm:$0xff]  }
  0xd1   :  { %2787 = vmatprep.subr.bf16.mxu1 %v5716_v18  ;;  %v5780_v18 = vld [vmem:[%s8170_s1 + $0x780] ss:$8 sps:$4 sm:$0xff]  }
  0xd3   :  { %2735 = vmatpush1.bf16.msra.mxu0 %v5711_v20  ;;  %v5785_v20 = vld [vmem:[%s8170_s1 + $0x874] ss:$8 sps:$4 sm:$0xff]  }
  0xd4   :  { %2788 = vmatpush1.bf16.msra.mxu1 %v5714_v21  ;;  %2736 = vmatprep.subr.bf16.mxu0 %v5719_v31  ;;  %v5788_v21 = vld [vmem:[%s8170_s1 + $0x974] ss:$8 sps:$4 sm:$0xff]   ;;  %v429_v31 = vld [vmem:[#allocation3 + $0x188] sm:$0xf] }
  0xd5   :  { %2789 = vmatprep.subr.bf16.mxu1 %v5722_v30  ;;  %v431_v30 = vld [vmem:[#allocation3 + $0x200] sm:$0xf] }
  0xd7   :  { %2737 = vmatpush1.bf16.msra.mxu0 %v5717_v46  ;;  %v5783_v46 = vld [vmem:[%s8170_s1 + $0x870] ss:$8 sps:$4 sm:$0xff]  }
  0xd8   :  { %2790 = vmatpush1.bf16.msra.mxu1 %v5720_v7  ;;  %2738 = vmatprep.subr.bf16.mxu0 %v5725_v32  ;;  %v5786_v7 = vld [vmem:[%s8170_s1 + $0x970] ss:$8 sps:$4 sm:$0xff]   ;;  %v5791_v32 = vld [vmem:[%s8170_s1 + $0x864] ss:$8 sps:$4 sm:$0xff]  }
  0xd9   :  { %2791 = vmatprep.subr.bf16.mxu1 %v5728_v33  ;;  %v5794_v33 = vld [vmem:[%s8170_s1 + $0x964] ss:$8 sps:$4 sm:$0xff]  }
  0xdb   :  { %2739 = vmatpush1.bf16.msra.mxu0 %v5723_v28  ;;  %v469_v28 = vpack.c.bf16 %v429_v31, %v6645_v62  ;;  %v430_v62 = vld [vmem:[#allocation3 + $0x268] sm:$0xf]  ;;  %v5855_v31 = vld [vmem:[%s8170_s1 + $0x8b0] ss:$8 sps:$4 sm:$0xff]  }
  0xdc   :  { %2792 = vmatpush1.bf16.msra.mxu1 %v5726_v24  ;;  %2740 = vmatprep.subr.bf16.mxu0 %v5731_v35  ;;  %v471_v24 = vpack.c.bf16 %v431_v30, %v6570_v25  ;;  %v5789_v35 = vld [vmem:[%s8170_s1 + $0x860] ss:$8 sps:$4 sm:$0xff]   ;;  %v5797_v25 = vld [vmem:[%s8170_s1 + $0x854] ss:$8 sps:$4 sm:$0xff]   ;;  %v5858_v30 = vld [vmem:[%s8170_s1 + $0x9b0] ss:$8 sps:$4 sm:$0xff]  }
  0xdd   :  { %2793 = vmatprep.subr.bf16.mxu1 %v5734_v13  ;;  %v5792_v13 = vld [vmem:[%s8170_s1 + $0x960] ss:$8 sps:$4 sm:$0xff]  }
  0xdf   :  { %2741 = vmatpush1.bf16.msra.mxu0 %v5729_v38  ;;  %v428_v38 = vld [vmem:[#allocation3 + $0x158] sm:$0xf] }
  0xe0   :  { %2794 = vmatpush1.bf16.msra.mxu1 %v5732_v15  ;;  %2742 = vmatprep.subr.bf16.mxu0 %v5737_v40  ;;  %v468_v51 = vpack.c.bf16 %v428_v38, %v6653_v0  ;;  %v5798_v15 = vld [vmem:[%s8170_s1 + $0x950] ss:$8 sps:$4 sm:$0xff]   ;;  %v5803_v40 = vld [vmem:[%s8170_s1 + $0x844] ss:$8 sps:$4 sm:$0xff]  }
  0xe1   :  { %2795 = vmatprep.subr.bf16.mxu1 %v5740_v41  ;;  %v5806_v0 = vld [vmem:[%s8170_s1 + $0x944] ss:$8 sps:$4 sm:$0xff]   ;;  %v5801_v41 = vld [vmem:[%s8170_s1 + $0x840] ss:$8 sps:$4 sm:$0xff]  }
  0xe2   :  { %v5875_v38 = vld [vmem:[%s8170_s1 + $0x884] ss:$8 sps:$4 sm:$0xff]  }
  0xe3   :  { %2743 = vmatpush2.bf16.msra.mxu0 %v5735_v42  ;;  %v5804_v42 = vld [vmem:[%s8170_s1 + $0x940] ss:$8 sps:$4 sm:$0xff]  }
  0xe4   :  { %2796 = vmatpush2.bf16.msra.mxu1 %v5738_v43  ;;  %2744 = vmatprep.subr.bf16.mxu0 %v5743_v1  ;;  %v5809_v43 = vld [vmem:[%s8170_s1 + $0x834] ss:$8 sps:$4 sm:$0xff]  }
  0xe5   :  { %2797 = vmatprep.subr.bf16.mxu1 %v5746_v6  ;;  %v5812_v1 = vld [vmem:[%s8170_s1 + $0x934] ss:$8 sps:$4 sm:$0xff]   ;;  %v5807_v6 = vld [vmem:[%s8170_s1 + $0x830] ss:$8 sps:$4 sm:$0xff]  }
  0xe7   :  { %2745 = vmatpush2.bf16.msra.mxu0 %v5741_v11  ;;  %v5810_v11 = vld [vmem:[%s8170_s1 + $0x930] ss:$8 sps:$4 sm:$0xff]  }
  0xe8   :  { %2798 = vmatpush2.bf16.msra.mxu1 %v5744_v23  ;;  %2746 = vmatprep.subr.bf16.mxu0 %v5749_v47  ;;  %v5815_v23 = vld [vmem:[%s8170_s1 + $0x824] ss:$8 sps:$4 sm:$0xff]   ;;  %v5821_v47 = vld [vmem:[%s8170_s1 + $0x814] ss:$8 sps:$4 sm:$0xff]  }
  0xe9   :  { %2799 = vmatprep.subr.bf16.mxu1 %v5752_v57  ;;  %v5824_v57 = vld [vmem:[%s8170_s1 + $0x914] ss:$8 sps:$4 sm:$0xff]  }
  0xeb   :  { %2747 = vmatpush2.bf16.msra.mxu0 %v5747_v2  ;;  %v5819_v2 = vld [vmem:[%s8170_s1 + $0x810] ss:$8 sps:$4 sm:$0xff]  }
  0xec   :  { %2800 = vmatpush2.bf16.msra.mxu1 %v5750_v49  ;;  %2748 = vmatprep.subr.bf16.mxu0 %v5755_v58  ;;  %v5822_v49 = vld [vmem:[%s8170_s1 + $0x910] ss:$8 sps:$4 sm:$0xff]   ;;  %v5827_v58 = vld [vmem:[%s8170_s1 + $0x804] ss:$8 sps:$4 sm:$0xff]  }
  0xed   :  { %2801 = vmatprep.subr.bf16.mxu1 %v5758_v50  ;;  %v5830_v50 = vld [vmem:[%s8170_s1 + $0x904] ss:$8 sps:$4 sm:$0xff]  }
  0xef   :  { %2749 = vmatpush2.bf16.msra.mxu0 %v5753_v52  ;;  %v5825_v52 = vld [vmem:[%s8170_s1 + $0x800] ss:$8 sps:$4 sm:$0xff]  }
  0xf0   :  { %2802 = vmatpush2.bf16.msra.mxu1 %v5756_v54  ;;  %2750 = vmatprep.subr.bf16.mxu0 %v5761_v10  ;;  %v5828_v54 = vld [vmem:[%s8170_s1 + $0x900] ss:$8 sps:$4 sm:$0xff]   ;;  %v5833_v10 = vld [vmem:[%s8170_s1 + $0x8f4] ss:$8 sps:$4 sm:$0xff]  }
  0xf1   :  { %2803 = vmatprep.subr.bf16.mxu1 %v5764_v45  ;;  %v5836_v45 = vld [vmem:[%s8170_s1 + $0x9f4] ss:$8 sps:$4 sm:$0xff]  }
  0xf3   :  { %2751 = vmatpush2.bf16.msra.mxu0 %v5759_v59  ;;  %v5831_v59 = vld [vmem:[%s8170_s1 + $0x8f0] ss:$8 sps:$4 sm:$0xff]  }
  0xf4   :  { %2804 = vmatpush2.bf16.msra.mxu1 %v5762_v60  ;;  %2752 = vmatprep.subr.bf16.mxu0 %v5767_v39  ;;  %v5834_v60 = vld [vmem:[%s8170_s1 + $0x9f0] ss:$8 sps:$4 sm:$0xff]   ;;  %v5839_v39 = vld [vmem:[%s8170_s1 + $0x8e4] ss:$8 sps:$4 sm:$0xff]  }
  0xf5   :  { %2805 = vmatprep.subr.bf16.mxu1 %v5770_v29  ;;  %v5842_v29 = vld [vmem:[%s8170_s1 + $0x9e4] ss:$8 sps:$4 sm:$0xff]  }
  0xf7   :  { %2753 = vmatpush2.bf16.msra.mxu0 %v5765_v19  ;;  %v5837_v19 = vld [vmem:[%s8170_s1 + $0x8e0] ss:$8 sps:$4 sm:$0xff]  }
  0xf8   :  { %2806 = vmatpush2.bf16.msra.mxu1 %v5768_v61  ;;  %2754 = vmatprep.subr.bf16.mxu0 %v5773_v34  ;;  %v5840_v61 = vld [vmem:[%s8170_s1 + $0x9e0] ss:$8 sps:$4 sm:$0xff]   ;;  %v5845_v34 = vld [vmem:[%s8170_s1 + $0x8d4] ss:$8 sps:$4 sm:$0xff]  }
  0xf9   :  { %2807 = vmatprep.subr.bf16.mxu1 %v5776_v3  ;;  %v5848_v3 = vld [vmem:[%s8170_s1 + $0x9d4] ss:$8 sps:$4 sm:$0xff]  }
  0xfb   :  { %2755 = vmatpush2.bf16.msra.mxu0 %v5771_v36  ;;  %v5843_v36 = vld [vmem:[%s8170_s1 + $0x8d0] ss:$8 sps:$4 sm:$0xff]  }
  0xfc   :  { %2808 = vmatpush2.bf16.msra.mxu1 %v5774_v5  ;;  %2756 = vmatprep.subr.bf16.mxu0 %v5779_v26  ;;  %v5846_v5 = vld [vmem:[%s8170_s1 + $0x9d0] ss:$8 sps:$4 sm:$0xff]   ;;  %v5851_v26 = vld [vmem:[%s8170_s1 + $0x8c4] ss:$8 sps:$4 sm:$0xff]  }
  0xfd   :  { %2809 = vmatprep.subr.bf16.mxu1 %v5782_v14  ;;  %v5854_v14 = vld [vmem:[%s8170_s1 + $0x9c4] ss:$8 sps:$4 sm:$0xff]  }
  0xff   :  { %2757 = vmatpush2.bf16.msra.mxu0 %v5777_v9  ;;  %v5849_v9 = vld [vmem:[%s8170_s1 + $0x8c0] ss:$8 sps:$4 sm:$0xff]  }
 0x100   :  { %2810 = vmatpush2.bf16.msra.mxu1 %v5780_v18  ;;  %2832 = vmatprep.subr.bf16.mxu0 %v5785_v20  ;;  %v5852_v18 = vld [vmem:[%s8170_s1 + $0x9c0] ss:$8 sps:$4 sm:$0xff]   ;;  %v5857_v20 = vld [vmem:[%s8170_s1 + $0x8b4] ss:$8 sps:$4 sm:$0xff]  }
 0x101   :  { %2885 = vmatprep.subr.bf16.mxu1 %v5788_v21  ;;  %v5860_v21 = vld [vmem:[%s8170_s1 + $0x9b4] ss:$8 sps:$4 sm:$0xff]  }
 0x102   :  { %2759 = vmatmul.mubr.bf16.vlgmr.msra.gmra.mxu0 %v6904_v16  ;;  %v5795_v16 = vld [vmem:[%s8170_s1 + $0x850] ss:$8 sps:$4 sm:$0xff]  }
 0x103   :  { %2812 = vmatmul.mubr.bf16.vlgmr.msra.gmra.mxu1 %v450_v53  ;;  %2833 = vmatpush1.bf16.msra.mxu0 %v5783_v46  ;;  %v470_v53 = vpack.c.bf16 %v430_v62, %v6668_v8  ;;  %v7117_v8 = vpack.c.bf16 %v6815_v17, %v6815_v17  ;;  %v5863_v46 = vld [vmem:[%s8170_s1 + $0x8a4] ss:$8 sps:$4 sm:$0xff]  }
 0x104   :  { %2886 = vmatpush1.bf16.msra.mxu1 %v5786_v7  ;;  %2834 = vmatprep.subr.bf16.mxu0 %v5791_v32  ;;  %v5866_v7 = vld [vmem:[%s8170_s1 + $0x9a4] ss:$8 sps:$4 sm:$0xff]   ;;  %v5861_v32 = vld [vmem:[%s8170_s1 + $0x8a0] ss:$8 sps:$4 sm:$0xff]  }
 0x105   :  { %2887 = vmatprep.subr.bf16.mxu1 %v5794_v33  ;;  %2768 = vmatprep.mubr.bf16.mxu0 %v469_v28  ;;  %v5864_v33 = vld [vmem:[%s8170_s1 + $0x9a0] ss:$8 sps:$4 sm:$0xff]   ;;  %v5869_v28 = vld [vmem:[%s8170_s1 + $0x894] ss:$8 sps:$4 sm:$0xff]   ;;  %v5878_v62 = vld [vmem:[%s8170_s1 + $0x984] ss:$8 sps:$4 sm:$0xff]  }
 0x106   :  { %2821 = vmatprep.mubr.bf16.mxu1 %v471_v24  ;;  %v5872_v24 = vld [vmem:[%s8170_s1 + $0x994] ss:$8 sps:$4 sm:$0xff]  }
 0x107   :  { %2835 = vmatpush1.bf16.msra.mxu0 %v5789_v35  ;;  %v5867_v35 = vld [vmem:[%s8170_s1 + $0x890] ss:$8 sps:$4 sm:$0xff]  }
 0x108   :  { %2888 = vmatpush1.bf16.msra.mxu1 %v5792_v13  ;;  %2836 = vmatprep.subr.bf16.mxu0 %v5797_v25  ;;  %v5870_v13 = vld [vmem:[%s8170_s1 + $0x990] ss:$8 sps:$4 sm:$0xff]   ;;  %v5873_v25 = vld [vmem:[%s8170_s1 + $0x880] ss:$8 sps:$4 sm:$0xff]  }
 0x109   :  { %2889 = vmatprep.subr.bf16.mxu1 %v5800_v44  ;;  %v5876_v44 = vld [vmem:[%s8170_s1 + $0x980] ss:$8 sps:$4 sm:$0xff]  }
 0x10a   :  { %2769 = vmatmul.mubr.bf16.gmra.mxu0 %v468_v51  ;;  %v433_v51 = vld [vmem:[#allocation3 + $0x210] sm:$0xf] }
 0x10b   :  { %2822 = vmatmul.mubr.bf16.gmra.mxu1 %v470_v53  ;;  %2837 = vmatpush1.bf16.msra.mxu0 %v5795_v16  ;;  %v435_v53 = vld [vmem:[#allocation3 + $0xe8] sm:$0xf]  ;;  %v473_v16 = vpack.c.bf16 %v433_v51, %v6883_v63 }
 0x10c   :  { %2890 = vmatpush1.bf16.msra.mxu1 %v5798_v15  ;;  %2838 = vmatprep.subr.bf16.mxu0 %v5803_v40  ;;  %v475_v15 = vpack.c.bf16 %v435_v53, %v6815_v17  ;;  %v432_v40 = vld [vmem:[#allocation3 + $0x208] sm:$0xf] }
 0x10d   :  { %2891 = vmatprep.subr.bf16.mxu1 %v5806_v0  ;;  %2864 = vmatprep.mubr.bf16.mxu0 %v453_v55  ;;  %v5816_v55 = vld [vmem:[%s8170_s1 + $0x920] ss:$8 sps:$4 sm:$0xff]   ;;  %v434_v0 = vld [vmem:[#allocation3 + $0x218] sm:$0xf] }
 0x10e   :  { %2917 = vmatprep.mubr.bf16.mxu1 %v7117_v8 }
 0x10f   :  { %2839 = vmatpush1.bf16.msra.mxu0 %v5801_v41  ;;  %v472_v41 = vpack.c.bf16 %v432_v40, %v6894_v4  ;;  %v798_v4 = vlaneseq }
 0x110   :  { %2892 = vmatpush1.bf16.msra.mxu1 %v5804_v42  ;;  %2840 = vmatprep.subr.bf16.mxu0 %v5809_v43  ;;  %v474_v42 = vpack.c.bf16 %v434_v0, %v6909_v37  ;;  %v7281_v43 = vpop.f32.mrf.mxu0 }
 0x111   :  { %2893 = vmatprep.subr.bf16.mxu1 %v5812_v1  ;;  %v7285_v1 = vpop.f32.mrf.mxu1 }
 0x112   :  { %v7283_v63 = vpop.f32.mrf.mxu0 }
 0x113   :  { %2841 = vmatpush1.bf16.msra.mxu0 %v5807_v6  ;;  %v7289_v27 = vpop.f32.mrf.mxu1 }
 0x114   :  { %2894 = vmatpush1.bf16.msra.mxu1 %v5810_v11  ;;  %2842 = vmatprep.subr.bf16.mxu0 %v5815_v23  ;;  %v5879_v23 = vld [vmem:[%s8172_s3 + $0x78] sm:$0xff]  }
 0x115   :  { %2895 = vmatprep.subr.bf16.mxu1 %v5818_v12  ;;  %v799_v12 = vshrl.u32 %v798_v4, 7 }
 0x117   :  { %2843 = vmatpush1.bf16.msra.mxu0 %v5813_v48  ;;  %v5880_v48 = vld [vmem:[%s8172_s3 + $0x38] sm:$0xff]   ;;  %v804_v51 = vsub.s32 1, %v799_v12 }
 0x118   :  { %2896 = vmatpush1.bf16.msra.mxu1 %v5816_v55  ;;  %2844 = vmatprep.subr.bf16.mxu0 %v5821_v47 }
 0x119   :  { %2897 = vmatprep.subr.bf16.mxu1 %v5824_v57 }
 0x11b   :  { %2845 = vmatpush1.bf16.msra.mxu0 %v5819_v2 }
 0x11c   :  { %2898 = vmatpush1.bf16.msra.mxu1 %v5822_v49  ;;  %2846 = vmatprep.subr.bf16.mxu0 %v5827_v58 }
 0x11d   :  { %2899 = vmatprep.subr.bf16.mxu1 %v5830_v50 }
 0x11f   :  { %2847 = vmatpush1.bf16.msra.mxu0 %v5825_v52 }
 0x120   :  { %2900 = vmatpush1.bf16.msra.mxu1 %v5828_v54  ;;  %2848 = vmatprep.subr.bf16.mxu0 %v5833_v10 }
 0x121   :  { %2901 = vmatprep.subr.bf16.mxu1 %v5836_v45 }
 0x123   :  { %2849 = vmatpush2.bf16.msra.mxu0 %v5831_v59 }
 0x124   :  { %2902 = vmatpush2.bf16.msra.mxu1 %v5834_v60  ;;  %2850 = vmatprep.subr.bf16.mxu0 %v5839_v39 }
 0x125   :  { %2903 = vmatprep.subr.bf16.mxu1 %v5842_v29 }
 0x127   :  { %2851 = vmatpush2.bf16.msra.mxu0 %v5837_v19 }
 0x128   :  { %2904 = vmatpush2.bf16.msra.mxu1 %v5840_v61  ;;  %2852 = vmatprep.subr.bf16.mxu0 %v5845_v34 }
 0x129   :  { %2905 = vmatprep.subr.bf16.mxu1 %v5848_v3 }
 0x12b   :  { %2853 = vmatpush2.bf16.msra.mxu0 %v5843_v36 }
 0x12c   :  { %2906 = vmatpush2.bf16.msra.mxu1 %v5846_v5  ;;  %2854 = vmatprep.subr.bf16.mxu0 %v5851_v26 }
 0x12d   :  { %2907 = vmatprep.subr.bf16.mxu1 %v5854_v14 }
 0x12f   :  { %2855 = vmatpush2.bf16.msra.mxu0 %v5849_v9 }
 0x130   :  { %2908 = vmatpush2.bf16.msra.mxu1 %v5852_v18  ;;  %2856 = vmatprep.subr.bf16.mxu0 %v5857_v20 }
 0x131   :  { %2909 = vmatprep.subr.bf16.mxu1 %v5860_v21 }
 0x133   :  { %2857 = vmatpush2.bf16.msra.mxu0 %v5855_v31 }
 0x134   :  { %2910 = vmatpush2.bf16.msra.mxu1 %v5858_v30  ;;  %2858 = vmatprep.subr.bf16.mxu0 %v5863_v46 }
 0x135   :  { %2911 = vmatprep.subr.bf16.mxu1 %v5866_v7 }
 0x137   :  { %2859 = vmatpush2.bf16.msra.mxu0 %v5861_v32 }
 0x138   :  { %2912 = vmatpush2.bf16.msra.mxu1 %v5864_v33  ;;  %2860 = vmatprep.subr.bf16.mxu0 %v5869_v28 }
 0x139   :  { %2913 = vmatprep.subr.bf16.mxu1 %v5872_v24 }
 0x13b   :  { %2861 = vmatpush2.bf16.msra.mxu0 %v5867_v35 }
 0x13c   :  { %2914 = vmatpush2.bf16.msra.mxu1 %v5870_v13  ;;  %2862 = vmatprep.subr.bf16.mxu0 %v5875_v38  ;;  %v800_v38 = vsub.s32 0, %v799_v12 }
 0x13d   :  { %2915 = vmatprep.subr.bf16.mxu1 %v5878_v62  ;;  %v796_v62 = vld [vmem:[%s8173_s2] sm:$0x3] }
 0x13e   :  { %v805_v40 = vrot.slane %v796_v62, %v804_v51 }
 0x13f   :  { %2863 = vmatpush2.bf16.msra.mxu0 %v5873_v25 }
 0x140   :  { %2916 = vmatpush2.bf16.msra.mxu1 %v5876_v44  ;;  %5157 = vmatprep.subr.bf16.mxu0 %v5879_v23  ;;  %v2445_v4 = vadd.f32 %v7283_v63, %v805_v40 }
 0x142   :  { %2865 = vmatmul.mubr.bf16.vlgmr.msra.gmra.mxu0 %v7117_v8  ;;  %v7287_v8 = vpop.f32.mrf.mxu0 }
 0x143   :  { %2918 = vmatmul.mubr.bf16.vlgmr.msra.gmra.mxu1 %v454_v22  ;;  %2874 = vmatprep.mubr.bf16.mxu0 %v473_v16  ;;  %v7293_v22 = vpop.f32.mrf.mxu1  ;;  %v801_v16 = vrot.slane %v796_v62, %v800_v38  ;;  %v2498_v38 = vadd.f32 %v7289_v27, %v2445_v4 }
 0x144   :  { %2927 = vmatprep.mubr.bf16.mxu1 %v475_v15  ;;  %v7291_v56 = vpop.f32.mrf.mxu0  ;;  %5158 = vmatpush3.bf16.msra.mxu0 %v5880_v48 }
 0x145   :  { %v7297_v37 = vpop.f32.mrf.mxu1  ;;  %v2447_v12 = vadd.f32 %v7287_v8, %v801_v16  ;;  %v2449_v62 = vadd.f32 %v7291_v56, %v805_v40 }
 0x146   :  { %v7295_v6 = vpop.f32.mrf.mxu0 }
 0x147   :  { %v7307_v55 = vpop.f32.mrf.mxu1  ;;  %v2500_v8 = vadd.f32 %v7293_v22, %v2447_v12 }
 0x148   :  { %v7299_v11 = vpop.f32.mrf.mxu0 }
 0x149   :  { %v7311_v57 = vpop.f32.mrf.mxu1 }
 0x14a   :  { %2875 = vmatmul.mubr.bf16.gmra.mxu0 %v472_v41  ;;  %v7309_v47 = vpop.f32.mrf.mxu0  ;;  %v2443_v41 = vadd.f32 %v7281_v43, %v801_v16  ;;  %v5881_v43 = vld [vmem:[%s8172_s3 + $0x70] sm:$0xff]  }
 0x14b   :  { %2928 = vmatmul.mubr.bf16.gmra.mxu1 %v474_v42  ;;  %v7315_v49 = vpop.f32.mrf.mxu1  ;;  %5159 = vmatprep.subr.bf16.mxu0 %v5881_v43  ;;  %v2457_v22 = vadd.f32 %v7309_v47, %v801_v16  ;;  %v5885_v47 = vld [vmem:[%s8172_s3 + $0x60] sm:$0xff]   ;;  %v7453_v43 = vld [vmem:[#allocation2 + $0x30] sm:$0xff] }
 0x14c   :  { %v7313_v2 = vpop.f32.mrf.mxu0  ;;  %v2496_v48 = vadd.f32 %v7285_v1, %v2443_v41  ;;  %v5882_v1 = vld [vmem:[%s8172_s3 + $0x30] sm:$0xff]   ;;  %2949 = vst.msk [vmem:[#allocation4 + $0x10] sm:$0xff] %vm2948_vm4, %v7453_v43  ;;  %2952 = vst.msk [vmem:[#allocation4 + $0x28] sm:$0xff] %vm2948_vm4, %v7453_v43 }
 0x14d   :  { %v7317_v50 = vpop.f32.mrf.mxu1  ;;  %5160 = vmatpush3.bf16.msra.mxu0 %v5882_v1  ;;  %2955 = vst.msk [vmem:[#allocation4 + $0x40] sm:$0xff] %vm2948_vm4, %v7453_v43  ;;  %2958 = vst.msk [vmem:[#allocation4 + $0x58] sm:$0xff] %vm2948_vm4, %v7453_v43 }
 0x14e   :  { %v2548_v58 = vpop.f32.mrf.mxu0  ;;  %2961 = vst.msk [vmem:[#allocation4 + $0x70] sm:$0xff] %vm2948_vm4, %v7453_v43 }
 0x14f   :  { %v2601_v54 = vpop.f32.mrf.mxu1  ;;  %v2549_v51 = vadd.f32 %v2548_v58, %v2496_v48  ;;  %v2502_v58 = vadd.f32 %v7297_v37, %v2449_v62 }
 0x150   :  { %v2550_v52 = vpop.f32.mrf.mxu0 }
 0x151   :  { %v7319_v45 = vpop.f32.mrf.mxu1  ;;  %v2551_v41 = vadd.f32 %v2550_v52, %v2498_v38  ;;  %v2602_v4 = vadd.f32 %v2601_v54, %v2549_v51  ;;  %v5884_v52 = vld [vmem:[%s8172_s3 + $0x28] sm:$0xff]  }
 0x152   :  { %v2552_v10 = vpop.f32.mrf.mxu0 }
 0x153   :  { %v7323_v60 = vpop.f32.mrf.mxu1  ;;  %v2553_v48 = vadd.f32 %v2552_v10, %v2500_v8  ;;  %v2604_v12 = vadd.f32 %v7319_v45, %v2551_v41  ;;  %v5889_v8 = vld [vmem:[%s8172_s3 + $0x50] sm:$0xff]  }
 0x154   :  { %v7321_v59 = vpop.f32.mrf.mxu0 }
 0x155   :  { %v7327_v29 = vpop.f32.mrf.mxu1  ;;  %v2555_v37 = vadd.f32 %v7321_v59, %v2502_v58  ;;  %v2459_v59 = vadd.f32 %v7313_v2, %v805_v40 }
 0x156   :  { %v7325_v39 = vpop.f32.mrf.mxu0 }
 0x157   :  { %v7331_v61 = vpop.f32.mrf.mxu1 }
 0x158   :  { %v7329_v19 = vpop.f32.mrf.mxu0 }
 0x159   :  { %v7335_v3 = vpop.f32.mrf.mxu1 }
 0x15a   :  { %v7333_v34 = vpop.f32.mrf.mxu0 }
 0x15b   :  { %v7339_v5 = vpop.f32.mrf.mxu1 }
 0x15c   :  { %v7337_v36 = vpop.f32.mrf.mxu0 }
 0x15d   :  { %v7341_v14 = vpop.f32.mrf.mxu1 }
 0x182   :  { %v2654_v26 = vpop.f32.mrf.mxu0 }
 0x183   :  { %v7343_v9 = vpop.f32.mrf.mxu1  ;;  %v2655_v54 = vadd.f32 %v2654_v26, %v2602_v4  ;;  %v2510_v26 = vadd.f32 %v7315_v49, %v2457_v22 }
 0x184   :  { %v2656_v18 = vpop.f32.mrf.mxu0 }
 0x185   :  { %v7345_v20 = vpop.f32.mrf.mxu1 }
 0x186   :  { %v7347_v21 = vpop.f32.mrf.mxu0 }
 0x187   :  { %v7349_v31 = vpop.f32.mrf.mxu1 }
 0x188   :  { %v7351_v30 = vpop.f32.mrf.mxu0 }
 0x189   :  { %v7353_v46 = vpop.f32.mrf.mxu1 }
 0x18a   :  { %v7355_v7 = vpop.f32.mrf.mxu0 }
 0x18b   :  { %v7357_v32 = vpop.f32.mrf.mxu1 }
 0x18c   :  { %v7359_v33 = vpop.f32.mrf.mxu0 }
 0x18d   :  { %v7361_v28 = vpop.f32.mrf.mxu1 }
 0x18e   :  { %v7363_v24 = vpop.f32.mrf.mxu0 }
 0x18f   :  { %v7365_v35 = vpop.f32.mrf.mxu1 }
 0x190   :  { %8179 = vst [vmem:[#allocation7_spill] sm:$0xff] %v7365_v35  ;;  %v7367_v13 = vpop.f32.mrf.mxu0 }
 0x191   :  { %v7372_v25 = vpop.f32.mrf.mxu1 }
 0x192   :  { %8180 = vst [vmem:[#allocation8_spill] sm:$0xff] %v7372_v25  ;;  %v2453_v25 = vadd.f32 %v7295_v6, %v801_v16  ;;  %v5883_v6 = vld [vmem:[%s8172_s3 + $0x68] sm:$0xff]  }
 0x193   :  { %5161 = vmatprep.subr.bf16.mxu0 %v5883_v6 }
 0x194   :  { %v2506_v35 = vadd.f32 %v7307_v55, %v2453_v25  ;;  %5162 = vmatpush3.bf16.msra.mxu0 %v5884_v52  ;;  %v2657_v55 = vadd.f32 %v2656_v18, %v2604_v12  ;;  %v2708_v25 = vadd.f32 %v7343_v9, %v2655_v54  ;;  %v5887_v9 = vld [vmem:[%s8172_s3 + $0x58] sm:$0xff]  }
 0x195   :  { %5163 = vmatprep.subr.bf16.mxu0 %v5885_v47 }
 0x196   :  { %v2559_v10 = vadd.f32 %v7325_v39, %v2506_v35  ;;  %v5886_v39 = vld [vmem:[%s8172_s3 + $0x20] sm:$0xff]   ;;  %v2608_v35 = vadd.f32 %v7327_v29, %v2555_v37  ;;  %v2710_v49 = vadd.f32 %v7345_v20, %v2657_v55 }
 0x198   :  { %v2612_v16 = vadd.f32 %v7331_v61, %v2559_v10  ;;  %5164 = vmatpush3.bf16.msra.mxu0 %v5886_v39  ;;  %v2661_v51 = vadd.f32 %v7351_v30, %v2608_v35  ;;  %v5888_v61 = vld [vmem:[%s8172_s3 + $0x18] sm:$0xff]  }
 0x199   :  { %5165 = vmatprep.subr.bf16.mxu0 %v5887_v9 }
 0x19c   :  { %5166 = vmatpush3.bf16.msra.mxu0 %v5888_v61 }
 0x19d   :  { %5167 = vmatprep.subr.bf16.mxu0 %v5889_v8 }
 0x1c2   :  { %v2760_v44 = vpop.f32.mrf.mxu0 }
 0x1c3   :  { %v7374_v53 = vpop.f32.mrf.mxu1  ;;  %v2761_v29 = vadd.f32 %v2760_v44, %v2708_v25 }
 0x1c4   :  { %v7376_v15 = vpop.f32.mrf.mxu0 }
 0x1c5   :  { %v7378_v0 = vpop.f32.mrf.mxu1  ;;  %v2763_v20 = vadd.f32 %v7376_v15, %v2710_v49  ;;  %v2714_v15 = vadd.f32 %v7353_v46, %v2661_v51  ;;  %v5890_v46 = vld [vmem:[%s8172_s3 + $0x10] sm:$0xff]  }
 0x1c6   :  { %v7381_v42 = vpop.f32.mrf.mxu0  ;;  %5168 = vmatpush3.bf16.msra.mxu0 %v5890_v46 }
 0x1c7   :  { %v7384_v23 = vpop.f32.mrf.mxu1 }
 0x1c8   :  { %v7388_v17 = vpop.f32.mrf.mxu0 }
 0x1c9   :  { %v7396_v63 = vpop.f32.mrf.mxu1 }
 0x1ca   :  { %8181 = vst [vmem:[#allocation9_spill] sm:$0xff] %v7396_v63  ;;  %v7402_v27 = vpop.f32.mrf.mxu0  ;;  %v2455_v63 = vadd.f32 %v7299_v11, %v805_v40  ;;  %v2606_v11 = vadd.f32 %v7323_v60, %v2553_v48 }
 0x1cb   :  { %v7404_v56 = vpop.f32.mrf.mxu1 }
 0x1cc   :  { %v7419_v38 = vpop.f32.mrf.mxu0  ;;  %v2508_v45 = vadd.f32 %v7311_v57, %v2455_v63  ;;  %v2659_v60 = vadd.f32 %v7347_v21, %v2606_v11  ;;  %v2563_v57 = vadd.f32 %v7333_v34, %v2510_v26  ;;  %v2512_v21 = vadd.f32 %v7317_v50, %v2459_v59 }
 0x1cd   :  { %v7421_v62 = vpop.f32.mrf.mxu1  ;;  %v2814_v63 = vadd.f32 %v7374_v53, %v2761_v29  ;;  %v2816_v53 = vadd.f32 %v7378_v0, %v2763_v20  ;;  %v8182_v0 = vld [vmem:[#allocation7_spill] sm:$0xff]  ;;  %v5893_v29 = vld [vmem:[%s8172_s3 + $0x40] sm:$0xff]  }
 0x1ce   :  { %v2561_v18 = vadd.f32 %v7329_v19, %v2508_v45  ;;  %v2774_v2 = vpop.f32.mrf.mxu0  ;;  %v2665_v19 = vadd.f32 %v7355_v7, %v2612_v16  ;;  %v2712_v34 = vadd.f32 %v7349_v31, %v2659_v60  ;;  %v2565_v31 = vadd.f32 %v7337_v36, %v2512_v21  ;;  %v8184_v16 = vld [vmem:[#allocation8_spill] sm:$0xff] }
 0x1cf   :  { %v7439_v40 = vpop.f32.mrf.mxu1  ;;  %v2616_v30 = vadd.f32 %v7339_v5, %v2563_v57 }
 0x1d0   :  { %v2614_v50 = vadd.f32 %v7335_v3, %v2561_v18  ;;  %v2776_v7 = vpop.f32.mrf.mxu0  ;;  %v2765_v1 = vadd.f32 %v7381_v42, %v2712_v34  ;;  %v2718_v36 = vadd.f32 %v7357_v32, %v2665_v19  ;;  %v2767_v42 = vadd.f32 %v7388_v17, %v2714_v15 }
 0x1d1   :  { %v7468_v44 = vpop.f32.mrf.mxu1  ;;  %v2669_v5 = vadd.f32 %v7363_v24, %v2616_v30  ;;  %v2618_v48 = vadd.f32 %v7341_v14, %v2565_v31  ;;  %v5891_v14 = vld [vmem:[%s8172_s3 + $0x48] sm:$0xff]  }
 0x1d2   :  { %v2667_v3 = vadd.f32 %v7359_v33, %v2614_v50  ;;  %v2771_v33 = vadd.f32 %v7402_v27, %v2718_v36  ;;  %v2818_v24 = vadd.f32 %v7384_v23, %v2765_v1  ;;  %v8183_v27 = vld [vmem:[#allocation9_spill] sm:$0xff]  ;;  %v5892_v23 = vld [vmem:[%s8172_s3 + $0x8] sm:$0xff]   ;;  %5169 = vmatprep.subr.bf16.mxu0 %v5891_v14 }
 0x1d3   :  { %v2671_v37 = vadd.f32 %v7367_v13, %v2618_v48  ;;  %v2722_v54 = vadd.f32 %v8182_v0, %v2669_v5  ;;  %v2820_v11 = vadd.f32 %v8183_v27, %v2767_v42  ;;  %5170 = vmatpush3.bf16.msra.mxu0 %v5892_v23  ;;  %v5895_v14 = vld [vmem:[%s8172_s3 + $0xf8] sm:$0xff]  }
 0x1d4   :  { %v2720_v12 = vadd.f32 %v7361_v28, %v2667_v3  ;;  %v2824_v13 = vadd.f32 %v7404_v56, %v2771_v33  ;;  %5171 = vmatprep.subr.bf16.mxu0 %v5893_v29  ;;  %v5896_v27 = vld [vmem:[%s8172_s3 + $0xb8] sm:$0xff]   ;;  %5191 = vmatprep.subr.bf16.mxu1 %v5895_v14 }
 0x1d5   :  { %v2775_v59 = vadd.f32 %v2774_v2, %v2722_v54  ;;  %v2724_v57 = vadd.f32 %v8184_v16, %v2671_v37  ;;  %v7533_v37 = vld [vmem:[#allocation4 + $0x58] sm:$0xff]  ;;  %5192 = vmatpush3.bf16.msra.mxu1 %v5896_v27 }
 0x1d6   :  { %v2773_v28 = vadd.f32 %v7419_v38, %v2720_v12  ;;  %v7531_v12 = vld [vmem:[#allocation4 + $0x40] sm:$0xff]  ;;  %v3331_v54 = vrot.slane %v7533_v37, 4  ;;  %3041 = vst.msk [vmem:[#allocation5 + $0x148] sm:$0xff] %vm2948_vm4, %v7533_v37 }
 0x1d7   :  { %v2777_v21 = vadd.f32 %v2776_v7, %v2724_v57  ;;  %v2828_v19 = vadd.f32 %v7439_v40, %v2775_v59  ;;  %v3325_v0 = vrot.slane %v7531_v12, 4  ;;  %3038 = vst.msk [vmem:[#allocation5 + $0xe0] sm:$0xff] %vm2948_vm4, %v7531_v12  ;;  %v5901_v59 = vld [vmem:[%s8172_s3 + $0xe0] sm:$0xff]   ;;  %v5905_v57 = vld [vmem:[%s8172_s3 + $0x178] sm:$0xff]  }
 0x1d8   :  { %v2826_v2 = vadd.f32 %v7421_v62, %v2773_v28  ;;  %v5894_v62 = vld [vmem:[%s8172_s3] sm:$0xff]  }
 0x1d9   :  { %v2830_v36 = vadd.f32 %v7468_v44, %v2777_v21  ;;  %5172 = vmatpush3.bf16.msra.mxu0 %v5894_v62 }
 0x1da   :  { %5225 = vmatprep.subr.bf16.mxu0 %v5905_v57 }
 0x202   :  { %v2866_v41 = vpop.f32.mrf.mxu0 }
 0x203   :  { %v2919_v58 = vpop.f32.mrf.mxu1  ;;  %v2867_v4 = vadd.f32 %v2866_v41, %v2814_v63 }
 0x204   :  { %v2868_v6 = vpop.f32.mrf.mxu0 }
 0x205   :  { %v2921_v32 = vpop.f32.mrf.mxu1  ;;  %v2920_v22 = vadd.f32 %v2919_v58, %v2867_v4  ;;  %v2869_v52 = vadd.f32 %v2868_v6, %v2816_v53  ;;  %v7519_v6 = vld [vmem:[#allocation4 + $0x10] sm:$0xff] }
 0x206   :  { %v2870_v17 = vpop.f32.mrf.mxu0  ;;  %3032 = vst.msk [vmem:[#allocation5 + $0x10] sm:$0xff] %vm2948_vm4, %v7519_v6 }
 0x207   :  { %v2923_v10 = vpop.f32.mrf.mxu1  ;;  %v2938_v55 = vmax.f32 %v2920_v22, 0.0  ;;  %v2922_v47 = vadd.f32 %v2921_v32, %v2869_v52  ;;  %v2871_v45 = vadd.f32 %v2870_v17, %v2818_v24  ;;  %v7521_v32 = vld [vmem:[#allocation4 + $0x28] sm:$0xff]  ;;  %v3318_v24 = vrot.slane %v7519_v6, 4 }
 0x208   :  { %v2872_v26 = vpop.f32.mrf.mxu0  ;;  %v3319_v22 = vrot.slane %v7521_v32, 4  ;;  %3035 = vst.msk [vmem:[#allocation5 + $0x78] sm:$0xff] %vm2948_vm4, %v7521_v32 }
 0x209   :  { %v2925_v39 = vpop.f32.mrf.mxu1  ;;  %v2939_v35 = vmax.f32 %v2922_v47, 0.0  ;;  %v2924_v25 = vadd.f32 %v2923_v10, %v2871_v45  ;;  %v2873_v60 = vadd.f32 %v2872_v26, %v2820_v11  ;;  %v2966_v18 = vrot.slane %v2938_v55, 4  ;;  %v5897_v11 = vld [vmem:[%s8172_s3 + $0xf0] sm:$0xff]   ;;  %v5899_v47 = vld [vmem:[%s8172_s3 + $0xe8] sm:$0xff]   ;;  %v5902_v26 = vld [vmem:[%s8172_s3 + $0xa0] sm:$0xff]  }
 0x20a   :  { %v2876_v49 = vpop.f32.mrf.mxu0  ;;  %v3320_v52 = vsel %vm295_vm3, %v3318_v24, %v3319_v22  ;;  %v3326_v17 = vsel %vm295_vm3, %v3319_v22, %v3325_v0  ;;  %v3332_v10 = vsel %vm295_vm3, %v3325_v0, %v3331_v54  ;;  %v5898_v55 = vld [vmem:[%s8172_s3 + $0xb0] sm:$0xff]   ;;  %5193 = vmatprep.subr.bf16.mxu1 %v5897_v11  ;;  %v5900_v45 = vld [vmem:[%s8172_s3 + $0xa8] sm:$0xff]   ;;  %v8185_v24 = vld [vmem:[#allocation6_spill] sm:$0xff] }
 0x20b   :  { %v2929_v51 = vpop.f32.mrf.mxu1  ;;  %v2940_v38 = vmax.f32 %v2924_v25, 0.0  ;;  %v2926_v9 = vadd.f32 %v2925_v39, %v2873_v60  ;;  %v2877_v56 = vadd.f32 %v2876_v49, %v2824_v13  ;;  %2972 = vrot.lane.b32.xlu0 %v2966_v18, %s6012_s19  ;;  %v2967_v20 = vrot.slane %v2939_v35, 4  ;;  %3356 = vst.msk [vmem:[#allocation5 + $0x60] sm:$0xff] %vm2948_vm4, %v3320_v52  ;;  %3359 = vst.msk [vmem:[#allocation5 + $0xc8] sm:$0xff] %vm2948_vm4, %v3326_v17  ;;  %v5903_v60 = vld [vmem:[%s8172_s3 + $0xd8] sm:$0xff]  }
 0x20c   :  { %v2878_v61 = vpop.f32.mrf.mxu0  ;;  %3362 = vst.msk [vmem:[#allocation5 + $0x130] sm:$0xff] %vm2948_vm4, %v3332_v10  ;;  %5194 = vmatpush3.bf16.msra.mxu1 %v5898_v55  ;;  %v5907_v11 = vld [vmem:[%s8172_s3 + $0x138] sm:$0xff]  }
 0x20d   :  { %v2931_v34 = vpop.f32.mrf.mxu1  ;;  %v2968_v50 = vrot.slane %v2940_v38, 4  ;;  %v2941_v31 = vmax.f32 %v2926_v9, 0.0  ;;  %v2930_v30 = vadd.f32 %v2929_v51, %v2877_v56  ;;  %v2879_v1 = vadd.f32 %v2878_v61, %v2826_v2  ;;  %5195 = vmatprep.subr.bf16.mxu1 %v5899_v47 }
 0x20e   :  { %v2880_v15 = vpop.f32.mrf.mxu0  ;;  %v7590_v38 = vrot.slane %v7453_v43, 1  ;;  %v7593_v9 = vrot.slane %v7453_v43, 2 }
 0x20f   :  { %v2933_v63 = vpop.f32.mrf.mxu1  ;;  %v2881_v8 = vadd.f32 %v2880_v15, %v2828_v19  ;;  %2974 = vrot.lane.b32.xlu0 %v2967_v20, %s6012_s19  ;;  %v2970_v7 = vrot.slane %v2941_v31, 4  ;;  %v2969_v40 = vsel %vm295_vm3, %v2966_v18, %v2968_v50  ;;  %v2942_v5 = vmax.f32 %v2930_v30, 0.0  ;;  %v5904_v18 = vld [vmem:[%s8172_s3 + $0x98] sm:$0xff]  }
 0x210   :  { %v2882_v3 = vpop.f32.mrf.mxu0  ;;  %2976 = vrot.lane.b32.xlu1 %v2969_v40, %s6012_s19  ;;  %v2932_v58 = vadd.f32 %v2931_v34, %v2879_v1  ;;  %5196 = vmatpush3.bf16.msra.mxu1 %v5900_v45  ;;  %v5906_v34 = vld [vmem:[%s8172_s3 + $0xd0] sm:$0xff]  }
 0x211   :  { %v2934_v41 = vadd.f32 %v2933_v63, %v2881_v8  ;;  %v2883_v46 = vadd.f32 %v2882_v3, %v2830_v36  ;;  %v2935_v53 = vpop.f32.mrf.mxu1  ;;  %v2971_v42 = vsel %vm295_vm3, %v2967_v20, %v2970_v7  ;;  %5197 = vmatprep.subr.bf16.mxu1 %v5901_v59  ;;  %v5908_v20 = vld [vmem:[%s8172_s3 + $0x90] sm:$0xff]  }
 0x212   :  { %v2943_v48 = vmax.f32 %v2932_v58, 0.0 }
 0x213   :  { %2996 = vrot.lane.b32.xlu0 %v2942_v5, %s6012_s19  ;;  %v2944_v4 = vmax.f32 %v2934_v41, 0.0  ;;  %v2936_v33 = vadd.f32 %v2935_v53, %v2883_v46 }
 0x214   :  { %2978 = vrot.lane.b32.xlu1 %v2971_v42, %s6012_s19  ;;  %5198 = vmatpush3.bf16.msra.mxu1 %v5902_v26 }
 0x215   :  { %v2945_v44 = vmax.f32 %v2936_v33, 0.0  ;;  %5199 = vmatprep.subr.bf16.mxu1 %v5903_v60  ;;  %v5914_v60 = vld [vmem:[%s8172_s3 + $0xc0] sm:$0xff]  }
 0x217   :  { %3000 = vrot.lane.b32.xlu0 %v2944_v4, %s6012_s19  ;;  %v5910_v4 = vld [vmem:[%s8172_s3 + $0xc8] sm:$0xff]  }
 0x218   :  { %2998 = vrot.lane.b32.xlu1 %v2943_v48, %s6012_s19  ;;  %5200 = vmatpush3.bf16.msra.mxu1 %v5904_v18  ;;  %v5912_v48 = vld [vmem:[%s8172_s3 + $0x88] sm:$0xff]   ;;  %v5916_v18 = vld [vmem:[%s8172_s3 + $0x80] sm:$0xff]  }
 0x219   :  { %5201 = vmatprep.subr.bf16.mxu1 %v5906_v34 }
 0x21c   :  { %3002 = vrot.lane.b32.xlu1 %v2945_v44, %s6012_s19  ;;  %5202 = vmatpush3.bf16.msra.mxu1 %v5908_v20  ;;  %v5913_v20 = vld [vmem:[%s8172_s3 + $0x168] sm:$0xff]  }
 0x21d   :  { %5203 = vmatprep.subr.bf16.mxu1 %v5910_v4 }
 0x220   :  { %5204 = vmatpush3.bf16.msra.mxu1 %v5912_v48 }
 0x221   :  { %5205 = vmatprep.subr.bf16.mxu1 %v5914_v60 }
 0x224   :  { %5206 = vmatpush3.bf16.msra.mxu1 %v5916_v18  ;;  %v5925_v18 = vld [vmem:[%s8172_s3 + $0x150] sm:$0xff]  }
 0x27d   :  { %v2973_v23 = vpop.permute.xlu0 %2972 }
 0x27e   :  { %2987 = vst.msk [vmem:[#allocation4] sm:$0xf0] %vm2986_vm5, %v2973_v23 }
 0x281   :  { %v2975_v28 = vpop.permute.xlu0 %2974 }
 0x282   :  { %v2980_v13 = vsel %vm2948_vm4, %v2973_v23, %v2975_v28  ;;  %v2977_v39 = vpop.permute.xlu1 %2976 }
 0x283   :  { %2988 = vst [vmem:[#allocation4 + $0x8] sm:$0xf0] %v2980_v13  ;;  %2990 = vst.msk [vmem:[#allocation4 + $0x18] sm:$0xff] %vm2989_vm6, %v2977_v39  ;;  %v5909_v13 = vld [vmem:[%s8172_s3 + $0x170] sm:$0xff]  }
 0x285   :  { %v2997_v35 = vpop.permute.xlu0 %2996  ;;  %v7573_v25 = vld [vmem:[#allocation4] sm:$0xff] }
 0x286   :  { %3010 = vst.msk [vmem:[#allocation4 + $0x48] sm:$0xff] %vm2989_vm6, %v2997_v35  ;;  %v2979_v16 = vpop.permute.xlu1 %2978  ;;  %v3061_v29 = vrot.slane %v7573_v25, 1  ;;  %v3158_v2 = vrot.slane %v7573_v25, 2  ;;  %v3312_v21 = vrot.slane %v7573_v25, 4 }
 0x287   :  { %v7586_v49 = vsel %vm2948_vm4, %v2977_v39, %v2979_v16 }
 0x288   :  { %v3162_v56 = vrot.slane %v7586_v49, 2  ;;  %v3065_v61 = vrot.slane %v7586_v49, 1  ;;  %v3316_v1 = vrot.slane %v7586_v49, 4 }
 0x289   :  { %v3001_v51 = vpop.permute.xlu0 %3000 }
 0x28a   :  { %3013 = vst.msk [vmem:[#allocation4 + $0x60] sm:$0xf] %vm3012_vm7, %v3001_v51  ;;  %v7599_v19 = vld [vmem:[#allocation4 + $0x8] sm:$0xff]  ;;  %v2999_v50 = vpop.permute.xlu1 %2998  ;;  %v7608_v31 = vld [vmem:[#allocation4 + $0x18] sm:$0xff]  ;;  %v7627_v58 = vsel %vm173_vm1, %v3162_v56, %v7593_v9  ;;  %v3073_v0 = vsel %vm112_vm0, %v3065_v61, %v7590_v38  ;;  %v3324_v14 = vsel %vm295_vm3, %v3316_v1, %v8185_v24 }
 0x28b   :  { %v3064_v30 = vrot.slane %v7599_v19, 1  ;;  %v3161_v15 = vrot.slane %v7599_v19, 2  ;;  %v3315_v63 = vrot.slane %v7599_v19, 4  ;;  %v7615_v8 = vsel %vm2948_vm4, %v2997_v35, %v2999_v50  ;;  %3358 = vst [vmem:[#allocation5 + $0xc0] sm:$0xff] %v3324_v14 }
 0x28c   :  { %v3062_v62 = vrot.slane %v7608_v31, 1  ;;  %v3159_v7 = vrot.slane %v7608_v31, 2  ;;  %v3313_v3 = vrot.slane %v7608_v31, 4  ;;  %v3435_v27 = vpack.c.bf16 %v7586_v49, %v7599_v19 }
 0x28d   :  { %v3066_v40 = vsel %vm112_vm0, %v3064_v30, %v3065_v61  ;;  %v3163_v36 = vsel %vm173_vm1, %v3161_v15, %v3162_v56  ;;  %v3317_v5 = vsel %vm295_vm3, %v3315_v63, %v3316_v1  ;;  %v7623_v41 = vld [vmem:[#allocation4 + $0x48] sm:$0xff]  ;;  %v3434_v23 = vpack.c.bf16 %v7608_v31, %v7573_v25  ;;  %v7716_v15 = vld [vmem:[#allocation4 + $0x70] sm:$0xff] }
 0x28e   :  { %v3063_v46 = vsel %vm112_vm0, %v3061_v29, %v3062_v62  ;;  %v7631_v53 = vsel %vm173_vm1, %v3158_v2, %v3159_v7  ;;  %v3314_v42 = vsel %vm295_vm3, %v3312_v21, %v3313_v3  ;;  %3201 = vst [vmem:[#allocation5 + $0x30] sm:$0xff] %v3163_v36  ;;  %3355 = vst [vmem:[#allocation5 + $0x58] sm:$0xff] %v3317_v5  ;;  %3090 = vrot.lane.b32.xlu1 %v3066_v40, %s6012_s19  ;;  %v3003_v33 = vpop.permute.xlu1 %3002  ;;  %v5911_v2 = vld [vmem:[%s8172_s3 + $0x130] sm:$0xff]   ;;  %v5917_v5 = vld [vmem:[%s8172_s3 + $0x160] sm:$0xff]  }
 0x28f   :  { %3354 = vst [vmem:[#allocation5 + $0x50] sm:$0xff] %v3314_v42  ;;  %3088 = vrot.lane.b32.xlu0 %v3063_v46, %s6012_s19  ;;  %v7644_v44 = vsel %vm173_vm1, %v3159_v7, %v7593_v9  ;;  %v3322_v22 = vsel %vm295_vm3, %v3313_v3, %v8185_v24  ;;  %v3173_v52 = vrot.slane %v7623_v41, 2  ;;  %v3005_v17 = vsel %vm2948_vm4, %v3001_v51, %v3003_v33 }
 0x290   :  { %3357 = vst [vmem:[#allocation5 + $0xb8] sm:$0xff] %v3322_v22  ;;  %v3327_v10 = vrot.slane %v7623_v41, 4  ;;  %3014 = vst [vmem:[#allocation4 + $0x68] sm:$0xf] %v3005_v17  ;;  %v3071_v55 = vsel %vm112_vm0, %v3062_v62, %v7590_v38  ;;  %v3078_v28 = vrot.slane %v7615_v8, 1  ;;  %v3076_v59 = vrot.slane %v7623_v41, 1  ;;  %4321 = vmatprep.mubr.bf16.mxu0 %v3435_v27 }
 0x291   :  { %v7664_v47 = vsel %vm173_vm1, %v7593_v9, %v3173_v52  ;;  %v7666_v45 = vld [vmem:[#allocation4 + $0x60] sm:$0xff]  ;;  %4322 = vmatmul.mubr.bf16.vlgmr.msra.gmra.mxu0 %v3434_v23  ;;  %v3175_v16 = vrot.slane %v7615_v8, 2  ;;  %v3329_v57 = vrot.slane %v7615_v8, 4  ;;  %v3448_v51 = vpack.c.bf16 %v7615_v8, %v7453_v43  ;;  %v5915_v62 = vld [vmem:[%s8172_s3 + $0x128] sm:$0xff]   ;;  %3045 = vst.msk [vmem:[#allocation5 + $0x1b0] sm:$0xf] %vm3044_vm8, %v7716_v15 }
 0x292   :  { %v3328_v26 = vsel %vm295_vm3, %v8185_v24, %v3327_v10  ;;  %3096 = vrot.lane.b32.xlu1 %v3073_v0, %s6012_s19  ;;  %3042 = vst [vmem:[#allocation5 + $0x1a0] sm:$0xf] %v7666_v45  ;;  %v3179_v39 = vrot.slane %v7666_v45, 2  ;;  %v3333_v35 = vrot.slane %v7666_v45, 4  ;;  %5226 = vmatpush3.bf16.msra.mxu0 %v5907_v11  ;;  %v3079_v21 = vsel %vm112_vm0, %v7590_v38, %v3078_v28 }
 0x293   :  { %3094 = vrot.lane.b32.xlu0 %v3071_v55, %s6012_s19  ;;  %3360 = vst [vmem:[#allocation5 + $0x120] sm:$0xff] %v3328_v26  ;;  %v3176_v61 = vsel %vm173_vm1, %v7593_v9, %v3175_v16  ;;  %v3330_v34 = vsel %vm295_vm3, %v8185_v24, %v3329_v57  ;;  %4329 = vmatprep.mubr.bf16.mxu0 %v3448_v51  ;;  %v3082_v30 = vrot.slane %v7666_v45, 1  ;;  %v5919_v9 = vld [vmem:[%s8172_s3 + $0x1f8] sm:$0xff]   ;;  %v3337_v1 = vrot.slane %v7716_v15, 4 }
 0x294   :  { %v7693_v29 = vsel %vm173_vm1, %v3173_v52, %v3179_v39  ;;  %3212 = vst [vmem:[#allocation5 + $0x1c8] sm:$0xf] %v3179_v39  ;;  %v3334_v56 = vsel %vm295_vm3, %v3327_v10, %v3333_v35  ;;  %3366 = vst [vmem:[#allocation5 + $0x1f0] sm:$0xf] %v3333_v35  ;;  %5227 = vmatprep.subr.bf16.mxu0 %v5909_v13  ;;  %v3077_v50 = vsel %vm112_vm0, %v7590_v38, %v3076_v59  ;;  %v5921_v10 = vld [vmem:[%s8172_s3 + $0x158] sm:$0xff]  }
 0x295   :  { %3363 = vst [vmem:[#allocation5 + $0x188] sm:$0xff] %v3334_v56  ;;  %3207 = vst [vmem:[#allocation5 + $0x100] sm:$0xff] %v3176_v61  ;;  %v3447_v38 = vpack.c.bf16 %v7623_v41, %v7453_v43  ;;  %5259 = vmatprep.subr.bf16.mxu1 %v5919_v9  ;;  %v3164_v36 = vrot.slane %v7519_v6, 2  ;;  %v3083_v46 = vsel %vm112_vm0, %v3076_v59, %v3082_v30  ;;  %v3165_v24 = vrot.slane %v7521_v32, 2  ;;  %v5922_v35 = vld [vmem:[%s8172_s3 + $0x118] sm:$0xff]  }
 0x296   :  { %3361 = vst [vmem:[#allocation5 + $0x128] sm:$0xff] %v3330_v34  ;;  %3102 = vrot.lane.b32.xlu1 %v3079_v21, %s6012_s19  ;;  %5228 = vmatpush3.bf16.msra.mxu0 %v5911_v2  ;;  %v3338_v42 = vsel %vm295_vm3, %v3331_v54, %v3337_v1  ;;  %3368 = vst.msk [vmem:[#allocation5 + $0x200] sm:$0xf] %vm3044_vm8, %v3337_v1  ;;  %v5918_v54 = vld [vmem:[%s8172_s3 + $0x120] sm:$0xff]   ;;  %v3171_v22 = vrot.slane %v7531_v12, 2  ;;  %v3177_v52 = vrot.slane %v7533_v37, 2 }
 0x297   :  { %3100 = vrot.lane.b32.xlu0 %v3077_v50, %s6012_s19  ;;  %v7718_v63 = vld [vmem:[#allocation4 + $0x68] sm:$0xff]  ;;  %5229 = vmatprep.subr.bf16.mxu0 %v5913_v20  ;;  %3365 = vst.msk [vmem:[#allocation5 + $0x198] sm:$0xff] %vm2948_vm4, %v3338_v42  ;;  %v3452_v0 = vpack.c.bf16 %v7693_v29, %v7664_v47  ;;  %v3166_v17 = vsel %vm173_vm1, %v3164_v36, %v3165_v24  ;;  %v3216_v14 = vrot.slane %v7608_v31, 3  ;;  %v3215_v23 = vrot.slane %v7573_v25, 3  ;;  %v5926_v2 = vld [vmem:[%s8172_s3 + $0x110] sm:$0xff]   ;;  %v5934_v1 = vld [vmem:[%s8172_s3 + $0x100] sm:$0xff]  }
 0x298   :  { %v3084_v7 = vrot.slane %v7718_v63, 1  ;;  %v3181_v3 = vrot.slane %v7718_v63, 2  ;;  %v3335_v40 = vrot.slane %v7718_v63, 4  ;;  %3043 = vst [vmem:[#allocation5 + $0x1a8] sm:$0xf] %v7718_v63  ;;  %3202 = vst.msk [vmem:[#allocation5 + $0x38] sm:$0xff] %vm2948_vm4, %v3166_v17  ;;  %v3172_v27 = vsel %vm173_vm1, %v3165_v24, %v3171_v22 }
 0x299   :  { %4330 = vmatmul.mubr.bf16.gmra.mxu0 %v3447_v38  ;;  %v3178_v11 = vsel %vm173_vm1, %v3171_v22, %v3177_v52  ;;  %v3421_v55 = vld [vmem:[#allocation5 + $0x1a0] sm:$0xf]  ;;  %3205 = vst.msk [vmem:[#allocation5 + $0xa0] sm:$0xff] %vm2948_vm4, %v3172_v27  ;;  %v3067_v31 = vrot.slane %v7519_v6, 1  ;;  %v3068_v13 = vrot.slane %v7521_v32, 1  ;;  %v7773_v26 = vrot.slane %v7453_v43, 3 }
 0x29a   :  { %v3085_v4 = vsel %vm112_vm0, %v3078_v28, %v3084_v7  ;;  %v7744_v48 = vsel %vm173_vm1, %v3175_v16, %v3181_v3  ;;  %3213 = vst [vmem:[#allocation5 + $0x1d0] sm:$0xf] %v3181_v3  ;;  %v3336_v33 = vsel %vm295_vm3, %v3329_v57, %v3335_v40  ;;  %3367 = vst [vmem:[#allocation5 + $0x1f8] sm:$0xf] %v3335_v40  ;;  %5230 = vmatpush3.bf16.msra.mxu0 %v5915_v62  ;;  %v5937_v62 = vld [vmem:[%s8172_s3 + $0x278] sm:$0xff]   ;;  %v5944_v47 = vld [vmem:[%s8172_s3 + $0x188] sm:$0xff]  }
 0x29b   :  { %3106 = vrot.lane.b32.xlu0 %v3083_v46, %s6012_s19  ;;  %3364 = vst [vmem:[#allocation5 + $0x190] sm:$0xff] %v3336_v33  ;;  %3108 = vrot.lane.b32.xlu1 %v3085_v4, %s6012_s19  ;;  %3208 = vst.msk [vmem:[#allocation5 + $0x108] sm:$0xff] %vm2948_vm4, %v3178_v11  ;;  %v3074_v39 = vrot.slane %v7531_v12, 1  ;;  %v3217_v25 = vsel %vm234_vm2, %v3215_v23, %v3216_v14  ;;  %v3460_v60 = vpack.c.bf16 %v3421_v55, %v3421_v55  ;;  %v5949_v29 = vld [vmem:[%s8172_s3 + $0x260] sm:$0xff]  }
 0x29c   :  { %5231 = vmatprep.subr.bf16.mxu0 %v5917_v5  ;;  %v3225_v43 = vsel %vm234_vm2, %v3216_v14, %v7773_v26  ;;  %v3439_v16 = vpack.c.bf16 %v7644_v44, %v7631_v53  ;;  %v3183_v57 = vrot.slane %v7716_v15, 2  ;;  %v3069_v51 = vsel %vm112_vm0, %v3067_v31, %v3068_v13  ;;  %v5929_v44 = vld [vmem:[%s8172_s3 + $0x148] sm:$0xff]   ;;  %v5920_v31 = vld [vmem:[%s8172_s3 + $0x1b8] sm:$0xff]  }
 0x29d   :  { %v3075_v56 = vsel %vm112_vm0, %v3068_v13, %v3074_v39  ;;  %v3230_v53 = vrot.slane %v7623_v41, 3  ;;  %v3236_v61 = vrot.slane %v7666_v45, 3  ;;  %v3080_v34 = vrot.slane %v7533_v37, 1  ;;  %v5930_v41 = vld [vmem:[%s8172_s3 + $0x108] sm:$0xff]  }
 0x29e   :  { %5232 = vmatpush3.bf16.msra.mxu0 %v5918_v54  ;;  %v3184_v21 = vsel %vm173_vm1, %v3177_v52, %v3183_v57  ;;  %3214 = vst.msk [vmem:[#allocation5 + $0x1d8] sm:$0xf] %vm3044_vm8, %v3183_v57  ;;  %v3086_v20 = vrot.slane %v7716_v15, 1  ;;  %v3222_v3 = vrot.slane %v7521_v32, 3  ;;  %v3218_v40 = vrot.slane %v7599_v19, 3 }
 0x29f   :  { %3112 = vrot.lane.b32.xlu0 %v3082_v30, %s6012_s19  ;;  %3114 = vrot.lane.b32.xlu1 %v3084_v7, %s6012_s19  ;;  %v3422_v28 = vld [vmem:[#allocation5 + $0x1a8] sm:$0xf]  ;;  %3211 = vst.msk [vmem:[#allocation5 + $0x170] sm:$0xff] %vm2948_vm4, %v3184_v21  ;;  %v3231_v50 = vsel %vm234_vm2, %v7773_v26, %v3230_v53  ;;  %v3237_v45 = vsel %vm234_vm2, %v3230_v53, %v3236_v61  ;;  %v3221_v7 = vrot.slane %v7519_v6, 3  ;;  %v3219_v36 = vrot.slane %v7586_v49, 3 }
 0x2a0   :  { %v3461_v59 = vpack.c.bf16 %v3422_v28, %v3422_v28  ;;  %5233 = vmatprep.subr.bf16.mxu0 %v5921_v10  ;;  %v5933_v30 = vld [vmem:[%s8172_s3 + $0x140] sm:$0xff]   ;;  %v3081_v9 = vsel %vm112_vm0, %v3074_v39, %v3080_v34  ;;  %v3087_v38 = vsel %vm112_vm0, %v3080_v34, %v3086_v20  ;;  %v3228_v46 = vrot.slane %v7531_v12, 3 }
 0x2a1   :  { %v3223_v5 = vsel %vm234_vm2, %v3221_v7, %v3222_v3  ;;  %v3220_v42 = vsel %vm234_vm2, %v3218_v40, %v3219_v36  ;;  %v3234_v32 = vrot.slane %v7533_v37, 3  ;;  %v3227_v19 = vsel %vm234_vm2, %v3219_v36, %v7773_v26  ;;  %v5932_v34 = vld [vmem:[%s8172_s3 + $0x1a0] sm:$0xff]  }
 0x2a2   :  { %4337 = vmatprep.mubr.bf16.mxu0 %v3461_v59  ;;  %5234 = vmatpush3.bf16.msra.mxu0 %v5922_v35  ;;  %v3229_v6 = vsel %vm234_vm2, %v3222_v3, %v3228_v46  ;;  %v3232_v49 = vrot.slane %v7615_v8, 3  ;;  %v3240_v4 = vrot.slane %v7716_v15, 3  ;;  %v3238_v24 = vrot.slane %v7718_v63, 3  ;;  %v5936_v3 = vld [vmem:[%s8172_s3 + $0x198] sm:$0xff]  }
 0x2a3   :  { %3242 = vrot.lane.b32.xlu0 %v3217_v25, %s6012_s19  ;;  %3248 = vrot.lane.b32.xlu1 %v3225_v43, %s6012_s19  ;;  %v3235_v12 = vsel %vm234_vm2, %v3228_v46, %v3234_v32  ;;  %v5927_v43 = vld [vmem:[%s8172_s3 + $0x1e8] sm:$0xff]  }
 0x2a4   :  { %4338 = vmatmul.mubr.bf16.gmra.mxu0 %v3460_v60  ;;  %5235 = vmatprep.subr.bf16.mxu0 %v5925_v18  ;;  %v3233_v33 = vsel %vm234_vm2, %v7773_v26, %v3232_v49  ;;  %v3241_v37 = vsel %vm234_vm2, %v3234_v32, %v3240_v4  ;;  %v3239_v8 = vsel %vm234_vm2, %v3232_v49, %v3238_v24  ;;  %v5923_v26 = vld [vmem:[%s8172_s3 + $0x1f0] sm:$0xff]  }
 0x2a5   :  { %4433 = vmatprep.mubr.bf16.mxu0 %v3439_v16  ;;  %v5924_v60 = vld [vmem:[%s8172_s3 + $0x1b0] sm:$0xff]  }
 0x2a6   :  { %5236 = vmatpush3.bf16.msra.mxu0 %v5926_v2  ;;  %v5928_v2 = vld [vmem:[%s8172_s3 + $0x1a8] sm:$0xff]   ;;  %v5941_v32 = vld [vmem:[%s8172_s3 + $0x270] sm:$0xff]  }
 0x2a7   :  { %3092 = vrot.lane.b32.xlu0 %v3069_v51, %s6012_s19  ;;  %3098 = vrot.lane.b32.xlu1 %v3075_v56, %s6012_s19 }
 0x2a8   :  { %5237 = vmatprep.subr.bf16.mxu0 %v5929_v44  ;;  %v5931_v44 = vld [vmem:[%s8172_s3 + $0x1e0] sm:$0xff]  }
 0x2aa   :  { %5238 = vmatpush3.bf16.msra.mxu0 %v5930_v41 }
 0x2ab   :  { %3254 = vrot.lane.b32.xlu0 %v3231_v50, %s6012_s19  ;;  %3260 = vrot.lane.b32.xlu1 %v3237_v45, %s6012_s19  ;;  %v5935_v50 = vld [vmem:[%s8172_s3 + $0x1d8] sm:$0xff]  }
 0x2ac   :  { %5239 = vmatprep.subr.bf16.mxu0 %v5933_v30 }
 0x2ae   :  { %5240 = vmatpush3.bf16.msra.mxu0 %v5934_v1 }
 0x2af   :  { %3104 = vrot.lane.b32.xlu0 %v3081_v9, %s6012_s19  ;;  %3110 = vrot.lane.b32.xlu1 %v3087_v38, %s6012_s19 }
 0x2b0   :  { %5293 = vmatprep.subr.bf16.mxu0 %v5937_v62  ;;  %v5939_v62 = vld [vmem:[%s8172_s3 + $0x238] sm:$0xff]  }
 0x2b3   :  { %3266 = vrot.lane.b32.xlu0 %v3236_v61, %s6012_s19  ;;  %3116 = vrot.lane.b32.xlu1 %v3086_v20, %s6012_s19 }
 0x2b7   :  { %3244 = vrot.lane.b32.xlu0 %v3220_v42, %s6012_s19  ;;  %3246 = vrot.lane.b32.xlu1 %v3223_v5, %s6012_s19  ;;  %v5938_v42 = vld [vmem:[%s8172_s3 + $0x1d0] sm:$0xff]  }
 0x2bb   :  { %3250 = vrot.lane.b32.xlu0 %v3227_v19, %s6012_s19  ;;  %3252 = vrot.lane.b32.xlu1 %v3229_v6, %s6012_s19  ;;  %v5943_v19 = vld [vmem:[%s8172_s3 + $0x230] sm:$0xff]  }
 0x2bf   :  { %3256 = vrot.lane.b32.xlu0 %v3233_v33, %s6012_s19  ;;  %3258 = vrot.lane.b32.xlu1 %v3235_v12, %s6012_s19  ;;  %v5940_v12 = vld [vmem:[%s8172_s3 + $0x190] sm:$0xff]  }
 0x2c3   :  { %3262 = vrot.lane.b32.xlu0 %v3239_v8, %s6012_s19  ;;  %3264 = vrot.lane.b32.xlu1 %v3241_v37, %s6012_s19  ;;  %v5942_v37 = vld [vmem:[%s8172_s3 + $0x1c8] sm:$0xff]  }
 0x2c7   :  { %3268 = vrot.lane.b32.xlu0 %v3238_v24, %s6012_s19  ;;  %3270 = vrot.lane.b32.xlu1 %v3240_v4, %s6012_s19  ;;  %v5945_v4 = vld [vmem:[%s8172_s3 + $0x268] sm:$0xff]  }
 0x300   :  { %v3091_v15 = vpop.permute.xlu1 %3090 }
 0x301   :  { %v3089_v54 = vpop.permute.xlu0 %3088 }
 0x302   :  { %3143 = vst.msk [vmem:[#allocation5 + $0x10] sm:$0xff] %vm2989_vm6, %v3089_v54  ;;  %v3118_v63 = vsel %vm2948_vm4, %v3089_v54, %v3091_v15 }
 0x304   :  { %v3097_v22 = vpop.permute.xlu1 %3096 }
 0x305   :  { %v3095_v52 = vpop.permute.xlu0 %3094 }
 0x306   :  { %3146 = vst.msk [vmem:[#allocation5 + $0x78] sm:$0xff] %vm2989_vm6, %v3095_v52  ;;  %v3120_v17 = vsel %vm2948_vm4, %v3095_v52, %v3097_v22  ;;  %v5946_v52 = vld [vmem:[%s8172_s3 + $0x1c0] sm:$0xff]  }
 0x307   :  { %v3437_v10 = vpack.c.bf16 %v3120_v17, %v3118_v63  ;;  %v5947_v63 = vld [vmem:[%s8172_s3 + $0x228] sm:$0xff]  }
 0x308   :  { %v7863_v14 = vpop.permute.xlu1 %3102 }
 0x309   :  { %v3101_v27 = vpop.permute.xlu0 %3100  ;;  %4377 = vmatprep.mubr.bf16.mxu1 %v3437_v10  ;;  %v3371_v23 = vld [vmem:[#allocation5 + $0x10] sm:$0xff] }
 0x30a   :  { %3149 = vst.msk [vmem:[#allocation5 + $0xe0] sm:$0xff] %vm2989_vm6, %v3101_v27  ;;  %v3122_v11 = vsel %vm2948_vm4, %v3101_v27, %v7863_v14 }
 0x30d   :  { %v3107_v55 = vpop.permute.xlu0 %3106  ;;  %v3384_v28 = vld [vmem:[#allocation5 + $0x78] sm:$0xff]  ;;  %v7872_v13 = vpop.permute.xlu1 %3108 }
 0x30e   :  { %3152 = vst.msk [vmem:[#allocation5 + $0x148] sm:$0xff] %vm2989_vm6, %v3107_v55  ;;  %v3436_v59 = vpack.c.bf16 %v3384_v28, %v3371_v23  ;;  %v3124_v39 = vsel %vm2948_vm4, %v3107_v55, %v7872_v13  ;;  %v5953_v55 = vld [vmem:[%s8172_s3 + $0x258] sm:$0xff]  }
 0x30f   :  { %v3450_v35 = vpack.c.bf16 %v3124_v39, %v3122_v11  ;;  %v5948_v11 = vld [vmem:[%s8172_s3 + $0x180] sm:$0xff]  }
 0x310   :  { %4378 = vmatmul.mubr.bf16.vlgmr.msra.gmra.mxu1 %v3436_v59  ;;  %v3375_v59 = vld [vmem:[#allocation5 + $0x30] sm:$0xff] }
 0x311   :  { %v3113_v25 = vpop.permute.xlu0 %3112  ;;  %5260 = vmatpush3.bf16.msra.mxu1 %v5920_v31  ;;  %v7883_v18 = vpop.permute.xlu1 %3114  ;;  %4385 = vmatprep.mubr.bf16.mxu1 %v3450_v35  ;;  %v3397_v51 = vld [vmem:[#allocation5 + $0xe0] sm:$0xff] }
 0x312   :  { %3155 = vst.msk [vmem:[#allocation5 + $0x1b0] sm:$0xf] %vm3012_vm7, %v3113_v25  ;;  %5261 = vmatprep.subr.bf16.mxu1 %v5923_v26  ;;  %v3126_v16 = vsel %vm2948_vm4, %v3113_v25, %v7883_v18  ;;  %v5951_v31 = vld [vmem:[%s8172_s3 + $0x2f8] sm:$0xff]  }
 0x313   :  { %3156 = vst [vmem:[#allocation5 + $0x1b8] sm:$0xf] %v3126_v16  ;;  %v5954_v35 = vld [vmem:[%s8172_s3 + $0x218] sm:$0xff]   ;;  %v3440_v16 = vpack.c.bf16 %v7627_v58, %v3375_v59  ;;  %v5958_v58 = vld [vmem:[%s8172_s3 + $0x210] sm:$0xff]  }
 0x315   :  { %v7890_v57 = vpop.permute.xlu0 %3242  ;;  %5262 = vmatpush3.bf16.msra.mxu1 %v5924_v60  ;;  %v3410_v56 = vld [vmem:[#allocation5 + $0x148] sm:$0xff]  ;;  %v7897_v21 = vpop.permute.xlu1 %3248  ;;  %v5952_v60 = vld [vmem:[%s8172_s3 + $0x2b8] sm:$0xff]  }
 0x316   :  { %3297 = vst.msk [vmem:[#allocation5 + $0x38] sm:$0xff] %vm2989_vm6, %v7890_v57  ;;  %5263 = vmatprep.subr.bf16.mxu1 %v5927_v43  ;;  %v3449_v53 = vpack.c.bf16 %v3410_v56, %v3397_v51  ;;  %3300 = vst.msk [vmem:[#allocation5 + $0xa0] sm:$0xff] %vm2989_vm6, %v7897_v21 }
 0x318   :  { %4386 = vmatmul.mubr.bf16.gmra.mxu1 %v3449_v53  ;;  %v5957_v53 = vld [vmem:[%s8172_s3 + $0x250] sm:$0xff]  }
 0x319   :  { %v3093_v61 = vpop.permute.xlu0 %3092  ;;  %5264 = vmatpush3.bf16.msra.mxu1 %v5928_v2  ;;  %v3099_v41 = vpop.permute.xlu1 %3098  ;;  %v3423_v9 = vld [vmem:[#allocation5 + $0x1b0] sm:$0xf] }
 0x31a   :  { %v3119_v20 = vsel %vm2948_vm4, %v3091_v15, %v3093_v61  ;;  %5265 = vmatprep.subr.bf16.mxu1 %v5931_v44  ;;  %v3121_v30 = vsel %vm2948_vm4, %v3097_v22, %v3099_v41  ;;  %v3424_v45 = vld [vmem:[#allocation5 + $0x1b8] sm:$0xf]  ;;  %v3462_v5 = vpack.c.bf16 %v3423_v9, %v3423_v9  ;;  %v3426_v15 = vld [vmem:[#allocation5 + $0x1c8] sm:$0xf] }
 0x31b   :  { %v3463_v38 = vpack.c.bf16 %v3424_v45, %v3424_v45  ;;  %v3438_v1 = vpack.c.bf16 %v3121_v30, %v3119_v20  ;;  %v3465_v17 = vpack.c.bf16 %v3426_v15, %v3426_v15  ;;  %v5961_v20 = vld [vmem:[%s8172_s3 + $0x248] sm:$0xff]  }
 0x31c   :  { %v5959_v30 = vld [vmem:[%s8172_s3 + $0x2e8] sm:$0xff]  }
 0x31d   :  { %v7915_v7 = vpop.permute.xlu0 %3254  ;;  %5266 = vmatpush3.bf16.msra.mxu1 %v5932_v34  ;;  %v3376_v40 = vld [vmem:[#allocation5 + $0x38] sm:$0xff]  ;;  %4393 = vmatprep.mubr.bf16.mxu1 %v3463_v38  ;;  %v7922_v36 = vpop.permute.xlu1 %3260  ;;  %v3389_v46 = vld [vmem:[#allocation5 + $0xa0] sm:$0xff]  ;;  %v5962_v38 = vld [vmem:[%s8172_s3 + $0x208] sm:$0xff]  }
 0x31e   :  { %3303 = vst.msk [vmem:[#allocation5 + $0x108] sm:$0xff] %vm2989_vm6, %v7915_v7  ;;  %5267 = vmatprep.subr.bf16.mxu1 %v5935_v50  ;;  %3306 = vst.msk [vmem:[#allocation5 + $0x170] sm:$0xff] %vm2989_vm6, %v7922_v36  ;;  %v3441_v6 = vpack.c.bf16 %v3389_v46, %v3376_v40  ;;  %4434 = vmatmul.mubr.bf16.vlgmr.msra.gmra.mxu0 %v3438_v1  ;;  %v5956_v34 = vld [vmem:[%s8172_s3 + $0x2b0] sm:$0xff]   ;;  %v5963_v46 = vld [vmem:[%s8172_s3 + $0x2e0] sm:$0xff]  }
 0x31f   :  { %5294 = vmatpush3.bf16.msra.mxu0 %v5939_v62  ;;  %4441 = vmatprep.mubr.bf16.mxu0 %v3452_v0  ;;  %v3401_v62 = vld [vmem:[#allocation5 + $0x100] sm:$0xff] }
 0x320   :  { %4394 = vmatmul.mubr.bf16.gmra.mxu1 %v3462_v5  ;;  %5295 = vmatprep.subr.bf16.mxu0 %v5941_v32  ;;  %v3453_v5 = vpack.c.bf16 %v7744_v48, %v3401_v62  ;;  %v5964_v48 = vld [vmem:[%s8172_s3 + $0x2a0] sm:$0xff]  }
 0x321   :  { %v3105_v49 = vpop.permute.xlu0 %3104  ;;  %5268 = vmatpush3.bf16.msra.mxu1 %v5936_v3  ;;  %4489 = vmatprep.mubr.bf16.mxu1 %v3441_v6  ;;  %v3111_v24 = vpop.permute.xlu1 %3110 }
 0x322   :  { %v3123_v33 = vsel %vm2948_vm4, %v7863_v14, %v3105_v49  ;;  %5269 = vmatprep.subr.bf16.mxu1 %v5938_v42  ;;  %v3125_v8 = vsel %vm2948_vm4, %v7872_v13, %v3111_v24  ;;  %v5950_v14 = vld [vmem:[%s8172_s3 + $0x220] sm:$0xff]   ;;  %v3427_v24 = vld [vmem:[#allocation5 + $0x1d0] sm:$0xf] }
 0x323   :  { %5296 = vmatpush3.bf16.msra.mxu0 %v5943_v19  ;;  %v3451_v54 = vpack.c.bf16 %v3125_v8, %v3123_v33  ;;  %v5965_v42 = vld [vmem:[%s8172_s3 + $0x240] sm:$0xff]   ;;  %v5968_v8 = vld [vmem:[%s8172_s3 + $0x298] sm:$0xff]  }
 0x324   :  { %5297 = vmatprep.subr.bf16.mxu0 %v5945_v4  ;;  %v5967_v4 = vld [vmem:[%s8172_s3 + $0x2d8] sm:$0xff]  }
 0x325   :  { %v7954_v22 = vpop.permute.xlu0 %3266  ;;  %5270 = vmatpush3.bf16.msra.mxu1 %v5940_v12  ;;  %v3117_v0 = vpop.permute.xlu1 %3116  ;;  %v3402_v26 = vld [vmem:[#allocation5 + $0x108] sm:$0xff]  ;;  %v3415_v39 = vld [vmem:[#allocation5 + $0x170] sm:$0xff] }
 0x326   :  { %3309 = vst.msk [vmem:[#allocation5 + $0x1d8] sm:$0xf] %vm3012_vm7, %v7954_v22  ;;  %5271 = vmatprep.subr.bf16.mxu1 %v5942_v37  ;;  %v3127_v10 = vsel %vm2948_vm4, %v7883_v18, %v3117_v0  ;;  %4442 = vmatmul.mubr.bf16.gmra.mxu0 %v3451_v54  ;;  %v3454_v56 = vpack.c.bf16 %v3415_v39, %v3402_v26  ;;  %v3380_v37 = vld [vmem:[#allocation5 + $0x58] sm:$0xff]  ;;  %v5974_v0 = vld [vmem:[%s8172_s3 + $0x318] sm:$0xff]   ;;  %v5978_v26 = vld [vmem:[%s8172_s3 + $0x300] sm:$0xff]  }
 0x327   :  { %3157 = vst [vmem:[#allocation5 + $0x1c0] sm:$0xf] %v3127_v10  ;;  %5298 = vmatpush3.bf16.msra.mxu0 %v5947_v63  ;;  %4449 = vmatprep.mubr.bf16.mxu0 %v3465_v17  ;;  %v8054_v54 = vld [vmem:[#allocation2 + $0x30] sm:$0xff]  ;;  %v3466_v63 = vpack.c.bf16 %v3427_v24, %v3427_v24  ;;  %v5971_v10 = vld [vmem:[%s8172_s3 + $0x2c8] sm:$0xff]  }
 0x328   :  { %5299 = vmatprep.subr.bf16.mxu0 %v5949_v29  ;;  %v5969_v29 = vld [vmem:[%s8172_s3 + $0x2d0] sm:$0xff]   ;;  %v3379_v39 = vld [vmem:[#allocation5 + $0x50] sm:$0xff] }
 0x329   :  { %v3245_v27 = vpop.permute.xlu0 %3244  ;;  %5272 = vmatpush3.bf16.msra.mxu1 %v5944_v47  ;;  %v3247_v28 = vpop.permute.xlu1 %3246  ;;  %v5970_v17 = vld [vmem:[%s8172_s3 + $0x290] sm:$0xff]  }
 0x32a   :  { %v7980_v23 = vsel %vm2948_vm4, %v7890_v57, %v3245_v27  ;;  %5273 = vmatprep.subr.bf16.mxu1 %v5946_v52  ;;  %v3273_v13 = vsel %vm2948_vm4, %v3245_v27, %v3247_v28  ;;  %v5955_v57 = vld [vmem:[%s8172_s3 + $0x2f0] sm:$0xff]   ;;  %v5973_v28 = vld [vmem:[%s8172_s3 + $0x2c0] sm:$0xff]  }
 0x32b   :  { %5300 = vmatpush3.bf16.msra.mxu0 %v5950_v14  ;;  %v5976_v14 = vld [vmem:[%s8172_s3 + $0x310] sm:$0xff]  }
 0x32c   :  { %5301 = vmatprep.subr.bf16.mxu0 %v5953_v55  ;;  %v5972_v55 = vld [vmem:[%s8172_s3 + $0x288] sm:$0xff]  }
 0x32d   :  { %v3251_v25 = vpop.permute.xlu0 %3250  ;;  %5274 = vmatpush3.bf16.msra.mxu1 %v5948_v11  ;;  %v3253_v43 = vpop.permute.xlu1 %3252  ;;  %v3428_v9 = vld [vmem:[#allocation5 + $0x1d8] sm:$0xf] }
 0x32e   :  { %v7994_v18 = vsel %vm2948_vm4, %v7897_v21, %v3251_v25  ;;  %5327 = vmatprep.subr.bf16.mxu1 %v5951_v31  ;;  %v3275_v51 = vsel %vm2948_vm4, %v3251_v25, %v3253_v43  ;;  %v3425_v2 = vld [vmem:[#allocation5 + $0x1c0] sm:$0xf]  ;;  %v3467_v32 = vpack.c.bf16 %v3428_v9, %v3428_v9  ;;  %v5977_v31 = vld [vmem:[%s8172_s3 + $0x308] sm:$0xff]   ;;  %v3406_v43 = vld [vmem:[#allocation5 + $0x128] sm:$0xff] }
 0x32f   :  { %v3464_v44 = vpack.c.bf16 %v3425_v2, %v3425_v2  ;;  %5302 = vmatpush3.bf16.msra.mxu0 %v5954_v35  ;;  %v3443_v21 = vpack.c.bf16 %v3275_v51, %v3273_v13  ;;  %v3442_v15 = vpack.c.bf16 %v7994_v18, %v7980_v23  ;;  %v5975_v13 = vld [vmem:[%s8172_s3 + $0x280] sm:$0xff]   ;;  %v3392_v35 = vld [vmem:[#allocation5 + $0xb8] sm:$0xff]  ;;  %v3419_v25 = vld [vmem:[#allocation5 + $0x190] sm:$0xff] }
 0x330   :  { %4490 = vmatmul.mubr.bf16.vlgmr.msra.gmra.mxu1 %v3440_v16  ;;  %5303 = vmatprep.subr.bf16.mxu0 %v5957_v53  ;;  %v3444_v18 = vpack.c.bf16 %v3392_v35, %v3379_v39  ;;  %v3458_v16 = vpack.c.bf16 %v3419_v25, %v3406_v43  ;;  %v3394_v51 = vld [vmem:[#allocation5 + $0xc8] sm:$0xff]  ;;  %v3431_v9 = vld [vmem:[#allocation5 + $0x1f0] sm:$0xf] }
 0x331   :  { %v3257_v61 = vpop.permute.xlu0 %3256  ;;  %4497 = vmatprep.mubr.bf16.mxu1 %v3454_v56  ;;  %5328 = vmatpush3.bf16.msra.mxu1 %v5952_v60  ;;  %v3259_v50 = vpop.permute.xlu1 %3258  ;;  %v3418_v2 = vld [vmem:[#allocation5 + $0x188] sm:$0xff]  ;;  %v3470_v62 = vpack.c.bf16 %v3431_v9, %v3431_v9 }
 0x332   :  { %v8015_v41 = vsel %vm2948_vm4, %v7915_v7, %v3257_v61  ;;  %4450 = vmatmul.mubr.bf16.gmra.mxu0 %v3464_v44  ;;  %5329 = vmatprep.subr.bf16.mxu1 %v5955_v57  ;;  %v3277_v45 = vsel %vm2948_vm4, %v3257_v61, %v3259_v50  ;;  %v5960_v7 = vld [vmem:[%s8172_s3 + $0x2a8] sm:$0xff]   ;;  %v3381_v57 = vld [vmem:[#allocation5 + $0x60] sm:$0xff]  ;;  %v3432_v44 = vld [vmem:[#allocation5 + $0x1f8] sm:$0xf] }
 0x333   :  { %4545 = vmatprep.mubr.bf16.mxu0 %v3443_v21  ;;  %5304 = vmatpush3.bf16.msra.mxu0 %v5958_v58  ;;  %v3446_v53 = vpack.c.bf16 %v3394_v51, %v3381_v57  ;;  %v3405_v21 = vld [vmem:[#allocation5 + $0x120] sm:$0xff] }
 0x334   :  { %5305 = vmatprep.subr.bf16.mxu0 %v5961_v20  ;;  %v3471_v20 = vpack.c.bf16 %v3432_v44, %v3432_v44 }
 0x335   :  { %v3263_v1 = vpop.permute.xlu0 %3262  ;;  %5330 = vmatpush3.bf16.msra.mxu1 %v5956_v34  ;;  %v3265_v40 = vpop.permute.xlu1 %3264  ;;  %v3457_v34 = vpack.c.bf16 %v3418_v2, %v3405_v21 }
 0x336   :  { %v3278_v3 = vsel %vm2948_vm4, %v7922_v36, %v3263_v1  ;;  %5331 = vmatprep.subr.bf16.mxu1 %v5959_v30  ;;  %v3279_v6 = vsel %vm2948_vm4, %v3263_v1, %v3265_v40  ;;  %v5966_v36 = vld [vmem:[%s8172_s3 + $0x200] sm:$0xff]   ;;  %v3407_v40 = vld [vmem:[#allocation5 + $0x130] sm:$0xff] }
 0x337   :  { %5306 = vmatpush3.bf16.msra.mxu0 %v5962_v38  ;;  %v3456_v47 = vpack.c.bf16 %v3279_v6, %v3277_v45  ;;  %v3455_v23 = vpack.c.bf16 %v3278_v3, %v8015_v41 }
 0x338   :  { %4498 = vmatmul.mubr.bf16.gmra.mxu1 %v3453_v5  ;;  %5307 = vmatprep.subr.bf16.mxu0 %v5965_v42  ;;  %v3420_v5 = vld [vmem:[#allocation5 + $0x198] sm:$0xff] }
 0x339   :  { %v3269_v19 = vpop.permute.xlu0 %3268  ;;  %4505 = vmatprep.mubr.bf16.mxu1 %v3467_v32  ;;  %5332 = vmatpush3.bf16.msra.mxu1 %v5960_v7  ;;  %v3271_v12 = vpop.permute.xlu1 %3270  ;;  %v3459_v6 = vpack.c.bf16 %v3420_v5, %v3407_v40 }
 0x33a   :  { %v3280_v49 = vsel %vm2948_vm4, %v7954_v22, %v3269_v19  ;;  %5333 = vmatprep.subr.bf16.mxu1 %v5963_v46  ;;  %v3281_v33 = vsel %vm2948_vm4, %v3269_v19, %v3271_v12  ;;  %v3393_v22 = vld [vmem:[#allocation5 + $0xc0] sm:$0xff] }
 0x33b   :  { %3310 = vst [vmem:[#allocation5 + $0x1e0] sm:$0xf] %v3280_v49  ;;  %3311 = vst [vmem:[#allocation5 + $0x1e8] sm:$0xf] %v3281_v33  ;;  %5308 = vmatpush3.bf16.msra.mxu0 %v5966_v36  ;;  %v3445_v52 = vpack.c.bf16 %v3393_v22, %v3380_v37 }
 0x33c   :  { %5368 = vmatprep.subr.bf16.mxu0 %v8054_v54 }
 0x33d   :  { %5334 = vmatpush3.bf16.msra.mxu1 %v5964_v48  ;;  %v3433_v48 = vld [vmem:[#allocation5 + $0x200] sm:$0xf] }
 0x33e   :  { %5335 = vmatprep.subr.bf16.mxu1 %v5967_v4  ;;  %4546 = vmatmul.mubr.bf16.vlgmr.msra.gmra.mxu0 %v3442_v15  ;;  %v3472_v12 = vpack.c.bf16 %v3433_v48, %v3433_v48  ;;  %v5045_v15 = vld [vmem:[%s8174_s4] ss:$0 sm:$0xff] }
 0x33f   :  { %4553 = vmatprep.mubr.bf16.mxu0 %v3456_v47  ;;  %5369 = vmatpush3.bf16.msra.mxu0 %v5974_v0 }
 0x340   :  { %4506 = vmatmul.mubr.bf16.gmra.mxu1 %v3466_v63  ;;  %5370 = vmatprep.subr.bf16.mxu0 %v8054_v54 }
 0x341   :  { %5336 = vmatpush3.bf16.msra.mxu1 %v5968_v8  ;;  %4601 = vmatprep.mubr.bf16.mxu1 %v3445_v52 }
 0x342   :  { %5337 = vmatprep.subr.bf16.mxu1 %v5969_v29  ;;  %v3430_v27 = vld [vmem:[#allocation5 + $0x1e8] sm:$0xf]  ;;  %v3429_v59 = vld [vmem:[#allocation5 + $0x1e0] sm:$0xf] }
 0x343   :  { %v3469_v11 = vpack.c.bf16 %v3430_v27, %v3430_v27  ;;  %5371 = vmatpush3.bf16.msra.mxu0 %v5976_v14  ;;  %v3468_v60 = vpack.c.bf16 %v3429_v59, %v3429_v59 }
 0x344   :  { %5372 = vmatprep.subr.bf16.mxu0 %v8054_v54 }
 0x345   :  { %5338 = vmatpush3.bf16.msra.mxu1 %v5970_v17 }
 0x346   :  { %5339 = vmatprep.subr.bf16.mxu1 %v5971_v10  ;;  %4554 = vmatmul.mubr.bf16.gmra.mxu0 %v3455_v23 }
 0x347   :  { %4561 = vmatprep.mubr.bf16.mxu0 %v3469_v11  ;;  %5373 = vmatpush3.bf16.msra.mxu0 %v5977_v31 }
 0x348   :  { %5374 = vmatprep.subr.bf16.mxu0 %v8054_v54 }
 0x349   :  { %5340 = vmatpush3.bf16.msra.mxu1 %v5972_v55 }
 0x34a   :  { %5341 = vmatprep.subr.bf16.mxu1 %v5973_v28 }
 0x34b   :  { %5375 = vmatpush3.bf16.msra.mxu0 %v5978_v26 }
 0x34d   :  { %5342 = vmatpush3.bf16.msra.mxu1 %v5975_v13 }
 0x34e   :  { %5388 = vmatprep.subr.bf16.mxu1 %v8054_v54  ;;  %4562 = vmatmul.mubr.bf16.gmra.mxu0 %v3468_v60 }
 0x34f   :  { %5376 = vmatprep.mubr.msk.bf16.mxu0 %vm6013_vm9, %v8054_v54 }
 0x350   :  { %4602 = vmatmul.mubr.bf16.vlgmr.msra.gmra.mxu1 %v3444_v18 }
 0x351   :  { %4609 = vmatprep.mubr.bf16.mxu1 %v3458_v16  ;;  %5392 = vmatpush3.bf16.msra.mxu1 %v5974_v0  ;;  %v5173_v56 = vpop.f32.mrf.mxu0 }
 0x352   :  { %5389 = vmatprep.subr.bf16.mxu1 %v8054_v54 }
 0x353   :  { %v5174_v58 = vpop.f32.mrf.mxu0 }
 0x354   :  { %v8095_v61 = vadd.f32 %v5174_v58, %v5173_v56 }
 0x355   :  { %5393 = vmatpush3.bf16.msra.mxu1 %v5976_v14  ;;  %v5176_v41 = vpop.f32.mrf.mxu0 }
 0x356   :  { %5390 = vmatprep.subr.bf16.mxu1 %v8054_v54  ;;  %5377 = vmatmul.mubr.msk.bf16.vlgmr.msra.gmra.mxu0 %vm2948_vm4, %v3446_v53 }
 0x357   :  { %v5177_v50 = vpop.f32.mrf.mxu0 }
 0x358   :  { %4610 = vmatmul.mubr.bf16.gmra.mxu1 %v3457_v34  ;;  %v8099_v30 = vadd.f32 %v5177_v50, %v5176_v41 }
 0x359   :  { %4617 = vmatprep.mubr.bf16.mxu1 %v3471_v20  ;;  %5394 = vmatpush3.bf16.msra.mxu1 %v5977_v31  ;;  %v5179_v45 = vpop.f32.mrf.mxu0 }
 0x35a   :  { %5391 = vmatprep.subr.bf16.mxu1 %v8054_v54 }
 0x35b   :  { %v5180_v38 = vpop.f32.mrf.mxu0 }
 0x35c   :  { %v5181_v1 = vadd.f32 %v5180_v38, %v5179_v45 }
 0x35d   :  { %5395 = vmatpush3.bf16.msra.mxu1 %v5978_v26  ;;  %v5182_v7 = vpop.f32.mrf.mxu0 }
 0x35e   :  { %v4332_v22 = vadd.f32 %v5181_v1, %v5045_v15 }
 0x35f   :  { %v5183_v3 = vpop.f32.mrf.mxu0 }
 0x360   :  { %4618 = vmatmul.mubr.bf16.gmra.mxu1 %v3470_v62  ;;  %v5184_v46 = vadd.f32 %v5183_v3, %v5182_v7 }
 0x361   :  { %5380 = vmatprep.mubr.msk.bf16.mxu1 %vm6013_vm9, %v8054_v54 }
 0x362   :  { %v4335_v52 = vadd.f32 %v5184_v46, %v5045_v15  ;;  %v4324_v46 = vadd.f32 %v8095_v61, %v5045_v15 }
 0x364   :  { %v5185_v42 = vpop.f32.mrf.mxu0 }
 0x366   :  { %v5186_v32 = vpop.f32.mrf.mxu0 }
 0x367   :  { %v5187_v36 = vadd.f32 %v5186_v32, %v5185_v42 }
 0x368   :  { %5381 = vmatmul.mubr.msk.bf16.vlgmr.msra.gmra.mxu1 %vm2948_vm4, %v3459_v6  ;;  %v5188_v19 = vpop.f32.mrf.mxu0 }
 0x369   :  { %5384 = vmatprep.mubr.msk.bf16.mxu1 %vm6013_vm9, %v8054_v54  ;;  %v4340_v23 = vadd.f32 %v5187_v36, %v5045_v15 }
 0x36a   :  { %v5189_v49 = vpop.f32.mrf.mxu0 }
 0x36b   :  { %v4327_v49 = vadd.f32 %v8099_v30, %v5045_v15 }
 0x370   :  { %5385 = vmatmul.mubr.msk.bf16.gmra.mxu1 %vm2948_vm4, %v3472_v12 }
 0x3d0   :  { %v5207_v4 = vpop.f32.mrf.mxu1 }
 0x3d2   :  { %v5208_v33 = vpop.f32.mrf.mxu1 }
 0x3d3   :  { %v5209_v40 = vadd.f32 %v5208_v33, %v5207_v4 }
 0x3d4   :  { %v5210_v24 = vpop.f32.mrf.mxu1 }
 0x3d5   :  { %v4380_v32 = vadd.f32 %v5209_v40, %v4324_v46 }
 0x3d6   :  { %v5211_v37 = vpop.f32.mrf.mxu1 }
 0x3d7   :  { %v5212_v36 = vadd.f32 %v5211_v37, %v5210_v24 }
 0x3d8   :  { %v5213_v8 = vpop.f32.mrf.mxu1 }
 0x3da   :  { %v5214_v63 = vpop.f32.mrf.mxu1 }
 0x3db   :  { %v5215_v47 = vadd.f32 %v5214_v63, %v5213_v8 }
 0x3dc   :  { %v5216_v29 = vpop.f32.mrf.mxu1 }
 0x3dd   :  { %v8111_v0 = vadd.f32 %v5215_v47, %v4332_v22 }
 0x3de   :  { %v5217_v54 = vpop.f32.mrf.mxu1  ;;  %v5241_v10 = vpop.f32.mrf.mxu0 }
 0x3df   :  { %v5218_v17 = vadd.f32 %v5217_v54, %v5216_v29  ;;  %v4383_v29 = vadd.f32 %v5212_v36, %v4327_v49 }
 0x3e0   :  { %v5219_v14 = vpop.f32.mrf.mxu1  ;;  %v5242_v11 = vpop.f32.mrf.mxu0 }
 0x3e1   :  { %v8113_v27 = vadd.f32 %v5218_v17, %v4335_v52  ;;  %v5243_v42 = vadd.f32 %v5242_v11, %v5241_v10 }
 0x3e2   :  { %v5220_v55 = vpop.f32.mrf.mxu1  ;;  %v5244_v31 = vpop.f32.mrf.mxu0 }
 0x3e3   :  { %v5221_v28 = vadd.f32 %v5220_v55, %v5219_v14  ;;  %v4436_v12 = vadd.f32 %v5243_v42, %v4380_v32 }
 0x3e4   :  { %v5222_v13 = vpop.f32.mrf.mxu1  ;;  %v5245_v26 = vpop.f32.mrf.mxu0 }
 0x3e5   :  { %v8115_v59 = vadd.f32 %v5221_v28, %v4340_v23  ;;  %v5246_v8 = vadd.f32 %v5245_v26, %v5244_v31 }
 0x3e6   :  { %v5223_v39 = vpop.f32.mrf.mxu1  ;;  %v8117_v35 = vpop.f32.mrf.mxu0 }
 0x3e7   :  { %v4439_v17 = vadd.f32 %v5246_v8, %v4383_v29 }
 0x3e8   :  { %v8119_v25 = vpop.f32.mrf.mxu0 }
 0x3ea   :  { %v8121_v60 = vpop.f32.mrf.mxu0 }
 0x3ec   :  { %v8123_v43 = vpop.f32.mrf.mxu0 }
 0x3ed   :  { %v5252_v46 = vadd.f32 %v8123_v43, %v8121_v60 }
 0x3f0   :  { %v5275_v18 = vpop.f32.mrf.mxu1 }
 0x3f2   :  { %v5276_v16 = vpop.f32.mrf.mxu1  ;;  %v8125_v57 = vpop.f32.mrf.mxu0 }
 0x3f3   :  { %v5277_v19 = vadd.f32 %v5276_v16, %v5275_v18 }
 0x3f4   :  { %v5278_v51 = vpop.f32.mrf.mxu1  ;;  %v8127_v56 = vpop.f32.mrf.mxu0 }
 0x3f5   :  { %v4492_v54 = vadd.f32 %v5277_v19, %v4436_v12 }
 0x3f6   :  { %v5279_v2 = vpop.f32.mrf.mxu1  ;;  %v5256_v53 = vpop.f32.mrf.mxu0 }
 0x3f7   :  { %v5280_v52 = vadd.f32 %v5279_v2, %v5278_v51 }
 0x3f8   :  { %v5281_v44 = vpop.f32.mrf.mxu1  ;;  %v5257_v58 = vpop.f32.mrf.mxu0 }
 0x3f9   :  { %v4495_v37 = vadd.f32 %v5280_v52, %v4439_v17 }
 0x3fa   :  { %v5282_v21 = vpop.f32.mrf.mxu1 }
 0x3fc   :  { %v8129_v34 = vpop.f32.mrf.mxu1 }
 0x3fe   :  { %v8131_v20 = vpop.f32.mrf.mxu1  ;;  %v5309_v41 = vpop.f32.mrf.mxu0 }
 0x3ff   :  { %v5286_v19 = vadd.f32 %v8131_v20, %v8129_v34 }
 0x400   :  { %v8133_v50 = vpop.f32.mrf.mxu1  ;;  %v5310_v45 = vpop.f32.mrf.mxu0 }
 0x401   :  { %v5311_v63 = vadd.f32 %v5310_v45, %v5309_v41  ;;  %v5249_v41 = vadd.f32 %v8119_v25, %v8117_v35  ;;  %v4447_v35 = vadd.f32 %v5252_v46, %v8113_v27  ;;  %v5255_v25 = vadd.f32 %v8127_v56, %v8125_v57 }
 0x402   :  { %v8135_v9 = vpop.f32.mrf.mxu1  ;;  %v5312_v38 = vpop.f32.mrf.mxu0 }
 0x403   :  { %v4548_v61 = vadd.f32 %v5311_v63, %v4492_v54  ;;  %v4444_v40 = vadd.f32 %v5249_v41, %v8111_v0  ;;  %v4503_v0 = vadd.f32 %v5286_v19, %v4447_v35  ;;  %v5289_v60 = vadd.f32 %v8135_v9, %v8133_v50 }
 0x404   :  { %v5290_v1 = vpop.f32.mrf.mxu1  ;;  %v5313_v62 = vpop.f32.mrf.mxu0  ;;  %v4452_v34 = vadd.f32 %v5255_v25, %v8115_v59 }
 0x405   :  { %v5314_v10 = vadd.f32 %v5313_v62, %v5312_v38  ;;  %v5283_v62 = vadd.f32 %v5282_v21, %v5281_v44 }
 0x406   :  { %v5291_v7 = vpop.f32.mrf.mxu1  ;;  %v5315_v3 = vpop.f32.mrf.mxu0  ;;  %v4508_v52 = vadd.f32 %v5289_v60, %v4452_v34 }
 0x407   :  { %v4551_v15 = vadd.f32 %v5314_v10, %v4495_v37  ;;  %v4500_v36 = vadd.f32 %v5283_v62, %v4444_v40 }
 0x408   :  { %v5316_v5 = vpop.f32.mrf.mxu0 }
 0x409   :  { %v5317_v42 = vadd.f32 %v5316_v5, %v5315_v3 }
 0x40a   :  { %v5318_v6 = vpop.f32.mrf.mxu0 }
 0x40b   :  { %v4556_v44 = vadd.f32 %v5317_v42, %v4500_v36 }
 0x40c   :  { %v5319_v48 = vpop.f32.mrf.mxu0 }
 0x40d   :  { %v5320_v21 = vadd.f32 %v5319_v48, %v5318_v6 }
 0x40e   :  { %v5321_v22 = vpop.f32.mrf.mxu0 }
 0x40f   :  { %v4559_v20 = vadd.f32 %v5320_v21, %v4503_v0 }
 0x410   :  { %v5343_v47 = vpop.f32.mrf.mxu1  ;;  %v5322_v4 = vpop.f32.mrf.mxu0 }
 0x412   :  { %v5344_v33 = vpop.f32.mrf.mxu1  ;;  %v5324_v11 = vpop.f32.mrf.mxu0 }
 0x413   :  { %v5345_v14 = vadd.f32 %v5344_v33, %v5343_v47  ;;  %v5323_v47 = vadd.f32 %v5322_v4, %v5321_v22 }
 0x414   :  { %v5346_v24 = vpop.f32.mrf.mxu1  ;;  %v5325_v55 = vpop.f32.mrf.mxu0 }
 0x415   :  { %v4604_v23 = vadd.f32 %v5345_v14, %v4548_v61  ;;  %v4564_v17 = vadd.f32 %v5323_v47, %v4508_v52 }
 0x416   :  { %v5347_v30 = vpop.f32.mrf.mxu1  ;;  %v4659_v31 = vpop.f32.mrf.mxu0 }
 0x417   :  { %v5348_v28 = vadd.f32 %v5347_v30, %v5346_v24  ;;  %v4660_v26 = vadd.f32 %v4659_v31, %v4604_v23 }
 0x418   :  { %v5349_v13 = vpop.f32.mrf.mxu1  ;;  %v5378_v39 = vpop.f32.mrf.mxu0 }
 0x419   :  { %v4607_v18 = vadd.f32 %v5348_v28, %v4551_v15  ;;  %v5149_v51 = vmul.f32 -1.442695, %v4660_v26 }
 0x41a   :  { %v5350_v16 = vpop.f32.mrf.mxu1  ;;  %v4662_v2 = vpop.f32.mrf.mxu0 }
 0x41b   :  { %5979 = vpow2.f32 %v5149_v51  ;;  %v4663_v58 = vadd.f32 %v4662_v2, %v4607_v18  ;;  %v5351_v49 = vadd.f32 %v5350_v16, %v5349_v13 }
 0x41c   :  { %v5352_v53 = vpop.f32.mrf.mxu1  ;;  %v5379_v45 = vpop.f32.mrf.mxu0 }
 0x41d   :  { %v5150_v1 = vmul.f32 -1.442695, %v4663_v58  ;;  %v4612_v3 = vadd.f32 %v5351_v49, %v4556_v44 }
 0x41e   :  { %v5353_v38 = vpop.f32.mrf.mxu1 }
 0x41f   :  { %5981 = vpow2.f32 %v5150_v1  ;;  %v5354_v43 = vadd.f32 %v5353_v38, %v5352_v53 }
 0x420   :  { %v5355_v7 = vpop.f32.mrf.mxu1 }
 0x421   :  { %v4615_v6 = vadd.f32 %v5354_v43, %v4559_v20 }
 0x422   :  { %v5356_v32 = vpop.f32.mrf.mxu1 }
 0x423   :  { %v5357_v57 = vadd.f32 %v5356_v32, %v5355_v7 }
 0x424   :  { %v5358_v12 = vpop.f32.mrf.mxu1 }
 0x425   :  { %v4620_v14 = vadd.f32 %v5357_v57, %v4564_v17 }
 0x426   :  { %v5359_v8 = vpop.f32.mrf.mxu1 }
 0x428   :  { %v4667_v5 = vpop.f32.mrf.mxu1  ;;  %v5980_v63 = vpop.eup %5979 }
 0x429   :  { %v4668_v29 = vadd.f32 %v4667_v5, %v4612_v3  ;;  %v4696_v27 = vadd.f32 1.0, %v5980_v63 }
 0x42a   :  { %v5382_v54 = vpop.f32.mrf.mxu1 }
 0x42b   :  { %v5151_v56 = vmul.f32 -1.442695, %v4668_v29  ;;  %5983 = vrcp.f32 %v4696_v27 }
 0x42c   :  { %v4670_v48 = vpop.f32.mrf.mxu1  ;;  %v5982_v33 = vpop.eup %5981 }
 0x42d   :  { %5985 = vpow2.f32 %v5151_v56  ;;  %v4671_v50 = vadd.f32 %v4670_v48, %v4615_v6  ;;  %v4697_v9 = vadd.f32 1.0, %v5982_v33 }
 0x42e   :  { %v5383_v61 = vpop.f32.mrf.mxu1 }
 0x42f   :  { %v5152_v10 = vmul.f32 -1.442695, %v4671_v50  ;;  %5987 = vrcp.f32 %v4697_v9 }
 0x430   :  { %v4675_v59 = vpop.f32.mrf.mxu1 }
 0x431   :  { %5989 = vpow2.f32 %v5152_v10  ;;  %v4676_v22 = vadd.f32 %v4675_v59, %v4620_v14 }
 0x432   :  { %v5386_v4 = vpop.f32.mrf.mxu1 }
 0x433   :  { %v5153_v11 = vmul.f32 -1.442695, %v4676_v22 }
 0x434   :  { %v4678_v24 = vpop.f32.mrf.mxu1 }
 0x435   :  { %5991 = vpow2.f32 %v5153_v11 }
 0x436   :  { %v5387_v37 = vpop.f32.mrf.mxu1 }
 0x438   :  { %v5984_v55 = vpop.eup %5983 }
 0x439   :  { %4712 = vst.msk [vmem:[%s8175_s5] sm:$0xff] %vm4711_vm10, %v5984_v55 }
 0x43a   :  { %v5986_v23 = vpop.eup %5985 }
 0x43b   :  { %v4698_v30 = vadd.f32 1.0, %v5986_v23 }
 0x43c   :  { %v5988_v15 = vpop.eup %5987 }
 0x43d   :  { %5993 = vrcp.f32 %v4698_v30  ;;  %4713 = vst.msk [vmem:[%s8175_s5 + $0x8] sm:$0xff] %vm4711_vm10, %v5988_v15 }
 0x43e   :  { %v5990_v28 = vpop.eup %5989 }
 0x43f   :  { %v4699_v31 = vadd.f32 1.0, %v5990_v28 }
 0x441   :  { %5995 = vrcp.f32 %v4699_v31 }
 0x442   :  { %v5992_v13 = vpop.eup %5991 }
 0x443   :  { %v4700_v26 = vadd.f32 1.0, %v5992_v13 }
 0x445   :  { %5997 = vrcp.f32 %v4700_v26 }
 0x44a   :  { %v5994_v39 = vpop.eup %5993 }
 0x44b   :  { %5154 = vst.msk [vmem:[%s8175_s5 + $0xc] sm:$0xf0] %vm4715_vm11, %v5994_v39 }
 0x44e   :  { %v5996_v18 = vpop.eup %5995 }
 0x44f   :  { %5155 = vst.msk [vmem:[%s8175_s5 + $0x14] sm:$0xff] %vm4711_vm10, %v5996_v18 }
 0x452   :  { %v5998_v16 = vpop.eup %5997 }
 0x453   :  { %5156 = vst.msk [vmem:[%s8175_s5 + $0x1c] sm:$0xf] %vm4718_vm12, %v5998_v16 }

</bundles_post_ra>
